<compile_context>
chip_gen: v7x
topology: tpu7x:2x2x1
jax: 0.10.0
libtpu: 0.0.40
codegen_flags: <defaults>
</compile_context>

<pallas_src>
import functools

import jax
import jax.numpy as jnp
from jax.experimental import pallas as pl
from jax.experimental.pallas import tpu as pltpu

LRELU_SLOPE = 0.2
IN_EPS = 1e-5      # PyTorch InstanceNorm2d default eps (affine=False, biased variance)
LANE = 128

# Per-sample HW*C element budget for the single-pass (fully resident) instance-norm path.
_NORM_RESIDENT_ELEMS = 512 * 1024


def _round_up(x, m):
    return -(-x // m) * m


def _vmem_limit_bytes():
    # v5e/v6e: 128 MiB VMEM, v7x: 64 MiB per TensorCore.  Use a generous limit where the
    # hardware allows it; fall back to a v7x-safe 48 MiB if the query is unavailable.
    try:
        cap = int(pltpu.get_tpu_info().vmem_capacity_bytes)
        return min(int(cap * 0.75), 100 * 1024 * 1024)
    except Exception:
        return 48 * 1024 * 1024


VMEM_LIMIT = _vmem_limit_bytes()


# ---------------------------------------------------------------------------
# Kernels
# ---------------------------------------------------------------------------
def _conv1x1_lrelu_kernel(x_ref, w_ref, b_ref, o_ref, *, cin):
    # x_ref: (tm, cin) bf16   w_ref: (cin, Coutp) bf16   b_ref: (1, Coutp) f32
    acc = b_ref[...].astype(jnp.float32)               # (1, Coutp)
    if cin <= 8:
        # Tiny contraction dim (RGB): VPU broadcast-FMAs, no lane-starved MXU matmul.
        x = x_ref[...].astype(jnp.float32)
        w = w_ref[...].astype(jnp.float32)
        out = acc
        for k in range(cin):
            out = out + x[:, k:k + 1] * w[k:k + 1, :]
    else:
        out = jnp.dot(x_ref[...], w_ref[...], preferred_element_type=jnp.float32) + acc
    out = jnp.where(out >= 0, out, LRELU_SLOPE * out)
    o_ref[...] = out.astype(o_ref.dtype)


def _conv4_kernel(*refs, stride, kh, kw, Wo, n_row_refs):
    # Implicit-GEMM k=4 conv for ONE output row.
    #   stride 1: row_refs = 4 refs of shape (1, 1, Wp,  Cp)  (padded rows y .. y+3)
    #   stride 2: row_refs = [even blk y, even blk y+1, odd blk y, odd blk y+1],
    #             each (1, 2, Wp//2, Cp)  (even/odd-column views of the padded input)
    # Weight is fully VMEM-resident: (kh, kw, Cp, Coutp) bf16.  No im2col, no K grid axis.
    row_refs = refs[:n_row_refs]
    w_ref = refs[n_row_refs]
    b_ref = refs[n_row_refs + 1]
    o_ref = refs[n_row_refs + 2]
    coutp = w_ref.shape[-1]

    acc = jnp.zeros((Wo, coutp), jnp.float32)
    for i in range(kh):
        for j in range(kw):
            if stride == 1:
                lhs = row_refs[i][0, 0, pl.ds(j, Wo), :]                  # (Wo, Cp)
            else:
                ref = row_refs[(j % 2) * 2 + (i // 2)]
                lhs = ref[0, i % 2, pl.ds(j // 2, Wo), :]                 # (Wo, Cp)
            acc = acc + jnp.dot(lhs, w_ref[i, j], preferred_element_type=jnp.float32)

    out = acc + b_ref[...]
    o_ref[0, 0] = out.astype(o_ref.dtype)


def _inorm_lrelu_kernel(x_ref, o_ref, *, inv_hw):
    # Single-pass InstanceNorm (biased var, eps=1e-5) + LeakyReLU on one resident sample.
    x = x_ref[0].astype(jnp.float32)                                      # (HW, C)
    mean = jnp.sum(x, axis=0, keepdims=True) * inv_hw
    var = jnp.sum(x * x, axis=0, keepdims=True) * inv_hw - mean * mean
    var = jnp.maximum(var, 0.0)
    y = (x - mean) * jax.lax.rsqrt(var + IN_EPS)
    y = jnp.where(y >= 0, y, LRELU_SLOPE * y)
    o_ref[0] = y.astype(o_ref.dtype)


def _inorm_stats_kernel(x_ref, st_ref):
    # Fallback phase 1: accumulate per-(sample, channel) sum / sum-of-squares.
    @pl.when(pl.program_id(1) == 0)
    def _():
        st_ref[...] = jnp.zeros_like(st_ref)

    x = x_ref[0].astype(jnp.float32)                                      # (t, C)
    st_ref[0, 0, :] += jnp.sum(x, axis=0)
    st_ref[0, 1, :] += jnp.sum(x * x, axis=0)


def _inorm_apply_kernel(x_ref, st_ref, o_ref, *, inv_hw):
    # Fallback phase 2: normalize + LeakyReLU, tiled over HW.
    x = x_ref[0].astype(jnp.float32)                                      # (t, C)
    mean = st_ref[0, 0, :] * inv_hw
    var = jnp.maximum(st_ref[0, 1, :] * inv_hw - mean * mean, 0.0)
    y = (x - mean) * jax.lax.rsqrt(var + IN_EPS)
    y = jnp.where(y >= 0, y, LRELU_SLOPE * y)
    o_ref[0] = y.astype(o_ref.dtype)


# ---------------------------------------------------------------------------
# pallas_call wrappers
# ---------------------------------------------------------------------------
def conv1x1_lrelu(x_nhwc, w_mat, bias, out_dtype=jnp.bfloat16):
    """1x1 conv + LeakyReLU.  x (N,H,W,Cin) bf16 -> (N,H,W,Coutp) out_dtype."""
    N, H, W, cin = x_nhwc.shape
    coutp = w_mat.shape[1]
    M = N * H * W
    x2d = x_nhwc.reshape(M, cin)

    tm = min(512, _round_up(M, 8))
    Mp = _round_up(M, tm)
    if Mp != M:                                  # rare / small: only ragged M is padded
        x2d = jnp.pad(x2d, ((0, Mp - M), (0, 0)))

    flops = 2 * Mp * cin * coutp
    bytes_accessed = (Mp * cin * 2 + cin * coutp * 2
                      + Mp * coutp * jnp.dtype(out_dtype).itemsize)

    out = pl.pallas_call(
        functools.partial(_conv1x1_lrelu_kernel, cin=cin),
        out_shape=jax.ShapeDtypeStruct((Mp, coutp), out_dtype),
        grid_spec=pltpu.PrefetchScalarGridSpec(
            num_scalar_prefetch=0,
            grid=(Mp // tm,),
            in_specs=[
                pl.BlockSpec((tm, cin), lambda i: (i, 0)),
                pl.BlockSpec((cin, coutp), lambda i: (0, 0)),   # resident
                pl.BlockSpec((1, coutp), lambda i: (0, 0)),     # resident
            ],
            out_specs=pl.BlockSpec((tm, coutp), lambda i: (i, 0)),
        ),
        compiler_params=pltpu.CompilerParams(
            dimension_semantics=("parallel",),
            vmem_limit_bytes=VMEM_LIMIT),
        cost_estimate=pl.CostEstimate(flops=flops, transcendentals=0,
                                      bytes_accessed=bytes_accessed),
    )(x2d, w_mat, bias)

    if Mp != M:
        out = out[:M]
    return out.reshape(N, H, W, coutp)


def _row_spec_s1(Wp, Cp, r):
    # stride-1: one padded input row at row index (y + r).
    return pl.BlockSpec((1, 1, Wp, Cp), lambda n, y: (n, y + r, 0, 0))


def _row_spec_s2(Wh, Cp, r):
    # stride-2: a 2-row block of a column-parity view, at row-block index (y + r).
    return pl.BlockSpec((1, 2, Wh, Cp), lambda n, y: (n, y + r, 0, 0))


def conv4(x_nhwc, w4, bias, stride, out_dtype):
    """k=4, pad=1 conv (stride 1 or 2) as implicit GEMM — no materialized im2col."""
    N, H, W, Cp = x_nhwc.shape
    kh, kw, Cw, coutp = w4.shape
    assert (kh, kw) == (4, 4) and Cw == Cp and stride in (1, 2)

    xp = jnp.pad(x_nhwc, ((0, 0), (1, 1), (1, 1), (0, 0)))   # +2-row/+2-col halo only
    Hp, Wp = H + 2, W + 2
    Ho = (Hp - kh) // stride + 1
    Wo = (Wp - kw) // stride + 1

    if stride == 1:
        in_arrays = [xp] * kh
        in_specs = [_row_spec_s1(Wp, Cp, r) for r in range(kh)]
    else:
        if Hp % 2:                                            # make 2-row blocking exact
            xp = jnp.pad(xp, ((0, 0), (0, 1), (0, 0), (0, 0)))
            Hp += 1
        # Even/odd column split so every in-kernel slice is contiguous (no strided loads).
        xe = xp[:, :, 0::2, :]
        xo = xp[:, :, 1::2, :]
        in_arrays = [xe, xe, xo, xo]
        in_specs = [_row_spec_s2(xe.shape[2], Cp, 0), _row_spec_s2(xe.shape[2], Cp, 1),
                    _row_spec_s2(xo.shape[2], Cp, 0), _row_spec_s2(xo.shape[2], Cp, 1)]

    flops = 2 * N * Ho * Wo * kh * kw * Cp * coutp
    bytes_accessed = (N * Hp * Wp * Cp * 2 * (kh // stride)          # redundant row reads
                      + kh * kw * Cp * coutp * 2                      # resident weight
                      + N * Ho * Wo * coutp * jnp.dtype(out_dtype).itemsize)

    return pl.pallas_call(
        functools.partial(_conv4_kernel, stride=stride, kh=kh, kw=kw, Wo=Wo,
                          n_row_refs=len(in_arrays)),
        out_shape=jax.ShapeDtypeStruct((N, Ho, Wo, coutp), out_dtype),
        grid_spec=pltpu.PrefetchScalarGridSpec(
            num_scalar_prefetch=0,
            grid=(N, Ho),
            in_specs=in_specs + [
                pl.BlockSpec((kh, kw, Cp, coutp), lambda n, y: (0, 0, 0, 0)),  # resident
                pl.BlockSpec((1, coutp), lambda n, y: (0, 0)),                  # resident
            ],
            out_specs=pl.BlockSpec((1, 1, Wo, coutp), lambda n, y: (n, y, 0, 0)),
        ),
        compiler_params=pltpu.CompilerParams(
            dimension_semantics=("parallel", "parallel"),
            vmem_limit_bytes=VMEM_LIMIT),
        cost_estimate=pl.CostEstimate(flops=flops, transcendentals=0,
                                      bytes_accessed=bytes_accessed),
    )(*in_arrays, w4, bias)


def instance_norm_lrelu(x_nhwc):
    """InstanceNorm2d (affine=False, biased var, eps=1e-5) + LeakyReLU(0.2)."""
    N, H, W, C = x_nhwc.shape
    HW = H * W
    x = x_nhwc.reshape(N, HW, C)

    if HW * C <= _NORM_RESIDENT_ELEMS:
        # Single pass: whole sample resident -> one HBM read + one write.
        out = pl.pallas_call(
            functools.partial(_inorm_lrelu_kernel, inv_hw=1.0 / float(HW)),
            out_shape=jax.ShapeDtypeStruct((N, HW, C), x.dtype),
            grid_spec=pltpu.PrefetchScalarGridSpec(
                num_scalar_prefetch=0,
                grid=(N,),
                in_specs=[pl.BlockSpec((1, HW, C), lambda n: (n, 0, 0))],
                out_specs=pl.BlockSpec((1, HW, C), lambda n: (n, 0, 0)),
            ),
            compiler_params=pltpu.CompilerParams(
                dimension_semantics=("parallel",),
                vmem_limit_bytes=VMEM_LIMIT),
        )(x)
        return out.reshape(N, H, W, C)

    # Fallback for very large HW: two tiled pallas_calls (stats, then normalize).
    t = 1024
    HWp = _round_up(HW, t)
    xp = jnp.pad(x, ((0, 0), (0, HWp - HW), (0, 0))) if HWp != HW else x
    S = HWp // t

    stats = pl.pallas_call(
        _inorm_stats_kernel,
        out_shape=jax.ShapeDtypeStruct((N, 2, C), jnp.float32),
        grid_spec=pltpu.PrefetchScalarGridSpec(
            num_scalar_prefetch=0,
            grid=(N, S),
            in_specs=[pl.BlockSpec((1, t, C), lambda n, s: (n, s, 0))],
            out_specs=pl.BlockSpec((1, 2, C), lambda n, s: (n, 0, 0)),
        ),
        compiler_params=pltpu.CompilerParams(
            dimension_semantics=("parallel", "arbitrary"),
            vmem_limit_bytes=VMEM_LIMIT),
    )(xp)

    out = pl.pallas_call(
        functools.partial(_inorm_apply_kernel, inv_hw=1.0 / float(HW)),
        out_shape=jax.ShapeDtypeStruct((N, HWp, C), x.dtype),
        grid_spec=pltpu.PrefetchScalarGridSpec(
            num_scalar_prefetch=0,
            grid=(N, S),
            in_specs=[pl.BlockSpec((1, t, C), lambda n, s: (n, s, 0)),
                      pl.BlockSpec((1, 2, C), lambda n, s: (n, 0, 0))],
            out_specs=pl.BlockSpec((1, t, C), lambda n, s: (n, s, 0)),
        ),
        compiler_params=pltpu.CompilerParams(
            dimension_semantics=("parallel", "arbitrary"),
            vmem_limit_bytes=VMEM_LIMIT),
    )(xp, stats)

    if HWp != HW:
        out = out[:, :HW, :]
    return out.reshape(N, H, W, C)


# ---------------------------------------------------------------------------
# Discriminator: parameters + forward
# ---------------------------------------------------------------------------
def init_conv_params(key, c_out, c_in, k):
    # Deterministic init mimicking PyTorch's default uniform(-1/sqrt(fan_in), ...)
    fan_in = c_in * k * k
    bound = 1.0 / (fan_in ** 0.5)
    kw_, kb_ = jax.random.split(key)
    w = jax.random.uniform(kw_, (c_out, c_in, k, k), jnp.float32, -bound, bound)
    b = jax.random.uniform(kb_, (c_out,), jnp.float32, -bound, bound)
    return w, b


def build_discriminator_params(key, input_ch=3, filters=64, n_layer=3):
    params = []
    keys = jax.random.split(key, n_layer + 2)
    params.append(init_conv_params(keys[0], filters, input_ch, 1))        # head conv k1
    c_prev = filters
    for i in range(1, n_layer):                                           # strided convs
        c = filters * (2 ** i)
        params.append(init_conv_params(keys[i], c, c_prev, 4))
        c_prev = c
    c = filters * (2 ** n_layer)                                          # stride-1 conv
    params.append(init_conv_params(keys[n_layer], c, c_prev, 4))
    params.append(init_conv_params(keys[n_layer + 1], 1, c, 4))           # final 1-ch conv
    return params


def pack_params(raw_params):
    """One-time packing: bf16 weights in (kh,kw,Cin_pad,Cout_pad) layout, f32 bias rows.

    Output channels are padded to multiples of 128 (lane-dense activations); input channels
    are padded to match the previous layer's padded outputs (extra rows are zero, so padded
    activation channels contribute nothing).  Arrays only — no static metadata in the pytree.
    """
    packed = []
    for idx, (w, b) in enumerate(raw_params):
        c_out, c_in, kh, kw = w.shape
        cin_p = c_in if idx == 0 else _round_up(c_in, LANE)   # raw image stays 3-channel
        cout_p = _round_up(c_out, LANE)
        wt = jnp.transpose(w, (2, 3, 1, 0))                   # (kh, kw, cin, cout)
        w_full = jnp.zeros((kh, kw, cin_p, cout_p), jnp.float32)
        w_full = w_full.at[:, :, :c_in, :c_out].set(wt)
        if kh == 1 and kw == 1:
            w_packed = w_full.reshape(cin_p, cout_p).astype(jnp.bfloat16)
        else:
            w_packed = w_full.astype(jnp.bfloat16)
        b_row = jnp.zeros((1, cout_p), jnp.float32).at[0, :c_out].set(b)
        packed.append((w_packed, b_row))
    return packed


def discriminator_forward(x_nchw, packed_params, *, n_layer=3):
    # External API is NCHW (PyTorch convention); compute in NHWC / bf16, channel-padded.
    # Layer structure (kernel sizes / strides) is Python-static — nothing traced.
    x = jnp.transpose(x_nchw, (0, 2, 3, 1)).astype(jnp.bfloat16)

    # Conv2d(k=1) + LeakyReLU (no norm)
    w, b = packed_params[0]
    x = conv1x1_lrelu(x, w, b, out_dtype=jnp.bfloat16)

    # conv(k=4) -> InstanceNorm -> LeakyReLU blocks
    strides = [2] * (n_layer - 1) + [1]
    for li, stride in enumerate(strides):
        w, b = packed_params[1 + li]
        x = conv4(x, w, b, stride=stride, out_dtype=jnp.bfloat16)
        x = instance_norm_lrelu(x)

    # Final Conv2d -> 1 channel (kept 128-lane wide in the kernel, sliced once here)
    w, b = packed_params[-1]
    y = conv4(x, w, b, stride=1, out_dtype=jnp.float32)
    y = y[..., :1]
    return jnp.transpose(y, (0, 3, 1, 2))  # back to NCHW


# ---------------------------------------------------------------------------
if __name__ == "__main__":
    key = jax.random.PRNGKey(0)
    k_param, k_input = jax.random.split(key)

    # Small but structure-preserving configuration.
    BATCH, IN_CH, SPATIAL = 2, 3, 16
    FILTERS, N_LAYER = 16, 3

    raw_params = build_discriminator_params(k_param, input_ch=IN_CH,
                                            filters=FILTERS, n_layer=N_LAYER)
    packed_params = pack_params(raw_params)
    x = jax.random.normal(k_input, (BATCH, IN_CH, SPATIAL, SPATIAL), jnp.float32)

    fwd = jax.jit(functools.partial(discriminator_forward, n_layer=N_LAYER))
    out = jax.block_until_ready(fwd(x, packed_params))

    # 16 -> 16 (k1) -> 8 -> 4 -> 3 (k4 s1 p1) -> 2 (k4 s1 p1), 1 output channel.
    assert out.shape == (BATCH, 1, 2, 2), out.shape
    assert bool(jnp.all(jnp.isfinite(out)))
    print("KERNEL_OK")
</pallas_src>

<mosaic_0001>
module attributes {stable_mosaic.version = 11 : i64} {
  func.func @_conv1x1_lrelu_kernel(%arg0: i32, %arg1: memref<512x3xbf16, #tpu.memory_space<vmem>>, %arg2: memref<3x128xbf16, #tpu.memory_space<vmem>>, %arg3: memref<1x128xf32, #tpu.memory_space<vmem>>, %arg4: memref<512x128xbf16, #tpu.memory_space<vmem>>) attributes {dimension_semantics = [#tpu.dimension_semantics<parallel>], iteration_bounds = array<i64: 1>, scalar_prefetch = 0 : i64, scratch_operands = 0 : i64, tpu.core_type = #tpu.core_type<tc>, window_params = [{transform_indices = @transform_0, window_bounds = array<i64: 512, 3>}, {pipeline_mode = #tpu.pipeline_mode<synchronous>, transform_indices = @transform_1, window_bounds = array<i64: 3, 128>}, {pipeline_mode = #tpu.pipeline_mode<synchronous>, transform_indices = @transform_2, window_bounds = array<i64: 1, 128>}, {transform_indices = @transform_3, window_bounds = array<i64: 512, 128>}]} {
    %c0 = arith.constant 0 : index
    %c0_0 = arith.constant 0 : index
    %0 = vector.load %arg3[%c0, %c0_0] : memref<1x128xf32, #tpu.memory_space<vmem>>, vector<1x128xf32>
    %c0_1 = arith.constant 0 : index
    %c0_2 = arith.constant 0 : index
    %1 = vector.load %arg1[%c0_1, %c0_2] : memref<512x3xbf16, #tpu.memory_space<vmem>>, vector<512x3xbf16>
    %2 = arith.extf %1 : vector<512x3xbf16> to vector<512x3xf32>
    %c0_3 = arith.constant 0 : index
    %c0_4 = arith.constant 0 : index
    %3 = vector.load %arg2[%c0_3, %c0_4] : memref<3x128xbf16, #tpu.memory_space<vmem>>, vector<3x128xbf16>
    %4 = arith.extf %3 : vector<3x128xbf16> to vector<3x128xf32>
    %5 = vector.extract_strided_slice %2 {offsets = [0, 0], sizes = [512, 1], strides = [1, 1]} : vector<512x3xf32> to vector<512x1xf32>
    %6 = vector.extract_strided_slice %4 {offsets = [0, 0], sizes = [1, 128], strides = [1, 1]} : vector<3x128xf32> to vector<1x128xf32>
    %7 = vector.broadcast %5 : vector<512x1xf32> to vector<512x128xf32>
    %8 = vector.broadcast %6 : vector<1x128xf32> to vector<512x128xf32>
    %9 = arith.mulf %7, %8 : vector<512x128xf32>
    %10 = vector.broadcast %0 : vector<1x128xf32> to vector<512x128xf32>
    %11 = arith.addf %10, %9 : vector<512x128xf32>
    %12 = vector.extract_strided_slice %2 {offsets = [0, 1], sizes = [512, 1], strides = [1, 1]} : vector<512x3xf32> to vector<512x1xf32>
    %13 = vector.extract_strided_slice %4 {offsets = [1, 0], sizes = [1, 128], strides = [1, 1]} : vector<3x128xf32> to vector<1x128xf32>
    %14 = vector.broadcast %12 : vector<512x1xf32> to vector<512x128xf32>
    %15 = vector.broadcast %13 : vector<1x128xf32> to vector<512x128xf32>
    %16 = arith.mulf %14, %15 : vector<512x128xf32>
    %17 = arith.addf %11, %16 : vector<512x128xf32>
    %18 = vector.extract_strided_slice %2 {offsets = [0, 2], sizes = [512, 1], strides = [1, 1]} : vector<512x3xf32> to vector<512x1xf32>
    %19 = vector.extract_strided_slice %4 {offsets = [2, 0], sizes = [1, 128], strides = [1, 1]} : vector<3x128xf32> to vector<1x128xf32>
    %20 = vector.broadcast %18 : vector<512x1xf32> to vector<512x128xf32>
    %21 = vector.broadcast %19 : vector<1x128xf32> to vector<512x128xf32>
    %22 = arith.mulf %20, %21 : vector<512x128xf32>
    %23 = arith.addf %17, %22 : vector<512x128xf32>
    %cst = arith.constant 0.000000e+00 : f32
    %24 = vector.broadcast %cst : f32 to vector<512x128xf32>
    %25 = arith.cmpf oge, %23, %24 : vector<512x128xf32>
    %cst_5 = arith.constant 2.000000e-01 : f32
    %26 = vector.broadcast %cst_5 : f32 to vector<512x128xf32>
    %27 = arith.mulf %26, %23 : vector<512x128xf32>
    %28 = arith.select %25, %23, %27 : vector<512x128xi1>, vector<512x128xf32>
    %29 = arith.truncf %28 : vector<512x128xf32> to vector<512x128xbf16>
    %c0_6 = arith.constant 0 : index
    %c0_7 = arith.constant 0 : index
    %30 = vector.load %arg4[%c0_6, %c0_7] : memref<512x128xbf16, #tpu.memory_space<vmem>>, vector<512x128xbf16>
    tpu.vector_store %arg4[%c0_6, %c0_7], %29 {strides = array<i32>} : memref<512x128xbf16, #tpu.memory_space<vmem>>, vector<512x128xbf16>,
    return
  }
  func.func @transform_0(%arg0: i32) -> (i32, i32) {
    %c0_i32 = arith.constant 0 : i32
    %c0_i32_0 = arith.constant 0 : i32
    return %arg0, %c0_i32 : i32, i32
  }
  func.func @transform_1(%arg0: i32) -> (i32, i32) {
    %c0_i32 = arith.constant 0 : i32
    %c0_i32_0 = arith.constant 0 : i32
    %c0_i32_1 = arith.constant 0 : i32
    return %c0_i32, %c0_i32_0 : i32, i32
  }
  func.func @transform_2(%arg0: i32) -> (i32, i32) {
    %c0_i32 = arith.constant 0 : i32
    %c0_i32_0 = arith.constant 0 : i32
    %c0_i32_1 = arith.constant 0 : i32
    return %c0_i32, %c0_i32_0 : i32, i32
  }
  func.func @transform_3(%arg0: i32) -> (i32, i32) {
    %c0_i32 = arith.constant 0 : i32
    %c0_i32_0 = arith.constant 0 : i32
    return %arg0, %c0_i32 : i32, i32
  }
}

module attributes {stable_mosaic.version = 11 : i64} {
  func.func @_conv4_kernel(%arg0: i32, %arg1: i32, %arg2: memref<1x2x9x128xbf16, #tpu.memory_space<vmem>>, %arg3: memref<1x2x9x128xbf16, #tpu.memory_space<vmem>>, %arg4: memref<1x2x9x128xbf16, #tpu.memory_space<vmem>>, %arg5: memref<1x2x9x128xbf16, #tpu.memory_space<vmem>>, %arg6: memref<4x4x128x128xbf16, #tpu.memory_space<vmem>>, %arg7: memref<1x128xf32, #tpu.memory_space<vmem>>, %arg8: memref<1x1x8x128xbf16, #tpu.memory_space<vmem>>) attributes {dimension_semantics = [#tpu.dimension_semantics<parallel>, #tpu.dimension_semantics<parallel>], iteration_bounds = array<i64: 2, 8>, scalar_prefetch = 0 : i64, scratch_operands = 0 : i64, tpu.core_type = #tpu.core_type<tc>, window_params = [{transform_indices = @transform_0, window_bounds = array<i64: 1, 2, 9, 128>}, {transform_indices = @transform_1, window_bounds = array<i64: 1, 2, 9, 128>}, {transform_indices = @transform_2, window_bounds = array<i64: 1, 2, 9, 128>}, {transform_indices = @transform_3, window_bounds = array<i64: 1, 2, 9, 128>}, {pipeline_mode = #tpu.pipeline_mode<synchronous>, transform_indices = @transform_4, window_bounds = array<i64: 4, 4, 128, 128>}, {pipeline_mode = #tpu.pipeline_mode<synchronous>, transform_indices = @transform_5, window_bounds = array<i64: 1, 128>}, {transform_indices = @transform_6, window_bounds = array<i64: 1, 1, 8, 128>}]} {
    %cst = arith.constant 0.000000e+00 : f32
    %0 = vector.broadcast %cst : f32 to vector<8x128xf32>
    %c0 = arith.constant 0 : index
    %c0_0 = arith.constant 0 : index
    %c0_1 = arith.constant 0 : index
    %c0_2 = arith.constant 0 : index
    %1 = vector.load %arg2[%c0, %c0_0, %c0_1, %c0_2] : memref<1x2x9x128xbf16, #tpu.memory_space<vmem>>, vector<1x1x8x128xbf16>
    %2 = vector.shape_cast %1 : vector<1x1x8x128xbf16> to vector<8x128xbf16>
    %c0_3 = arith.constant 0 : index
    %c0_4 = arith.constant 0 : index
    %c0_5 = arith.constant 0 : index
    %c0_6 = arith.constant 0 : index
    %3 = vector.load %arg6[%c0_3, %c0_4, %c0_5, %c0_6] : memref<4x4x128x128xbf16, #tpu.memory_space<vmem>>, vector<1x1x128x128xbf16>
    %4 = vector.shape_cast %3 : vector<1x1x128x128xbf16> to vector<128x128xbf16>
    %cst_7 = arith.constant dense<0.000000e+00> : vector<8x128xf32>
    %5 = tpu.matmul %2, %4, %cst_7 {dimension_numbers = #tpu.dot_dimension_numbers<[1], [0], [0], [1], [0, 0, 1, 1], [], []>} : vector<8x128xbf16>, vector<128x128xbf16>, vector<8x128xf32> -> vector<8x128xf32>
    %6 = arith.addf %0, %5 : vector<8x128xf32>
    %c0_8 = arith.constant 0 : index
    %c0_9 = arith.constant 0 : index
    %c0_10 = arith.constant 0 : index
    %c0_11 = arith.constant 0 : index
    %7 = vector.load %arg4[%c0_8, %c0_9, %c0_10, %c0_11] : memref<1x2x9x128xbf16, #tpu.memory_space<vmem>>, vector<1x1x8x128xbf16>
    %8 = vector.shape_cast %7 : vector<1x1x8x128xbf16> to vector<8x128xbf16>
    %c0_12 = arith.constant 0 : index
    %c1 = arith.constant 1 : index
    %c0_13 = arith.constant 0 : index
    %c0_14 = arith.constant 0 : index
    %9 = vector.load %arg6[%c0_12, %c1, %c0_13, %c0_14] : memref<4x4x128x128xbf16, #tpu.memory_space<vmem>>, vector<1x1x128x128xbf16>
    %10 = vector.shape_cast %9 : vector<1x1x128x128xbf16> to vector<128x128xbf16>
    %cst_15 = arith.constant dense<0.000000e+00> : vector<8x128xf32>
    %11 = tpu.matmul %8, %10, %cst_15 {dimension_numbers = #tpu.dot_dimension_numbers<[1], [0], [0], [1], [0, 0, 1, 1], [], []>} : vector<8x128xbf16>, vector<128x128xbf16>, vector<8x128xf32> -> vector<8x128xf32>
    %12 = arith.addf %6, %11 : vector<8x128xf32>
    %c0_16 = arith.constant 0 : index
    %c0_17 = arith.constant 0 : index
    %c1_18 = arith.constant 1 : index
    %c0_19 = arith.constant 0 : index
    %13 = vector.load %arg2[%c0_16, %c0_17, %c1_18, %c0_19] : memref<1x2x9x128xbf16, #tpu.memory_space<vmem>>, vector<1x1x8x128xbf16>
    %14 = vector.shape_cast %13 : vector<1x1x8x128xbf16> to vector<8x128xbf16>
    %c0_20 = arith.constant 0 : index
    %c2 = arith.constant 2 : index
    %c0_21 = arith.constant 0 : index
    %c0_22 = arith.constant 0 : index
    %15 = vector.load %arg6[%c0_20, %c2, %c0_21, %c0_22] : memref<4x4x128x128xbf16, #tpu.memory_space<vmem>>, vector<1x1x128x128xbf16>
    %16 = vector.shape_cast %15 : vector<1x1x128x128xbf16> to vector<128x128xbf16>
    %cst_23 = arith.constant dense<0.000000e+00> : vector<8x128xf32>
    %17 = tpu.matmul %14, %16, %cst_23 {dimension_numbers = #tpu.dot_dimension_numbers<[1], [0], [0], [1], [0, 0, 1, 1], [], []>} : vector<8x128xbf16>, vector<128x128xbf16>, vector<8x128xf32> -> vector<8x128xf32>
    %18 = arith.addf %12, %17 : vector<8x128xf32>
    %c0_24 = arith.constant 0 : index
    %c0_25 = arith.constant 0 : index
    %c1_26 = arith.constant 1 : index
    %c0_27 = arith.constant 0 : index
    %19 = vector.load %arg4[%c0_24, %c0_25, %c1_26, %c0_27] : memref<1x2x9x128xbf16, #tpu.memory_space<vmem>>, vector<1x1x8x128xbf16>
    %20 = vector.shape_cast %19 : vector<1x1x8x128xbf16> to vector<8x128xbf16>
    %c0_28 = arith.constant 0 : index
    %c3 = arith.constant 3 : index
    %c0_29 = arith.constant 0 : index
    %c0_30 = arith.constant 0 : index
    %21 = vector.load %arg6[%c0_28, %c3, %c0_29, %c0_30] : memref<4x4x128x128xbf16, #tpu.memory_space<vmem>>, vector<1x1x128x128xbf16>
    %22 = vector.shape_cast %21 : vector<1x1x128x128xbf16> to vector<128x128xbf16>
    %cst_31 = arith.constant dense<0.000000e+00> : vector<8x128xf32>
    %23 = tpu.matmul %20, %22, %cst_31 {dimension_numbers = #tpu.dot_dimension_numbers<[1], [0], [0], [1], [0, 0, 1, 1], [], []>} : vector<8x128xbf16>, vector<128x128xbf16>, vector<8x128xf32> -> vector<8x128xf32>
    %24 = arith.addf %18, %23 : vector<8x128xf32>
    %c0_32 = arith.constant 0 : index
    %c1_33 = arith.constant 1 : index
    %c0_34 = arith.constant 0 : index
    %c0_35 = arith.constant 0 : index
    %25 = vector.load %arg2[%c0_32, %c1_33, %c0_34, %c0_35] : memref<1x2x9x128xbf16, #tpu.memory_space<vmem>>, vector<1x1x8x128xbf16>
    %26 = vector.shape_cast %25 : vector<1x1x8x128xbf16> to vector<8x128xbf16>
    %c1_36 = arith.constant 1 : index
    %c0_37 = arith.constant 0 : index
    %c0_38 = arith.constant 0 : index
    %c0_39 = arith.constant 0 : index
    %27 = vector.load %arg6[%c1_36, %c0_37, %c0_38, %c0_39] : memref<4x4x128x128xbf16, #tpu.memory_space<vmem>>, vector<1x1x128x128xbf16>
    %28 = vector.shape_cast %27 : vector<1x1x128x128xbf16> to vector<128x128xbf16>
    %cst_40 = arith.constant dense<0.000000e+00> : vector<8x128xf32>
    %29 = tpu.matmul %26, %28, %cst_40 {dimension_numbers = #tpu.dot_dimension_numbers<[1], [0], [0], [1], [0, 0, 1, 1], [], []>} : vector<8x128xbf16>, vector<128x128xbf16>, vector<8x128xf32> -> vector<8x128xf32>
    %30 = arith.addf %24, %29 : vector<8x128xf32>
    %c0_41 = arith.constant 0 : index
    %c1_42 = arith.constant 1 : index
    %c0_43 = arith.constant 0 : index
    %c0_44 = arith.constant 0 : index
    %31 = vector.load %arg4[%c0_41, %c1_42, %c0_43, %c0_44] : memref<1x2x9x128xbf16, #tpu.memory_space<vmem>>, vector<1x1x8x128xbf16>
    %32 = vector.shape_cast %31 : vector<1x1x8x128xbf16> to vector<8x128xbf16>
    %c1_45 = arith.constant 1 : index
    %c1_46 = arith.constant 1 : index
    %c0_47 = arith.constant 0 : index
    %c0_48 = arith.constant 0 : index
    %33 = vector.load %arg6[%c1_45, %c1_46, %c0_47, %c0_48] : memref<4x4x128x128xbf16, #tpu.memory_space<vmem>>, vector<1x1x128x128xbf16>
    %34 = vector.shape_cast %33 : vector<1x1x128x128xbf16> to vector<128x128xbf16>
    %cst_49 = arith.constant dense<0.000000e+00> : vector<8x128xf32>
    %35 = tpu.matmul %32, %34, %cst_49 {dimension_numbers = #tpu.dot_dimension_numbers<[1], [0], [0], [1], [0, 0, 1, 1], [], []>} : vector<8x128xbf16>, vector<128x128xbf16>, vector<8x128xf32> -> vector<8x128xf32>
    %36 = arith.addf %30, %35 : vector<8x128xf32>
    %c0_50 = arith.constant 0 : index
    %c1_51 = arith.constant 1 : index
    %c1_52 = arith.constant 1 : index
    %c0_53 = arith.constant 0 : index
    %37 = vector.load %arg2[%c0_50, %c1_51, %c1_52, %c0_53] : memref<1x2x9x128xbf16, #tpu.memory_space<vmem>>, vector<1x1x8x128xbf16>
    %38 = vector.shape_cast %37 : vector<1x1x8x128xbf16> to vector<8x128xbf16>
    %c1_54 = arith.constant 1 : index
    %c2_55 = arith.constant 2 : index
    %c0_56 = arith.constant 0 : index
    %c0_57 = arith.constant 0 : index
    %39 = vector.load %arg6[%c1_54, %c2_55, %c0_56, %c0_57] : memref<4x4x128x128xbf16, #tpu.memory_space<vmem>>, vector<1x1x128x128xbf16>
    %40 = vector.shape_cast %39 : vector<1x1x128x128xbf16> to vector<128x128xbf16>
    %cst_58 = arith.constant dense<0.000000e+00> : vector<8x128xf32>
    %41 = tpu.matmul %38, %40, %cst_58 {dimension_numbers = #tpu.dot_dimension_numbers<[1], [0], [0], [1], [0, 0, 1, 1], [], []>} : vector<8x128xbf16>, vector<128x128xbf16>, vector<8x128xf32> -> vector<8x128xf32>
    %42 = arith.addf %36, %41 : vector<8x128xf32>
    %c0_59 = arith.constant 0 : index
    %c1_60 = arith.constant 1 : index
    %c1_61 = arith.constant 1 : index
    %c0_62 = arith.constant 0 : index
    %43 = vector.load %arg4[%c0_59, %c1_60, %c1_61, %c0_62] : memref<1x2x9x128xbf16, #tpu.memory_space<vmem>>, vector<1x1x8x128xbf16>
    %44 = vector.shape_cast %43 : vector<1x1x8x128xbf16> to vector<8x128xbf16>
    %c1_63 = arith.constant 1 : index
    %c3_64 = arith.constant 3 : index
    %c0_65 = arith.constant 0 : index
    %c0_66 = arith.constant 0 : index
    %45 = vector.load %arg6[%c1_63, %c3_64, %c0_65, %c0_66] : memref<4x4x128x128xbf16, #tpu.memory_space<vmem>>, vector<1x1x128x128xbf16>
    %46 = vector.shape_cast %45 : vector<1x1x128x128xbf16> to vector<128x128xbf16>
    %cst_67 = arith.constant dense<0.000000e+00> : vector<8x128xf32>
    %47 = tpu.matmul %44, %46, %cst_67 {dimension_numbers = #tpu.dot_dimension_numbers<[1], [0], [0], [1], [0, 0, 1, 1], [], []>} : vector<8x128xbf16>, vector<128x128xbf16>, vector<8x128xf32> -> vector<8x128xf32>
    %48 = arith.addf %42, %47 : vector<8x128xf32>
    %c0_68 = arith.constant 0 : index
    %c0_69 = arith.constant 0 : index
    %c0_70 = arith.constant 0 : index
    %c0_71 = arith.constant 0 : index
    %49 = vector.load %arg3[%c0_68, %c0_69, %c0_70, %c0_71] : memref<1x2x9x128xbf16, #tpu.memory_space<vmem>>, vector<1x1x8x128xbf16>
    %50 = vector.shape_cast %49 : vector<1x1x8x128xbf16> to vector<8x128xbf16>
    %c2_72 = arith.constant 2 : index
    %c0_73 = arith.constant 0 : index
    %c0_74 = arith.constant 0 : index
    %c0_75 = arith.constant 0 : index
    %51 = vector.load %arg6[%c2_72, %c0_73, %c0_74, %c0_75] : memref<4x4x128x128xbf16, #tpu.memory_space<vmem>>, vector<1x1x128x128xbf16>
    %52 = vector.shape_cast %51 : vector<1x1x128x128xbf16> to vector<128x128xbf16>
    %cst_76 = arith.constant dense<0.000000e+00> : vector<8x128xf32>
    %53 = tpu.matmul %50, %52, %cst_76 {dimension_numbers = #tpu.dot_dimension_numbers<[1], [0], [0], [1], [0, 0, 1, 1], [], []>} : vector<8x128xbf16>, vector<128x128xbf16>, vector<8x128xf32> -> vector<8x128xf32>
    %54 = arith.addf %48, %53 : vector<8x128xf32>
    %c0_77 = arith.constant 0 : index
    %c0_78 = arith.constant 0 : index
    %c0_79 = arith.constant 0 : index
    %c0_80 = arith.constant 0 : index
    %55 = vector.load %arg5[%c0_77, %c0_78, %c0_79, %c0_80] : memref<1x2x9x128xbf16, #tpu.memory_space<vmem>>, vector<1x1x8x128xbf16>
    %56 = vector.shape_cast %55 : vector<1x1x8x128xbf16> to vector<8x128xbf16>
    %c2_81 = arith.constant 2 : index
    %c1_82 = arith.constant 1 : index
    %c0_83 = arith.constant 0 : index
    %c0_84 = arith.constant 0 : index
    %57 = vector.load %arg6[%c2_81, %c1_82, %c0_83, %c0_84] : memref<4x4x128x128xbf16, #tpu.memory_space<vmem>>, vector<1x1x128x128xbf16>
    %58 = vector.shape_cast %57 : vector<1x1x128x128xbf16> to vector<128x128xbf16>
    %cst_85 = arith.constant dense<0.000000e+00> : vector<8x128xf32>
    %59 = tpu.matmul %56, %58, %cst_85 {dimension_numbers = #tpu.dot_dimension_numbers<[1], [0], [0], [1], [0, 0, 1, 1], [], []>} : vector<8x128xbf16>, vector<128x128xbf16>, vector<8x128xf32> -> vector<8x128xf32>
    %60 = arith.addf %54, %59 : vector<8x128xf32>
    %c0_86 = arith.constant 0 : index
    %c0_87 = arith.constant 0 : index
    %c1_88 = arith.constant 1 : index
    %c0_89 = arith.constant 0 : index
    %61 = vector.load %arg3[%c0_86, %c0_87, %c1_88, %c0_89] : memref<1x2x9x128xbf16, #tpu.memory_space<vmem>>, vector<1x1x8x128xbf16>
    %62 = vector.shape_cast %61 : vector<1x1x8x128xbf16> to vector<8x128xbf16>
    %c2_90 = arith.constant 2 : index
    %c2_91 = arith.constant 2 : index
    %c0_92 = arith.constant 0 : index
    %c0_93 = arith.constant 0 : index
    %63 = vector.load %arg6[%c2_90, %c2_91, %c0_92, %c0_93] : memref<4x4x128x128xbf16, #tpu.memory_space<vmem>>, vector<1x1x128x128xbf16>
    %64 = vector.shape_cast %63 : vector<1x1x128x128xbf16> to vector<128x128xbf16>
    %cst_94 = arith.constant dense<0.000000e+00> : vector<8x128xf32>
    %65 = tpu.matmul %62, %64, %cst_94 {dimension_numbers = #tpu.dot_dimension_numbers<[1], [0], [0], [1], [0, 0, 1, 1], [], []>} : vector<8x128xbf16>, vector<128x128xbf16>, vector<8x128xf32> -> vector<8x128xf32>
    %66 = arith.addf %60, %65 : vector<8x128xf32>
    %c0_95 = arith.constant 0 : index
    %c0_96 = arith.constant 0 : index
    %c1_97 = arith.constant 1 : index
    %c0_98 = arith.constant 0 : index
    %67 = vector.load %arg5[%c0_95, %c0_96, %c1_97, %c0_98] : memref<1x2x9x128xbf16, #tpu.memory_space<vmem>>, vector<1x1x8x128xbf16>
    %68 = vector.shape_cast %67 : vector<1x1x8x128xbf16> to vector<8x128xbf16>
    %c2_99 = arith.constant 2 : index
    %c3_100 = arith.constant 3 : index
    %c0_101 = arith.constant 0 : index
    %c0_102 = arith.constant 0 : index
    %69 = vector.load %arg6[%c2_99, %c3_100, %c0_101, %c0_102] : memref<4x4x128x128xbf16, #tpu.memory_space<vmem>>, vector<1x1x128x128xbf16>
    %70 = vector.shape_cast %69 : vector<1x1x128x128xbf16> to vector<128x128xbf16>
    %cst_103 = arith.constant dense<0.000000e+00> : vector<8x128xf32>
    %71 = tpu.matmul %68, %70, %cst_103 {dimension_numbers = #tpu.dot_dimension_numbers<[1], [0], [0], [1], [0, 0, 1, 1], [], []>} : vector<8x128xbf16>, vector<128x128xbf16>, vector<8x128xf32> -> vector<8x128xf32>
    %72 = arith.addf %66, %71 : vector<8x128xf32>
    %c0_104 = arith.constant 0 : index
    %c1_105 = arith.constant 1 : index
    %c0_106 = arith.constant 0 : index
    %c0_107 = arith.constant 0 : index
    %73 = vector.load %arg3[%c0_104, %c1_105, %c0_106, %c0_107] : memref<1x2x9x128xbf16, #tpu.memory_space<vmem>>, vector<1x1x8x128xbf16>
    %74 = vector.shape_cast %73 : vector<1x1x8x128xbf16> to vector<8x128xbf16>
    %c3_108 = arith.constant 3 : index
    %c0_109 = arith.constant 0 : index
    %c0_110 = arith.constant 0 : index
    %c0_111 = arith.constant 0 : index
    %75 = vector.load %arg6[%c3_108, %c0_109, %c0_110, %c0_111] : memref<4x4x128x128xbf16, #tpu.memory_space<vmem>>, vector<1x1x128x128xbf16>
    %76 = vector.shape_cast %75 : vector<1x1x128x128xbf16> to vector<128x128xbf16>
    %cst_112 = arith.constant dense<0.000000e+00> : vector<8x128xf32>
    %77 = tpu.matmul %74, %76, %cst_112 {dimension_numbers = #tpu.dot_dimension_numbers<[1], [0], [0], [1], [0, 0, 1, 1], [], []>} : vector<8x128xbf16>, vector<128x128xbf16>, vector<8x128xf32> -> vector<8x128xf32>
    %78 = arith.addf %72, %77 : vector<8x128xf32>
    %c0_113 = arith.constant 0 : index
    %c1_114 = arith.constant 1 : index
    %c0_115 = arith.constant 0 : index
    %c0_116 = arith.constant 0 : index
    %79 = vector.load %arg5[%c0_113, %c1_114, %c0_115, %c0_116] : memref<1x2x9x128xbf16, #tpu.memory_space<vmem>>, vector<1x1x8x128xbf16>
    %80 = vector.shape_cast %79 : vector<1x1x8x128xbf16> to vector<8x128xbf16>
    %c3_117 = arith.constant 3 : index
    %c1_118 = arith.constant 1 : index
    %c0_119 = arith.constant 0 : index
    %c0_120 = arith.constant 0 : index
    %81 = vector.load %arg6[%c3_117, %c1_118, %c0_119, %c0_120] : memref<4x4x128x128xbf16, #tpu.memory_space<vmem>>, vector<1x1x128x128xbf16>
    %82 = vector.shape_cast %81 : vector<1x1x128x128xbf16> to vector<128x128xbf16>
    %cst_121 = arith.constant dense<0.000000e+00> : vector<8x128xf32>
    %83 = tpu.matmul %80, %82, %cst_121 {dimension_numbers = #tpu.dot_dimension_numbers<[1], [0], [0], [1], [0, 0, 1, 1], [], []>} : vector<8x128xbf16>, vector<128x128xbf16>, vector<8x128xf32> -> vector<8x128xf32>
    %84 = arith.addf %78, %83 : vector<8x128xf32>
    %c0_122 = arith.constant 0 : index
    %c1_123 = arith.constant 1 : index
    %c1_124 = arith.constant 1 : index
    %c0_125 = arith.constant 0 : index
    %85 = vector.load %arg3[%c0_122, %c1_123, %c1_124, %c0_125] : memref<1x2x9x128xbf16, #tpu.memory_space<vmem>>, vector<1x1x8x128xbf16>
    %86 = vector.shape_cast %85 : vector<1x1x8x128xbf16> to vector<8x128xbf16>
    %c3_126 = arith.constant 3 : index
    %c2_127 = arith.constant 2 : index
    %c0_128 = arith.constant 0 : index
    %c0_129 = arith.constant 0 : index
    %87 = vector.load %arg6[%c3_126, %c2_127, %c0_128, %c0_129] : memref<4x4x128x128xbf16, #tpu.memory_space<vmem>>, vector<1x1x128x128xbf16>
    %88 = vector.shape_cast %87 : vector<1x1x128x128xbf16> to vector<128x128xbf16>
    %cst_130 = arith.constant dense<0.000000e+00> : vector<8x128xf32>
    %89 = tpu.matmul %86, %88, %cst_130 {dimension_numbers = #tpu.dot_dimension_numbers<[1], [0], [0], [1], [0, 0, 1, 1], [], []>} : vector<8x128xbf16>, vector<128x128xbf16>, vector<8x128xf32> -> vector<8x128xf32>
    %90 = arith.addf %84, %89 : vector<8x128xf32>
    %c0_131 = arith.constant 0 : index
    %c1_132 = arith.constant 1 : index
    %c1_133 = arith.constant 1 : index
    %c0_134 = arith.constant 0 : index
    %91 = vector.load %arg5[%c0_131, %c1_132, %c1_133, %c0_134] : memref<1x2x9x128xbf16, #tpu.memory_space<vmem>>, vector<1x1x8x128xbf16>
    %92 = vector.shape_cast %91 : vector<1x1x8x128xbf16> to vector<8x128xbf16>
    %c3_135 = arith.constant 3 : index
    %c3_136 = arith.constant 3 : index
    %c0_137 = arith.constant 0 : index
    %c0_138 = arith.constant 0 : index
    %93 = vector.load %arg6[%c3_135, %c3_136, %c0_137, %c0_138] : memref<4x4x128x128xbf16, #tpu.memory_space<vmem>>, vector<1x1x128x128xbf16>
    %94 = vector.shape_cast %93 : vector<1x1x128x128xbf16> to vector<128x128xbf16>
    %cst_139 = arith.constant dense<0.000000e+00> : vector<8x128xf32>
    %95 = tpu.matmul %92, %94, %cst_139 {dimension_numbers = #tpu.dot_dimension_numbers<[1], [0], [0], [1], [0, 0, 1, 1], [], []>} : vector<8x128xbf16>, vector<128x128xbf16>, vector<8x128xf32> -> vector<8x128xf32>
    %96 = arith.addf %90, %95 : vector<8x128xf32>
    %c0_140 = arith.constant 0 : index
    %c0_141 = arith.constant 0 : index
    %97 = vector.load %arg7[%c0_140, %c0_141] : memref<1x128xf32, #tpu.memory_space<vmem>>, vector<1x128xf32>
    %98 = vector.broadcast %97 : vector<1x128xf32> to vector<8x128xf32>
    %99 = arith.addf %96, %98 : vector<8x128xf32>
    %100 = arith.truncf %99 : vector<8x128xf32> to vector<8x128xbf16>
    %c0_142 = arith.constant 0 : index
    %c0_143 = arith.constant 0 : index
    %c0_144 = arith.constant 0 : index
    %c0_145 = arith.constant 0 : index
    %101 = vector.load %arg8[%c0_142, %c0_143, %c0_144, %c0_145] : memref<1x1x8x128xbf16, #tpu.memory_space<vmem>>, vector<1x1x8x128xbf16>
    %102 = vector.shape_cast %101 : vector<1x1x8x128xbf16> to vector<8x128xbf16>
    %103 = vector.shape_cast %100 : vector<8x128xbf16> to vector<1x1x8x128xbf16>
    tpu.vector_store %arg8[%c0_142, %c0_143, %c0_144, %c0_145], %103 {strides = array<i32>} : memref<1x1x8x128xbf16, #tpu.memory_space<vmem>>, vector<1x1x8x128xbf16>,
    return
  }
  func.func @transform_0(%arg0: i32, %arg1: i32) -> (i32, i32, i32, i32) {
    %c0_i32 = arith.constant 0 : i32
    %0 = arith.addi %arg1, %c0_i32 : i32
    %c0_i32_0 = arith.constant 0 : i32
    %c0_i32_1 = arith.constant 0 : i32
    %c0_i32_2 = arith.constant 0 : i32
    return %arg0, %0, %c0_i32_0, %c0_i32_1 : i32, i32, i32, i32
  }
  func.func @transform_1(%arg0: i32, %arg1: i32) -> (i32, i32, i32, i32) {
    %c1_i32 = arith.constant 1 : i32
    %0 = arith.addi %arg1, %c1_i32 : i32
    %c0_i32 = arith.constant 0 : i32
    %c0_i32_0 = arith.constant 0 : i32
    %c0_i32_1 = arith.constant 0 : i32
    return %arg0, %0, %c0_i32, %c0_i32_0 : i32, i32, i32, i32
  }
  func.func @transform_2(%arg0: i32, %arg1: i32) -> (i32, i32, i32, i32) {
    %c0_i32 = arith.constant 0 : i32
    %0 = arith.addi %arg1, %c0_i32 : i32
    %c0_i32_0 = arith.constant 0 : i32
    %c0_i32_1 = arith.constant 0 : i32
    %c0_i32_2 = arith.constant 0 : i32
    return %arg0, %0, %c0_i32_0, %c0_i32_1 : i32, i32, i32, i32
  }
  func.func @transform_3(%arg0: i32, %arg1: i32) -> (i32, i32, i32, i32) {
    %c1_i32 = arith.constant 1 : i32
    %0 = arith.addi %arg1, %c1_i32 : i32
    %c0_i32 = arith.constant 0 : i32
    %c0_i32_0 = arith.constant 0 : i32
    %c0_i32_1 = arith.constant 0 : i32
    return %arg0, %0, %c0_i32, %c0_i32_0 : i32, i32, i32, i32
  }
  func.func @transform_4(%arg0: i32, %arg1: i32) -> (i32, i32, i32, i32) {
    %c0_i32 = arith.constant 0 : i32
    %c0_i32_0 = arith.constant 0 : i32
    %c0_i32_1 = arith.constant 0 : i32
    %c0_i32_2 = arith.constant 0 : i32
    %c0_i32_3 = arith.constant 0 : i32
    return %c0_i32, %c0_i32_0, %c0_i32_1, %c0_i32_2 : i32, i32, i32, i32
  }
  func.func @transform_5(%arg0: i32, %arg1: i32) -> (i32, i32) {
    %c0_i32 = arith.constant 0 : i32
    %c0_i32_0 = arith.constant 0 : i32
    %c0_i32_1 = arith.constant 0 : i32
    return %c0_i32, %c0_i32_0 : i32, i32
  }
  func.func @transform_6(%arg0: i32, %arg1: i32) -> (i32, i32, i32, i32) {
    %c0_i32 = arith.constant 0 : i32
    %c0_i32_0 = arith.constant 0 : i32
    %c0_i32_1 = arith.constant 0 : i32
    return %arg0, %arg1, %c0_i32, %c0_i32_0 : i32, i32, i32, i32
  }
}

module attributes {stable_mosaic.version = 11 : i64} {
  func.func @_inorm_lrelu_kernel(%arg0: i32, %arg1: memref<1x64x128xbf16, #tpu.memory_space<vmem>>, %arg2: memref<1x64x128xbf16, #tpu.memory_space<vmem>>) attributes {dimension_semantics = [#tpu.dimension_semantics<parallel>], iteration_bounds = array<i64: 2>, scalar_prefetch = 0 : i64, scratch_operands = 0 : i64, tpu.core_type = #tpu.core_type<tc>, window_params = [{transform_indices = @transform_0, window_bounds = array<i64: 1, 64, 128>}, {transform_indices = @transform_1, window_bounds = array<i64: 1, 64, 128>}]} {
    %c0 = arith.constant 0 : index
    %c0_0 = arith.constant 0 : index
    %c0_1 = arith.constant 0 : index
    %0 = vector.load %arg1[%c0, %c0_0, %c0_1] : memref<1x64x128xbf16, #tpu.memory_space<vmem>>, vector<1x64x128xbf16>
    %1 = vector.shape_cast %0 : vector<1x64x128xbf16> to vector<64x128xbf16>
    %2 = arith.extf %1 : vector<64x128xbf16> to vector<64x128xf32>
    %cst = arith.constant dense<0.000000e+00> : vector<128xf32>
    %3 = vector.multi_reduction <add>, %2, %cst [0] : vector<64x128xf32> to vector<128xf32>
    %4 = vector.shape_cast %3 : vector<128xf32> to vector<1x128xf32>
    %cst_2 = arith.constant 1.562500e-02 : f32
    %5 = vector.broadcast %cst_2 : f32 to vector<1x128xf32>
    %6 = arith.mulf %4, %5 : vector<1x128xf32>
    %7 = arith.mulf %2, %2 : vector<64x128xf32>
    %cst_3 = arith.constant dense<0.000000e+00> : vector<128xf32>
    %8 = vector.multi_reduction <add>, %7, %cst_3 [0] : vector<64x128xf32> to vector<128xf32>
    %9 = vector.shape_cast %8 : vector<128xf32> to vector<1x128xf32>
    %cst_4 = arith.constant 1.562500e-02 : f32
    %10 = vector.broadcast %cst_4 : f32 to vector<1x128xf32>
    %11 = arith.mulf %9, %10 : vector<1x128xf32>
    %12 = arith.mulf %6, %6 : vector<1x128xf32>
    %13 = arith.subf %11, %12 : vector<1x128xf32>
    %cst_5 = arith.constant 0.000000e+00 : f32
    %14 = vector.broadcast %cst_5 : f32 to vector<1x128xf32>
    %15 = arith.maximumf %13, %14 : vector<1x128xf32>
    %16 = vector.broadcast %6 : vector<1x128xf32> to vector<64x128xf32>
    %17 = arith.subf %2, %16 : vector<64x128xf32>
    %cst_6 = arith.constant 9.99999974E-6 : f32
    %18 = vector.broadcast %cst_6 : f32 to vector<1x128xf32>
    %19 = arith.addf %15, %18 : vector<1x128xf32>
    %20 = math.rsqrt %19 : vector<1x128xf32>
    %21 = vector.broadcast %20 : vector<1x128xf32> to vector<64x128xf32>
    %22 = arith.mulf %17, %21 : vector<64x128xf32>
    %cst_7 = arith.constant 0.000000e+00 : f32
    %23 = vector.broadcast %cst_7 : f32 to vector<64x128xf32>
    %24 = arith.cmpf oge, %22, %23 : vector<64x128xf32>
    %cst_8 = arith.constant 2.000000e-01 : f32
    %25 = vector.broadcast %cst_8 : f32 to vector<64x128xf32>
    %26 = arith.mulf %25, %22 : vector<64x128xf32>
    %27 = arith.select %24, %22, %26 : vector<64x128xi1>, vector<64x128xf32>
    %28 = arith.truncf %27 : vector<64x128xf32> to vector<64x128xbf16>
    %c0_9 = arith.constant 0 : index
    %c0_10 = arith.constant 0 : index
    %c0_11 = arith.constant 0 : index
    %29 = vector.load %arg2[%c0_9, %c0_10, %c0_11] : memref<1x64x128xbf16, #tpu.memory_space<vmem>>, vector<1x64x128xbf16>
    %30 = vector.shape_cast %29 : vector<1x64x128xbf16> to vector<64x128xbf16>
    %31 = vector.shape_cast %28 : vector<64x128xbf16> to vector<1x64x128xbf16>
    tpu.vector_store %arg2[%c0_9, %c0_10, %c0_11], %31 {strides = array<i32>} : memref<1x64x128xbf16, #tpu.memory_space<vmem>>, vector<1x64x128xbf16>,
    return
  }
  func.func @transform_0(%arg0: i32) -> (i32, i32, i32) {
    %c0_i32 = arith.constant 0 : i32
    %c0_i32_0 = arith.constant 0 : i32
    %c0_i32_1 = arith.constant 0 : i32
    return %arg0, %c0_i32, %c0_i32_0 : i32, i32, i32
  }
  func.func @transform_1(%arg0: i32) -> (i32, i32, i32) {
    %c0_i32 = arith.constant 0 : i32
    %c0_i32_0 = arith.constant 0 : i32
    %c0_i32_1 = arith.constant 0 : i32
    return %arg0, %c0_i32, %c0_i32_0 : i32, i32, i32
  }
}

module attributes {stable_mosaic.version = 11 : i64} {
  func.func @_conv4_kernel(%arg0: i32, %arg1: i32, %arg2: memref<1x2x5x128xbf16, #tpu.memory_space<vmem>>, %arg3: memref<1x2x5x128xbf16, #tpu.memory_space<vmem>>, %arg4: memref<1x2x5x128xbf16, #tpu.memory_space<vmem>>, %arg5: memref<1x2x5x128xbf16, #tpu.memory_space<vmem>>, %arg6: memref<4x4x128x128xbf16, #tpu.memory_space<vmem>>, %arg7: memref<1x128xf32, #tpu.memory_space<vmem>>, %arg8: memref<1x1x4x128xbf16, #tpu.memory_space<vmem>>) attributes {dimension_semantics = [#tpu.dimension_semantics<parallel>, #tpu.dimension_semantics<parallel>], iteration_bounds = array<i64: 2, 4>, scalar_prefetch = 0 : i64, scratch_operands = 0 : i64, tpu.core_type = #tpu.core_type<tc>, window_params = [{transform_indices = @transform_0, window_bounds = array<i64: 1, 2, 5, 128>}, {transform_indices = @transform_1, window_bounds = array<i64: 1, 2, 5, 128>}, {transform_indices = @transform_2, window_bounds = array<i64: 1, 2, 5, 128>}, {transform_indices = @transform_3, window_bounds = array<i64: 1, 2, 5, 128>}, {pipeline_mode = #tpu.pipeline_mode<synchronous>, transform_indices = @transform_4, window_bounds = array<i64: 4, 4, 128, 128>}, {pipeline_mode = #tpu.pipeline_mode<synchronous>, transform_indices = @transform_5, window_bounds = array<i64: 1, 128>}, {transform_indices = @transform_6, window_bounds = array<i64: 1, 1, 4, 128>}]} {
    %cst = arith.constant 0.000000e+00 : f32
    %0 = vector.broadcast %cst : f32 to vector<4x128xf32>
    %c0 = arith.constant 0 : index
    %c0_0 = arith.constant 0 : index
    %c0_1 = arith.constant 0 : index
    %c0_2 = arith.constant 0 : index
    %1 = vector.load %arg2[%c0, %c0_0, %c0_1, %c0_2] : memref<1x2x5x128xbf16, #tpu.memory_space<vmem>>, vector<1x1x4x128xbf16>
    %2 = vector.shape_cast %1 : vector<1x1x4x128xbf16> to vector<4x128xbf16>
    %c0_3 = arith.constant 0 : index
    %c0_4 = arith.constant 0 : index
    %c0_5 = arith.constant 0 : index
    %c0_6 = arith.constant 0 : index
    %3 = vector.load %arg6[%c0_3, %c0_4, %c0_5, %c0_6] : memref<4x4x128x128xbf16, #tpu.memory_space<vmem>>, vector<1x1x128x128xbf16>
    %4 = vector.shape_cast %3 : vector<1x1x128x128xbf16> to vector<128x128xbf16>
    %cst_7 = arith.constant dense<0.000000e+00> : vector<4x128xf32>
    %5 = tpu.matmul %2, %4, %cst_7 {dimension_numbers = #tpu.dot_dimension_numbers<[1], [0], [0], [1], [0, 0, 1, 1], [], []>} : vector<4x128xbf16>, vector<128x128xbf16>, vector<4x128xf32> -> vector<4x128xf32>
    %6 = arith.addf %0, %5 : vector<4x128xf32>
    %c0_8 = arith.constant 0 : index
    %c0_9 = arith.constant 0 : index
    %c0_10 = arith.constant 0 : index
    %c0_11 = arith.constant 0 : index
    %7 = vector.load %arg4[%c0_8, %c0_9, %c0_10, %c0_11] : memref<1x2x5x128xbf16, #tpu.memory_space<vmem>>, vector<1x1x4x128xbf16>
    %8 = vector.shape_cast %7 : vector<1x1x4x128xbf16> to vector<4x128xbf16>
    %c0_12 = arith.constant 0 : index
    %c1 = arith.constant 1 : index
    %c0_13 = arith.constant 0 : index
    %c0_14 = arith.constant 0 : index
    %9 = vector.load %arg6[%c0_12, %c1, %c0_13, %c0_14] : memref<4x4x128x128xbf16, #tpu.memory_space<vmem>>, vector<1x1x128x128xbf16>
    %10 = vector.shape_cast %9 : vector<1x1x128x128xbf16> to vector<128x128xbf16>
    %cst_15 = arith.constant dense<0.000000e+00> : vector<4x128xf32>
    %11 = tpu.matmul %8, %10, %cst_15 {dimension_numbers = #tpu.dot_dimension_numbers<[1], [0], [0], [1], [0, 0, 1, 1], [], []>} : vector<4x128xbf16>, vector<128x128xbf16>, vector<4x128xf32> -> vector<4x128xf32>
    %12 = arith.addf %6, %11 : vector<4x128xf32>
    %c0_16 = arith.constant 0 : index
    %c0_17 = arith.constant 0 : index
    %c1_18 = arith.constant 1 : index
    %c0_19 = arith.constant 0 : index
    %13 = vector.load %arg2[%c0_16, %c0_17, %c1_18, %c0_19] : memref<1x2x5x128xbf16, #tpu.memory_space<vmem>>, vector<1x1x4x128xbf16>
    %14 = vector.shape_cast %13 : vector<1x1x4x128xbf16> to vector<4x128xbf16>
    %c0_20 = arith.constant 0 : index
    %c2 = arith.constant 2 : index
    %c0_21 = arith.constant 0 : index
    %c0_22 = arith.constant 0 : index
    %15 = vector.load %arg6[%c0_20, %c2, %c0_21, %c0_22] : memref<4x4x128x128xbf16, #tpu.memory_space<vmem>>, vector<1x1x128x128xbf16>
    %16 = vector.shape_cast %15 : vector<1x1x128x128xbf16> to vector<128x128xbf16>
    %cst_23 = arith.constant dense<0.000000e+00> : vector<4x128xf32>
    %17 = tpu.matmul %14, %16, %cst_23 {dimension_numbers = #tpu.dot_dimension_numbers<[1], [0], [0], [1], [0, 0, 1, 1], [], []>} : vector<4x128xbf16>, vector<128x128xbf16>, vector<4x128xf32> -> vector<4x128xf32>
    %18 = arith.addf %12, %17 : vector<4x128xf32>
    %c0_24 = arith.constant 0 : index
    %c0_25 = arith.constant 0 : index
    %c1_26 = arith.constant 1 : index
    %c0_27 = arith.constant 0 : index
    %19 = vector.load %arg4[%c0_24, %c0_25, %c1_26, %c0_27] : memref<1x2x5x128xbf16, #tpu.memory_space<vmem>>, vector<1x1x4x128xbf16>
    %20 = vector.shape_cast %19 : vector<1x1x4x128xbf16> to vector<4x128xbf16>
    %c0_28 = arith.constant 0 : index
    %c3 = arith.constant 3 : index
    %c0_29 = arith.constant 0 : index
    %c0_30 = arith.constant 0 : index
    %21 = vector.load %arg6[%c0_28, %c3, %c0_29, %c0_30] : memref<4x4x128x128xbf16, #tpu.memory_space<vmem>>, vector<1x1x128x128xbf16>
    %22 = vector.shape_cast %21 : vector<1x1x128x128xbf16> to vector<128x128xbf16>
    %cst_31 = arith.constant dense<0.000000e+00> : vector<4x128xf32>
    %23 = tpu.matmul %20, %22, %cst_31 {dimension_numbers = #tpu.dot_dimension_numbers<[1], [0], [0], [1], [0, 0, 1, 1], [], []>} : vector<4x128xbf16>, vector<128x128xbf16>, vector<4x128xf32> -> vector<4x128xf32>
    %24 = arith.addf %18, %23 : vector<4x128xf32>
    %c0_32 = arith.constant 0 : index
    %c1_33 = arith.constant 1 : index
    %c0_34 = arith.constant 0 : index
    %c0_35 = arith.constant 0 : index
    %25 = vector.load %arg2[%c0_32, %c1_33, %c0_34, %c0_35] : memref<1x2x5x128xbf16, #tpu.memory_space<vmem>>, vector<1x1x4x128xbf16>
    %26 = vector.shape_cast %25 : vector<1x1x4x128xbf16> to vector<4x128xbf16>
    %c1_36 = arith.constant 1 : index
    %c0_37 = arith.constant 0 : index
    %c0_38 = arith.constant 0 : index
    %c0_39 = arith.constant 0 : index
    %27 = vector.load %arg6[%c1_36, %c0_37, %c0_38, %c0_39] : memref<4x4x128x128xbf16, #tpu.memory_space<vmem>>, vector<1x1x128x128xbf16>
    %28 = vector.shape_cast %27 : vector<1x1x128x128xbf16> to vector<128x128xbf16>
    %cst_40 = arith.constant dense<0.000000e+00> : vector<4x128xf32>
    %29 = tpu.matmul %26, %28, %cst_40 {dimension_numbers = #tpu.dot_dimension_numbers<[1], [0], [0], [1], [0, 0, 1, 1], [], []>} : vector<4x128xbf16>, vector<128x128xbf16>, vector<4x128xf32> -> vector<4x128xf32>
    %30 = arith.addf %24, %29 : vector<4x128xf32>
    %c0_41 = arith.constant 0 : index
    %c1_42 = arith.constant 1 : index
    %c0_43 = arith.constant 0 : index
    %c0_44 = arith.constant 0 : index
    %31 = vector.load %arg4[%c0_41, %c1_42, %c0_43, %c0_44] : memref<1x2x5x128xbf16, #tpu.memory_space<vmem>>, vector<1x1x4x128xbf16>
    %32 = vector.shape_cast %31 : vector<1x1x4x128xbf16> to vector<4x128xbf16>
    %c1_45 = arith.constant 1 : index
    %c1_46 = arith.constant 1 : index
    %c0_47 = arith.constant 0 : index
    %c0_48 = arith.constant 0 : index
    %33 = vector.load %arg6[%c1_45, %c1_46, %c0_47, %c0_48] : memref<4x4x128x128xbf16, #tpu.memory_space<vmem>>, vector<1x1x128x128xbf16>
    %34 = vector.shape_cast %33 : vector<1x1x128x128xbf16> to vector<128x128xbf16>
    %cst_49 = arith.constant dense<0.000000e+00> : vector<4x128xf32>
    %35 = tpu.matmul %32, %34, %cst_49 {dimension_numbers = #tpu.dot_dimension_numbers<[1], [0], [0], [1], [0, 0, 1, 1], [], []>} : vector<4x128xbf16>, vector<128x128xbf16>, vector<4x128xf32> -> vector<4x128xf32>
    %36 = arith.addf %30, %35 : vector<4x128xf32>
    %c0_50 = arith.constant 0 : index
    %c1_51 = arith.constant 1 : index
    %c1_52 = arith.constant 1 : index
    %c0_53 = arith.constant 0 : index
    %37 = vector.load %arg2[%c0_50, %c1_51, %c1_52, %c0_53] : memref<1x2x5x128xbf16, #tpu.memory_space<vmem>>, vector<1x1x4x128xbf16>
    %38 = vector.shape_cast %37 : vector<1x1x4x128xbf16> to vector<4x128xbf16>
    %c1_54 = arith.constant 1 : index
    %c2_55 = arith.constant 2 : index
    %c0_56 = arith.constant 0 : index
    %c0_57 = arith.constant 0 : index
    %39 = vector.load %arg6[%c1_54, %c2_55, %c0_56, %c0_57] : memref<4x4x128x128xbf16, #tpu.memory_space<vmem>>, vector<1x1x128x128xbf16>
    %40 = vector.shape_cast %39 : vector<1x1x128x128xbf16> to vector<128x128xbf16>
    %cst_58 = arith.constant dense<0.000000e+00> : vector<4x128xf32>
    %41 = tpu.matmul %38, %40, %cst_58 {dimension_numbers = #tpu.dot_dimension_numbers<[1], [0], [0], [1], [0, 0, 1, 1], [], []>} : vector<4x128xbf16>, vector<128x128xbf16>, vector<4x128xf32> -> vector<4x128xf32>
    %42 = arith.addf %36, %41 : vector<4x128xf32>
    %c0_59 = arith.constant 0 : index
    %c1_60 = arith.constant 1 : index
    %c1_61 = arith.constant 1 : index
    %c0_62 = arith.constant 0 : index
    %43 = vector.load %arg4[%c0_59, %c1_60, %c1_61, %c0_62] : memref<1x2x5x128xbf16, #tpu.memory_space<vmem>>, vector<1x1x4x128xbf16>
    %44 = vector.shape_cast %43 : vector<1x1x4x128xbf16> to vector<4x128xbf16>
    %c1_63 = arith.constant 1 : index
    %c3_64 = arith.constant 3 : index
    %c0_65 = arith.constant 0 : index
    %c0_66 = arith.constant 0 : index
    %45 = vector.load %arg6[%c1_63, %c3_64, %c0_65, %c0_66] : memref<4x4x128x128xbf16, #tpu.memory_space<vmem>>, vector<1x1x128x128xbf16>
    %46 = vector.shape_cast %45 : vector<1x1x128x128xbf16> to vector<128x128xbf16>
    %cst_67 = arith.constant dense<0.000000e+00> : vector<4x128xf32>
    %47 = tpu.matmul %44, %46, %cst_67 {dimension_numbers = #tpu.dot_dimension_numbers<[1], [0], [0], [1], [0, 0, 1, 1], [], []>} : vector<4x128xbf16>, vector<128x128xbf16>, vector<4x128xf32> -> vector<4x128xf32>
    %48 = arith.addf %42, %47 : vector<4x128xf32>
    %c0_68 = arith.constant 0 : index
    %c0_69 = arith.constant 0 : index
    %c0_70 = arith.constant 0 : index
    %c0_71 = arith.constant 0 : index
    %49 = vector.load %arg3[%c0_68, %c0_69, %c0_70, %c0_71] : memref<1x2x5x128xbf16, #tpu.memory_space<vmem>>, vector<1x1x4x128xbf16>
    %50 = vector.shape_cast %49 : vector<1x1x4x128xbf16> to vector<4x128xbf16>
    %c2_72 = arith.constant 2 : index
    %c0_73 = arith.constant 0 : index
    %c0_74 = arith.constant 0 : index
    %c0_75 = arith.constant 0 : index
    %51 = vector.load %arg6[%c2_72, %c0_73, %c0_74, %c0_75] : memref<4x4x128x128xbf16, #tpu.memory_space<vmem>>, vector<1x1x128x128xbf16>
    %52 = vector.shape_cast %51 : vector<1x1x128x128xbf16> to vector<128x128xbf16>
    %cst_76 = arith.constant dense<0.000000e+00> : vector<4x128xf32>
    %53 = tpu.matmul %50, %52, %cst_76 {dimension_numbers = #tpu.dot_dimension_numbers<[1], [0], [0], [1], [0, 0, 1, 1], [], []>} : vector<4x128xbf16>, vector<128x128xbf16>, vector<4x128xf32> -> vector<4x128xf32>
    %54 = arith.addf %48, %53 : vector<4x128xf32>
    %c0_77 = arith.constant 0 : index
    %c0_78 = arith.constant 0 : index
    %c0_79 = arith.constant 0 : index
    %c0_80 = arith.constant 0 : index
    %55 = vector.load %arg5[%c0_77, %c0_78, %c0_79, %c0_80] : memref<1x2x5x128xbf16, #tpu.memory_space<vmem>>, vector<1x1x4x128xbf16>
    %56 = vector.shape_cast %55 : vector<1x1x4x128xbf16> to vector<4x128xbf16>
    %c2_81 = arith.constant 2 : index
    %c1_82 = arith.constant 1 : index
    %c0_83 = arith.constant 0 : index
    %c0_84 = arith.constant 0 : index
    %57 = vector.load %arg6[%c2_81, %c1_82, %c0_83, %c0_84] : memref<4x4x128x128xbf16, #tpu.memory_space<vmem>>, vector<1x1x128x128xbf16>
    %58 = vector.shape_cast %57 : vector<1x1x128x128xbf16> to vector<128x128xbf16>
    %cst_85 = arith.constant dense<0.000000e+00> : vector<4x128xf32>
    %59 = tpu.matmul %56, %58, %cst_85 {dimension_numbers = #tpu.dot_dimension_numbers<[1], [0], [0], [1], [0, 0, 1, 1], [], []>} : vector<4x128xbf16>, vector<128x128xbf16>, vector<4x128xf32> -> vector<4x128xf32>
    %60 = arith.addf %54, %59 : vector<4x128xf32>
    %c0_86 = arith.constant 0 : index
    %c0_87 = arith.constant 0 : index
    %c1_88 = arith.constant 1 : index
    %c0_89 = arith.constant 0 : index
    %61 = vector.load %arg3[%c0_86, %c0_87, %c1_88, %c0_89] : memref<1x2x5x128xbf16, #tpu.memory_space<vmem>>, vector<1x1x4x128xbf16>
    %62 = vector.shape_cast %61 : vector<1x1x4x128xbf16> to vector<4x128xbf16>
    %c2_90 = arith.constant 2 : index
    %c2_91 = arith.constant 2 : index
    %c0_92 = arith.constant 0 : index
    %c0_93 = arith.constant 0 : index
    %63 = vector.load %arg6[%c2_90, %c2_91, %c0_92, %c0_93] : memref<4x4x128x128xbf16, #tpu.memory_space<vmem>>, vector<1x1x128x128xbf16>
    %64 = vector.shape_cast %63 : vector<1x1x128x128xbf16> to vector<128x128xbf16>
    %cst_94 = arith.constant dense<0.000000e+00> : vector<4x128xf32>
    %65 = tpu.matmul %62, %64, %cst_94 {dimension_numbers = #tpu.dot_dimension_numbers<[1], [0], [0], [1], [0, 0, 1, 1], [], []>} : vector<4x128xbf16>, vector<128x128xbf16>, vector<4x128xf32> -> vector<4x128xf32>
    %66 = arith.addf %60, %65 : vector<4x128xf32>
    %c0_95 = arith.constant 0 : index
    %c0_96 = arith.constant 0 : index
    %c1_97 = arith.constant 1 : index
    %c0_98 = arith.constant 0 : index
    %67 = vector.load %arg5[%c0_95, %c0_96, %c1_97, %c0_98] : memref<1x2x5x128xbf16, #tpu.memory_space<vmem>>, vector<1x1x4x128xbf16>
    %68 = vector.shape_cast %67 : vector<1x1x4x128xbf16> to vector<4x128xbf16>
    %c2_99 = arith.constant 2 : index
    %c3_100 = arith.constant 3 : index
    %c0_101 = arith.constant 0 : index
    %c0_102 = arith.constant 0 : index
    %69 = vector.load %arg6[%c2_99, %c3_100, %c0_101, %c0_102] : memref<4x4x128x128xbf16, #tpu.memory_space<vmem>>, vector<1x1x128x128xbf16>
    %70 = vector.shape_cast %69 : vector<1x1x128x128xbf16> to vector<128x128xbf16>
    %cst_103 = arith.constant dense<0.000000e+00> : vector<4x128xf32>
    %71 = tpu.matmul %68, %70, %cst_103 {dimension_numbers = #tpu.dot_dimension_numbers<[1], [0], [0], [1], [0, 0, 1, 1], [], []>} : vector<4x128xbf16>, vector<128x128xbf16>, vector<4x128xf32> -> vector<4x128xf32>
    %72 = arith.addf %66, %71 : vector<4x128xf32>
    %c0_104 = arith.constant 0 : index
    %c1_105 = arith.constant 1 : index
    %c0_106 = arith.constant 0 : index
    %c0_107 = arith.constant 0 : index
    %73 = vector.load %arg3[%c0_104, %c1_105, %c0_106, %c0_107] : memref<1x2x5x128xbf16, #tpu.memory_space<vmem>>, vector<1x1x4x128xbf16>
    %74 = vector.shape_cast %73 : vector<1x1x4x128xbf16> to vector<4x128xbf16>
    %c3_108 = arith.constant 3 : index
    %c0_109 = arith.constant 0 : index
    %c0_110 = arith.constant 0 : index
    %c0_111 = arith.constant 0 : index
    %75 = vector.load %arg6[%c3_108, %c0_109, %c0_110, %c0_111] : memref<4x4x128x128xbf16, #tpu.memory_space<vmem>>, vector<1x1x128x128xbf16>
    %76 = vector.shape_cast %75 : vector<1x1x128x128xbf16> to vector<128x128xbf16>
    %cst_112 = arith.constant dense<0.000000e+00> : vector<4x128xf32>
    %77 = tpu.matmul %74, %76, %cst_112 {dimension_numbers = #tpu.dot_dimension_numbers<[1], [0], [0], [1], [0, 0, 1, 1], [], []>} : vector<4x128xbf16>, vector<128x128xbf16>, vector<4x128xf32> -> vector<4x128xf32>
    %78 = arith.addf %72, %77 : vector<4x128xf32>
    %c0_113 = arith.constant 0 : index
    %c1_114 = arith.constant 1 : index
    %c0_115 = arith.constant 0 : index
    %c0_116 = arith.constant 0 : index
    %79 = vector.load %arg5[%c0_113, %c1_114, %c0_115, %c0_116] : memref<1x2x5x128xbf16, #tpu.memory_space<vmem>>, vector<1x1x4x128xbf16>
    %80 = vector.shape_cast %79 : vector<1x1x4x128xbf16> to vector<4x128xbf16>
    %c3_117 = arith.constant 3 : index
    %c1_118 = arith.constant 1 : index
    %c0_119 = arith.constant 0 : index
    %c0_120 = arith.constant 0 : index
    %81 = vector.load %arg6[%c3_117, %c1_118, %c0_119, %c0_120] : memref<4x4x128x128xbf16, #tpu.memory_space<vmem>>, vector<1x1x128x128xbf16>
    %82 = vector.shape_cast %81 : vector<1x1x128x128xbf16> to vector<128x128xbf16>
    %cst_121 = arith.constant dense<0.000000e+00> : vector<4x128xf32>
    %83 = tpu.matmul %80, %82, %cst_121 {dimension_numbers = #tpu.dot_dimension_numbers<[1], [0], [0], [1], [0, 0, 1, 1], [], []>} : vector<4x128xbf16>, vector<128x128xbf16>, vector<4x128xf32> -> vector<4x128xf32>
    %84 = arith.addf %78, %83 : vector<4x128xf32>
    %c0_122 = arith.constant 0 : index
    %c1_123 = arith.constant 1 : index
    %c1_124 = arith.constant 1 : index
    %c0_125 = arith.constant 0 : index
    %85 = vector.load %arg3[%c0_122, %c1_123, %c1_124, %c0_125] : memref<1x2x5x128xbf16, #tpu.memory_space<vmem>>, vector<1x1x4x128xbf16>
    %86 = vector.shape_cast %85 : vector<1x1x4x128xbf16> to vector<4x128xbf16>
    %c3_126 = arith.constant 3 : index
    %c2_127 = arith.constant 2 : index
    %c0_128 = arith.constant 0 : index
    %c0_129 = arith.constant 0 : index
    %87 = vector.load %arg6[%c3_126, %c2_127, %c0_128, %c0_129] : memref<4x4x128x128xbf16, #tpu.memory_space<vmem>>, vector<1x1x128x128xbf16>
    %88 = vector.shape_cast %87 : vector<1x1x128x128xbf16> to vector<128x128xbf16>
    %cst_130 = arith.constant dense<0.000000e+00> : vector<4x128xf32>
    %89 = tpu.matmul %86, %88, %cst_130 {dimension_numbers = #tpu.dot_dimension_numbers<[1], [0], [0], [1], [0, 0, 1, 1], [], []>} : vector<4x128xbf16>, vector<128x128xbf16>, vector<4x128xf32> -> vector<4x128xf32>
    %90 = arith.addf %84, %89 : vector<4x128xf32>
    %c0_131 = arith.constant 0 : index
    %c1_132 = arith.constant 1 : index
    %c1_133 = arith.constant 1 : index
    %c0_134 = arith.constant 0 : index
    %91 = vector.load %arg5[%c0_131, %c1_132, %c1_133, %c0_134] : memref<1x2x5x128xbf16, #tpu.memory_space<vmem>>, vector<1x1x4x128xbf16>
    %92 = vector.shape_cast %91 : vector<1x1x4x128xbf16> to vector<4x128xbf16>
    %c3_135 = arith.constant 3 : index
    %c3_136 = arith.constant 3 : index
    %c0_137 = arith.constant 0 : index
    %c0_138 = arith.constant 0 : index
    %93 = vector.load %arg6[%c3_135, %c3_136, %c0_137, %c0_138] : memref<4x4x128x128xbf16, #tpu.memory_space<vmem>>, vector<1x1x128x128xbf16>
    %94 = vector.shape_cast %93 : vector<1x1x128x128xbf16> to vector<128x128xbf16>
    %cst_139 = arith.constant dense<0.000000e+00> : vector<4x128xf32>
    %95 = tpu.matmul %92, %94, %cst_139 {dimension_numbers = #tpu.dot_dimension_numbers<[1], [0], [0], [1], [0, 0, 1, 1], [], []>} : vector<4x128xbf16>, vector<128x128xbf16>, vector<4x128xf32> -> vector<4x128xf32>
    %96 = arith.addf %90, %95 : vector<4x128xf32>
    %c0_140 = arith.constant 0 : index
    %c0_141 = arith.constant 0 : index
    %97 = vector.load %arg7[%c0_140, %c0_141] : memref<1x128xf32, #tpu.memory_space<vmem>>, vector<1x128xf32>
    %98 = vector.broadcast %97 : vector<1x128xf32> to vector<4x128xf32>
    %99 = arith.addf %96, %98 : vector<4x128xf32>
    %100 = arith.truncf %99 : vector<4x128xf32> to vector<4x128xbf16>
    %c0_142 = arith.constant 0 : index
    %c0_143 = arith.constant 0 : index
    %c0_144 = arith.constant 0 : index
    %c0_145 = arith.constant 0 : index
    %101 = vector.load %arg8[%c0_142, %c0_143, %c0_144, %c0_145] : memref<1x1x4x128xbf16, #tpu.memory_space<vmem>>, vector<1x1x4x128xbf16>
    %102 = vector.shape_cast %101 : vector<1x1x4x128xbf16> to vector<4x128xbf16>
    %103 = vector.shape_cast %100 : vector<4x128xbf16> to vector<1x1x4x128xbf16>
    tpu.vector_store %arg8[%c0_142, %c0_143, %c0_144, %c0_145], %103 {strides = array<i32>} : memref<1x1x4x128xbf16, #tpu.memory_space<vmem>>, vector<1x1x4x128xbf16>,
    return
  }
  func.func @transform_0(%arg0: i32, %arg1: i32) -> (i32, i32, i32, i32) {
    %c0_i32 = arith.constant 0 : i32
    %0 = arith.addi %arg1, %c0_i32 : i32
    %c0_i32_0 = arith.constant 0 : i32
    %c0_i32_1 = arith.constant 0 : i32
    %c0_i32_2 = arith.constant 0 : i32
    return %arg0, %0, %c0_i32_0, %c0_i32_1 : i32, i32, i32, i32
  }
  func.func @transform_1(%arg0: i32, %arg1: i32) -> (i32, i32, i32, i32) {
    %c1_i32 = arith.constant 1 : i32
    %0 = arith.addi %arg1, %c1_i32 : i32
    %c0_i32 = arith.constant 0 : i32
    %c0_i32_0 = arith.constant 0 : i32
    %c0_i32_1 = arith.constant 0 : i32
    return %arg0, %0, %c0_i32, %c0_i32_0 : i32, i32, i32, i32
  }
  func.func @transform_2(%arg0: i32, %arg1: i32) -> (i32, i32, i32, i32) {
    %c0_i32 = arith.constant 0 : i32
    %0 = arith.addi %arg1, %c0_i32 : i32
    %c0_i32_0 = arith.constant 0 : i32
    %c0_i32_1 = arith.constant 0 : i32
    %c0_i32_2 = arith.constant 0 : i32
    return %arg0, %0, %c0_i32_0, %c0_i32_1 : i32, i32, i32, i32
  }
  func.func @transform_3(%arg0: i32, %arg1: i32) -> (i32, i32, i32, i32) {
    %c1_i32 = arith.constant 1 : i32
    %0 = arith.addi %arg1, %c1_i32 : i32
    %c0_i32 = arith.constant 0 : i32
    %c0_i32_0 = arith.constant 0 : i32
    %c0_i32_1 = arith.constant 0 : i32
    return %arg0, %0, %c0_i32, %c0_i32_0 : i32, i32, i32, i32
  }
  func.func @transform_4(%arg0: i32, %arg1: i32) -> (i32, i32, i32, i32) {
    %c0_i32 = arith.constant 0 : i32
    %c0_i32_0 = arith.constant 0 : i32
    %c0_i32_1 = arith.constant 0 : i32
    %c0_i32_2 = arith.constant 0 : i32
    %c0_i32_3 = arith.constant 0 : i32
    return %c0_i32, %c0_i32_0, %c0_i32_1, %c0_i32_2 : i32, i32, i32, i32
  }
  func.func @transform_5(%arg0: i32, %arg1: i32) -> (i32, i32) {
    %c0_i32 = arith.constant 0 : i32
    %c0_i32_0 = arith.constant 0 : i32
    %c0_i32_1 = arith.constant 0 : i32
    return %c0_i32, %c0_i32_0 : i32, i32
  }
  func.func @transform_6(%arg0: i32, %arg1: i32) -> (i32, i32, i32, i32) {
    %c0_i32 = arith.constant 0 : i32
    %c0_i32_0 = arith.constant 0 : i32
    %c0_i32_1 = arith.constant 0 : i32
    return %arg0, %arg1, %c0_i32, %c0_i32_0 : i32, i32, i32, i32
  }
}

module attributes {stable_mosaic.version = 11 : i64} {
  func.func @_inorm_lrelu_kernel(%arg0: i32, %arg1: memref<1x16x128xbf16, #tpu.memory_space<vmem>>, %arg2: memref<1x16x128xbf16, #tpu.memory_space<vmem>>) attributes {dimension_semantics = [#tpu.dimension_semantics<parallel>], iteration_bounds = array<i64: 2>, scalar_prefetch = 0 : i64, scratch_operands = 0 : i64, tpu.core_type = #tpu.core_type<tc>, window_params = [{transform_indices = @transform_0, window_bounds = array<i64: 1, 16, 128>}, {transform_indices = @transform_1, window_bounds = array<i64: 1, 16, 128>}]} {
    %c0 = arith.constant 0 : index
    %c0_0 = arith.constant 0 : index
    %c0_1 = arith.constant 0 : index
    %0 = vector.load %arg1[%c0, %c0_0, %c0_1] : memref<1x16x128xbf16, #tpu.memory_space<vmem>>, vector<1x16x128xbf16>
    %1 = vector.shape_cast %0 : vector<1x16x128xbf16> to vector<16x128xbf16>
    %2 = arith.extf %1 : vector<16x128xbf16> to vector<16x128xf32>
    %cst = arith.constant dense<0.000000e+00> : vector<128xf32>
    %3 = vector.multi_reduction <add>, %2, %cst [0] : vector<16x128xf32> to vector<128xf32>
    %4 = vector.shape_cast %3 : vector<128xf32> to vector<1x128xf32>
    %cst_2 = arith.constant 6.250000e-02 : f32
    %5 = vector.broadcast %cst_2 : f32 to vector<1x128xf32>
    %6 = arith.mulf %4, %5 : vector<1x128xf32>
    %7 = arith.mulf %2, %2 : vector<16x128xf32>
    %cst_3 = arith.constant dense<0.000000e+00> : vector<128xf32>
    %8 = vector.multi_reduction <add>, %7, %cst_3 [0] : vector<16x128xf32> to vector<128xf32>
    %9 = vector.shape_cast %8 : vector<128xf32> to vector<1x128xf32>
    %cst_4 = arith.constant 6.250000e-02 : f32
    %10 = vector.broadcast %cst_4 : f32 to vector<1x128xf32>
    %11 = arith.mulf %9, %10 : vector<1x128xf32>
    %12 = arith.mulf %6, %6 : vector<1x128xf32>
    %13 = arith.subf %11, %12 : vector<1x128xf32>
    %cst_5 = arith.constant 0.000000e+00 : f32
    %14 = vector.broadcast %cst_5 : f32 to vector<1x128xf32>
    %15 = arith.maximumf %13, %14 : vector<1x128xf32>
    %16 = vector.broadcast %6 : vector<1x128xf32> to vector<16x128xf32>
    %17 = arith.subf %2, %16 : vector<16x128xf32>
    %cst_6 = arith.constant 9.99999974E-6 : f32
    %18 = vector.broadcast %cst_6 : f32 to vector<1x128xf32>
    %19 = arith.addf %15, %18 : vector<1x128xf32>
    %20 = math.rsqrt %19 : vector<1x128xf32>
    %21 = vector.broadcast %20 : vector<1x128xf32> to vector<16x128xf32>
    %22 = arith.mulf %17, %21 : vector<16x128xf32>
    %cst_7 = arith.constant 0.000000e+00 : f32
    %23 = vector.broadcast %cst_7 : f32 to vector<16x128xf32>
    %24 = arith.cmpf oge, %22, %23 : vector<16x128xf32>
    %cst_8 = arith.constant 2.000000e-01 : f32
    %25 = vector.broadcast %cst_8 : f32 to vector<16x128xf32>
    %26 = arith.mulf %25, %22 : vector<16x128xf32>
    %27 = arith.select %24, %22, %26 : vector<16x128xi1>, vector<16x128xf32>
    %28 = arith.truncf %27 : vector<16x128xf32> to vector<16x128xbf16>
    %c0_9 = arith.constant 0 : index
    %c0_10 = arith.constant 0 : index
    %c0_11 = arith.constant 0 : index
    %29 = vector.load %arg2[%c0_9, %c0_10, %c0_11] : memref<1x16x128xbf16, #tpu.memory_space<vmem>>, vector<1x16x128xbf16>
    %30 = vector.shape_cast %29 : vector<1x16x128xbf16> to vector<16x128xbf16>
    %31 = vector.shape_cast %28 : vector<16x128xbf16> to vector<1x16x128xbf16>
    tpu.vector_store %arg2[%c0_9, %c0_10, %c0_11], %31 {strides = array<i32>} : memref<1x16x128xbf16, #tpu.memory_space<vmem>>, vector<1x16x128xbf16>,
    return
  }
  func.func @transform_0(%arg0: i32) -> (i32, i32, i32) {
    %c0_i32 = arith.constant 0 : i32
    %c0_i32_0 = arith.constant 0 : i32
    %c0_i32_1 = arith.constant 0 : i32
    return %arg0, %c0_i32, %c0_i32_0 : i32, i32, i32
  }
  func.func @transform_1(%arg0: i32) -> (i32, i32, i32) {
    %c0_i32 = arith.constant 0 : i32
    %c0_i32_0 = arith.constant 0 : i32
    %c0_i32_1 = arith.constant 0 : i32
    return %arg0, %c0_i32, %c0_i32_0 : i32, i32, i32
  }
}

module attributes {stable_mosaic.version = 11 : i64} {
  func.func @_conv4_kernel(%arg0: i32, %arg1: i32, %arg2: memref<1x1x6x128xbf16, #tpu.memory_space<vmem>>, %arg3: memref<1x1x6x128xbf16, #tpu.memory_space<vmem>>, %arg4: memref<1x1x6x128xbf16, #tpu.memory_space<vmem>>, %arg5: memref<1x1x6x128xbf16, #tpu.memory_space<vmem>>, %arg6: memref<4x4x128x128xbf16, #tpu.memory_space<vmem>>, %arg7: memref<1x128xf32, #tpu.memory_space<vmem>>, %arg8: memref<1x1x3x128xbf16, #tpu.memory_space<vmem>>) attributes {dimension_semantics = [#tpu.dimension_semantics<parallel>, #tpu.dimension_semantics<parallel>], iteration_bounds = array<i64: 2, 3>, scalar_prefetch = 0 : i64, scratch_operands = 0 : i64, tpu.core_type = #tpu.core_type<tc>, window_params = [{transform_indices = @transform_0, window_bounds = array<i64: 1, 1, 6, 128>}, {transform_indices = @transform_1, window_bounds = array<i64: 1, 1, 6, 128>}, {transform_indices = @transform_2, window_bounds = array<i64: 1, 1, 6, 128>}, {transform_indices = @transform_3, window_bounds = array<i64: 1, 1, 6, 128>}, {pipeline_mode = #tpu.pipeline_mode<synchronous>, transform_indices = @transform_4, window_bounds = array<i64: 4, 4, 128, 128>}, {pipeline_mode = #tpu.pipeline_mode<synchronous>, transform_indices = @transform_5, window_bounds = array<i64: 1, 128>}, {transform_indices = @transform_6, window_bounds = array<i64: 1, 1, 3, 128>}]} {
    %cst = arith.constant 0.000000e+00 : f32
    %0 = vector.broadcast %cst : f32 to vector<3x128xf32>
    %c0 = arith.constant 0 : index
    %c0_0 = arith.constant 0 : index
    %c0_1 = arith.constant 0 : index
    %c0_2 = arith.constant 0 : index
    %1 = vector.load %arg2[%c0, %c0_0, %c0_1, %c0_2] : memref<1x1x6x128xbf16, #tpu.memory_space<vmem>>, vector<1x1x3x128xbf16>
    %2 = vector.shape_cast %1 : vector<1x1x3x128xbf16> to vector<3x128xbf16>
    %c0_3 = arith.constant 0 : index
    %c0_4 = arith.constant 0 : index
    %c0_5 = arith.constant 0 : index
    %c0_6 = arith.constant 0 : index
    %3 = vector.load %arg6[%c0_3, %c0_4, %c0_5, %c0_6] : memref<4x4x128x128xbf16, #tpu.memory_space<vmem>>, vector<1x1x128x128xbf16>
    %4 = vector.shape_cast %3 : vector<1x1x128x128xbf16> to vector<128x128xbf16>
    %cst_7 = arith.constant dense<0.000000e+00> : vector<3x128xf32>
    %5 = tpu.matmul %2, %4, %cst_7 {dimension_numbers = #tpu.dot_dimension_numbers<[1], [0], [0], [1], [0, 0, 1, 1], [], []>} : vector<3x128xbf16>, vector<128x128xbf16>, vector<3x128xf32> -> vector<3x128xf32>
    %6 = arith.addf %0, %5 : vector<3x128xf32>
    %c0_8 = arith.constant 0 : index
    %c0_9 = arith.constant 0 : index
    %c1 = arith.constant 1 : index
    %c0_10 = arith.constant 0 : index
    %7 = vector.load %arg2[%c0_8, %c0_9, %c1, %c0_10] : memref<1x1x6x128xbf16, #tpu.memory_space<vmem>>, vector<1x1x3x128xbf16>
    %8 = vector.shape_cast %7 : vector<1x1x3x128xbf16> to vector<3x128xbf16>
    %c0_11 = arith.constant 0 : index
    %c1_12 = arith.constant 1 : index
    %c0_13 = arith.constant 0 : index
    %c0_14 = arith.constant 0 : index
    %9 = vector.load %arg6[%c0_11, %c1_12, %c0_13, %c0_14] : memref<4x4x128x128xbf16, #tpu.memory_space<vmem>>, vector<1x1x128x128xbf16>
    %10 = vector.shape_cast %9 : vector<1x1x128x128xbf16> to vector<128x128xbf16>
    %cst_15 = arith.constant dense<0.000000e+00> : vector<3x128xf32>
    %11 = tpu.matmul %8, %10, %cst_15 {dimension_numbers = #tpu.dot_dimension_numbers<[1], [0], [0], [1], [0, 0, 1, 1], [], []>} : vector<3x128xbf16>, vector<128x128xbf16>, vector<3x128xf32> -> vector<3x128xf32>
    %12 = arith.addf %6, %11 : vector<3x128xf32>
    %c0_16 = arith.constant 0 : index
    %c0_17 = arith.constant 0 : index
    %c2 = arith.constant 2 : index
    %c0_18 = arith.constant 0 : index
    %13 = vector.load %arg2[%c0_16, %c0_17, %c2, %c0_18] : memref<1x1x6x128xbf16, #tpu.memory_space<vmem>>, vector<1x1x3x128xbf16>
    %14 = vector.shape_cast %13 : vector<1x1x3x128xbf16> to vector<3x128xbf16>
    %c0_19 = arith.constant 0 : index
    %c2_20 = arith.constant 2 : index
    %c0_21 = arith.constant 0 : index
    %c0_22 = arith.constant 0 : index
    %15 = vector.load %arg6[%c0_19, %c2_20, %c0_21, %c0_22] : memref<4x4x128x128xbf16, #tpu.memory_space<vmem>>, vector<1x1x128x128xbf16>
    %16 = vector.shape_cast %15 : vector<1x1x128x128xbf16> to vector<128x128xbf16>
    %cst_23 = arith.constant dense<0.000000e+00> : vector<3x128xf32>
    %17 = tpu.matmul %14, %16, %cst_23 {dimension_numbers = #tpu.dot_dimension_numbers<[1], [0], [0], [1], [0, 0, 1, 1], [], []>} : vector<3x128xbf16>, vector<128x128xbf16>, vector<3x128xf32> -> vector<3x128xf32>
    %18 = arith.addf %12, %17 : vector<3x128xf32>
    %c0_24 = arith.constant 0 : index
    %c0_25 = arith.constant 0 : index
    %c3 = arith.constant 3 : index
    %c0_26 = arith.constant 0 : index
    %19 = vector.load %arg2[%c0_24, %c0_25, %c3, %c0_26] : memref<1x1x6x128xbf16, #tpu.memory_space<vmem>>, vector<1x1x3x128xbf16>
    %20 = vector.shape_cast %19 : vector<1x1x3x128xbf16> to vector<3x128xbf16>
    %c0_27 = arith.constant 0 : index
    %c3_28 = arith.constant 3 : index
    %c0_29 = arith.constant 0 : index
    %c0_30 = arith.constant 0 : index
    %21 = vector.load %arg6[%c0_27, %c3_28, %c0_29, %c0_30] : memref<4x4x128x128xbf16, #tpu.memory_space<vmem>>, vector<1x1x128x128xbf16>
    %22 = vector.shape_cast %21 : vector<1x1x128x128xbf16> to vector<128x128xbf16>
    %cst_31 = arith.constant dense<0.000000e+00> : vector<3x128xf32>
    %23 = tpu.matmul %20, %22, %cst_31 {dimension_numbers = #tpu.dot_dimension_numbers<[1], [0], [0], [1], [0, 0, 1, 1], [], []>} : vector<3x128xbf16>, vector<128x128xbf16>, vector<3x128xf32> -> vector<3x128xf32>
    %24 = arith.addf %18, %23 : vector<3x128xf32>
    %c0_32 = arith.constant 0 : index
    %c0_33 = arith.constant 0 : index
    %c0_34 = arith.constant 0 : index
    %c0_35 = arith.constant 0 : index
    %25 = vector.load %arg3[%c0_32, %c0_33, %c0_34, %c0_35] : memref<1x1x6x128xbf16, #tpu.memory_space<vmem>>, vector<1x1x3x128xbf16>
    %26 = vector.shape_cast %25 : vector<1x1x3x128xbf16> to vector<3x128xbf16>
    %c1_36 = arith.constant 1 : index
    %c0_37 = arith.constant 0 : index
    %c0_38 = arith.constant 0 : index
    %c0_39 = arith.constant 0 : index
    %27 = vector.load %arg6[%c1_36, %c0_37, %c0_38, %c0_39] : memref<4x4x128x128xbf16, #tpu.memory_space<vmem>>, vector<1x1x128x128xbf16>
    %28 = vector.shape_cast %27 : vector<1x1x128x128xbf16> to vector<128x128xbf16>
    %cst_40 = arith.constant dense<0.000000e+00> : vector<3x128xf32>
    %29 = tpu.matmul %26, %28, %cst_40 {dimension_numbers = #tpu.dot_dimension_numbers<[1], [0], [0], [1], [0, 0, 1, 1], [], []>} : vector<3x128xbf16>, vector<128x128xbf16>, vector<3x128xf32> -> vector<3x128xf32>
    %30 = arith.addf %24, %29 : vector<3x128xf32>
    %c0_41 = arith.constant 0 : index
    %c0_42 = arith.constant 0 : index
    %c1_43 = arith.constant 1 : index
    %c0_44 = arith.constant 0 : index
    %31 = vector.load %arg3[%c0_41, %c0_42, %c1_43, %c0_44] : memref<1x1x6x128xbf16, #tpu.memory_space<vmem>>, vector<1x1x3x128xbf16>
    %32 = vector.shape_cast %31 : vector<1x1x3x128xbf16> to vector<3x128xbf16>
    %c1_45 = arith.constant 1 : index
    %c1_46 = arith.constant 1 : index
    %c0_47 = arith.constant 0 : index
    %c0_48 = arith.constant 0 : index
    %33 = vector.load %arg6[%c1_45, %c1_46, %c0_47, %c0_48] : memref<4x4x128x128xbf16, #tpu.memory_space<vmem>>, vector<1x1x128x128xbf16>
    %34 = vector.shape_cast %33 : vector<1x1x128x128xbf16> to vector<128x128xbf16>
    %cst_49 = arith.constant dense<0.000000e+00> : vector<3x128xf32>
    %35 = tpu.matmul %32, %34, %cst_49 {dimension_numbers = #tpu.dot_dimension_numbers<[1], [0], [0], [1], [0, 0, 1, 1], [], []>} : vector<3x128xbf16>, vector<128x128xbf16>, vector<3x128xf32> -> vector<3x128xf32>
    %36 = arith.addf %30, %35 : vector<3x128xf32>
    %c0_50 = arith.constant 0 : index
    %c0_51 = arith.constant 0 : index
    %c2_52 = arith.constant 2 : index
    %c0_53 = arith.constant 0 : index
    %37 = vector.load %arg3[%c0_50, %c0_51, %c2_52, %c0_53] : memref<1x1x6x128xbf16, #tpu.memory_space<vmem>>, vector<1x1x3x128xbf16>
    %38 = vector.shape_cast %37 : vector<1x1x3x128xbf16> to vector<3x128xbf16>
    %c1_54 = arith.constant 1 : index
    %c2_55 = arith.constant 2 : index
    %c0_56 = arith.constant 0 : index
    %c0_57 = arith.constant 0 : index
    %39 = vector.load %arg6[%c1_54, %c2_55, %c0_56, %c0_57] : memref<4x4x128x128xbf16, #tpu.memory_space<vmem>>, vector<1x1x128x128xbf16>
    %40 = vector.shape_cast %39 : vector<1x1x128x128xbf16> to vector<128x128xbf16>
    %cst_58 = arith.constant dense<0.000000e+00> : vector<3x128xf32>
    %41 = tpu.matmul %38, %40, %cst_58 {dimension_numbers = #tpu.dot_dimension_numbers<[1], [0], [0], [1], [0, 0, 1, 1], [], []>} : vector<3x128xbf16>, vector<128x128xbf16>, vector<3x128xf32> -> vector<3x128xf32>
    %42 = arith.addf %36, %41 : vector<3x128xf32>
    %c0_59 = arith.constant 0 : index
    %c0_60 = arith.constant 0 : index
    %c3_61 = arith.constant 3 : index
    %c0_62 = arith.constant 0 : index
    %43 = vector.load %arg3[%c0_59, %c0_60, %c3_61, %c0_62] : memref<1x1x6x128xbf16, #tpu.memory_space<vmem>>, vector<1x1x3x128xbf16>
    %44 = vector.shape_cast %43 : vector<1x1x3x128xbf16> to vector<3x128xbf16>
    %c1_63 = arith.constant 1 : index
    %c3_64 = arith.constant 3 : index
    %c0_65 = arith.constant 0 : index
    %c0_66 = arith.constant 0 : index
    %45 = vector.load %arg6[%c1_63, %c3_64, %c0_65, %c0_66] : memref<4x4x128x128xbf16, #tpu.memory_space<vmem>>, vector<1x1x128x128xbf16>
    %46 = vector.shape_cast %45 : vector<1x1x128x128xbf16> to vector<128x128xbf16>
    %cst_67 = arith.constant dense<0.000000e+00> : vector<3x128xf32>
    %47 = tpu.matmul %44, %46, %cst_67 {dimension_numbers = #tpu.dot_dimension_numbers<[1], [0], [0], [1], [0, 0, 1, 1], [], []>} : vector<3x128xbf16>, vector<128x128xbf16>, vector<3x128xf32> -> vector<3x128xf32>
    %48 = arith.addf %42, %47 : vector<3x128xf32>
    %c0_68 = arith.constant 0 : index
    %c0_69 = arith.constant 0 : index
    %c0_70 = arith.constant 0 : index
    %c0_71 = arith.constant 0 : index
    %49 = vector.load %arg4[%c0_68, %c0_69, %c0_70, %c0_71] : memref<1x1x6x128xbf16, #tpu.memory_space<vmem>>, vector<1x1x3x128xbf16>
    %50 = vector.shape_cast %49 : vector<1x1x3x128xbf16> to vector<3x128xbf16>
    %c2_72 = arith.constant 2 : index
    %c0_73 = arith.constant 0 : index
    %c0_74 = arith.constant 0 : index
    %c0_75 = arith.constant 0 : index
    %51 = vector.load %arg6[%c2_72, %c0_73, %c0_74, %c0_75] : memref<4x4x128x128xbf16, #tpu.memory_space<vmem>>, vector<1x1x128x128xbf16>
    %52 = vector.shape_cast %51 : vector<1x1x128x128xbf16> to vector<128x128xbf16>
    %cst_76 = arith.constant dense<0.000000e+00> : vector<3x128xf32>
    %53 = tpu.matmul %50, %52, %cst_76 {dimension_numbers = #tpu.dot_dimension_numbers<[1], [0], [0], [1], [0, 0, 1, 1], [], []>} : vector<3x128xbf16>, vector<128x128xbf16>, vector<3x128xf32> -> vector<3x128xf32>
    %54 = arith.addf %48, %53 : vector<3x128xf32>
    %c0_77 = arith.constant 0 : index
    %c0_78 = arith.constant 0 : index
    %c1_79 = arith.constant 1 : index
    %c0_80 = arith.constant 0 : index
    %55 = vector.load %arg4[%c0_77, %c0_78, %c1_79, %c0_80] : memref<1x1x6x128xbf16, #tpu.memory_space<vmem>>, vector<1x1x3x128xbf16>
    %56 = vector.shape_cast %55 : vector<1x1x3x128xbf16> to vector<3x128xbf16>
    %c2_81 = arith.constant 2 : index
    %c1_82 = arith.constant 1 : index
    %c0_83 = arith.constant 0 : index
    %c0_84 = arith.constant 0 : index
    %57 = vector.load %arg6[%c2_81, %c1_82, %c0_83, %c0_84] : memref<4x4x128x128xbf16, #tpu.memory_space<vmem>>, vector<1x1x128x128xbf16>
    %58 = vector.shape_cast %57 : vector<1x1x128x128xbf16> to vector<128x128xbf16>
    %cst_85 = arith.constant dense<0.000000e+00> : vector<3x128xf32>
    %59 = tpu.matmul %56, %58, %cst_85 {dimension_numbers = #tpu.dot_dimension_numbers<[1], [0], [0], [1], [0, 0, 1, 1], [], []>} : vector<3x128xbf16>, vector<128x128xbf16>, vector<3x128xf32> -> vector<3x128xf32>
    %60 = arith.addf %54, %59 : vector<3x128xf32>
    %c0_86 = arith.constant 0 : index
    %c0_87 = arith.constant 0 : index
    %c2_88 = arith.constant 2 : index
    %c0_89 = arith.constant 0 : index
    %61 = vector.load %arg4[%c0_86, %c0_87, %c2_88, %c0_89] : memref<1x1x6x128xbf16, #tpu.memory_space<vmem>>, vector<1x1x3x128xbf16>
    %62 = vector.shape_cast %61 : vector<1x1x3x128xbf16> to vector<3x128xbf16>
    %c2_90 = arith.constant 2 : index
    %c2_91 = arith.constant 2 : index
    %c0_92 = arith.constant 0 : index
    %c0_93 = arith.constant 0 : index
    %63 = vector.load %arg6[%c2_90, %c2_91, %c0_92, %c0_93] : memref<4x4x128x128xbf16, #tpu.memory_space<vmem>>, vector<1x1x128x128xbf16>
    %64 = vector.shape_cast %63 : vector<1x1x128x128xbf16> to vector<128x128xbf16>
    %cst_94 = arith.constant dense<0.000000e+00> : vector<3x128xf32>
    %65 = tpu.matmul %62, %64, %cst_94 {dimension_numbers = #tpu.dot_dimension_numbers<[1], [0], [0], [1], [0, 0, 1, 1], [], []>} : vector<3x128xbf16>, vector<128x128xbf16>, vector<3x128xf32> -> vector<3x128xf32>
    %66 = arith.addf %60, %65 : vector<3x128xf32>
    %c0_95 = arith.constant 0 : index
    %c0_96 = arith.constant 0 : index
    %c3_97 = arith.constant 3 : index
    %c0_98 = arith.constant 0 : index
    %67 = vector.load %arg4[%c0_95, %c0_96, %c3_97, %c0_98] : memref<1x1x6x128xbf16, #tpu.memory_space<vmem>>, vector<1x1x3x128xbf16>
    %68 = vector.shape_cast %67 : vector<1x1x3x128xbf16> to vector<3x128xbf16>
    %c2_99 = arith.constant 2 : index
    %c3_100 = arith.constant 3 : index
    %c0_101 = arith.constant 0 : index
    %c0_102 = arith.constant 0 : index
    %69 = vector.load %arg6[%c2_99, %c3_100, %c0_101, %c0_102] : memref<4x4x128x128xbf16, #tpu.memory_space<vmem>>, vector<1x1x128x128xbf16>
    %70 = vector.shape_cast %69 : vector<1x1x128x128xbf16> to vector<128x128xbf16>
    %cst_103 = arith.constant dense<0.000000e+00> : vector<3x128xf32>
    %71 = tpu.matmul %68, %70, %cst_103 {dimension_numbers = #tpu.dot_dimension_numbers<[1], [0], [0], [1], [0, 0, 1, 1], [], []>} : vector<3x128xbf16>, vector<128x128xbf16>, vector<3x128xf32> -> vector<3x128xf32>
    %72 = arith.addf %66, %71 : vector<3x128xf32>
    %c0_104 = arith.constant 0 : index
    %c0_105 = arith.constant 0 : index
    %c0_106 = arith.constant 0 : index
    %c0_107 = arith.constant 0 : index
    %73 = vector.load %arg5[%c0_104, %c0_105, %c0_106, %c0_107] : memref<1x1x6x128xbf16, #tpu.memory_space<vmem>>, vector<1x1x3x128xbf16>
    %74 = vector.shape_cast %73 : vector<1x1x3x128xbf16> to vector<3x128xbf16>
    %c3_108 = arith.constant 3 : index
    %c0_109 = arith.constant 0 : index
    %c0_110 = arith.constant 0 : index
    %c0_111 = arith.constant 0 : index
    %75 = vector.load %arg6[%c3_108, %c0_109, %c0_110, %c0_111] : memref<4x4x128x128xbf16, #tpu.memory_space<vmem>>, vector<1x1x128x128xbf16>
    %76 = vector.shape_cast %75 : vector<1x1x128x128xbf16> to vector<128x128xbf16>
    %cst_112 = arith.constant dense<0.000000e+00> : vector<3x128xf32>
    %77 = tpu.matmul %74, %76, %cst_112 {dimension_numbers = #tpu.dot_dimension_numbers<[1], [0], [0], [1], [0, 0, 1, 1], [], []>} : vector<3x128xbf16>, vector<128x128xbf16>, vector<3x128xf32> -> vector<3x128xf32>
    %78 = arith.addf %72, %77 : vector<3x128xf32>
    %c0_113 = arith.constant 0 : index
    %c0_114 = arith.constant 0 : index
    %c1_115 = arith.constant 1 : index
    %c0_116 = arith.constant 0 : index
    %79 = vector.load %arg5[%c0_113, %c0_114, %c1_115, %c0_116] : memref<1x1x6x128xbf16, #tpu.memory_space<vmem>>, vector<1x1x3x128xbf16>
    %80 = vector.shape_cast %79 : vector<1x1x3x128xbf16> to vector<3x128xbf16>
    %c3_117 = arith.constant 3 : index
    %c1_118 = arith.constant 1 : index
    %c0_119 = arith.constant 0 : index
    %c0_120 = arith.constant 0 : index
    %81 = vector.load %arg6[%c3_117, %c1_118, %c0_119, %c0_120] : memref<4x4x128x128xbf16, #tpu.memory_space<vmem>>, vector<1x1x128x128xbf16>
    %82 = vector.shape_cast %81 : vector<1x1x128x128xbf16> to vector<128x128xbf16>
    %cst_121 = arith.constant dense<0.000000e+00> : vector<3x128xf32>
    %83 = tpu.matmul %80, %82, %cst_121 {dimension_numbers = #tpu.dot_dimension_numbers<[1], [0], [0], [1], [0, 0, 1, 1], [], []>} : vector<3x128xbf16>, vector<128x128xbf16>, vector<3x128xf32> -> vector<3x128xf32>
    %84 = arith.addf %78, %83 : vector<3x128xf32>
    %c0_122 = arith.constant 0 : index
    %c0_123 = arith.constant 0 : index
    %c2_124 = arith.constant 2 : index
    %c0_125 = arith.constant 0 : index
    %85 = vector.load %arg5[%c0_122, %c0_123, %c2_124, %c0_125] : memref<1x1x6x128xbf16, #tpu.memory_space<vmem>>, vector<1x1x3x128xbf16>
    %86 = vector.shape_cast %85 : vector<1x1x3x128xbf16> to vector<3x128xbf16>
    %c3_126 = arith.constant 3 : index
    %c2_127 = arith.constant 2 : index
    %c0_128 = arith.constant 0 : index
    %c0_129 = arith.constant 0 : index
    %87 = vector.load %arg6[%c3_126, %c2_127, %c0_128, %c0_129] : memref<4x4x128x128xbf16, #tpu.memory_space<vmem>>, vector<1x1x128x128xbf16>
    %88 = vector.shape_cast %87 : vector<1x1x128x128xbf16> to vector<128x128xbf16>
    %cst_130 = arith.constant dense<0.000000e+00> : vector<3x128xf32>
    %89 = tpu.matmul %86, %88, %cst_130 {dimension_numbers = #tpu.dot_dimension_numbers<[1], [0], [0], [1], [0, 0, 1, 1], [], []>} : vector<3x128xbf16>, vector<128x128xbf16>, vector<3x128xf32> -> vector<3x128xf32>
    %90 = arith.addf %84, %89 : vector<3x128xf32>
    %c0_131 = arith.constant 0 : index
    %c0_132 = arith.constant 0 : index
    %c3_133 = arith.constant 3 : index
    %c0_134 = arith.constant 0 : index
    %91 = vector.load %arg5[%c0_131, %c0_132, %c3_133, %c0_134] : memref<1x1x6x128xbf16, #tpu.memory_space<vmem>>, vector<1x1x3x128xbf16>
    %92 = vector.shape_cast %91 : vector<1x1x3x128xbf16> to vector<3x128xbf16>
    %c3_135 = arith.constant 3 : index
    %c3_136 = arith.constant 3 : index
    %c0_137 = arith.constant 0 : index
    %c0_138 = arith.constant 0 : index
    %93 = vector.load %arg6[%c3_135, %c3_136, %c0_137, %c0_138] : memref<4x4x128x128xbf16, #tpu.memory_space<vmem>>, vector<1x1x128x128xbf16>
    %94 = vector.shape_cast %93 : vector<1x1x128x128xbf16> to vector<128x128xbf16>
    %cst_139 = arith.constant dense<0.000000e+00> : vector<3x128xf32>
    %95 = tpu.matmul %92, %94, %cst_139 {dimension_numbers = #tpu.dot_dimension_numbers<[1], [0], [0], [1], [0, 0, 1, 1], [], []>} : vector<3x128xbf16>, vector<128x128xbf16>, vector<3x128xf32> -> vector<3x128xf32>
    %96 = arith.addf %90, %95 : vector<3x128xf32>
    %c0_140 = arith.constant 0 : index
    %c0_141 = arith.constant 0 : index
    %97 = vector.load %arg7[%c0_140, %c0_141] : memref<1x128xf32, #tpu.memory_space<vmem>>, vector<1x128xf32>
    %98 = vector.broadcast %97 : vector<1x128xf32> to vector<3x128xf32>
    %99 = arith.addf %96, %98 : vector<3x128xf32>
    %100 = arith.truncf %99 : vector<3x128xf32> to vector<3x128xbf16>
    %c0_142 = arith.constant 0 : index
    %c0_143 = arith.constant 0 : index
    %c0_144 = arith.constant 0 : index
    %c0_145 = arith.constant 0 : index
    %101 = vector.load %arg8[%c0_142, %c0_143, %c0_144, %c0_145] : memref<1x1x3x128xbf16, #tpu.memory_space<vmem>>, vector<1x1x3x128xbf16>
    %102 = vector.shape_cast %101 : vector<1x1x3x128xbf16> to vector<3x128xbf16>
    %103 = vector.shape_cast %100 : vector<3x128xbf16> to vector<1x1x3x128xbf16>
    tpu.vector_store %arg8[%c0_142, %c0_143, %c0_144, %c0_145], %103 {strides = array<i32>} : memref<1x1x3x128xbf16, #tpu.memory_space<vmem>>, vector<1x1x3x128xbf16>,
    return
  }
  func.func @transform_0(%arg0: i32, %arg1: i32) -> (i32, i32, i32, i32) {
    %c0_i32 = arith.constant 0 : i32
    %0 = arith.addi %arg1, %c0_i32 : i32
    %c0_i32_0 = arith.constant 0 : i32
    %c0_i32_1 = arith.constant 0 : i32
    %c0_i32_2 = arith.constant 0 : i32
    return %arg0, %0, %c0_i32_0, %c0_i32_1 : i32, i32, i32, i32
  }
  func.func @transform_1(%arg0: i32, %arg1: i32) -> (i32, i32, i32, i32) {
    %c1_i32 = arith.constant 1 : i32
    %0 = arith.addi %arg1, %c1_i32 : i32
    %c0_i32 = arith.constant 0 : i32
    %c0_i32_0 = arith.constant 0 : i32
    %c0_i32_1 = arith.constant 0 : i32
    return %arg0, %0, %c0_i32, %c0_i32_0 : i32, i32, i32, i32
  }
  func.func @transform_2(%arg0: i32, %arg1: i32) -> (i32, i32, i32, i32) {
    %c2_i32 = arith.constant 2 : i32
    %0 = arith.addi %arg1, %c2_i32 : i32
    %c0_i32 = arith.constant 0 : i32
    %c0_i32_0 = arith.constant 0 : i32
    %c0_i32_1 = arith.constant 0 : i32
    return %arg0, %0, %c0_i32, %c0_i32_0 : i32, i32, i32, i32
  }
  func.func @transform_3(%arg0: i32, %arg1: i32) -> (i32, i32, i32, i32) {
    %c3_i32 = arith.constant 3 : i32
    %0 = arith.addi %arg1, %c3_i32 : i32
    %c0_i32 = arith.constant 0 : i32
    %c0_i32_0 = arith.constant 0 : i32
    %c0_i32_1 = arith.constant 0 : i32
    return %arg0, %0, %c0_i32, %c0_i32_0 : i32, i32, i32, i32
  }
  func.func @transform_4(%arg0: i32, %arg1: i32) -> (i32, i32, i32, i32) {
    %c0_i32 = arith.constant 0 : i32
    %c0_i32_0 = arith.constant 0 : i32
    %c0_i32_1 = arith.constant 0 : i32
    %c0_i32_2 = arith.constant 0 : i32
    %c0_i32_3 = arith.constant 0 : i32
    return %c0_i32, %c0_i32_0, %c0_i32_1, %c0_i32_2 : i32, i32, i32, i32
  }
  func.func @transform_5(%arg0: i32, %arg1: i32) -> (i32, i32) {
    %c0_i32 = arith.constant 0 : i32
    %c0_i32_0 = arith.constant 0 : i32
    %c0_i32_1 = arith.constant 0 : i32
    return %c0_i32, %c0_i32_0 : i32, i32
  }
  func.func @transform_6(%arg0: i32, %arg1: i32) -> (i32, i32, i32, i32) {
    %c0_i32 = arith.constant 0 : i32
    %c0_i32_0 = arith.constant 0 : i32
    %c0_i32_1 = arith.constant 0 : i32
    return %arg0, %arg1, %c0_i32, %c0_i32_0 : i32, i32, i32, i32
  }
}

module attributes {stable_mosaic.version = 11 : i64} {
  func.func @_inorm_lrelu_kernel(%arg0: i32, %arg1: memref<1x9x128xbf16, #tpu.memory_space<vmem>>, %arg2: memref<1x9x128xbf16, #tpu.memory_space<vmem>>) attributes {dimension_semantics = [#tpu.dimension_semantics<parallel>], iteration_bounds = array<i64: 2>, scalar_prefetch = 0 : i64, scratch_operands = 0 : i64, tpu.core_type = #tpu.core_type<tc>, window_params = [{transform_indices = @transform_0, window_bounds = array<i64: 1, 9, 128>}, {transform_indices = @transform_1, window_bounds = array<i64: 1, 9, 128>}]} {
    %c0 = arith.constant 0 : index
    %c0_0 = arith.constant 0 : index
    %c0_1 = arith.constant 0 : index
    %0 = vector.load %arg1[%c0, %c0_0, %c0_1] : memref<1x9x128xbf16, #tpu.memory_space<vmem>>, vector<1x9x128xbf16>
    %1 = vector.shape_cast %0 : vector<1x9x128xbf16> to vector<9x128xbf16>
    %2 = arith.extf %1 : vector<9x128xbf16> to vector<9x128xf32>
    %cst = arith.constant dense<0.000000e+00> : vector<128xf32>
    %3 = vector.multi_reduction <add>, %2, %cst [0] : vector<9x128xf32> to vector<128xf32>
    %4 = vector.shape_cast %3 : vector<128xf32> to vector<1x128xf32>
    %cst_2 = arith.constant 0.111111112 : f32
    %5 = vector.broadcast %cst_2 : f32 to vector<1x128xf32>
    %6 = arith.mulf %4, %5 : vector<1x128xf32>
    %7 = arith.mulf %2, %2 : vector<9x128xf32>
    %cst_3 = arith.constant dense<0.000000e+00> : vector<128xf32>
    %8 = vector.multi_reduction <add>, %7, %cst_3 [0] : vector<9x128xf32> to vector<128xf32>
    %9 = vector.shape_cast %8 : vector<128xf32> to vector<1x128xf32>
    %cst_4 = arith.constant 0.111111112 : f32
    %10 = vector.broadcast %cst_4 : f32 to vector<1x128xf32>
    %11 = arith.mulf %9, %10 : vector<1x128xf32>
    %12 = arith.mulf %6, %6 : vector<1x128xf32>
    %13 = arith.subf %11, %12 : vector<1x128xf32>
    %cst_5 = arith.constant 0.000000e+00 : f32
    %14 = vector.broadcast %cst_5 : f32 to vector<1x128xf32>
    %15 = arith.maximumf %13, %14 : vector<1x128xf32>
    %16 = vector.broadcast %6 : vector<1x128xf32> to vector<9x128xf32>
    %17 = arith.subf %2, %16 : vector<9x128xf32>
    %cst_6 = arith.constant 9.99999974E-6 : f32
    %18 = vector.broadcast %cst_6 : f32 to vector<1x128xf32>
    %19 = arith.addf %15, %18 : vector<1x128xf32>
    %20 = math.rsqrt %19 : vector<1x128xf32>
    %21 = vector.broadcast %20 : vector<1x128xf32> to vector<9x128xf32>
    %22 = arith.mulf %17, %21 : vector<9x128xf32>
    %cst_7 = arith.constant 0.000000e+00 : f32
    %23 = vector.broadcast %cst_7 : f32 to vector<9x128xf32>
    %24 = arith.cmpf oge, %22, %23 : vector<9x128xf32>
    %cst_8 = arith.constant 2.000000e-01 : f32
    %25 = vector.broadcast %cst_8 : f32 to vector<9x128xf32>
    %26 = arith.mulf %25, %22 : vector<9x128xf32>
    %27 = arith.select %24, %22, %26 : vector<9x128xi1>, vector<9x128xf32>
    %28 = arith.truncf %27 : vector<9x128xf32> to vector<9x128xbf16>
    %c0_9 = arith.constant 0 : index
    %c0_10 = arith.constant 0 : index
    %c0_11 = arith.constant 0 : index
    %29 = vector.load %arg2[%c0_9, %c0_10, %c0_11] : memref<1x9x128xbf16, #tpu.memory_space<vmem>>, vector<1x9x128xbf16>
    %30 = vector.shape_cast %29 : vector<1x9x128xbf16> to vector<9x128xbf16>
    %31 = vector.shape_cast %28 : vector<9x128xbf16> to vector<1x9x128xbf16>
    tpu.vector_store %arg2[%c0_9, %c0_10, %c0_11], %31 {strides = array<i32>} : memref<1x9x128xbf16, #tpu.memory_space<vmem>>, vector<1x9x128xbf16>,
    return
  }
  func.func @transform_0(%arg0: i32) -> (i32, i32, i32) {
    %c0_i32 = arith.constant 0 : i32
    %c0_i32_0 = arith.constant 0 : i32
    %c0_i32_1 = arith.constant 0 : i32
    return %arg0, %c0_i32, %c0_i32_0 : i32, i32, i32
  }
  func.func @transform_1(%arg0: i32) -> (i32, i32, i32) {
    %c0_i32 = arith.constant 0 : i32
    %c0_i32_0 = arith.constant 0 : i32
    %c0_i32_1 = arith.constant 0 : i32
    return %arg0, %c0_i32, %c0_i32_0 : i32, i32, i32
  }
}

module attributes {stable_mosaic.version = 11 : i64} {
  func.func @_conv4_kernel(%arg0: i32, %arg1: i32, %arg2: memref<1x1x5x128xbf16, #tpu.memory_space<vmem>>, %arg3: memref<1x1x5x128xbf16, #tpu.memory_space<vmem>>, %arg4: memref<1x1x5x128xbf16, #tpu.memory_space<vmem>>, %arg5: memref<1x1x5x128xbf16, #tpu.memory_space<vmem>>, %arg6: memref<4x4x128x128xbf16, #tpu.memory_space<vmem>>, %arg7: memref<1x128xf32, #tpu.memory_space<vmem>>, %arg8: memref<1x1x2x128xf32, #tpu.memory_space<vmem>>) attributes {dimension_semantics = [#tpu.dimension_semantics<parallel>, #tpu.dimension_semantics<parallel>], iteration_bounds = array<i64: 2, 2>, scalar_prefetch = 0 : i64, scratch_operands = 0 : i64, tpu.core_type = #tpu.core_type<tc>, window_params = [{transform_indices = @transform_0, window_bounds = array<i64: 1, 1, 5, 128>}, {transform_indices = @transform_1, window_bounds = array<i64: 1, 1, 5, 128>}, {transform_indices = @transform_2, window_bounds = array<i64: 1, 1, 5, 128>}, {transform_indices = @transform_3, window_bounds = array<i64: 1, 1, 5, 128>}, {pipeline_mode = #tpu.pipeline_mode<synchronous>, transform_indices = @transform_4, window_bounds = array<i64: 4, 4, 128, 128>}, {pipeline_mode = #tpu.pipeline_mode<synchronous>, transform_indices = @transform_5, window_bounds = array<i64: 1, 128>}, {transform_indices = @transform_6, window_bounds = array<i64: 1, 1, 2, 128>}]} {
    %cst = arith.constant 0.000000e+00 : f32
    %0 = vector.broadcast %cst : f32 to vector<2x128xf32>
    %c0 = arith.constant 0 : index
    %c0_0 = arith.constant 0 : index
    %c0_1 = arith.constant 0 : index
    %c0_2 = arith.constant 0 : index
    %1 = vector.load %arg2[%c0, %c0_0, %c0_1, %c0_2] : memref<1x1x5x128xbf16, #tpu.memory_space<vmem>>, vector<1x1x2x128xbf16>
    %2 = vector.shape_cast %1 : vector<1x1x2x128xbf16> to vector<2x128xbf16>
    %c0_3 = arith.constant 0 : index
    %c0_4 = arith.constant 0 : index
    %c0_5 = arith.constant 0 : index
    %c0_6 = arith.constant 0 : index
    %3 = vector.load %arg6[%c0_3, %c0_4, %c0_5, %c0_6] : memref<4x4x128x128xbf16, #tpu.memory_space<vmem>>, vector<1x1x128x128xbf16>
    %4 = vector.shape_cast %3 : vector<1x1x128x128xbf16> to vector<128x128xbf16>
    %cst_7 = arith.constant dense<0.000000e+00> : vector<2x128xf32>
    %5 = tpu.matmul %2, %4, %cst_7 {dimension_numbers = #tpu.dot_dimension_numbers<[1], [0], [0], [1], [0, 0, 1, 1], [], []>} : vector<2x128xbf16>, vector<128x128xbf16>, vector<2x128xf32> -> vector<2x128xf32>
    %6 = arith.addf %0, %5 : vector<2x128xf32>
    %c0_8 = arith.constant 0 : index
    %c0_9 = arith.constant 0 : index
    %c1 = arith.constant 1 : index
    %c0_10 = arith.constant 0 : index
    %7 = vector.load %arg2[%c0_8, %c0_9, %c1, %c0_10] : memref<1x1x5x128xbf16, #tpu.memory_space<vmem>>, vector<1x1x2x128xbf16>
    %8 = vector.shape_cast %7 : vector<1x1x2x128xbf16> to vector<2x128xbf16>
    %c0_11 = arith.constant 0 : index
    %c1_12 = arith.constant 1 : index
    %c0_13 = arith.constant 0 : index
    %c0_14 = arith.constant 0 : index
    %9 = vector.load %arg6[%c0_11, %c1_12, %c0_13, %c0_14] : memref<4x4x128x128xbf16, #tpu.memory_space<vmem>>, vector<1x1x128x128xbf16>
    %10 = vector.shape_cast %9 : vector<1x1x128x128xbf16> to vector<128x128xbf16>
    %cst_15 = arith.constant dense<0.000000e+00> : vector<2x128xf32>
    %11 = tpu.matmul %8, %10, %cst_15 {dimension_numbers = #tpu.dot_dimension_numbers<[1], [0], [0], [1], [0, 0, 1, 1], [], []>} : vector<2x128xbf16>, vector<128x128xbf16>, vector<2x128xf32> -> vector<2x128xf32>
    %12 = arith.addf %6, %11 : vector<2x128xf32>
    %c0_16 = arith.constant 0 : index
    %c0_17 = arith.constant 0 : index
    %c2 = arith.constant 2 : index
    %c0_18 = arith.constant 0 : index
    %13 = vector.load %arg2[%c0_16, %c0_17, %c2, %c0_18] : memref<1x1x5x128xbf16, #tpu.memory_space<vmem>>, vector<1x1x2x128xbf16>
    %14 = vector.shape_cast %13 : vector<1x1x2x128xbf16> to vector<2x128xbf16>
    %c0_19 = arith.constant 0 : index
    %c2_20 = arith.constant 2 : index
    %c0_21 = arith.constant 0 : index
    %c0_22 = arith.constant 0 : index
    %15 = vector.load %arg6[%c0_19, %c2_20, %c0_21, %c0_22] : memref<4x4x128x128xbf16, #tpu.memory_space<vmem>>, vector<1x1x128x128xbf16>
    %16 = vector.shape_cast %15 : vector<1x1x128x128xbf16> to vector<128x128xbf16>
    %cst_23 = arith.constant dense<0.000000e+00> : vector<2x128xf32>
    %17 = tpu.matmul %14, %16, %cst_23 {dimension_numbers = #tpu.dot_dimension_numbers<[1], [0], [0], [1], [0, 0, 1, 1], [], []>} : vector<2x128xbf16>, vector<128x128xbf16>, vector<2x128xf32> -> vector<2x128xf32>
    %18 = arith.addf %12, %17 : vector<2x128xf32>
    %c0_24 = arith.constant 0 : index
    %c0_25 = arith.constant 0 : index
    %c3 = arith.constant 3 : index
    %c0_26 = arith.constant 0 : index
    %19 = vector.load %arg2[%c0_24, %c0_25, %c3, %c0_26] : memref<1x1x5x128xbf16, #tpu.memory_space<vmem>>, vector<1x1x2x128xbf16>
    %20 = vector.shape_cast %19 : vector<1x1x2x128xbf16> to vector<2x128xbf16>
    %c0_27 = arith.constant 0 : index
    %c3_28 = arith.constant 3 : index
    %c0_29 = arith.constant 0 : index
    %c0_30 = arith.constant 0 : index
    %21 = vector.load %arg6[%c0_27, %c3_28, %c0_29, %c0_30] : memref<4x4x128x128xbf16, #tpu.memory_space<vmem>>, vector<1x1x128x128xbf16>
    %22 = vector.shape_cast %21 : vector<1x1x128x128xbf16> to vector<128x128xbf16>
    %cst_31 = arith.constant dense<0.000000e+00> : vector<2x128xf32>
    %23 = tpu.matmul %20, %22, %cst_31 {dimension_numbers = #tpu.dot_dimension_numbers<[1], [0], [0], [1], [0, 0, 1, 1], [], []>} : vector<2x128xbf16>, vector<128x128xbf16>, vector<2x128xf32> -> vector<2x128xf32>
    %24 = arith.addf %18, %23 : vector<2x128xf32>
    %c0_32 = arith.constant 0 : index
    %c0_33 = arith.constant 0 : index
    %c0_34 = arith.constant 0 : index
    %c0_35 = arith.constant 0 : index
    %25 = vector.load %arg3[%c0_32, %c0_33, %c0_34, %c0_35] : memref<1x1x5x128xbf16, #tpu.memory_space<vmem>>, vector<1x1x2x128xbf16>
    %26 = vector.shape_cast %25 : vector<1x1x2x128xbf16> to vector<2x128xbf16>
    %c1_36 = arith.constant 1 : index
    %c0_37 = arith.constant 0 : index
    %c0_38 = arith.constant 0 : index
    %c0_39 = arith.constant 0 : index
    %27 = vector.load %arg6[%c1_36, %c0_37, %c0_38, %c0_39] : memref<4x4x128x128xbf16, #tpu.memory_space<vmem>>, vector<1x1x128x128xbf16>
    %28 = vector.shape_cast %27 : vector<1x1x128x128xbf16> to vector<128x128xbf16>
    %cst_40 = arith.constant dense<0.000000e+00> : vector<2x128xf32>
    %29 = tpu.matmul %26, %28, %cst_40 {dimension_numbers = #tpu.dot_dimension_numbers<[1], [0], [0], [1], [0, 0, 1, 1], [], []>} : vector<2x128xbf16>, vector<128x128xbf16>, vector<2x128xf32> -> vector<2x128xf32>
    %30 = arith.addf %24, %29 : vector<2x128xf32>
    %c0_41 = arith.constant 0 : index
    %c0_42 = arith.constant 0 : index
    %c1_43 = arith.constant 1 : index
    %c0_44 = arith.constant 0 : index
    %31 = vector.load %arg3[%c0_41, %c0_42, %c1_43, %c0_44] : memref<1x1x5x128xbf16, #tpu.memory_space<vmem>>, vector<1x1x2x128xbf16>
    %32 = vector.shape_cast %31 : vector<1x1x2x128xbf16> to vector<2x128xbf16>
    %c1_45 = arith.constant 1 : index
    %c1_46 = arith.constant 1 : index
    %c0_47 = arith.constant 0 : index
    %c0_48 = arith.constant 0 : index
    %33 = vector.load %arg6[%c1_45, %c1_46, %c0_47, %c0_48] : memref<4x4x128x128xbf16, #tpu.memory_space<vmem>>, vector<1x1x128x128xbf16>
    %34 = vector.shape_cast %33 : vector<1x1x128x128xbf16> to vector<128x128xbf16>
    %cst_49 = arith.constant dense<0.000000e+00> : vector<2x128xf32>
    %35 = tpu.matmul %32, %34, %cst_49 {dimension_numbers = #tpu.dot_dimension_numbers<[1], [0], [0], [1], [0, 0, 1, 1], [], []>} : vector<2x128xbf16>, vector<128x128xbf16>, vector<2x128xf32> -> vector<2x128xf32>
    %36 = arith.addf %30, %35 : vector<2x128xf32>
    %c0_50 = arith.constant 0 : index
    %c0_51 = arith.constant 0 : index
    %c2_52 = arith.constant 2 : index
    %c0_53 = arith.constant 0 : index
    %37 = vector.load %arg3[%c0_50, %c0_51, %c2_52, %c0_53] : memref<1x1x5x128xbf16, #tpu.memory_space<vmem>>, vector<1x1x2x128xbf16>
    %38 = vector.shape_cast %37 : vector<1x1x2x128xbf16> to vector<2x128xbf16>
    %c1_54 = arith.constant 1 : index
    %c2_55 = arith.constant 2 : index
    %c0_56 = arith.constant 0 : index
    %c0_57 = arith.constant 0 : index
    %39 = vector.load %arg6[%c1_54, %c2_55, %c0_56, %c0_57] : memref<4x4x128x128xbf16, #tpu.memory_space<vmem>>, vector<1x1x128x128xbf16>
    %40 = vector.shape_cast %39 : vector<1x1x128x128xbf16> to vector<128x128xbf16>
    %cst_58 = arith.constant dense<0.000000e+00> : vector<2x128xf32>
    %41 = tpu.matmul %38, %40, %cst_58 {dimension_numbers = #tpu.dot_dimension_numbers<[1], [0], [0], [1], [0, 0, 1, 1], [], []>} : vector<2x128xbf16>, vector<128x128xbf16>, vector<2x128xf32> -> vector<2x128xf32>
    %42 = arith.addf %36, %41 : vector<2x128xf32>
    %c0_59 = arith.constant 0 : index
    %c0_60 = arith.constant 0 : index
    %c3_61 = arith.constant 3 : index
    %c0_62 = arith.constant 0 : index
    %43 = vector.load %arg3[%c0_59, %c0_60, %c3_61, %c0_62] : memref<1x1x5x128xbf16, #tpu.memory_space<vmem>>, vector<1x1x2x128xbf16>
    %44 = vector.shape_cast %43 : vector<1x1x2x128xbf16> to vector<2x128xbf16>
    %c1_63 = arith.constant 1 : index
    %c3_64 = arith.constant 3 : index
    %c0_65 = arith.constant 0 : index
    %c0_66 = arith.constant 0 : index
    %45 = vector.load %arg6[%c1_63, %c3_64, %c0_65, %c0_66] : memref<4x4x128x128xbf16, #tpu.memory_space<vmem>>, vector<1x1x128x128xbf16>
    %46 = vector.shape_cast %45 : vector<1x1x128x128xbf16> to vector<128x128xbf16>
    %cst_67 = arith.constant dense<0.000000e+00> : vector<2x128xf32>
    %47 = tpu.matmul %44, %46, %cst_67 {dimension_numbers = #tpu.dot_dimension_numbers<[1], [0], [0], [1], [0, 0, 1, 1], [], []>} : vector<2x128xbf16>, vector<128x128xbf16>, vector<2x128xf32> -> vector<2x128xf32>
    %48 = arith.addf %42, %47 : vector<2x128xf32>
    %c0_68 = arith.constant 0 : index
    %c0_69 = arith.constant 0 : index
    %c0_70 = arith.constant 0 : index
    %c0_71 = arith.constant 0 : index
    %49 = vector.load %arg4[%c0_68, %c0_69, %c0_70, %c0_71] : memref<1x1x5x128xbf16, #tpu.memory_space<vmem>>, vector<1x1x2x128xbf16>
    %50 = vector.shape_cast %49 : vector<1x1x2x128xbf16> to vector<2x128xbf16>
    %c2_72 = arith.constant 2 : index
    %c0_73 = arith.constant 0 : index
    %c0_74 = arith.constant 0 : index
    %c0_75 = arith.constant 0 : index
    %51 = vector.load %arg6[%c2_72, %c0_73, %c0_74, %c0_75] : memref<4x4x128x128xbf16, #tpu.memory_space<vmem>>, vector<1x1x128x128xbf16>
    %52 = vector.shape_cast %51 : vector<1x1x128x128xbf16> to vector<128x128xbf16>
    %cst_76 = arith.constant dense<0.000000e+00> : vector<2x128xf32>
    %53 = tpu.matmul %50, %52, %cst_76 {dimension_numbers = #tpu.dot_dimension_numbers<[1], [0], [0], [1], [0, 0, 1, 1], [], []>} : vector<2x128xbf16>, vector<128x128xbf16>, vector<2x128xf32> -> vector<2x128xf32>
    %54 = arith.addf %48, %53 : vector<2x128xf32>
    %c0_77 = arith.constant 0 : index
    %c0_78 = arith.constant 0 : index
    %c1_79 = arith.constant 1 : index
    %c0_80 = arith.constant 0 : index
    %55 = vector.load %arg4[%c0_77, %c0_78, %c1_79, %c0_80] : memref<1x1x5x128xbf16, #tpu.memory_space<vmem>>, vector<1x1x2x128xbf16>
    %56 = vector.shape_cast %55 : vector<1x1x2x128xbf16> to vector<2x128xbf16>
    %c2_81 = arith.constant 2 : index
    %c1_82 = arith.constant 1 : index
    %c0_83 = arith.constant 0 : index
    %c0_84 = arith.constant 0 : index
    %57 = vector.load %arg6[%c2_81, %c1_82, %c0_83, %c0_84] : memref<4x4x128x128xbf16, #tpu.memory_space<vmem>>, vector<1x1x128x128xbf16>
    %58 = vector.shape_cast %57 : vector<1x1x128x128xbf16> to vector<128x128xbf16>
    %cst_85 = arith.constant dense<0.000000e+00> : vector<2x128xf32>
    %59 = tpu.matmul %56, %58, %cst_85 {dimension_numbers = #tpu.dot_dimension_numbers<[1], [0], [0], [1], [0, 0, 1, 1], [], []>} : vector<2x128xbf16>, vector<128x128xbf16>, vector<2x128xf32> -> vector<2x128xf32>
    %60 = arith.addf %54, %59 : vector<2x128xf32>
    %c0_86 = arith.constant 0 : index
    %c0_87 = arith.constant 0 : index
    %c2_88 = arith.constant 2 : index
    %c0_89 = arith.constant 0 : index
    %61 = vector.load %arg4[%c0_86, %c0_87, %c2_88, %c0_89] : memref<1x1x5x128xbf16, #tpu.memory_space<vmem>>, vector<1x1x2x128xbf16>
    %62 = vector.shape_cast %61 : vector<1x1x2x128xbf16> to vector<2x128xbf16>
    %c2_90 = arith.constant 2 : index
    %c2_91 = arith.constant 2 : index
    %c0_92 = arith.constant 0 : index
    %c0_93 = arith.constant 0 : index
    %63 = vector.load %arg6[%c2_90, %c2_91, %c0_92, %c0_93] : memref<4x4x128x128xbf16, #tpu.memory_space<vmem>>, vector<1x1x128x128xbf16>
    %64 = vector.shape_cast %63 : vector<1x1x128x128xbf16> to vector<128x128xbf16>
    %cst_94 = arith.constant dense<0.000000e+00> : vector<2x128xf32>
    %65 = tpu.matmul %62, %64, %cst_94 {dimension_numbers = #tpu.dot_dimension_numbers<[1], [0], [0], [1], [0, 0, 1, 1], [], []>} : vector<2x128xbf16>, vector<128x128xbf16>, vector<2x128xf32> -> vector<2x128xf32>
    %66 = arith.addf %60, %65 : vector<2x128xf32>
    %c0_95 = arith.constant 0 : index
    %c0_96 = arith.constant 0 : index
    %c3_97 = arith.constant 3 : index
    %c0_98 = arith.constant 0 : index
    %67 = vector.load %arg4[%c0_95, %c0_96, %c3_97, %c0_98] : memref<1x1x5x128xbf16, #tpu.memory_space<vmem>>, vector<1x1x2x128xbf16>
    %68 = vector.shape_cast %67 : vector<1x1x2x128xbf16> to vector<2x128xbf16>
    %c2_99 = arith.constant 2 : index
    %c3_100 = arith.constant 3 : index
    %c0_101 = arith.constant 0 : index
    %c0_102 = arith.constant 0 : index
    %69 = vector.load %arg6[%c2_99, %c3_100, %c0_101, %c0_102] : memref<4x4x128x128xbf16, #tpu.memory_space<vmem>>, vector<1x1x128x128xbf16>
    %70 = vector.shape_cast %69 : vector<1x1x128x128xbf16> to vector<128x128xbf16>
    %cst_103 = arith.constant dense<0.000000e+00> : vector<2x128xf32>
    %71 = tpu.matmul %68, %70, %cst_103 {dimension_numbers = #tpu.dot_dimension_numbers<[1], [0], [0], [1], [0, 0, 1, 1], [], []>} : vector<2x128xbf16>, vector<128x128xbf16>, vector<2x128xf32> -> vector<2x128xf32>
    %72 = arith.addf %66, %71 : vector<2x128xf32>
    %c0_104 = arith.constant 0 : index
    %c0_105 = arith.constant 0 : index
    %c0_106 = arith.constant 0 : index
    %c0_107 = arith.constant 0 : index
    %73 = vector.load %arg5[%c0_104, %c0_105, %c0_106, %c0_107] : memref<1x1x5x128xbf16, #tpu.memory_space<vmem>>, vector<1x1x2x128xbf16>
    %74 = vector.shape_cast %73 : vector<1x1x2x128xbf16> to vector<2x128xbf16>
    %c3_108 = arith.constant 3 : index
    %c0_109 = arith.constant 0 : index
    %c0_110 = arith.constant 0 : index
    %c0_111 = arith.constant 0 : index
    %75 = vector.load %arg6[%c3_108, %c0_109, %c0_110, %c0_111] : memref<4x4x128x128xbf16, #tpu.memory_space<vmem>>, vector<1x1x128x128xbf16>
    %76 = vector.shape_cast %75 : vector<1x1x128x128xbf16> to vector<128x128xbf16>
    %cst_112 = arith.constant dense<0.000000e+00> : vector<2x128xf32>
    %77 = tpu.matmul %74, %76, %cst_112 {dimension_numbers = #tpu.dot_dimension_numbers<[1], [0], [0], [1], [0, 0, 1, 1], [], []>} : vector<2x128xbf16>, vector<128x128xbf16>, vector<2x128xf32> -> vector<2x128xf32>
    %78 = arith.addf %72, %77 : vector<2x128xf32>
    %c0_113 = arith.constant 0 : index
    %c0_114 = arith.constant 0 : index
    %c1_115 = arith.constant 1 : index
    %c0_116 = arith.constant 0 : index
    %79 = vector.load %arg5[%c0_113, %c0_114, %c1_115, %c0_116] : memref<1x1x5x128xbf16, #tpu.memory_space<vmem>>, vector<1x1x2x128xbf16>
    %80 = vector.shape_cast %79 : vector<1x1x2x128xbf16> to vector<2x128xbf16>
    %c3_117 = arith.constant 3 : index
    %c1_118 = arith.constant 1 : index
    %c0_119 = arith.constant 0 : index
    %c0_120 = arith.constant 0 : index
    %81 = vector.load %arg6[%c3_117, %c1_118, %c0_119, %c0_120] : memref<4x4x128x128xbf16, #tpu.memory_space<vmem>>, vector<1x1x128x128xbf16>
    %82 = vector.shape_cast %81 : vector<1x1x128x128xbf16> to vector<128x128xbf16>
    %cst_121 = arith.constant dense<0.000000e+00> : vector<2x128xf32>
    %83 = tpu.matmul %80, %82, %cst_121 {dimension_numbers = #tpu.dot_dimension_numbers<[1], [0], [0], [1], [0, 0, 1, 1], [], []>} : vector<2x128xbf16>, vector<128x128xbf16>, vector<2x128xf32> -> vector<2x128xf32>
    %84 = arith.addf %78, %83 : vector<2x128xf32>
    %c0_122 = arith.constant 0 : index
    %c0_123 = arith.constant 0 : index
    %c2_124 = arith.constant 2 : index
    %c0_125 = arith.constant 0 : index
    %85 = vector.load %arg5[%c0_122, %c0_123, %c2_124, %c0_125] : memref<1x1x5x128xbf16, #tpu.memory_space<vmem>>, vector<1x1x2x128xbf16>
    %86 = vector.shape_cast %85 : vector<1x1x2x128xbf16> to vector<2x128xbf16>
    %c3_126 = arith.constant 3 : index
    %c2_127 = arith.constant 2 : index
    %c0_128 = arith.constant 0 : index
    %c0_129 = arith.constant 0 : index
    %87 = vector.load %arg6[%c3_126, %c2_127, %c0_128, %c0_129] : memref<4x4x128x128xbf16, #tpu.memory_space<vmem>>, vector<1x1x128x128xbf16>
    %88 = vector.shape_cast %87 : vector<1x1x128x128xbf16> to vector<128x128xbf16>
    %cst_130 = arith.constant dense<0.000000e+00> : vector<2x128xf32>
    %89 = tpu.matmul %86, %88, %cst_130 {dimension_numbers = #tpu.dot_dimension_numbers<[1], [0], [0], [1], [0, 0, 1, 1], [], []>} : vector<2x128xbf16>, vector<128x128xbf16>, vector<2x128xf32> -> vector<2x128xf32>
    %90 = arith.addf %84, %89 : vector<2x128xf32>
    %c0_131 = arith.constant 0 : index
    %c0_132 = arith.constant 0 : index
    %c3_133 = arith.constant 3 : index
    %c0_134 = arith.constant 0 : index
    %91 = vector.load %arg5[%c0_131, %c0_132, %c3_133, %c0_134] : memref<1x1x5x128xbf16, #tpu.memory_space<vmem>>, vector<1x1x2x128xbf16>
    %92 = vector.shape_cast %91 : vector<1x1x2x128xbf16> to vector<2x128xbf16>
    %c3_135 = arith.constant 3 : index
    %c3_136 = arith.constant 3 : index
    %c0_137 = arith.constant 0 : index
    %c0_138 = arith.constant 0 : index
    %93 = vector.load %arg6[%c3_135, %c3_136, %c0_137, %c0_138] : memref<4x4x128x128xbf16, #tpu.memory_space<vmem>>, vector<1x1x128x128xbf16>
    %94 = vector.shape_cast %93 : vector<1x1x128x128xbf16> to vector<128x128xbf16>
    %cst_139 = arith.constant dense<0.000000e+00> : vector<2x128xf32>
    %95 = tpu.matmul %92, %94, %cst_139 {dimension_numbers = #tpu.dot_dimension_numbers<[1], [0], [0], [1], [0, 0, 1, 1], [], []>} : vector<2x128xbf16>, vector<128x128xbf16>, vector<2x128xf32> -> vector<2x128xf32>
    %96 = arith.addf %90, %95 : vector<2x128xf32>
    %c0_140 = arith.constant 0 : index
    %c0_141 = arith.constant 0 : index
    %97 = vector.load %arg7[%c0_140, %c0_141] : memref<1x128xf32, #tpu.memory_space<vmem>>, vector<1x128xf32>
    %98 = vector.broadcast %97 : vector<1x128xf32> to vector<2x128xf32>
    %99 = arith.addf %96, %98 : vector<2x128xf32>
    %c0_142 = arith.constant 0 : index
    %c0_143 = arith.constant 0 : index
    %c0_144 = arith.constant 0 : index
    %c0_145 = arith.constant 0 : index
    %100 = vector.load %arg8[%c0_142, %c0_143, %c0_144, %c0_145] : memref<1x1x2x128xf32, #tpu.memory_space<vmem>>, vector<1x1x2x128xf32>
    %101 = vector.shape_cast %100 : vector<1x1x2x128xf32> to vector<2x128xf32>
    %102 = vector.shape_cast %99 : vector<2x128xf32> to vector<1x1x2x128xf32>
    tpu.vector_store %arg8[%c0_142, %c0_143, %c0_144, %c0_145], %102 {strides = array<i32>} : memref<1x1x2x128xf32, #tpu.memory_space<vmem>>, vector<1x1x2x128xf32>,
    return
  }
  func.func @transform_0(%arg0: i32, %arg1: i32) -> (i32, i32, i32, i32) {
    %c0_i32 = arith.constant 0 : i32
    %0 = arith.addi %arg1, %c0_i32 : i32
    %c0_i32_0 = arith.constant 0 : i32
    %c0_i32_1 = arith.constant 0 : i32
    %c0_i32_2 = arith.constant 0 : i32
    return %arg0, %0, %c0_i32_0, %c0_i32_1 : i32, i32, i32, i32
  }
  func.func @transform_1(%arg0: i32, %arg1: i32) -> (i32, i32, i32, i32) {
    %c1_i32 = arith.constant 1 : i32
    %0 = arith.addi %arg1, %c1_i32 : i32
    %c0_i32 = arith.constant 0 : i32
    %c0_i32_0 = arith.constant 0 : i32
    %c0_i32_1 = arith.constant 0 : i32
    return %arg0, %0, %c0_i32, %c0_i32_0 : i32, i32, i32, i32
  }
  func.func @transform_2(%arg0: i32, %arg1: i32) -> (i32, i32, i32, i32) {
    %c2_i32 = arith.constant 2 : i32
    %0 = arith.addi %arg1, %c2_i32 : i32
    %c0_i32 = arith.constant 0 : i32
    %c0_i32_0 = arith.constant 0 : i32
    %c0_i32_1 = arith.constant 0 : i32
    return %arg0, %0, %c0_i32, %c0_i32_0 : i32, i32, i32, i32
  }
  func.func @transform_3(%arg0: i32, %arg1: i32) -> (i32, i32, i32, i32) {
    %c3_i32 = arith.constant 3 : i32
    %0 = arith.addi %arg1, %c3_i32 : i32
    %c0_i32 = arith.constant 0 : i32
    %c0_i32_0 = arith.constant 0 : i32
    %c0_i32_1 = arith.constant 0 : i32
    return %arg0, %0, %c0_i32, %c0_i32_0 : i32, i32, i32, i32
  }
  func.func @transform_4(%arg0: i32, %arg1: i32) -> (i32, i32, i32, i32) {
    %c0_i32 = arith.constant 0 : i32
    %c0_i32_0 = arith.constant 0 : i32
    %c0_i32_1 = arith.constant 0 : i32
    %c0_i32_2 = arith.constant 0 : i32
    %c0_i32_3 = arith.constant 0 : i32
    return %c0_i32, %c0_i32_0, %c0_i32_1, %c0_i32_2 : i32, i32, i32, i32
  }
  func.func @transform_5(%arg0: i32, %arg1: i32) -> (i32, i32) {
    %c0_i32 = arith.constant 0 : i32
    %c0_i32_0 = arith.constant 0 : i32
    %c0_i32_1 = arith.constant 0 : i32
    return %c0_i32, %c0_i32_0 : i32, i32
  }
  func.func @transform_6(%arg0: i32, %arg1: i32) -> (i32, i32, i32, i32) {
    %c0_i32 = arith.constant 0 : i32
    %c0_i32_0 = arith.constant 0 : i32
    %c0_i32_1 = arith.constant 0 : i32
    return %arg0, %arg1, %c0_i32, %c0_i32_0 : i32, i32, i32, i32
  }
}

</mosaic_0001>

<bundles_post_ra>
// kernel: discriminator_forward.10
= control target key start
LH: loop header
LB: loop body
LE: loop exit
PB: predicated region body
PF: predicated region fallthrough
CT: control target
= control target key end

     0   :  { %s408_s6 = smov 0   ;;  %s432_s0 = inlined_call_operand.vmem [shape: bf16[2,64,128], index: 0, kind: input, shape index: {}]   ;;  %s433_s1 = inlined_call_operand.vmem [shape: bf16[2,64,128], index: 1, kind: output, shape index: {}]  }
   0x1 LB: > { %s309_s7 = sadd.s32 4294967295, %s396_s6   ;;  %p313_p0 = scmp.ge.s32.totalorder %s396_s6, 1  ;;  %s396_s6 = sphi %s408_s6, %s11_s6  }
   0x2   : > { %p87_p1 = scmp.lt.s32.totalorder %s396_s6, 3 }
   0x4   : > { %p88_p2 = pnand %p313_p0, %p87_p1 }
   0x5   : > { %p107_p3 = scmp.lt.s32.totalorder (!%p88_p2), %s309_s7, 1 }
   0x6   : > { %91 = sbr.rel (%p88_p2) target bundleno = 79 (0x4f), region = 24 }
   0xd   : > { %s435_s7 = smov (!%p107_p3, %s309_s7), 1 }
   0xe   : > { %s328_s8 = sshll.u32 %s435_s7, 5 }
   0xf   : > { %s111_s11 = scalar_lea.vmem %s432_s0, %s328_s8  ;;  %s116_s14 = scalar_lea.vmem %s433_s1, %s328_s8 }
  0x10   : > { %v339_v0 = vld [vmem:[%s111_s11] sm:$0xff]   ;;  %v374_v1 = vld [vmem:[%s111_s11 + $0x8] sm:$0xff]   ;;  %v375_v2 = vld [vmem:[%s111_s11 + $0x10] sm:$0xff]  }
  0x11   : > { %v340_v3 = vunpack.c.l.bf16 %v339_v0  ;;  %v341_v4 = vunpack.c.h.bf16 %v339_v0  ;;  %v344_v5 = vunpack.c.l.bf16 %v374_v1  ;;  %v345_v6 = vunpack.c.h.bf16 %v374_v1  ;;  %v376_v12 = vld [vmem:[%s111_s11 + $0x18] sm:$0xff]  }
  0x12   : > { %v348_v7 = vunpack.c.l.bf16 %v375_v2  ;;  %v349_v13 = vunpack.c.h.bf16 %v375_v2  ;;  %v352_v17 = vunpack.c.l.bf16 %v376_v12  ;;  %v353_v21 = vunpack.c.h.bf16 %v376_v12 }
  0x13   : > { %v133_v8 = vadd.f32 %v341_v4, %v340_v3  ;;  %v147_v9 = vmul.f32 %v340_v3, %v340_v3  ;;  %v148_v10 = vmul.f32 %v341_v4, %v341_v4  ;;  %v149_v11 = vmul.f32 %v344_v5, %v344_v5 }
  0x14   : > { %v150_v15 = vmul.f32 %v345_v6, %v345_v6  ;;  %v151_v19 = vmul.f32 %v348_v7, %v348_v7  ;;  %v152_v23 = vmul.f32 %v349_v13, %v349_v13  ;;  %v153_v26 = vmul.f32 %v352_v17, %v352_v17 }
  0x15   : > { %v134_v14 = vadd.f32 %v344_v5, %v133_v8  ;;  %v155_v16 = vadd.f32 %v148_v10, %v147_v9  ;;  %v154_v29 = vmul.f32 %v353_v21, %v353_v21 }
  0x17   : > { %v135_v18 = vadd.f32 %v345_v6, %v134_v14  ;;  %v156_v20 = vadd.f32 %v155_v16, %v149_v11 }
  0x19   : > { %v136_v22 = vadd.f32 %v348_v7, %v135_v18  ;;  %v157_v24 = vadd.f32 %v156_v20, %v150_v15 }
  0x1b   : > { %v137_v25 = vadd.f32 %v349_v13, %v136_v22  ;;  %v158_v27 = vadd.f32 %v157_v24, %v151_v19 }
  0x1d   : > { %v138_v28 = vadd.f32 %v352_v17, %v137_v25  ;;  %v159_v30 = vadd.f32 %v158_v27, %v152_v23 }
  0x1f   : > { %v139_v31 = vadd.f32 %v353_v21, %v138_v28  ;;  %v160_v32 = vadd.f32 %v159_v30, %v153_v26 }
  0x21   : > { %v140_v33 = vrot.slane %v139_v31, 4  ;;  %v161_v34 = vadd.f32 %v160_v32, %v154_v29 }
  0x23   : > { %v141_v35 = vadd.f32 %v140_v33, %v139_v31  ;;  %v162_v36 = vrot.slane %v161_v34, 4 }
  0x25   : > { %v142_v37 = vrot.slane %v141_v35, 2  ;;  %v163_v38 = vadd.f32 %v162_v36, %v161_v34 }
  0x27   : > { %v143_v39 = vadd.f32 %v142_v37, %v141_v35  ;;  %v164_v40 = vrot.slane %v163_v38, 2 }
  0x29   : > { %v144_v41 = vrot.slane %v143_v39, 1  ;;  %v165_v42 = vadd.f32 %v164_v40, %v163_v38 }
  0x2b   : > { %v145_v43 = vadd.f32 %v144_v41, %v143_v39  ;;  %v166_v44 = vrot.slane %v165_v42, 1 }
  0x2d   : > { %v146_v45 = vmul.f32 0.015625, %v145_v43  ;;  %v167_v46 = vadd.f32 %v166_v44, %v165_v42 }
  0x2f   : > { %v168_v47 = vmul.f32 0.015625, %v167_v46  ;;  %v169_v48 = vmul.f32 %v146_v45, %v146_v45  ;;  %v172_v52 = vsub.f32 %v340_v3, %v146_v45  ;;  %v173_v53 = vsub.f32 %v341_v4, %v146_v45 }
  0x30   : > { %v174_v54 = vsub.f32 %v344_v5, %v146_v45  ;;  %v175_v55 = vsub.f32 %v345_v6, %v146_v45  ;;  %v176_v56 = vsub.f32 %v348_v7, %v146_v45  ;;  %v177_v57 = vsub.f32 %v349_v13, %v146_v45 }
  0x31   : > { %v170_v49 = vsub.f32 %v168_v47, %v169_v48  ;;  %v178_v58 = vsub.f32 %v352_v17, %v146_v45  ;;  %v179_v59 = vsub.f32 %v353_v21, %v146_v45 }
  0x33   : > { %v171_v50 = vmax.f32 %v170_v49, 0.0 }
  0x35   : > { %v180_v51 = vadd.f32 1e-05, %v171_v50 }
  0x37   : > { %388 = vrsqrt.f32 %v180_v51 }
  0x41   : > { %v389_v60 = vpop.eup %388 }
  0x42   : > { %v182_v61 = vmul.f32 %v389_v60, %v172_v52  ;;  %v183_v62 = vmul.f32 %v389_v60, %v173_v53  ;;  %v184_v63 = vmul.f32 %v389_v60, %v174_v54  ;;  %v185_v0 = vmul.f32 %v389_v60, %v175_v55 }
  0x43   : > { %v186_v1 = vmul.f32 %v389_v60, %v176_v56  ;;  %v187_v2 = vmul.f32 %v389_v60, %v177_v57  ;;  %v188_v8 = vmul.f32 %v389_v60, %v178_v58  ;;  %v189_v9 = vmul.f32 %v389_v60, %v179_v59 }
  0x44   : > { %vm190_vm0 = vcmp.ge.f32.partialorder %v182_v61, 0.0  ;;  %vm191_vm1 = vcmp.ge.f32.partialorder %v183_v62, 0.0  ;;  %v198_v3 = vmul.f32 0.2, %v182_v61  ;;  %v199_v4 = vmul.f32 0.2, %v183_v62 }
  0x45   : > { %vm192_vm2 = vcmp.ge.f32.partialorder %v184_v63, 0.0  ;;  %vm193_vm3 = vcmp.ge.f32.partialorder %v185_v0, 0.0  ;;  %v200_v5 = vmul.f32 0.2, %v184_v63  ;;  %v201_v6 = vmul.f32 0.2, %v185_v0 }
  0x46   : > { %v206_v7 = vsel %vm190_vm0, %v182_v61, %v198_v3  ;;  %v207_v10 = vsel %vm191_vm1, %v183_v62, %v199_v4  ;;  %vm194_vm4 = vcmp.ge.f32.partialorder %v186_v1, 0.0  ;;  %vm195_vm5 = vcmp.ge.f32.partialorder %v187_v2, 0.0 }
  0x47   : > { %v357_v11 = vpack.c.bf16 %v207_v10, %v206_v7  ;;  %v208_v12 = vsel %vm192_vm2, %v184_v63, %v200_v5  ;;  %v209_v13 = vsel %vm193_vm3, %v185_v0, %v201_v6  ;;  %v202_v14 = vmul.f32 0.2, %v186_v1 }
  0x48   : > { %v362_v15 = vpack.c.bf16 %v209_v13, %v208_v12  ;;  %v203_v16 = vmul.f32 0.2, %v187_v2  ;;  %vm196_vm6 = vcmp.ge.f32.partialorder %v188_v8, 0.0  ;;  %vm197_vm7 = vcmp.ge.f32.partialorder %v189_v9, 0.0 }
  0x49   : > { %358 = vst [vmem:[%s116_s14] sm:$0xff] %v357_v11   ;;  %v210_v17 = vsel %vm194_vm4, %v186_v1, %v202_v14  ;;  %v204_v18 = vmul.f32 0.2, %v188_v8  ;;  %v205_v19 = vmul.f32 0.2, %v189_v9 }
  0x4a   : > { %377 = vst [vmem:[%s116_s14 + $0x8] sm:$0xff] %v362_v15   ;;  %v211_v20 = vsel %vm195_vm5, %v187_v2, %v203_v16 }
  0x4b   : > { %v367_v21 = vpack.c.bf16 %v211_v20, %v210_v17  ;;  %v212_v22 = vsel %vm196_vm6, %v188_v8, %v204_v18  ;;  %v213_v23 = vsel %vm197_vm7, %v189_v9, %v205_v19 }
  0x4c   : > { %v372_v24 = vpack.c.bf16 %v213_v23, %v212_v22 }
  0x4d   : > { %378 = vst [vmem:[%s116_s14 + $0x10] sm:$0xff] %v367_v21  }
  0x4e   : > { %379 = vst [vmem:[%s116_s14 + $0x18] sm:$0xff] %v372_v24  }
  0x4f PF: > { %s11_s6 = sadd.s32 1, %s396_s6  }
  0x50   : > { %p8_p4 = scmp.ge.s32.totalorder %s11_s6, 4  }
  0x52   :  { %10 = sbr.rel (!%p8_p4) target bundleno = 1 (0x1), region = 54 }

// kernel: discriminator_forward.8
= control target key start
LH: loop header
LB: loop body
LE: loop exit
PB: predicated region body
PF: predicated region fallthrough
CT: control target
= control target key end

     0   :  { %v2863_v0 = vmov 0   ;;  %s3954_s0 = inlined_call_operand.vmem [shape: bf16[512,3], index: 0, kind: input, shape index: {}]   ;;  %s3955_s1 = inlined_call_operand.vmem [shape: bf16[3,128], index: 1, kind: input, shape index: {}]   ;;  %s3956_s2 = inlined_call_operand.vmem [shape: f32[1,128], index: 2, kind: input, shape index: {}]   ;;  %s3957_s3 = inlined_call_operand.vmem [shape: bf16[512,128], index: 3, kind: output, shape index: {}]  }
   0x1   :  { %2388 = vset.pattern.permute.xlu1 %v2863_v0  ;;  %2377 = vset.pattern.permute.xlu0 %v2863_v0  ;;  %v2313_v1 = vld [vmem:[%s3954_s0 + $0x10] sm:$0xff]   ;;  %v2025_v2 = vld [vmem:[%s3954_s0] sm:$0xff]   ;;  %v2314_v3 = vld [vmem:[%s3954_s0 + $0x18] sm:$0xff]  }
   0x2   :  { %v2034_v4 = vunpack.c.l.bf16 %v2313_v1  ;;  %v2035_v5 = vunpack.c.h.bf16 %v2313_v1  ;;  %v2026_v6 = vunpack.c.l.bf16 %v2025_v2  ;;  %v2027_v7 = vunpack.c.h.bf16 %v2025_v2  ;;  %v2312_v8 = vld [vmem:[%s3954_s0 + $0x8] sm:$0xff]   ;;  %v2315_v14 = vld [vmem:[%s3954_s0 + $0x20] sm:$0xff]   ;;  %v2318_v17 = vld [vmem:[%s3954_s0 + $0x38] sm:$0xff]  }
   0x3   :  { %v2316_v9 = vld [vmem:[%s3954_s0 + $0x28] sm:$0xff]   ;;  %v2038_v10 = vunpack.c.l.bf16 %v2314_v3  ;;  %v2039_v11 = vunpack.c.h.bf16 %v2314_v3  ;;  %v2030_v12 = vunpack.c.l.bf16 %v2312_v8  ;;  %v2031_v13 = vunpack.c.h.bf16 %v2312_v8  ;;  %v2317_v20 = vld [vmem:[%s3954_s0 + $0x30] sm:$0xff]   ;;  %v2319_v30 = vld [vmem:[%s3954_s0 + $0x40] sm:$0xff]  }
   0x4   :  { %v2904_v15 = vpack.i.bf16 %v2035_v5, %v2034_v4  ;;  %v2906_v16 = vpack.i.bf16 %v2027_v7, %v2026_v6  ;;  %v2046_v18 = vunpack.c.l.bf16 %v2316_v9  ;;  %v2047_v19 = vunpack.c.h.bf16 %v2316_v9  ;;  %v2320_v29 = vld [vmem:[%s3954_s0 + $0x48] sm:$0xff]   ;;  %v2322_v31 = vld [vmem:[%s3954_s0 + $0x58] sm:$0xff]   ;;  %v2321_v34 = vld [vmem:[%s3954_s0 + $0x50] sm:$0xff]  }
   0x5   :  { %v2916_v21 = vpack.i.bf16 %v2039_v11, %v2038_v10  ;;  %v2918_v22 = vpack.i.bf16 %v2031_v13, %v2030_v12  ;;  %v2042_v23 = vunpack.c.l.bf16 %v2315_v14  ;;  %v2043_v24 = vunpack.c.h.bf16 %v2315_v14  ;;  %v2324_v35 = vld [vmem:[%s3954_s0 + $0x68] sm:$0xff]   ;;  %v2323_v40 = vld [vmem:[%s3954_s0 + $0x60] sm:$0xff]   ;;  %v2326_v41 = vld [vmem:[%s3954_s0 + $0x78] sm:$0xff]  }
   0x6   :  { %2390 = vperm.xlu1 %2388, %v2904_v15   ;;  %2379 = vperm.xlu0 %2377, %v2906_v16   ;;  %v2054_v25 = vunpack.c.l.bf16 %v2318_v17  ;;  %v2055_v26 = vunpack.c.h.bf16 %v2318_v17  ;;  %v2050_v27 = vunpack.c.l.bf16 %v2317_v20  ;;  %v2051_v28 = vunpack.c.h.bf16 %v2317_v20  ;;  %v2325_v46 = vld [vmem:[%s3954_s0 + $0x70] sm:$0xff]   ;;  %v2328_v47 = vld [vmem:[%s3954_s0 + $0x88] sm:$0xff]   ;;  %v2327_v52 = vld [vmem:[%s3954_s0 + $0x80] sm:$0xff]  }
   0x7   :  { %v2931_v32 = vpack.i.bf16 %v2047_v19, %v2046_v18  ;;  %v2933_v33 = vpack.i.bf16 %v2043_v24, %v2042_v23  ;;  %v2062_v37 = vunpack.c.l.bf16 %v2320_v29  ;;  %v2063_v38 = vunpack.c.h.bf16 %v2320_v29  ;;  %v2330_v63 = vld [vmem:[%s3954_s0 + $0x98] sm:$0xff]   ;;  %v2329_v4 = vld [vmem:[%s3954_s0 + $0x90] sm:$0xff]   ;;  %v2332_v5 = vld [vmem:[%s3954_s0 + $0xa8] sm:$0xff]  }
   0x8   :  { %v2941_v36 = vpack.i.bf16 %v2055_v26, %v2054_v25  ;;  %v2058_v39 = vunpack.c.l.bf16 %v2319_v30  ;;  %v2949_v42 = vpack.i.bf16 %v2051_v28, %v2050_v27  ;;  %v2059_v43 = vunpack.c.h.bf16 %v2319_v30  ;;  %v2331_v9 = vld [vmem:[%s3954_s0 + $0xa0] sm:$0xff]   ;;  %v2334_v10 = vld [vmem:[%s3954_s0 + $0xb8] sm:$0xff]   ;;  %v2333_v17 = vld [vmem:[%s3954_s0 + $0xb0] sm:$0xff]  }
   0x9   :  { %v2070_v44 = vunpack.c.l.bf16 %v2322_v31  ;;  %v2071_v45 = vunpack.c.h.bf16 %v2322_v31  ;;  %v2066_v48 = vunpack.c.l.bf16 %v2321_v34  ;;  %v2067_v49 = vunpack.c.h.bf16 %v2321_v34  ;;  %v2336_v18 = vld [vmem:[%s3954_s0 + $0xc8] sm:$0xff]   ;;  %v2335_v25 = vld [vmem:[%s3954_s0 + $0xc0] sm:$0xff]   ;;  %v2338_v26 = vld [vmem:[%s3954_s0 + $0xd8] sm:$0xff]  }
   0xa   :  { %2395 = vperm.xlu1 %2388, %v2916_v21   ;;  %2384 = vperm.xlu0 %2377, %v2918_v22   ;;  %v2078_v50 = vunpack.c.l.bf16 %v2324_v35  ;;  %v2079_v51 = vunpack.c.h.bf16 %v2324_v35  ;;  %v2074_v53 = vunpack.c.l.bf16 %v2323_v40  ;;  %v2075_v54 = vunpack.c.h.bf16 %v2323_v40  ;;  %v2337_v31 = vld [vmem:[%s3954_s0 + $0xd0] sm:$0xff]   ;;  %v2340_v34 = vld [vmem:[%s3954_s0 + $0xe8] sm:$0xff]   ;;  %v2339_v40 = vld [vmem:[%s3954_s0 + $0xe0] sm:$0xff]  }
   0xb   :  { %v2086_v55 = vunpack.c.l.bf16 %v2326_v41  ;;  %v2087_v56 = vunpack.c.h.bf16 %v2326_v41  ;;  %v2082_v57 = vunpack.c.l.bf16 %v2325_v46  ;;  %v2083_v58 = vunpack.c.h.bf16 %v2325_v46  ;;  %v2342_v46 = vld [vmem:[%s3954_s0 + $0xf8] sm:$0xff]  }
   0xc   :  { %v2094_v59 = vunpack.c.l.bf16 %v2328_v47  ;;  %v2095_v60 = vunpack.c.h.bf16 %v2328_v47  ;;  %v2090_v61 = vunpack.c.l.bf16 %v2327_v52  ;;  %v2091_v62 = vunpack.c.h.bf16 %v2327_v52 }
   0xd   :  { %v2965_v0 = vpack.i.bf16 %v2063_v38, %v2062_v37  ;;  %v2967_v1 = vpack.i.bf16 %v2059_v43, %v2058_v39  ;;  %v2969_v2 = vpack.i.bf16 %v2071_v45, %v2070_v44  ;;  %v2971_v3 = vpack.i.bf16 %v2067_v49, %v2066_v48 }
   0xe   :  { %2405 = vperm.xlu1 %2388, %v2931_v32   ;;  %2400 = vperm.xlu0 %2377, %v2933_v33   ;;  %v2981_v6 = vpack.i.bf16 %v2079_v51, %v2078_v50  ;;  %v2983_v7 = vpack.i.bf16 %v2075_v54, %v2074_v53  ;;  %v2985_v8 = vpack.i.bf16 %v2087_v56, %v2086_v55  ;;  %v2102_v13 = vunpack.c.l.bf16 %v2330_v63  ;;  %v2341_v51 = vld [vmem:[%s3954_s0 + $0xf0] sm:$0xff]  }
   0xf   :  { %v2993_v11 = vpack.i.bf16 %v2083_v58, %v2082_v57  ;;  %v2995_v12 = vpack.i.bf16 %v2095_v60, %v2094_v59  ;;  %v2103_v14 = vunpack.c.h.bf16 %v2330_v63  ;;  %v3003_v19 = vpack.i.bf16 %v2091_v62, %v2090_v61 }
  0x10   :  { %v2098_v20 = vunpack.c.l.bf16 %v2329_v4  ;;  %v2099_v23 = vunpack.c.h.bf16 %v2329_v4  ;;  %v2110_v24 = vunpack.c.l.bf16 %v2332_v5  ;;  %v2111_v27 = vunpack.c.h.bf16 %v2332_v5 }
  0x11   :  { %v2106_v28 = vunpack.c.l.bf16 %v2331_v9  ;;  %v2107_v29 = vunpack.c.h.bf16 %v2331_v9  ;;  %v2118_v30 = vunpack.c.l.bf16 %v2334_v10  ;;  %v2119_v35 = vunpack.c.h.bf16 %v2334_v10 }
  0x12   :  { %2415 = vperm.xlu1 %2388, %v2941_v36   ;;  %2410 = vperm.xlu0 %2377, %v2949_v42   ;;  %v2114_v37 = vunpack.c.l.bf16 %v2333_v17  ;;  %v2115_v38 = vunpack.c.h.bf16 %v2333_v17  ;;  %v2126_v39 = vunpack.c.l.bf16 %v2336_v18  ;;  %v2127_v41 = vunpack.c.h.bf16 %v2336_v18 }
  0x13   :  { %v2122_v43 = vunpack.c.l.bf16 %v2335_v25  ;;  %v2123_v44 = vunpack.c.h.bf16 %v2335_v25  ;;  %v2134_v45 = vunpack.c.l.bf16 %v2338_v26  ;;  %v2135_v47 = vunpack.c.h.bf16 %v2338_v26 }
  0x14   :  { %v2130_v48 = vunpack.c.l.bf16 %v2337_v31  ;;  %v2131_v49 = vunpack.c.h.bf16 %v2337_v31  ;;  %v2142_v50 = vunpack.c.l.bf16 %v2340_v34  ;;  %v2143_v52 = vunpack.c.h.bf16 %v2340_v34 }
  0x15   :  { %v2138_v53 = vunpack.c.l.bf16 %v2339_v40  ;;  %v2139_v54 = vunpack.c.h.bf16 %v2339_v40  ;;  %v2150_v55 = vunpack.c.l.bf16 %v2342_v46  ;;  %v2151_v56 = vunpack.c.h.bf16 %v2342_v46 }
  0x16   :  { %2425 = vperm.xlu1 %2388, %v2965_v0   ;;  %2420 = vperm.xlu0 %2377, %v2967_v1   ;;  %v2146_v57 = vunpack.c.l.bf16 %v2341_v51  ;;  %v2147_v58 = vunpack.c.h.bf16 %v2341_v51  ;;  %v3032_v59 = vpack.i.bf16 %v2099_v23, %v2098_v20  ;;  %v3034_v60 = vpack.i.bf16 %v2103_v14, %v2102_v13 }
  0x17   :  { %v3036_v61 = vpack.i.bf16 %v2107_v29, %v2106_v28  ;;  %v3038_v62 = vpack.i.bf16 %v2111_v27, %v2110_v24  ;;  %v3040_v63 = vpack.i.bf16 %v2115_v38, %v2114_v37  ;;  %v3042_v4 = vpack.i.bf16 %v2119_v35, %v2118_v30 }
  0x18   :  { %v3044_v5 = vpack.i.bf16 %v2123_v44, %v2122_v43  ;;  %v3046_v9 = vpack.i.bf16 %v2127_v41, %v2126_v39  ;;  %v3048_v10 = vpack.i.bf16 %v2131_v49, %v2130_v48  ;;  %v3050_v17 = vpack.i.bf16 %v2135_v47, %v2134_v45 }
  0x19   :  { %v3052_v18 = vpack.i.bf16 %v2139_v54, %v2138_v53  ;;  %v3054_v13 = vpack.i.bf16 %v2143_v52, %v2142_v50  ;;  %v3058_v14 = vpack.i.bf16 %v2147_v58, %v2146_v57  ;;  %v3060_v20 = vpack.i.bf16 %v2151_v56, %v2150_v55 }
  0x1a   :  { %2435 = vperm.xlu1 %2388, %v2969_v2   ;;  %2430 = vperm.xlu0 %2377, %v2971_v3   ;;  %v2864_v23 = vmov 1   ;;  %v2865_v26 = vmov 2  }
  0x1e   :  { %2445 = vperm.xlu1 %2388, %v2981_v6   ;;  %2440 = vperm.xlu0 %2377, %v2983_v7  }
  0x22   :  { %2455 = vperm.xlu1 %2388, %v2985_v8   ;;  %2450 = vperm.xlu0 %2377, %v2993_v11  }
  0x26   :  { %2465 = vperm.xlu1 %2388, %v2995_v12   ;;  %2460 = vperm.xlu0 %2377, %v3003_v19  }
  0x2a   :  { %2475 = vperm.xlu1 %2388, %v3034_v60   ;;  %2470 = vperm.xlu0 %2377, %v3032_v59  }
  0x2e   :  { %2485 = vperm.xlu1 %2388, %v3038_v62   ;;  %2480 = vperm.xlu0 %2377, %v3036_v61  }
  0x32   :  { %2495 = vperm.xlu1 %2388, %v3042_v4   ;;  %2490 = vperm.xlu0 %2377, %v3040_v63  }
  0x36   :  { %2505 = vperm.xlu1 %2388, %v3046_v9   ;;  %2500 = vperm.xlu0 %2377, %v3044_v5  }
  0x3a   :  { %2515 = vperm.xlu1 %2388, %v3050_v17   ;;  %2510 = vperm.xlu0 %2377, %v3048_v10  }
  0x3e   :  { %2525 = vperm.xlu1 %2388, %v3054_v13   ;;  %2520 = vperm.xlu0 %2377, %v3052_v18  }
  0x42   :  { %2535 = vperm.xlu1 %2388, %v3060_v20   ;;  %2530 = vperm.xlu0 %2377, %v3058_v14  }
  0x46   :  { %2545 = vset.pattern.permute.xlu1 %v2864_v23  ;;  %2539 = vset.pattern.permute.xlu0 %v2864_v23 }
  0x47   :  { %2547 = vperm.xlu1 %2545, %v2918_v22   ;;  %2541 = vperm.xlu0 %2539, %v2906_v16  }
  0x4b   :  { %2552 = vperm.xlu1 %2545, %v2904_v15   ;;  %2557 = vperm.xlu0 %2539, %v2916_v21  }
  0x4f   :  { %2562 = vperm.xlu1 %2545, %v2933_v33   ;;  %2567 = vperm.xlu0 %2539, %v2931_v32  }
  0x53   :  { %2572 = vperm.xlu1 %2545, %v2949_v42   ;;  %2577 = vperm.xlu0 %2539, %v2941_v36  }
  0x57   :  { %2582 = vperm.xlu1 %2545, %v2967_v1   ;;  %2587 = vperm.xlu0 %2539, %v2965_v0  }
  0x5b   :  { %2592 = vperm.xlu1 %2545, %v2971_v3   ;;  %2597 = vperm.xlu0 %2539, %v2969_v2  }
  0x5f   :  { %2602 = vperm.xlu1 %2545, %v2983_v7   ;;  %2607 = vperm.xlu0 %2539, %v2981_v6  }
  0x63   :  { %2612 = vperm.xlu1 %2545, %v2993_v11   ;;  %2617 = vperm.xlu0 %2539, %v2985_v8  }
  0x67   :  { %2622 = vperm.xlu1 %2545, %v3003_v19   ;;  %2627 = vperm.xlu0 %2539, %v2995_v12  }
  0x6b   :  { %2632 = vperm.xlu1 %2545, %v3032_v59   ;;  %2637 = vperm.xlu0 %2539, %v3034_v60  }
  0x6f   :  { %2642 = vperm.xlu1 %2545, %v3036_v61   ;;  %2647 = vperm.xlu0 %2539, %v3038_v62  }
  0x73   :  { %2652 = vperm.xlu1 %2545, %v3040_v63   ;;  %2657 = vperm.xlu0 %2539, %v3042_v4  }
  0x77   :  { %2662 = vperm.xlu1 %2545, %v3044_v5   ;;  %2667 = vperm.xlu0 %2539, %v3046_v9  }
  0x7b   :  { %2672 = vperm.xlu1 %2545, %v3048_v10   ;;  %2677 = vperm.xlu0 %2539, %v3050_v17  }
  0x7f   :  { %2682 = vperm.xlu1 %2545, %v3052_v18   ;;  %2687 = vperm.xlu0 %2539, %v3054_v13  }
  0x83   :  { %2692 = vperm.xlu1 %2545, %v3058_v14   ;;  %2697 = vperm.xlu0 %2539, %v3060_v20  }
  0x85   :  { %v2391_v24 = vpop.permute.xlu1 %2390  ;;  %v3110_v25 = vpop.permute.xlu0 %2379 }
  0x86   :  { %v2393_v39 = vunpack.i.h.bf16 %v2391_v24  ;;  %v2392_v40 = vunpack.i.l.bf16 %v2391_v24 }
  0x87   :  { %2701 = vset.pattern.permute.xlu1 %v2865_v26  ;;  %2707 = vset.pattern.permute.xlu0 %v2865_v26 }
  0x88   :  { %2703 = vperm.xlu1 %2701, %v2906_v16   ;;  %2709 = vperm.xlu0 %2707, %v2918_v22  }
  0x89   :  { %v2396_v27 = vpop.permute.xlu1 %2395  ;;  %v3114_v28 = vpop.permute.xlu0 %2384 }
  0x8a   :  { %v2398_v41 = vunpack.i.h.bf16 %v2396_v27  ;;  %v2397_v43 = vunpack.i.l.bf16 %v2396_v27 }
  0x8c   :  { %2714 = vperm.xlu1 %2701, %v2904_v15   ;;  %2724 = vperm.xlu0 %2707, %v2933_v33   ;;  %v465_v33 = vlaneseq }
  0x8d   :  { %v2406_v29 = vpop.permute.xlu1 %2405  ;;  %v3118_v30 = vpop.permute.xlu0 %2400 }
  0x8e   :  { %v2408_v44 = vunpack.i.h.bf16 %v2406_v29  ;;  %v2407_v45 = vunpack.i.l.bf16 %v2406_v29 }
  0x90   :  { %2719 = vperm.xlu1 %2701, %v2916_v21   ;;  %2734 = vperm.xlu0 %2707, %v2949_v42  }
  0x91   :  { %v3122_v31 = vpop.permute.xlu1 %2415  ;;  %v3124_v34 = vpop.permute.xlu0 %2410 }
  0x92   :  { %v2418_v26 = vunpack.i.h.bf16 %v3122_v31 }
  0x94   :  { %2729 = vperm.xlu1 %2701, %v2931_v32   ;;  %2744 = vperm.xlu0 %2707, %v2967_v1   ;;  %v3144_v1 = vshrl.u32 %v465_v33, 7 }
  0x95   :  { %v3128_v16 = vpop.permute.xlu1 %2425  ;;  %v3130_v15 = vpop.permute.xlu0 %2420 }
  0x98   :  { %2739 = vperm.xlu1 %2701, %v2941_v36   ;;  %2754 = vperm.xlu0 %2707, %v2971_v3   ;;  %v143_v36 = vld [vmem:[%s3955_s1] sm:$0x3] }
  0x99   :  { %v3134_v22 = vpop.permute.xlu1 %2435  ;;  %v3136_v21 = vpop.permute.xlu0 %2430 }
  0x9c   :  { %2749 = vperm.xlu1 %2701, %v2965_v0   ;;  %2764 = vperm.xlu0 %2707, %v2983_v7   ;;  %v3155_v0 = vunpack.c.l.bf16 %v143_v36  ;;  %v467_v7 = vsub.s32 0, %v3144_v1 }
  0x9d   :  { %v3140_v32 = vpop.permute.xlu1 %2445  ;;  %v3142_v42 = vpop.permute.xlu0 %2440 }
  0xa0   :  { %2759 = vperm.xlu1 %2701, %v2969_v2   ;;  %2774 = vperm.xlu0 %2707, %v2993_v11   ;;  %v861_v2 = vsub.s32 1, %v3144_v1  ;;  %v3166_v11 = vrot.slane %v3155_v0, %v467_v7 }
  0xa1   :  { %v3151_v3 = vpop.permute.xlu1 %2455  ;;  %v3153_v35 = vpop.permute.xlu0 %2450 }
  0xa2   :  { %v3174_v47 = vrot.slane %v3155_v0, %v861_v2  ;;  %v474_v48 = vmul.f32 %v2393_v39, %v3166_v11  ;;  %v473_v49 = vmul.f32 %v2392_v40, %v3166_v11  ;;  %v476_v53 = vmul.f32 %v2398_v41, %v3166_v11 }
  0xa3   :  { %v475_v54 = vmul.f32 %v2397_v43, %v3166_v11  ;;  %v480_v56 = vmul.f32 %v2408_v44, %v3166_v11  ;;  %v479_v57 = vmul.f32 %v2407_v45, %v3166_v11  ;;  %v2412_v39 = vunpack.i.l.bf16 %v3124_v34 }
  0xa4   :  { %2769 = vperm.xlu1 %2701, %v2981_v6   ;;  %2784 = vperm.xlu0 %2707, %v3003_v19  }
  0xa5   :  { %v3160_v37 = vpop.permute.xlu1 %2465  ;;  %v3162_v38 = vpop.permute.xlu0 %2460 }
  0xa8   :  { %2779 = vperm.xlu1 %2701, %v2985_v8   ;;  %2794 = vperm.xlu0 %2707, %v3032_v59   ;;  %v3181_v8 = vld [vmem:[%s3956_s2] ss:$0 sm:$0xff] }
  0xa9   :  { %v2476_v6 = vpop.permute.xlu1 %2475  ;;  %v3170_v19 = vpop.permute.xlu0 %2470  ;;  %v3202_v33 = vadd.f32 %v3181_v8, %v474_v48  ;;  %v3205_v36 = vadd.f32 %v3181_v8, %v473_v49  ;;  %v3215_v41 = vadd.f32 %v3181_v8, %v476_v53  ;;  %v3218_v43 = vadd.f32 %v3181_v8, %v475_v54 }
  0xaa   :  { %v2478_v50 = vunpack.i.h.bf16 %v2476_v6  ;;  %v2477_v51 = vunpack.i.l.bf16 %v2476_v6  ;;  %v3221_v44 = vadd.f32 %v3181_v8, %v480_v56  ;;  %v3224_v45 = vadd.f32 %v3181_v8, %v479_v57 }
  0xab   :  { %v484_v48 = vmul.f32 %v2418_v26, %v3166_v11 }
  0xac   :  { %2789 = vperm.xlu1 %2701, %v2995_v12   ;;  %v3191_v58 = vmul.f32 %v2478_v50, %v3166_v11  ;;  %v3194_v59 = vmul.f32 %v2477_v51, %v3166_v11  ;;  %2804 = vperm.xlu0 %2707, %v3036_v61   ;;  %v2417_v12 = vunpack.i.l.bf16 %v3122_v31  ;;  %v2413_v61 = vunpack.i.h.bf16 %v3124_v34 }
  0xad   :  { %v2486_v23 = vpop.permute.xlu1 %2485  ;;  %v3197_v24 = vpop.permute.xlu0 %2480 }
  0xae   :  { %v2488_v27 = vunpack.i.h.bf16 %v2486_v23  ;;  %v2487_v29 = vunpack.i.l.bf16 %v2486_v23  ;;  %v482_v57 = vmul.f32 %v2413_v61, %v3166_v11 }
  0xb0   :  { %v512_v40 = vmul.f32 %v2488_v27, %v3166_v11  ;;  %v511_v31 = vmul.f32 %v2487_v29, %v3166_v11  ;;  %2799 = vperm.xlu1 %2701, %v3034_v60   ;;  %2814 = vperm.xlu0 %2707, %v3040_v63   ;;  %v483_v60 = vmul.f32 %v2417_v12, %v3166_v11 }
  0xb1   :  { %v2496_v34 = vpop.permute.xlu1 %2495  ;;  %v2491_v6 = vpop.permute.xlu0 %2490  ;;  %v481_v63 = vmul.f32 %v2412_v39, %v3166_v11 }
  0xb2   :  { %v3230_v49 = vadd.f32 %v3181_v8, %v512_v40  ;;  %v3233_v50 = vadd.f32 %v3181_v8, %v511_v31  ;;  %v2498_v51 = vunpack.i.h.bf16 %v2496_v34  ;;  %v2497_v53 = vunpack.i.l.bf16 %v2496_v34 }
  0xb3   :  { %v2493_v54 = vunpack.i.h.bf16 %v2491_v6  ;;  %v2492_v56 = vunpack.i.l.bf16 %v2491_v6  ;;  %v3287_v52 = vadd.f32 %v3181_v8, %v481_v63 }
  0xb4   :  { %2809 = vperm.xlu1 %2701, %v3038_v62   ;;  %v516_v12 = vmul.f32 %v2498_v51, %v3166_v11  ;;  %v515_v27 = vmul.f32 %v2497_v53, %v3166_v11  ;;  %2824 = vperm.xlu0 %2707, %v3044_v5  }
  0xb5   :  { %v514_v29 = vmul.f32 %v2493_v54, %v3166_v11  ;;  %v513_v40 = vmul.f32 %v2492_v56, %v3166_v11  ;;  %v2506_v31 = vpop.permute.xlu1 %2505  ;;  %v2501_v61 = vpop.permute.xlu0 %2500 }
  0xb6   :  { %v2508_v34 = vunpack.i.h.bf16 %v2506_v31  ;;  %v2507_v39 = vunpack.i.l.bf16 %v2506_v31  ;;  %v2503_v6 = vunpack.i.h.bf16 %v2501_v61  ;;  %v2502_v2 = vunpack.i.l.bf16 %v2501_v61 }
  0xb7   :  { %v3246_v7 = vadd.f32 %v3181_v8, %v516_v12  ;;  %v3249_v62 = vadd.f32 %v3181_v8, %v515_v27  ;;  %v3252_v51 = vadd.f32 %v3181_v8, %v514_v29  ;;  %v3255_v53 = vadd.f32 %v3181_v8, %v513_v40 }
  0xb8   :  { %v520_v5 = vmul.f32 %v2508_v34, %v3166_v11  ;;  %v519_v54 = vmul.f32 %v2507_v39, %v3166_v11  ;;  %v518_v56 = vmul.f32 %v2503_v6, %v3166_v11  ;;  %v517_v31 = vmul.f32 %v2502_v2, %v3166_v11  ;;  %2819 = vperm.xlu1 %2701, %v3042_v4  }
  0xb9   :  { %v3263_v12 = vadd.f32 %v3181_v8, %v484_v48  ;;  %v3266_v27 = vadd.f32 %v3181_v8, %v483_v60  ;;  %v2423_v29 = vunpack.i.h.bf16 %v3130_v15  ;;  %v2422_v40 = vunpack.i.l.bf16 %v3130_v15  ;;  %2834 = vperm.xlu0 %2707, %v3048_v10   ;;  %v2516_v61 = vpop.permute.xlu1 %2515  ;;  %v2511_v34 = vpop.permute.xlu0 %2510 }
  0xba   :  { %v3272_v39 = vadd.f32 %v3181_v8, %v520_v5  ;;  %v3275_v2 = vadd.f32 %v3181_v8, %v519_v54  ;;  %v3278_v4 = vadd.f32 %v3181_v8, %v518_v56  ;;  %v3281_v48 = vadd.f32 %v3181_v8, %v517_v31 }
  0xbb   :  { %v2518_v60 = vunpack.i.h.bf16 %v2516_v61  ;;  %v2517_v6 = vunpack.i.l.bf16 %v2516_v61  ;;  %v2513_v55 = vunpack.i.h.bf16 %v2511_v34  ;;  %v2512_v15 = vunpack.i.l.bf16 %v2511_v34 }
  0xbc   :  { %3959 = vst [vmem:[#allocation2_spill] sm:$0xff] %v3275_v2  ;;  %v3284_v10 = vadd.f32 %v3181_v8, %v482_v57  ;;  %v2438_v5 = vunpack.i.h.bf16 %v3134_v22  ;;  %v2437_v54 = vunpack.i.l.bf16 %v3134_v22  ;;  %2829 = vperm.xlu1 %2701, %v3046_v9  }
  0xbd   :  { %v524_v56 = vmul.f32 %v2518_v60, %v3166_v11  ;;  %v523_v31 = vmul.f32 %v2517_v6, %v3166_v11  ;;  %v522_v61 = vmul.f32 %v2513_v55, %v3166_v11  ;;  %v521_v34 = vmul.f32 %v2512_v15, %v3166_v11  ;;  %2844 = vperm.xlu0 %2707, %v3052_v18   ;;  %v2526_v57 = vpop.permute.xlu1 %2525  ;;  %v2521_v46 = vpop.permute.xlu0 %2520 }
  0xbe   :  { %v2528_v63 = vunpack.i.h.bf16 %v2526_v57  ;;  %v2527_v26 = vunpack.i.l.bf16 %v2526_v57  ;;  %v2523_v23 = vunpack.i.h.bf16 %v2521_v46  ;;  %v2522_v2 = vunpack.i.l.bf16 %v2521_v46 }
  0xbf   :  { %v3298_v22 = vadd.f32 %v3181_v8, %v524_v56  ;;  %v3301_v9 = vadd.f32 %v3181_v8, %v523_v31  ;;  %v3304_v60 = vadd.f32 %v3181_v8, %v522_v61  ;;  %v3307_v55 = vadd.f32 %v3181_v8, %v521_v34 }
  0xc0   :  { %v528_v18 = vmul.f32 %v2528_v63, %v3166_v11  ;;  %v527_v6 = vmul.f32 %v2527_v26, %v3166_v11  ;;  %v526_v15 = vmul.f32 %v2523_v23, %v3166_v11  ;;  %v525_v46 = vmul.f32 %v2522_v2, %v3166_v11  ;;  %2839 = vperm.xlu1 %2701, %v3050_v17  }
  0xc1   :  { %3960 = vst [vmem:[#allocation3_spill] sm:$0xff] %v3298_v22  ;;  %3961 = vst [vmem:[#allocation4_spill] sm:$0xff] %v3301_v9  ;;  %v3964_v56 = vunpack.i.h.bf16 %v3128_v16  ;;  %v3965_v61 = vunpack.i.l.bf16 %v3128_v16  ;;  %v486_v34 = vmul.f32 %v2423_v29, %v3166_v11  ;;  %v485_v63 = vmul.f32 %v2422_v40, %v3166_v11  ;;  %2854 = vperm.xlu0 %2707, %v3058_v14   ;;  %v2536_v26 = vpop.permute.xlu1 %2535  ;;  %v2531_v23 = vpop.permute.xlu0 %2530 }
  0xc2   :  { %3962 = vst [vmem:[#allocation5_spill] sm:$0xff] %v3304_v60  ;;  %3963 = vst [vmem:[#allocation6_spill] sm:$0xff] %v3307_v55  ;;  %v3324_v2 = vadd.f32 %v3181_v8, %v528_v18  ;;  %v3327_v17 = vadd.f32 %v3181_v8, %v527_v6  ;;  %v3333_v16 = vadd.f32 %v3181_v8, %v525_v46  ;;  %v2537_v29 = vunpack.i.l.bf16 %v2536_v26 }
  0xc3   :  { %v488_v31 = vmul.f32 %v3964_v56, %v3166_v11  ;;  %v487_v57 = vmul.f32 %v3965_v61, %v3166_v11  ;;  %v3330_v56 = vadd.f32 %v3181_v8, %v526_v15  ;;  %v2538_v61 = vunpack.i.h.bf16 %v2536_v26 }
  0xc4   :  { %3966 = vst [vmem:[#allocation7_spill] sm:$0xff] %v3324_v2  ;;  %3967 = vst [vmem:[#allocation8_spill] sm:$0xff] %v3327_v17  ;;  %v2533_v9 = vunpack.i.h.bf16 %v2531_v23  ;;  %v2532_v40 = vunpack.i.l.bf16 %v2531_v23  ;;  %v492_v14 = vmul.f32 %v2438_v5, %v3166_v11  ;;  %v491_v22 = vmul.f32 %v2437_v54, %v3166_v11  ;;  %2849 = vperm.xlu1 %2701, %v3054_v13  }
  0xc5   :  { %3968 = vst [vmem:[#allocation9_spill] sm:$0xff] %v3330_v56  ;;  %3969 = vst [vmem:[#allocation10_spill] sm:$0xff] %v3333_v16  ;;  %v2433_v18 = vunpack.i.h.bf16 %v3136_v21  ;;  %v2432_v2 = vunpack.i.l.bf16 %v3136_v21  ;;  %v532_v6 = vmul.f32 %v2538_v61, %v3166_v11  ;;  %v531_v15 = vmul.f32 %v2537_v29, %v3166_v11 }
  0xc6   :  { %v530_v46 = vmul.f32 %v2533_v9, %v3166_v11  ;;  %v529_v26 = vmul.f32 %v2532_v40, %v3166_v11  ;;  %v2448_v23 = vunpack.i.h.bf16 %v3140_v32  ;;  %v2447_v5 = vunpack.i.l.bf16 %v3140_v32  ;;  %v3348_v56 = vpop.permute.xlu1 %2547  ;;  %v3350_v21 = vpop.permute.xlu0 %2541 }
  0xc7   :  { %v2443_v54 = vunpack.i.h.bf16 %v3142_v42  ;;  %v2442_v17 = vunpack.i.l.bf16 %v3142_v42  ;;  %v3353_v13 = vadd.f32 %v3181_v8, %v532_v6  ;;  %v3356_v61 = vadd.f32 %v3181_v8, %v531_v15 }
  0xc8   :  { %v3359_v9 = vadd.f32 %v3181_v8, %v530_v46  ;;  %v3362_v29 = vadd.f32 %v3181_v8, %v529_v26  ;;  %v3365_v32 = vadd.f32 %v3181_v8, %v488_v31  ;;  %v3368_v42 = vadd.f32 %v3181_v8, %v487_v57  ;;  %2859 = vperm.xlu1 %2701, %v3060_v20  }
  0xc9   :  { %3970 = vst [vmem:[#allocation11_spill] sm:$0xff] %v3353_v13  ;;  %3971 = vst [vmem:[#allocation12_spill] sm:$0xff] %v3356_v61  ;;  %v3371_v40 = vadd.f32 %v3181_v8, %v486_v34  ;;  %v3374_v6 = vadd.f32 %v3181_v8, %v485_v63  ;;  %v3378_v15 = vadd.f32 %v3181_v8, %v492_v14 }
  0xca   :  { %3972 = vst [vmem:[#allocation13_spill] sm:$0xff] %v3359_v9  ;;  %3973 = vst [vmem:[#allocation14_spill] sm:$0xff] %v3362_v29  ;;  %v3381_v46 = vadd.f32 %v3181_v8, %v491_v22  ;;  %v490_v31 = vmul.f32 %v2433_v18, %v3166_v11  ;;  %v489_v26 = vmul.f32 %v2432_v2, %v3166_v11  ;;  %v2553_v13 = vpop.permute.xlu1 %2552  ;;  %v2558_v20 = vpop.permute.xlu0 %2557  ;;  %v2458_v22 = vunpack.i.h.bf16 %v3151_v3 }
  0xcb   :  { %v496_v57 = vmul.f32 %v2448_v23, %v3166_v11  ;;  %v495_v34 = vmul.f32 %v2447_v5, %v3166_v11  ;;  %v494_v61 = vmul.f32 %v2443_v54, %v3166_v11  ;;  %v493_v63 = vmul.f32 %v2442_v17, %v3166_v11 }
  0xcc   :  { %v2555_v9 = vunpack.i.h.bf16 %v2553_v13  ;;  %v2554_v14 = vunpack.i.l.bf16 %v2553_v13  ;;  %v2560_v29 = vunpack.i.h.bf16 %v2558_v20  ;;  %v2559_v16 = vunpack.i.l.bf16 %v2558_v20 }
  0xcd   :  { %v2457_v18 = vunpack.i.l.bf16 %v3151_v3  ;;  %v2453_v2 = vunpack.i.h.bf16 %v3153_v35  ;;  %v2452_v23 = vunpack.i.l.bf16 %v3153_v35  ;;  %v3398_v13 = vadd.f32 %v3181_v8, %v490_v31 }
  0xce   :  { %v868_v5 = vmul.f32 %v2555_v9, %v3174_v47  ;;  %v867_v54 = vmul.f32 %v2554_v14, %v3174_v47  ;;  %v870_v17 = vmul.f32 %v2560_v29, %v3174_v47  ;;  %v869_v60 = vmul.f32 %v2559_v16, %v3174_v47  ;;  %v3409_v35 = vpop.permute.xlu1 %2562  ;;  %v2568_v9 = vpop.permute.xlu0 %2567 }
  0xcf   :  { %v3401_v20 = vadd.f32 %v3181_v8, %v489_v26  ;;  %v3404_v3 = vadd.f32 %v3181_v8, %v496_v57  ;;  %v3407_v55 = vadd.f32 %v3181_v8, %v495_v34  ;;  %3974 = vst [vmem:[#allocation15_spill] sm:$0xff] %v3409_v35  ;;  %v3424_v26 = vadd.f32 %v3181_v8, %v494_v61 }
  0xd0   :  { %v3412_v14 = vadd.f32 %v868_v5, %v3202_v33  ;;  %v3415_v16 = vadd.f32 %v867_v54, %v3205_v36  ;;  %v3418_v29 = vadd.f32 %v870_v17, %v3215_v41  ;;  %v3421_v31 = vadd.f32 %v869_v60, %v3218_v43 }
  0xd1   :  { %v3427_v57 = vadd.f32 %v3181_v8, %v493_v63  ;;  %v2570_v34 = vunpack.i.h.bf16 %v2568_v9  ;;  %v2569_v35 = vunpack.i.l.bf16 %v2568_v9  ;;  %v500_v33 = vmul.f32 %v2458_v22, %v3166_v11 }
  0xd2   :  { %3975 = vst [vmem:[#allocation16_spill] sm:$0xff] %v3412_v14  ;;  %3976 = vst [vmem:[#allocation17_spill] sm:$0xff] %v3415_v16  ;;  %v499_v5 = vmul.f32 %v2457_v18, %v3166_v11  ;;  %v498_v36 = vmul.f32 %v2453_v2, %v3166_v11  ;;  %v497_v41 = vmul.f32 %v2452_v23, %v3166_v11  ;;  %v2468_v54 = vunpack.i.h.bf16 %v3160_v37  ;;  %v2573_v63 = vpop.permute.xlu1 %2572  ;;  %v2578_v17 = vpop.permute.xlu0 %2577 }
  0xd3   :  { %3977 = vst [vmem:[#allocation18_spill] sm:$0xff] %v3418_v29  ;;  %3978 = vst [vmem:[#allocation19_spill] sm:$0xff] %v3421_v31  ;;  %v2467_v43 = vunpack.i.l.bf16 %v3160_v37  ;;  %v874_v60 = vmul.f32 %v2570_v34, %v3174_v47  ;;  %v873_v61 = vmul.f32 %v2569_v35, %v3174_v47  ;;  %v2575_v29 = vunpack.i.h.bf16 %v2573_v63 }
  0xd4   :  { %v2574_v9 = vunpack.i.l.bf16 %v2573_v63  ;;  %v2580_v31 = vunpack.i.h.bf16 %v2578_v17  ;;  %v2579_v22 = vunpack.i.l.bf16 %v2578_v17  ;;  %v2463_v18 = vunpack.i.h.bf16 %v3162_v38 }
  0xd5   :  { %v2462_v2 = vunpack.i.l.bf16 %v3162_v38  ;;  %v3440_v23 = vadd.f32 %v874_v60, %v3221_v44  ;;  %v3443_v16 = vadd.f32 %v873_v61, %v3224_v45  ;;  %v876_v37 = vmul.f32 %v2575_v29, %v3174_v47 }
  0xd6   :  { %v875_v35 = vmul.f32 %v2574_v9, %v3174_v47  ;;  %v878_v34 = vmul.f32 %v2580_v31, %v3174_v47  ;;  %v877_v63 = vmul.f32 %v2579_v22, %v3174_v47  ;;  %v3450_v17 = vadd.f32 %v3181_v8, %v500_v33  ;;  %v2583_v45 = vpop.permute.xlu1 %2582  ;;  %v2588_v29 = vpop.permute.xlu0 %2587 }
  0xd7   :  { %3979 = vst [vmem:[#allocation20_spill] sm:$0xff] %v3440_v23  ;;  %v3453_v14 = vadd.f32 %v3181_v8, %v499_v5  ;;  %v3456_v38 = vadd.f32 %v3181_v8, %v498_v36  ;;  %v3459_v44 = vadd.f32 %v3181_v8, %v497_v41  ;;  %v3465_v31 = vadd.f32 %v876_v37, %v3284_v10 }
  0xd8   :  { %v3462_v60 = vadd.f32 %v875_v35, %v3287_v52  ;;  %v3468_v33 = vadd.f32 %v878_v34, %v3263_v12  ;;  %v3471_v5 = vadd.f32 %v877_v63, %v3266_v27  ;;  %v2585_v61 = vunpack.i.h.bf16 %v2583_v45 }
  0xd9   :  { %v2584_v36 = vunpack.i.l.bf16 %v2583_v45  ;;  %v2590_v9 = vunpack.i.h.bf16 %v2588_v29  ;;  %v2589_v22 = vunpack.i.l.bf16 %v2588_v29  ;;  %v504_v41 = vmul.f32 %v2468_v54, %v3166_v11 }
  0xda   :  { %3980 = vst [vmem:[#allocation21_spill] sm:$0xff] %v3468_v33  ;;  %3981 = vst [vmem:[#allocation22_spill] sm:$0xff] %v3471_v5  ;;  %v503_v23 = vmul.f32 %v2467_v43, %v3166_v11  ;;  %v2473_v52 = vunpack.i.h.bf16 %v3170_v19  ;;  %v2472_v35 = vunpack.i.l.bf16 %v3170_v19  ;;  %v880_v10 = vmul.f32 %v2585_v61, %v3174_v47  ;;  %v2593_v34 = vpop.permute.xlu1 %2592  ;;  %v2598_v63 = vpop.permute.xlu0 %2597 }
  0xdb   :  { %v879_v12 = vmul.f32 %v2584_v36, %v3174_v47  ;;  %v882_v37 = vmul.f32 %v2590_v9, %v3174_v47  ;;  %v881_v27 = vmul.f32 %v2589_v22, %v3174_v47  ;;  %v2595_v45 = vunpack.i.h.bf16 %v2593_v34 }
  0xdc   :  { %v2594_v29 = vunpack.i.l.bf16 %v2593_v34  ;;  %v2600_v5 = vunpack.i.h.bf16 %v2598_v63  ;;  %v2599_v54 = vunpack.i.l.bf16 %v2598_v63  ;;  %v3485_v33 = vadd.f32 %v880_v10, %v3371_v40 }
  0xdd   :  { %v3482_v43 = vadd.f32 %v879_v12, %v3374_v6  ;;  %v3488_v19 = vadd.f32 %v882_v37, %v3365_v32  ;;  %v3491_v61 = vadd.f32 %v881_v27, %v3368_v42  ;;  %v884_v36 = vmul.f32 %v2595_v45, %v3174_v47 }
  0xde   :  { %v883_v9 = vmul.f32 %v2594_v29, %v3174_v47  ;;  %v886_v22 = vmul.f32 %v2600_v5, %v3174_v47  ;;  %v885_v34 = vmul.f32 %v2599_v54, %v3174_v47  ;;  %v3498_v6 = vadd.f32 %v3181_v8, %v504_v41  ;;  %v2603_v42 = vpop.permute.xlu1 %2602  ;;  %v2608_v12 = vpop.permute.xlu0 %2607 }
  0xdf   :  { %v3501_v40 = vadd.f32 %v3181_v8, %v503_v23  ;;  %v502_v32 = vmul.f32 %v2463_v18, %v3166_v11  ;;  %v501_v10 = vmul.f32 %v2462_v2, %v3166_v11  ;;  %v3509_v27 = vadd.f32 %v884_v36, %v3398_v13 }
  0xe0   :  { %v3506_v37 = vadd.f32 %v883_v9, %v3401_v20  ;;  %v3512_v5 = vadd.f32 %v886_v22, %v3378_v15  ;;  %v3515_v41 = vadd.f32 %v885_v34, %v3381_v46  ;;  %v2605_v23 = vunpack.i.h.bf16 %v2603_v42 }
  0xe1   :  { %v2604_v63 = vunpack.i.l.bf16 %v2603_v42  ;;  %v2610_v45 = vunpack.i.h.bf16 %v2608_v12  ;;  %v2609_v18 = vunpack.i.l.bf16 %v2608_v12  ;;  %v506_v2 = vmul.f32 %v2473_v52, %v3166_v11 }
  0xe2   :  { %3982 = vst [vmem:[#allocation23_spill] sm:$0xff] %v3512_v5  ;;  %v505_v29 = vmul.f32 %v2472_v35, %v3166_v11  ;;  %v2483_v20 = vunpack.i.h.bf16 %v3197_v24  ;;  %v2482_v54 = vunpack.i.l.bf16 %v3197_v24  ;;  %v888_v13 = vmul.f32 %v2605_v23, %v3174_v47  ;;  %v2613_v9 = vpop.permute.xlu1 %2612  ;;  %v2618_v22 = vpop.permute.xlu0 %2617 }
  0xe3   :  { %v887_v15 = vmul.f32 %v2604_v63, %v3174_v47  ;;  %v890_v36 = vmul.f32 %v2610_v45, %v3174_v47  ;;  %v889_v46 = vmul.f32 %v2609_v18, %v3174_v47  ;;  %v2615_v34 = vunpack.i.h.bf16 %v2613_v9 }
  0xe4   :  { %v2614_v42 = vunpack.i.l.bf16 %v2613_v9  ;;  %v2620_v12 = vunpack.i.h.bf16 %v2618_v22  ;;  %v2619_v52 = vunpack.i.l.bf16 %v2618_v22  ;;  %v3529_v5 = vadd.f32 %v888_v13, %v3424_v26 }
  0xe5   :  { %v3526_v35 = vadd.f32 %v887_v15, %v3427_v57  ;;  %v3532_v24 = vadd.f32 %v890_v36, %v3404_v3  ;;  %v3535_v23 = vadd.f32 %v889_v46, %v3407_v55  ;;  %v892_v63 = vmul.f32 %v2615_v34, %v3174_v47 }
  0xe6   :  { %v891_v45 = vmul.f32 %v2614_v42, %v3174_v47  ;;  %v894_v18 = vmul.f32 %v2620_v12, %v3174_v47  ;;  %v893_v9 = vmul.f32 %v2619_v52, %v3174_v47  ;;  %v572_v57 = vadd.f32 %v3181_v8, %v502_v32  ;;  %v2623_v55 = vpop.permute.xlu1 %2622  ;;  %v2628_v13 = vpop.permute.xlu0 %2627 }
  0xe7   :  { %v571_v15 = vadd.f32 %v3181_v8, %v501_v10  ;;  %v578_v26 = vadd.f32 %v3181_v8, %v3191_v58  ;;  %v577_v3 = vadd.f32 %v3181_v8, %v3194_v59  ;;  %v3551_v46 = vadd.f32 %v892_v63, %v3456_v38 }
  0xe8   :  { %v3548_v36 = vadd.f32 %v891_v45, %v3459_v44  ;;  %v3554_v22 = vadd.f32 %v894_v18, %v3450_v17  ;;  %v3557_v32 = vadd.f32 %v893_v9, %v3453_v14  ;;  %v2625_v10 = vunpack.i.h.bf16 %v2623_v55 }
  0xe9   :  { %v2624_v34 = vunpack.i.l.bf16 %v2623_v55  ;;  %v2630_v58 = vunpack.i.h.bf16 %v2628_v13  ;;  %v2629_v42 = vunpack.i.l.bf16 %v2628_v13  ;;  %v576_v59 = vadd.f32 %v3181_v8, %v506_v2 }
  0xea   :  { %3983 = vst [vmem:[#allocation24_spill] sm:$0xff] %v3554_v22  ;;  %v575_v12 = vadd.f32 %v3181_v8, %v505_v29  ;;  %v510_v44 = vmul.f32 %v2483_v20, %v3166_v11  ;;  %v509_v52 = vmul.f32 %v2482_v54, %v3166_v11  ;;  %v896_v38 = vmul.f32 %v2625_v10, %v3174_v47  ;;  %v2633_v45 = vpop.permute.xlu1 %2632  ;;  %v2638_v18 = vpop.permute.xlu0 %2637 }
  0xeb   :  { %v895_v17 = vmul.f32 %v2624_v34, %v3174_v47  ;;  %v898_v63 = vmul.f32 %v2630_v58, %v3174_v47  ;;  %v897_v14 = vmul.f32 %v2629_v42, %v3174_v47  ;;  %v2635_v9 = vunpack.i.h.bf16 %v2633_v45 }
  0xec   :  { %v2634_v55 = vunpack.i.l.bf16 %v2633_v45  ;;  %v2640_v13 = vunpack.i.h.bf16 %v2638_v18  ;;  %v2639_v2 = vunpack.i.l.bf16 %v2638_v18  ;;  %v3569_v29 = vadd.f32 %v896_v38, %v572_v57 }
  0xed   :  { %v3567_v22 = vadd.f32 %v895_v17, %v571_v15  ;;  %v3572_v20 = vadd.f32 %v898_v63, %v3498_v6  ;;  %v3575_v54 = vadd.f32 %v897_v14, %v3501_v40  ;;  %v900_v10 = vmul.f32 %v2635_v9, %v3174_v47 }
  0xee   :  { %v899_v34 = vmul.f32 %v2634_v55, %v3174_v47  ;;  %v902_v58 = vmul.f32 %v2640_v13, %v3174_v47  ;;  %v901_v42 = vmul.f32 %v2639_v2, %v3174_v47  ;;  %v3985_v15 = vunpack.i.h.bf16 %v3110_v25  ;;  %v2643_v38 = vpop.permute.xlu1 %2642  ;;  %v2648_v63 = vpop.permute.xlu0 %2647 }
  0xef   :  { %3984 = vst [vmem:[#allocation25_spill] sm:$0xff] %v3572_v20  ;;  %v3986_v57 = vunpack.i.l.bf16 %v3110_v25  ;;  %v3987_v40 = vsub.s32 2, %v3144_v1  ;;  %v3594_v18 = vadd.f32 %v900_v10, %v576_v59  ;;  %v2645_v13 = vunpack.i.h.bf16 %v2643_v38 }
  0xf0   :  { %v470_v17 = vmul.f32 %v3985_v15, %v3166_v11  ;;  %v3592_v45 = vadd.f32 %v899_v34, %v575_v12  ;;  %v3596_v9 = vadd.f32 %v902_v58, %v578_v26  ;;  %v3598_v55 = vadd.f32 %v901_v42, %v577_v3 }
  0xf1   :  { %v469_v6 = vmul.f32 %v3986_v57, %v3166_v11  ;;  %v3590_v14 = vrot.slane %v3155_v0, %v3987_v40  ;;  %v2644_v2 = vunpack.i.l.bf16 %v2643_v38  ;;  %v2650_v15 = vunpack.i.h.bf16 %v2648_v63 }
  0xf2   :  { %v2649_v25 = vunpack.i.l.bf16 %v2648_v63  ;;  %v3988_v57 = vunpack.i.h.bf16 %v3114_v28  ;;  %v3989_v1 = vunpack.i.l.bf16 %v3114_v28  ;;  %v580_v12 = vadd.f32 %v3181_v8, %v510_v44  ;;  %v2653_v58 = vpop.permute.xlu1 %2652  ;;  %v2658_v42 = vpop.permute.xlu0 %2657 }
  0xf3   :  { %v579_v59 = vadd.f32 %v3181_v8, %v509_v52  ;;  %v904_v26 = vmul.f32 %v2645_v13, %v3174_v47  ;;  %v903_v3 = vmul.f32 %v2644_v2, %v3174_v47  ;;  %v906_v10 = vmul.f32 %v2650_v15, %v3174_v47 }
  0xf4   :  { %v472_v20 = vmul.f32 %v3988_v57, %v3166_v11  ;;  %v471_v0 = vmul.f32 %v3989_v1, %v3166_v11  ;;  %v905_v34 = vmul.f32 %v2649_v25, %v3174_v47  ;;  %v2655_v38 = vunpack.i.h.bf16 %v2653_v58 }
  0xf5   :  { %v2654_v63 = vunpack.i.l.bf16 %v2653_v58  ;;  %v2660_v40 = vunpack.i.h.bf16 %v2658_v42  ;;  %v2659_v57 = vunpack.i.l.bf16 %v2658_v42  ;;  %v3612_v28 = vadd.f32 %v903_v3, %v579_v59 }
  0xf6   :  { %v3614_v1 = vadd.f32 %v904_v26, %v580_v12  ;;  %v3617_v44 = vadd.f32 %v906_v10, %v3230_v49  ;;  %v3620_v52 = vadd.f32 %v905_v34, %v3233_v50  ;;  %v908_v13 = vmul.f32 %v2655_v38, %v3174_v47  ;;  %v2663_v50 = vpop.permute.xlu1 %2662  ;;  %v2668_v26 = vpop.permute.xlu0 %2667 }
  0xf7   :  { %v907_v2 = vmul.f32 %v2654_v63, %v3174_v47  ;;  %v910_v15 = vmul.f32 %v2660_v40, %v3174_v47  ;;  %v909_v25 = vmul.f32 %v2659_v57, %v3174_v47  ;;  %v3627_v58 = vadd.f32 %v3181_v8, %v470_v17 }
  0xf8   :  { %3990 = vst [vmem:[#allocation26_spill] sm:$0xff] %v3620_v52  ;;  %v3630_v12 = vadd.f32 %v3181_v8, %v469_v6  ;;  %v2403_v49 = vunpack.i.h.bf16 %v3118_v30  ;;  %v2402_v59 = vunpack.i.l.bf16 %v3118_v30  ;;  %v3638_v10 = vadd.f32 %v908_v13, %v3252_v51 }
  0xf9   :  { %v3635_v3 = vadd.f32 %v907_v2, %v3255_v53  ;;  %v3641_v34 = vadd.f32 %v910_v15, %v3246_v7  ;;  %v3644_v17 = vadd.f32 %v909_v25, %v3249_v62  ;;  %v2665_v6 = vunpack.i.h.bf16 %v2663_v50 }
  0xfa   :  { %v2664_v42 = vunpack.i.l.bf16 %v2663_v50  ;;  %v2670_v38 = vunpack.i.h.bf16 %v2668_v26  ;;  %v2669_v63 = vunpack.i.l.bf16 %v2668_v26  ;;  %v3647_v30 = vadd.f32 %v3181_v8, %v472_v20  ;;  %v2673_v2 = vpop.permute.xlu1 %2672  ;;  %v2678_v15 = vpop.permute.xlu0 %2677 }
  0xfb   :  { %3991 = vst [vmem:[#allocation27_spill] sm:$0xff] %v3641_v34  ;;  %3992 = vst [vmem:[#allocation28_spill] sm:$0xff] %v3644_v17  ;;  %v3650_v40 = vadd.f32 %v3181_v8, %v471_v0  ;;  %v2550_v53 = vunpack.i.h.bf16 %v3348_v56  ;;  %v2549_v51 = vunpack.i.l.bf16 %v3348_v56  ;;  %v912_v7 = vmul.f32 %v2665_v6, %v3174_v47  ;;  %v3996_v6 = vld [vmem:[#allocation2_spill] sm:$0xff] }
  0xfc   :  { %v911_v57 = vmul.f32 %v2664_v42, %v3174_v47  ;;  %v914_v62 = vmul.f32 %v2670_v38, %v3174_v47  ;;  %v913_v13 = vmul.f32 %v2669_v63, %v3174_v47  ;;  %v2675_v25 = vunpack.i.h.bf16 %v2673_v2 }
  0xfd   :  { %v2674_v20 = vunpack.i.l.bf16 %v2673_v2  ;;  %v2680_v50 = vunpack.i.h.bf16 %v2678_v15  ;;  %v2679_v26 = vunpack.i.l.bf16 %v2678_v15  ;;  %v3662_v17 = vadd.f32 %v912_v7, %v3278_v4 }
  0xfe   :  { %v3659_v0 = vadd.f32 %v911_v57, %v3281_v48  ;;  %v3665_v56 = vadd.f32 %v914_v62, %v3272_v39  ;;  %v3668_v42 = vadd.f32 %v913_v13, %v3996_v6  ;;  %v916_v38 = vmul.f32 %v2675_v25, %v3174_v47  ;;  %v2683_v7 = vpop.permute.xlu1 %2682  ;;  %v2688_v62 = vpop.permute.xlu0 %2687  ;;  %v3998_v13 = vld [vmem:[#allocation6_spill] sm:$0xff]  ;;  %v4000_v25 = vld [vmem:[#allocation5_spill] sm:$0xff] }
  0xff   :  { %3994 = vst [vmem:[#allocation30_spill] sm:$0xff] %v3662_v17  ;;  %v915_v63 = vmul.f32 %v2674_v20, %v3174_v47  ;;  %v918_v2 = vmul.f32 %v2680_v50, %v3174_v47  ;;  %v917_v15 = vmul.f32 %v2679_v26, %v3174_v47  ;;  %v478_v48 = vmul.f32 %v2403_v49, %v3166_v11  ;;  %v4002_v20 = vld [vmem:[#allocation3_spill] sm:$0xff]  ;;  %v4004_v26 = vld [vmem:[#allocation4_spill] sm:$0xff] }
 0x100   :  { %3993 = vst [vmem:[#allocation29_spill] sm:$0xff] %v3659_v0  ;;  %3995 = vst [vmem:[#allocation31_spill] sm:$0xff] %v3665_v56  ;;  %v477_v57 = vmul.f32 %v2402_v59, %v3166_v11  ;;  %v2544_v4 = vunpack.i.h.bf16 %v3350_v21  ;;  %v2543_v39 = vunpack.i.l.bf16 %v3350_v21  ;;  %v2685_v49 = vunpack.i.h.bf16 %v2683_v7  ;;  %v4006_v0 = vld [vmem:[#allocation15_spill] sm:$0xff] }
 0x101   :  { %3997 = vst [vmem:[#allocation2_spill] sm:$0xff] %v3668_v42  ;;  %v3679_v6 = vadd.f32 %v915_v63, %v3998_v13  ;;  %v3682_v42 = vadd.f32 %v916_v38, %v4000_v25  ;;  %v3685_v50 = vadd.f32 %v918_v2, %v4002_v20  ;;  %v3688_v56 = vadd.f32 %v917_v15, %v4004_v26 }
 0x102   :  { %v2684_v11 = vunpack.i.l.bf16 %v2683_v7  ;;  %v2690_v59 = vunpack.i.h.bf16 %v2688_v62  ;;  %v2689_v34 = vunpack.i.l.bf16 %v2688_v62  ;;  %v866_v21 = vmul.f32 %v2550_v53, %v3174_v47  ;;  %v2693_v20 = vpop.permute.xlu1 %2692  ;;  %v2698_v7 = vpop.permute.xlu0 %2697 }
 0x103   :  { %3999 = vst [vmem:[#allocation6_spill] sm:$0xff] %v3679_v6  ;;  %4001 = vst [vmem:[#allocation5_spill] sm:$0xff] %v3682_v42  ;;  %v865_v17 = vmul.f32 %v2549_v51, %v3174_v47  ;;  %v2565_v63 = vunpack.i.h.bf16 %v4006_v0  ;;  %v2564_v13 = vunpack.i.l.bf16 %v4006_v0  ;;  %v920_v38 = vmul.f32 %v2685_v49, %v3174_v47  ;;  %v4008_v42 = vld [vmem:[#allocation9_spill] sm:$0xff]  ;;  %v4009_v0 = vld [vmem:[#allocation7_spill] sm:$0xff] }
 0x104   :  { %4003 = vst [vmem:[#allocation3_spill] sm:$0xff] %v3685_v50  ;;  %4005 = vst [vmem:[#allocation4_spill] sm:$0xff] %v3688_v56  ;;  %v919_v2 = vmul.f32 %v2684_v11, %v3174_v47  ;;  %v922_v25 = vmul.f32 %v2690_v59, %v3174_v47  ;;  %v921_v15 = vmul.f32 %v2689_v34, %v3174_v47  ;;  %v2695_v26 = vunpack.i.h.bf16 %v2693_v20  ;;  %v4007_v56 = vld [vmem:[#allocation10_spill] sm:$0xff]  ;;  %v4011_v11 = vld [vmem:[#allocation8_spill] sm:$0xff] }
 0x105   :  { %v2694_v62 = vunpack.i.l.bf16 %v2693_v20  ;;  %v2700_v50 = vunpack.i.h.bf16 %v2698_v7  ;;  %v2699_v53 = vunpack.i.l.bf16 %v2698_v7  ;;  %v3702_v6 = vadd.f32 %v920_v38, %v4008_v42 }
 0x106   :  { %v3699_v51 = vadd.f32 %v919_v2, %v4007_v56  ;;  %v3705_v49 = vadd.f32 %v922_v25, %v4009_v0  ;;  %v3708_v52 = vadd.f32 %v921_v15, %v4011_v11  ;;  %v924_v34 = vmul.f32 %v2695_v26, %v3174_v47  ;;  %v4013_v25 = vld [vmem:[#allocation14_spill] sm:$0xff]  ;;  %v4014_v15 = vld [vmem:[#allocation13_spill] sm:$0xff]  ;;  %v4015_v26 = vld [vmem:[#allocation11_spill] sm:$0xff] }
 0x107   :  { %v923_v59 = vmul.f32 %v2694_v62, %v3174_v47  ;;  %v926_v20 = vmul.f32 %v2700_v50, %v3174_v47  ;;  %v925_v7 = vmul.f32 %v2699_v53, %v3174_v47  ;;  %v864_v56 = vmul.f32 %v2544_v4, %v3174_v47  ;;  %v4017_v50 = vld [vmem:[#allocation12_spill] sm:$0xff]  ;;  %v2704_v53 = vpop.permute.xlu1 %2703 }
 0x108   :  { %4010 = vst [vmem:[#allocation15_spill] sm:$0xff] %v3705_v49  ;;  %4012 = vst [vmem:[#allocation10_spill] sm:$0xff] %v3708_v52  ;;  %v863_v2 = vmul.f32 %v2543_v39, %v3174_v47  ;;  %v872_v42 = vmul.f32 %v2565_v63, %v3174_v47  ;;  %v871_v38 = vmul.f32 %v2564_v13, %v3174_v47  ;;  %v2706_v63 = vunpack.i.h.bf16 %v2704_v53  ;;  %v2710_v47 = vpop.permute.xlu0 %2709 }
 0x109   :  { %v3719_v0 = vadd.f32 %v923_v59, %v4013_v25  ;;  %v3722_v11 = vadd.f32 %v924_v34, %v4014_v15  ;;  %v3725_v62 = vadd.f32 %v926_v20, %v4015_v26  ;;  %v3728_v49 = vadd.f32 %v925_v7, %v4017_v50 }
 0x10a   :  { %v548_v4 = vadd.f32 %v3181_v8, %v478_v48  ;;  %v547_v39 = vadd.f32 %v3181_v8, %v477_v57  ;;  %v2705_v52 = vunpack.i.l.bf16 %v2704_v53  ;;  %v929_v13 = vadd.f32 %v865_v17, %v3650_v40 }
 0x10b   :  { %4016 = vst [vmem:[#allocation9_spill] sm:$0xff] %v3725_v62  ;;  %4018 = vst [vmem:[#allocation7_spill] sm:$0xff] %v3728_v49  ;;  %v930_v59 = vadd.f32 %v866_v21, %v3647_v30  ;;  %v2712_v34 = vunpack.i.h.bf16 %v2710_v47  ;;  %v2711_v25 = vunpack.i.l.bf16 %v2710_v47  ;;  %v927_v20 = vadd.f32 %v863_v2, %v3630_v12  ;;  %v2715_v53 = vpop.permute.xlu1 %2714 }
 0x10c   :  { %v928_v15 = vadd.f32 %v864_v56, %v3627_v58  ;;  %v1252_v7 = vmul.f32 %v2706_v63, %v3590_v14  ;;  %v1251_v26 = vmul.f32 %v2705_v52, %v3590_v14  ;;  %v935_v48 = vadd.f32 %v871_v38, %v547_v39  ;;  %v2725_v47 = vpop.permute.xlu0 %2724 }
 0x10d   :  { %v936_v50 = vadd.f32 %v872_v42, %v548_v4  ;;  %v1254_v8 = vmul.f32 %v2712_v34, %v3590_v14  ;;  %v1253_v57 = vmul.f32 %v2711_v25, %v3590_v14  ;;  %v2717_v30 = vunpack.i.h.bf16 %v2715_v53 }
 0x10e   :  { %v1315_v17 = vadd.f32 %v1251_v26, %v927_v20  ;;  %v1316_v40 = vadd.f32 %v1252_v7, %v928_v15  ;;  %v2716_v21 = vunpack.i.l.bf16 %v2715_v53  ;;  %v2727_v2 = vunpack.i.h.bf16 %v2725_v47  ;;  %v4020_v53 = vld [vmem:[#allocation17_spill] sm:$0xff] }
 0x10f   :  { %v1317_v49 = vadd.f32 %v1253_v57, %v929_v13  ;;  %v1318_v12 = vadd.f32 %v1254_v8, %v930_v59  ;;  %v2726_v58 = vunpack.i.l.bf16 %v2725_v47  ;;  %v1256_v63 = vmul.f32 %v2717_v30, %v3590_v14  ;;  %v2720_v25 = vpop.permute.xlu1 %2719  ;;  %v4019_v8 = vld [vmem:[#allocation16_spill] sm:$0xff] }
 0x110   :  { %vm1379_vm0 = vcmp.ge.f32.partialorder %v1315_v17, 0.0  ;;  %vm1380_vm1 = vcmp.ge.f32.partialorder %v1316_v40, 0.0  ;;  %v1443_v56 = vmul.f32 0.2, %v1315_v17  ;;  %v1444_v52 = vmul.f32 0.2, %v1316_v40  ;;  %v2735_v20 = vpop.permute.xlu0 %2734 }
 0x111   :  { %vm1381_vm2 = vcmp.ge.f32.partialorder %v1317_v49, 0.0  ;;  %vm1382_vm3 = vcmp.ge.f32.partialorder %v1318_v12, 0.0  ;;  %v1445_v42 = vmul.f32 0.2, %v1317_v49  ;;  %v1446_v38 = vmul.f32 0.2, %v1318_v12 }
 0x112   :  { %v1507_v4 = vsel %vm1379_vm0, %v1315_v17, %v1443_v56  ;;  %v1508_v39 = vsel %vm1380_vm1, %v1316_v40, %v1444_v52  ;;  %v1255_v34 = vmul.f32 %v2716_v21, %v3590_v14  ;;  %v1260_v7 = vmul.f32 %v2727_v2, %v3590_v14 }
 0x113   :  { %v2155_v13 = vpack.c.bf16 %v1508_v39, %v1507_v4  ;;  %v1509_v59 = vsel %vm1381_vm2, %v1317_v49, %v1445_v42  ;;  %v1510_v15 = vsel %vm1382_vm3, %v1318_v12, %v1446_v38  ;;  %v1320_v57 = vadd.f32 %v1256_v63, %v4019_v8  ;;  %v2730_v4 = vpop.permute.xlu1 %2729 }
 0x114   :  { %v2160_v26 = vpack.c.bf16 %v1510_v15, %v1509_v59  ;;  %v1319_v47 = vadd.f32 %v1255_v34, %v4020_v53  ;;  %v1259_v62 = vmul.f32 %v2726_v58, %v3590_v14  ;;  %v1324_v17 = vadd.f32 %v1260_v7, %v936_v50  ;;  %v2745_v39 = vpop.permute.xlu0 %2744  ;;  %v4022_v15 = vld [vmem:[#allocation18_spill] sm:$0xff] }
 0x115   :  { %2156 = vst [vmem:[%s3957_s3] sm:$0xff] %v2155_v13   ;;  %v2722_v40 = vunpack.i.h.bf16 %v2720_v25  ;;  %v2721_v30 = vunpack.i.l.bf16 %v2720_v25  ;;  %v2737_v21 = vunpack.i.h.bf16 %v2735_v20  ;;  %vm1384_vm4 = vcmp.ge.f32.partialorder %v1320_v57, 0.0  ;;  %v4021_v13 = vld [vmem:[#allocation19_spill] sm:$0xff] }
 0x116   :  { %2343 = vst [vmem:[%s3957_s3 + $0x8] sm:$0xff] %v2160_v26   ;;  %v1448_v49 = vmul.f32 0.2, %v1320_v57  ;;  %vm1383_vm5 = vcmp.ge.f32.partialorder %v1319_v47, 0.0  ;;  %v1447_v12 = vmul.f32 0.2, %v1319_v47  ;;  %v1323_v2 = vadd.f32 %v1259_v62, %v935_v48 }
 0x117   :  { %vm1388_vm6 = vcmp.ge.f32.partialorder %v1324_v17, 0.0  ;;  %v1452_v56 = vmul.f32 0.2, %v1324_v17  ;;  %v1258_v58 = vmul.f32 %v2722_v40, %v3590_v14  ;;  %v1257_v50 = vmul.f32 %v2721_v30, %v3590_v14 }
 0x118   :  { %v1512_v52 = vsel %vm1384_vm4, %v1320_v57, %v1448_v49  ;;  %v1511_v42 = vsel %vm1383_vm5, %v1319_v47, %v1447_v12  ;;  %v1264_v38 = vmul.f32 %v2737_v21, %v3590_v14  ;;  %vm1387_vm7 = vcmp.ge.f32.partialorder %v1323_v2, 0.0 }
 0x119   :  { %v2165_v63 = vpack.c.bf16 %v1512_v52, %v1511_v42  ;;  %v1451_v34 = vmul.f32 0.2, %v1323_v2  ;;  %v1516_v25 = vsel %vm1388_vm6, %v1324_v17, %v1452_v56  ;;  %v1321_v59 = vadd.f32 %v1257_v50, %v4021_v13  ;;  %v2755_v56 = vpop.permute.xlu0 %2754 }
 0x11a   :  { %v1322_v62 = vadd.f32 %v1258_v58, %v4022_v15  ;;  %v2736_v48 = vunpack.i.l.bf16 %v2735_v20  ;;  %v1328_v7 = vadd.f32 %v1264_v38, %v3465_v31  ;;  %v2732_v8 = vunpack.i.h.bf16 %v2730_v4 }
 0x11b   :  { %2344 = vst [vmem:[%s3957_s3 + $0x10] sm:$0xff] %v2165_v63   ;;  %v1515_v26 = vsel %vm1387_vm7, %v1323_v2, %v1451_v34  ;;  %v2731_v57 = vunpack.i.l.bf16 %v2730_v4  ;;  %v2747_v53 = vunpack.i.h.bf16 %v2745_v39  ;;  %vm1385_vm8 = vcmp.ge.f32.partialorder %v1321_v59, 0.0  ;;  %v2740_v2 = vpop.permute.xlu1 %2739  ;;  %v4023_v63 = vld [vmem:[#allocation20_spill] sm:$0xff] }
 0x11c   :  { %v2175_v47 = vpack.c.bf16 %v1516_v25, %v1515_v26  ;;  %vm1386_vm9 = vcmp.ge.f32.partialorder %v1322_v62, 0.0  ;;  %v1449_v40 = vmul.f32 0.2, %v1321_v59  ;;  %v1450_v17 = vmul.f32 0.2, %v1322_v62 }
 0x11d   :  { %v1263_v30 = vmul.f32 %v2736_v48, %v3590_v14  ;;  %vm1392_vm10 = vcmp.ge.f32.partialorder %v1328_v7, 0.0  ;;  %v1456_v21 = vmul.f32 0.2, %v1328_v7  ;;  %v1262_v20 = vmul.f32 %v2732_v8, %v3590_v14 }
 0x11e   :  { %2346 = vst [vmem:[%s3957_s3 + $0x20] sm:$0xff] %v2175_v47   ;;  %v1513_v31 = vsel %vm1385_vm8, %v1321_v59, %v1449_v40  ;;  %v1261_v49 = vmul.f32 %v2731_v57, %v3590_v14  ;;  %v1268_v12 = vmul.f32 %v2747_v53, %v3590_v14  ;;  %v1514_v58 = vsel %vm1386_vm9, %v1322_v62, %v1450_v17  ;;  %v2765_v53 = vpop.permute.xlu0 %2764 }
 0x11f   :  { %v1327_v52 = vadd.f32 %v1263_v30, %v3462_v60  ;;  %v1520_v42 = vsel %vm1392_vm10, %v1328_v7, %v1456_v21  ;;  %v2746_v50 = vunpack.i.l.bf16 %v2745_v39  ;;  %v2170_v38 = vpack.c.bf16 %v1514_v58, %v1513_v31  ;;  %v2750_v57 = vpop.permute.xlu1 %2749  ;;  %v4024_v21 = vld [vmem:[#allocation21_spill] sm:$0xff] }
 0x120   :  { %v1325_v4 = vadd.f32 %v1261_v49, %v3443_v16  ;;  %v1326_v34 = vadd.f32 %v1262_v20, %v4023_v63  ;;  %v1332_v25 = vadd.f32 %v1268_v12, %v3485_v33  ;;  %v2742_v15 = vunpack.i.h.bf16 %v2740_v2 }
 0x121   :  { %vm1391_vm11 = vcmp.ge.f32.partialorder %v1327_v52, 0.0  ;;  %v1455_v13 = vmul.f32 0.2, %v1327_v52  ;;  %v1267_v59 = vmul.f32 %v2746_v50, %v3590_v14  ;;  %2345 = vst [vmem:[%s3957_s3 + $0x18] sm:$0xff] %v2170_v38   ;;  %v2741_v30 = vunpack.i.l.bf16 %v2740_v2 }
 0x122   :  { %vm1389_vm12 = vcmp.ge.f32.partialorder %v1325_v4, 0.0  ;;  %vm1390_vm13 = vcmp.ge.f32.partialorder %v1326_v34, 0.0  ;;  %v1453_v60 = vmul.f32 0.2, %v1325_v4  ;;  %v1454_v39 = vmul.f32 0.2, %v1326_v34 }
 0x123   :  { %v1519_v62 = vsel %vm1391_vm11, %v1327_v52, %v1455_v13  ;;  %v1331_v16 = vadd.f32 %v1267_v59, %v3482_v43  ;;  %vm1396_vm14 = vcmp.ge.f32.partialorder %v1332_v25, 0.0  ;;  %v1460_v48 = vmul.f32 0.2, %v1332_v25 }
 0x124   :  { %v2185_v7 = vpack.c.bf16 %v1520_v42, %v1519_v62  ;;  %v1517_v33 = vsel %vm1389_vm12, %v1325_v4, %v1453_v60  ;;  %v1518_v26 = vsel %vm1390_vm13, %v1326_v34, %v1454_v39  ;;  %v1266_v8 = vmul.f32 %v2742_v15, %v3590_v14  ;;  %v4025_v34 = vld [vmem:[#allocation22_spill] sm:$0xff] }
 0x125   :  { %v2180_v47 = vpack.c.bf16 %v1518_v26, %v1517_v33  ;;  %vm1395_vm15 = vcmp.ge.f32.partialorder %v1331_v16, 0.0  ;;  %v1459_v40 = vmul.f32 0.2, %v1331_v16  ;;  %v1524_v17 = vsel %vm1396_vm14, %v1332_v25, %v1460_v48  ;;  %v2760_v48 = vpop.permute.xlu1 %2759 }
 0x126   :  { %2348 = vst [vmem:[%s3957_s3 + $0x30] sm:$0xff] %v2185_v7   ;;  %v1330_v43 = vadd.f32 %v1266_v8, %v4024_v21  ;;  %v2757_v31 = vunpack.i.h.bf16 %v2755_v56  ;;  %v2756_v20 = vunpack.i.l.bf16 %v2755_v56  ;;  %v2752_v12 = vunpack.i.h.bf16 %v2750_v57 }
 0x127   :  { %2347 = vst [vmem:[%s3957_s3 + $0x28] sm:$0xff] %v2180_v47   ;;  %v1523_v49 = vsel %vm1395_vm15, %v1331_v16, %v1459_v40  ;;  %v2751_v58 = vunpack.i.l.bf16 %v2750_v57  ;;  %v2767_v52 = vunpack.i.h.bf16 %v2765_v53  ;;  %v1265_v50 = vmul.f32 %v2741_v30, %v3590_v14 }
 0x128   :  { %v2195_v42 = vpack.c.bf16 %v1524_v17, %v1523_v49  ;;  %vm1394_vm0 = vcmp.ge.f32.partialorder %v1330_v43, 0.0  ;;  %v1458_v38 = vmul.f32 0.2, %v1330_v43  ;;  %v1272_v4 = vmul.f32 %v2757_v31, %v3590_v14 }
 0x129   :  { %v1271_v2 = vmul.f32 %v2756_v20, %v3590_v14  ;;  %v1270_v63 = vmul.f32 %v2752_v12, %v3590_v14  ;;  %v1269_v56 = vmul.f32 %v2751_v58, %v3590_v14  ;;  %v1329_v25 = vadd.f32 %v1265_v50, %v4025_v34  ;;  %v2770_v49 = vpop.permute.xlu1 %2769 }
 0x12a   :  { %2350 = vst [vmem:[%s3957_s3 + $0x40] sm:$0xff] %v2195_v42   ;;  %v1522_v13 = vsel %vm1394_vm0, %v1330_v43, %v1458_v38  ;;  %v1276_v59 = vmul.f32 %v2767_v52, %v3590_v14  ;;  %v2766_v15 = vunpack.i.l.bf16 %v2765_v53  ;;  %v1336_v39 = vadd.f32 %v1272_v4, %v3509_v27  ;;  %v2775_v53 = vpop.permute.xlu0 %2774 }
 0x12b   :  { %v1335_v60 = vadd.f32 %v1271_v2, %v3506_v37  ;;  %v1333_v62 = vadd.f32 %v1269_v56, %v3491_v61  ;;  %v1334_v16 = vadd.f32 %v1270_v63, %v3488_v19  ;;  %vm1393_vm1 = vcmp.ge.f32.partialorder %v1329_v25, 0.0 }
 0x12c   :  { %v1457_v7 = vmul.f32 0.2, %v1329_v25  ;;  %v1275_v33 = vmul.f32 %v2766_v15, %v3590_v14  ;;  %v1340_v26 = vadd.f32 %v1276_v59, %v3529_v5  ;;  %vm1400_vm3 = vcmp.ge.f32.partialorder %v1336_v39, 0.0  ;;  %v4026_v59 = vld [vmem:[#allocation23_spill] sm:$0xff] }
 0x12d   :  { %vm1399_vm2 = vcmp.ge.f32.partialorder %v1335_v60, 0.0  ;;  %v1463_v8 = vmul.f32 0.2, %v1335_v60  ;;  %v1464_v57 = vmul.f32 0.2, %v1336_v39  ;;  %vm1397_vm4 = vcmp.ge.f32.partialorder %v1333_v62, 0.0 }
 0x12e   :  { %v1521_v47 = vsel %vm1393_vm1, %v1329_v25, %v1457_v7  ;;  %vm1398_vm5 = vcmp.ge.f32.partialorder %v1334_v16, 0.0  ;;  %v1461_v37 = vmul.f32 0.2, %v1333_v62  ;;  %v1462_v19 = vmul.f32 0.2, %v1334_v16  ;;  %v2785_v4 = vpop.permute.xlu0 %2784 }
 0x12f   :  { %v2190_v27 = vpack.c.bf16 %v1522_v13, %v1521_v47  ;;  %v1527_v61 = vsel %vm1399_vm2, %v1335_v60, %v1463_v8  ;;  %v1528_v40 = vsel %vm1400_vm3, %v1336_v39, %v1464_v57  ;;  %v1339_v21 = vadd.f32 %v1275_v33, %v3526_v35 }
 0x130   :  { %v2205_v17 = vpack.c.bf16 %v1528_v40, %v1527_v61  ;;  %v1525_v30 = vsel %vm1397_vm4, %v1333_v62, %v1461_v37  ;;  %vm1404_vm6 = vcmp.ge.f32.partialorder %v1340_v26, 0.0  ;;  %v1526_v5 = vsel %vm1398_vm5, %v1334_v16, %v1462_v19 }
 0x131   :  { %2349 = vst [vmem:[%s3957_s3 + $0x38] sm:$0xff] %v2190_v27   ;;  %v1468_v43 = vmul.f32 0.2, %v1340_v26  ;;  %v2762_v31 = vunpack.i.h.bf16 %v2760_v48  ;;  %v2761_v20 = vunpack.i.l.bf16 %v2760_v48  ;;  %v2200_v12 = vpack.c.bf16 %v1526_v5, %v1525_v30 }
 0x132   :  { %2352 = vst [vmem:[%s3957_s3 + $0x50] sm:$0xff] %v2205_v17   ;;  %vm1403_vm7 = vcmp.ge.f32.partialorder %v1339_v21, 0.0  ;;  %v1467_v58 = vmul.f32 0.2, %v1339_v21  ;;  %v2777_v52 = vunpack.i.h.bf16 %v2775_v53  ;;  %v2776_v38 = vunpack.i.l.bf16 %v2775_v53 }
 0x133   :  { %v1532_v42 = vsel %vm1404_vm6, %v1340_v26, %v1468_v43  ;;  %v1274_v35 = vmul.f32 %v2762_v31, %v3590_v14  ;;  %v1273_v50 = vmul.f32 %v2761_v20, %v3590_v14  ;;  %2351 = vst [vmem:[%s3957_s3 + $0x48] sm:$0xff] %v2200_v12   ;;  %v2772_v56 = vunpack.i.h.bf16 %v2770_v49 }
 0x134   :  { %v1531_v2 = vsel %vm1403_vm7, %v1339_v21, %v1467_v58  ;;  %v1280_v63 = vmul.f32 %v2777_v52, %v3590_v14  ;;  %v2771_v34 = vunpack.i.l.bf16 %v2770_v49  ;;  %v1279_v60 = vmul.f32 %v2776_v38, %v3590_v14 }
 0x135   :  { %v2215_v25 = vpack.c.bf16 %v1532_v42, %v1531_v2  ;;  %v1337_v13 = vadd.f32 %v1273_v50, %v3515_v41  ;;  %v1338_v15 = vadd.f32 %v1274_v35, %v4026_v59  ;;  %v1278_v62 = vmul.f32 %v2772_v56, %v3590_v14  ;;  %v2780_v41 = vpop.permute.xlu1 %2779 }
 0x136   :  { %v1344_v39 = vadd.f32 %v1280_v63, %v3551_v46  ;;  %v1277_v16 = vmul.f32 %v2771_v34, %v3590_v14  ;;  %v2787_v48 = vunpack.i.h.bf16 %v2785_v4  ;;  %v1343_v26 = vadd.f32 %v1279_v60, %v3548_v36  ;;  %v4027_v34 = vld [vmem:[#allocation24_spill] sm:$0xff] }
 0x137   :  { %2354 = vst [vmem:[%s3957_s3 + $0x60] sm:$0xff] %v2215_v25   ;;  %vm1401_vm8 = vcmp.ge.f32.partialorder %v1337_v13, 0.0  ;;  %vm1402_vm9 = vcmp.ge.f32.partialorder %v1338_v15, 0.0  ;;  %v1465_v7 = vmul.f32 0.2, %v1337_v13  ;;  %v1342_v47 = vadd.f32 %v1278_v62, %v3532_v24  ;;  %v2795_v24 = vpop.permute.xlu0 %2794 }
 0x138   :  { %v1466_v33 = vmul.f32 0.2, %v1338_v15  ;;  %vm1408_vm10 = vcmp.ge.f32.partialorder %v1344_v39, 0.0  ;;  %v1472_v8 = vmul.f32 0.2, %v1344_v39  ;;  %v1341_v46 = vadd.f32 %v1277_v16, %v3535_v23 }
 0x139   :  { %v1529_v57 = vsel %vm1401_vm8, %v1337_v13, %v1465_v7  ;;  %v1284_v37 = vmul.f32 %v2787_v48, %v3590_v14  ;;  %vm1407_vm11 = vcmp.ge.f32.partialorder %v1343_v26, 0.0  ;;  %v1471_v61 = vmul.f32 0.2, %v1343_v26  ;;  %v2790_v49 = vpop.permute.xlu1 %2789 }
 0x13a   :  { %v1530_v53 = vsel %vm1402_vm9, %v1338_v15, %v1466_v33  ;;  %v1536_v40 = vsel %vm1408_vm10, %v1344_v39, %v1472_v8  ;;  %vm1405_vm12 = vcmp.ge.f32.partialorder %v1341_v46, 0.0  ;;  %vm1406_vm13 = vcmp.ge.f32.partialorder %v1342_v47, 0.0 }
 0x13b   :  { %v2210_v27 = vpack.c.bf16 %v1530_v53, %v1529_v57  ;;  %v1469_v19 = vmul.f32 0.2, %v1341_v46  ;;  %v1470_v17 = vmul.f32 0.2, %v1342_v47  ;;  %v1535_v36 = vsel %vm1407_vm11, %v1343_v26, %v1471_v61  ;;  %v2805_v62 = vpop.permute.xlu0 %2804  ;;  %v4028_v57 = vld [vmem:[#allocation25_spill] sm:$0xff] }
 0x13c   :  { %v2786_v23 = vunpack.i.l.bf16 %v2785_v4  ;;  %v1348_v30 = vadd.f32 %v1284_v37, %v3569_v29  ;;  %v2782_v21 = vunpack.i.h.bf16 %v2780_v41  ;;  %v2225_v5 = vpack.c.bf16 %v1536_v40, %v1535_v36 }
 0x13d   :  { %2353 = vst [vmem:[%s3957_s3 + $0x58] sm:$0xff] %v2210_v27   ;;  %v1533_v43 = vsel %vm1405_vm12, %v1341_v46, %v1469_v19  ;;  %v1534_v31 = vsel %vm1406_vm13, %v1342_v47, %v1470_v17  ;;  %v2781_v20 = vunpack.i.l.bf16 %v2780_v41  ;;  %v2797_v35 = vunpack.i.h.bf16 %v2795_v24  ;;  %v2800_v48 = vpop.permute.xlu1 %2799 }
 0x13e   :  { %v2220_v12 = vpack.c.bf16 %v1534_v31, %v1533_v43  ;;  %v1283_v58 = vmul.f32 %v2786_v23, %v3590_v14  ;;  %vm1412_vm14 = vcmp.ge.f32.partialorder %v1348_v30, 0.0  ;;  %v1476_v52 = vmul.f32 0.2, %v1348_v30  ;;  %2356 = vst [vmem:[%s3957_s3 + $0x70] sm:$0xff] %v2225_v5  }
 0x13f   :  { %v1282_v42 = vmul.f32 %v2782_v21, %v3590_v14  ;;  %v1281_v29 = vmul.f32 %v2781_v20, %v3590_v14  ;;  %v2796_v50 = vunpack.i.l.bf16 %v2795_v24  ;;  %v2792_v2 = vunpack.i.h.bf16 %v2790_v49  ;;  %v2815_v19 = vpop.permute.xlu0 %2814 }
 0x140   :  { %2355 = vst [vmem:[%s3957_s3 + $0x68] sm:$0xff] %v2220_v12   ;;  %v1347_v38 = vadd.f32 %v1283_v58, %v3567_v22  ;;  %v1540_v4 = vsel %vm1412_vm14, %v1348_v30, %v1476_v52  ;;  %v2791_v63 = vunpack.i.l.bf16 %v2790_v49  ;;  %v1288_v13 = vmul.f32 %v2797_v35, %v3590_v14 }
 0x141   :  { %v1345_v56 = vadd.f32 %v1281_v29, %v3557_v32  ;;  %v1346_v25 = vadd.f32 %v1282_v42, %v4027_v34  ;;  %v1287_v59 = vmul.f32 %v2796_v50, %v3590_v14  ;;  %v1286_v60 = vmul.f32 %v2792_v2, %v3590_v14  ;;  %v2810_v21 = vpop.permute.xlu1 %2809 }
 0x142   :  { %vm1411_vm15 = vcmp.ge.f32.partialorder %v1347_v38, 0.0  ;;  %v1475_v15 = vmul.f32 0.2, %v1347_v38  ;;  %v1285_v39 = vmul.f32 %v2791_v63, %v3590_v14  ;;  %v1352_v33 = vadd.f32 %v1288_v13, %v3594_v18 }
 0x143   :  { %vm1409_vm0 = vcmp.ge.f32.partialorder %v1345_v56, 0.0  ;;  %vm1410_vm1 = vcmp.ge.f32.partialorder %v1346_v25, 0.0  ;;  %v1473_v22 = vmul.f32 0.2, %v1345_v56  ;;  %v1474_v16 = vmul.f32 0.2, %v1346_v25 }
 0x144   :  { %v1539_v7 = vsel %vm1411_vm15, %v1347_v38, %v1475_v15  ;;  %v1351_v32 = vadd.f32 %v1287_v59, %v3592_v45  ;;  %v1349_v41 = vadd.f32 %v1285_v39, %v3575_v54  ;;  %v1350_v53 = vadd.f32 %v1286_v60, %v4028_v57 }
 0x145   :  { %v2235_v26 = vpack.c.bf16 %v1540_v4, %v1539_v7  ;;  %v1537_v8 = vsel %vm1409_vm0, %v1345_v56, %v1473_v22  ;;  %v1538_v46 = vsel %vm1410_vm1, %v1346_v25, %v1474_v16  ;;  %vm1416_vm3 = vcmp.ge.f32.partialorder %v1352_v33, 0.0  ;;  %v2820_v15 = vpop.permute.xlu1 %2819 }
 0x146   :  { %v2230_v47 = vpack.c.bf16 %v1538_v46, %v1537_v8  ;;  %vm1415_vm2 = vcmp.ge.f32.partialorder %v1351_v32, 0.0  ;;  %v1479_v37 = vmul.f32 0.2, %v1351_v32  ;;  %v1480_v27 = vmul.f32 0.2, %v1352_v33  ;;  %v4029_v8 = vld [vmem:[#allocation26_spill] sm:$0xff] }
 0x147   :  { %2358 = vst [vmem:[%s3957_s3 + $0x80] sm:$0xff] %v2235_v26   ;;  %vm1413_vm4 = vcmp.ge.f32.partialorder %v1349_v41, 0.0  ;;  %vm1414_vm5 = vcmp.ge.f32.partialorder %v1350_v53, 0.0  ;;  %v1477_v45 = vmul.f32 0.2, %v1349_v41  ;;  %v2807_v61 = vunpack.i.h.bf16 %v2805_v62 }
 0x148   :  { %2357 = vst [vmem:[%s3957_s3 + $0x78] sm:$0xff] %v2230_v47   ;;  %v1543_v54 = vsel %vm1415_vm2, %v1351_v32, %v1479_v37  ;;  %v1478_v18 = vmul.f32 0.2, %v1350_v53  ;;  %v2806_v40 = vunpack.i.l.bf16 %v2805_v62  ;;  %v1544_v17 = vsel %vm1416_vm3, %v1352_v33, %v1480_v27 }
 0x149   :  { %v1541_v36 = vsel %vm1413_vm4, %v1349_v41, %v1477_v45  ;;  %v2802_v23 = vunpack.i.h.bf16 %v2800_v48  ;;  %v2801_v30 = vunpack.i.l.bf16 %v2800_v48  ;;  %v2245_v24 = vpack.c.bf16 %v1544_v17, %v1543_v54  ;;  %v2830_v54 = vpop.permute.xlu1 %2829 }
 0x14a   :  { %v1542_v5 = vsel %vm1414_vm5, %v1350_v53, %v1478_v18  ;;  %v1292_v43 = vmul.f32 %v2807_v61, %v3590_v14  ;;  %v1291_v31 = vmul.f32 %v2806_v40, %v3590_v14  ;;  %v2817_v58 = vunpack.i.h.bf16 %v2815_v19 }
 0x14b   :  { %v2240_v20 = vpack.c.bf16 %v1542_v5, %v1541_v36  ;;  %v1290_v49 = vmul.f32 %v2802_v23, %v3590_v14  ;;  %v1289_v12 = vmul.f32 %v2801_v30, %v3590_v14  ;;  %2360 = vst [vmem:[%s3957_s3 + $0x90] sm:$0xff] %v2245_v24   ;;  %v2816_v29 = vunpack.i.l.bf16 %v2815_v19  ;;  %v4030_v19 = vld [vmem:[#allocation29_spill] sm:$0xff]  ;;  %v4031_v36 = vld [vmem:[#allocation30_spill] sm:$0xff] }
 0x14c   :  { %v1355_v52 = vadd.f32 %v1291_v31, %v3612_v28  ;;  %v1356_v42 = vadd.f32 %v1292_v43, %v3614_v1  ;;  %v2812_v35 = vunpack.i.h.bf16 %v2810_v21  ;;  %v1296_v4 = vmul.f32 %v2817_v58, %v3590_v14 }
 0x14d   :  { %2359 = vst [vmem:[%s3957_s3 + $0x88] sm:$0xff] %v2240_v20   ;;  %v1353_v50 = vadd.f32 %v1289_v12, %v3598_v55  ;;  %v1354_v38 = vadd.f32 %v1290_v49, %v3596_v9  ;;  %v2811_v2 = vunpack.i.l.bf16 %v2810_v21  ;;  %v1295_v13 = vmul.f32 %v2816_v29, %v3590_v14  ;;  %v2825_v55 = vpop.permute.xlu0 %2824  ;;  %v4032_v21 = vld [vmem:[#allocation27_spill] sm:$0xff] }
 0x14e   :  { %vm1419_vm6 = vcmp.ge.f32.partialorder %v1355_v52, 0.0  ;;  %vm1420_vm7 = vcmp.ge.f32.partialorder %v1356_v42, 0.0  ;;  %v1483_v63 = vmul.f32 0.2, %v1355_v52  ;;  %v1484_v56 = vmul.f32 0.2, %v1356_v42 }
 0x14f   :  { %vm1417_vm8 = vcmp.ge.f32.partialorder %v1353_v50, 0.0  ;;  %vm1418_vm9 = vcmp.ge.f32.partialorder %v1354_v38, 0.0  ;;  %v1481_v28 = vmul.f32 0.2, %v1353_v50  ;;  %v1482_v1 = vmul.f32 0.2, %v1354_v38 }
 0x150   :  { %v1547_v34 = vsel %vm1419_vm6, %v1355_v52, %v1483_v63  ;;  %v1548_v25 = vsel %vm1420_vm7, %v1356_v42, %v1484_v56  ;;  %v1360_v59 = vadd.f32 %v1296_v4, %v3638_v10  ;;  %v1294_v62 = vmul.f32 %v2812_v35, %v3590_v14  ;;  %v4033_v52 = vld [vmem:[#allocation28_spill] sm:$0xff]  ;;  %v2840_v63 = vpop.permute.xlu1 %2839 }
 0x151   :  { %v2255_v9 = vpack.c.bf16 %v1548_v25, %v1547_v34  ;;  %v1545_v60 = vsel %vm1417_vm8, %v1353_v50, %v1481_v28  ;;  %v1546_v39 = vsel %vm1418_vm9, %v1354_v38, %v1482_v1  ;;  %v1359_v16 = vadd.f32 %v1295_v13, %v3635_v3  ;;  %v2835_v45 = vpop.permute.xlu0 %2834  ;;  %v4034_v25 = vld [vmem:[#allocation6_spill] sm:$0xff] }
 0x152   :  { %v2250_v22 = vpack.c.bf16 %v1546_v39, %v1545_v60  ;;  %vm1424_vm10 = vcmp.ge.f32.partialorder %v1360_v59, 0.0  ;;  %v1488_v48 = vmul.f32 0.2, %v1360_v59  ;;  %v1293_v7 = vmul.f32 %v2811_v2, %v3590_v14  ;;  %v4036_v60 = vld [vmem:[#allocation31_spill] sm:$0xff] }
 0x153   :  { %2362 = vst [vmem:[%s3957_s3 + $0xa0] sm:$0xff] %v2255_v9   ;;  %v1358_v10 = vadd.f32 %v1294_v62, %v3617_v44  ;;  %v2827_v32 = vunpack.i.h.bf16 %v2825_v55  ;;  %v2826_v33 = vunpack.i.l.bf16 %v2825_v55  ;;  %vm1423_vm11 = vcmp.ge.f32.partialorder %v1359_v16, 0.0 }
 0x154   :  { %2361 = vst [vmem:[%s3957_s3 + $0x98] sm:$0xff] %v2250_v22   ;;  %v1487_v41 = vmul.f32 0.2, %v1359_v16  ;;  %v1552_v26 = vsel %vm1424_vm10, %v1360_v59, %v1488_v48  ;;  %v2822_v3 = vunpack.i.h.bf16 %v2820_v15  ;;  %v1357_v46 = vadd.f32 %v1293_v7, %v4029_v8  ;;  %v4035_v59 = vld [vmem:[#allocation5_spill] sm:$0xff] }
 0x155   :  { %vm1422_vm12 = vcmp.ge.f32.partialorder %v1358_v10, 0.0  ;;  %v1486_v57 = vmul.f32 0.2, %v1358_v10  ;;  %v1300_v53 = vmul.f32 %v2827_v32, %v3590_v14  ;;  %v1299_v37 = vmul.f32 %v2826_v33, %v3590_v14  ;;  %v2845_v2 = vpop.permute.xlu0 %2844 }
 0x156   :  { %v1551_v47 = vsel %vm1423_vm11, %v1359_v16, %v1487_v41  ;;  %v1298_v44 = vmul.f32 %v2822_v3, %v3590_v14  ;;  %v2821_v27 = vunpack.i.l.bf16 %v2820_v15  ;;  %vm1421_vm13 = vcmp.ge.f32.partialorder %v1357_v46, 0.0 }
 0x157   :  { %v2265_v18 = vpack.c.bf16 %v1552_v26, %v1551_v47  ;;  %v1485_v61 = vmul.f32 0.2, %v1357_v46  ;;  %v1550_v40 = vsel %vm1422_vm12, %v1358_v10, %v1486_v57  ;;  %v1363_v17 = vadd.f32 %v1299_v37, %v4030_v19 }
 0x158   :  { %v1364_v23 = vadd.f32 %v1300_v53, %v4031_v36  ;;  %v1297_v30 = vmul.f32 %v2821_v27, %v3590_v14  ;;  %v1362_v24 = vadd.f32 %v1298_v44, %v4032_v21  ;;  %v2837_v43 = vunpack.i.h.bf16 %v2835_v45  ;;  %v4037_v53 = vld [vmem:[#allocation2_spill] sm:$0xff]  ;;  %v4039_v21 = vld [vmem:[#allocation3_spill] sm:$0xff] }
 0x159   :  { %2364 = vst [vmem:[%s3957_s3 + $0xb0] sm:$0xff] %v2265_v18   ;;  %v1549_v5 = vsel %vm1421_vm13, %v1357_v46, %v1485_v61  ;;  %v2836_v31 = vunpack.i.l.bf16 %v2835_v45  ;;  %v2832_v20 = vunpack.i.h.bf16 %v2830_v54  ;;  %vm1427_vm14 = vcmp.ge.f32.partialorder %v1363_v17, 0.0  ;;  %v2855_v8 = vpop.permute.xlu0 %2854  ;;  %v2850_v46 = vpop.permute.xlu1 %2849 }
 0x15a   :  { %v2260_v49 = vpack.c.bf16 %v1550_v40, %v1549_v5  ;;  %vm1428_vm15 = vcmp.ge.f32.partialorder %v1364_v23, 0.0  ;;  %v1491_v12 = vmul.f32 0.2, %v1363_v17  ;;  %v1492_v58 = vmul.f32 0.2, %v1364_v23 }
 0x15b   :  { %v1361_v42 = vadd.f32 %v1297_v30, %v4033_v52  ;;  %vm1426_vm0 = vcmp.ge.f32.partialorder %v1362_v24, 0.0  ;;  %v1490_v29 = vmul.f32 0.2, %v1362_v24  ;;  %v1304_v50 = vmul.f32 %v2837_v43, %v3590_v14  ;;  %v4038_v30 = vld [vmem:[#allocation4_spill] sm:$0xff] }
 0x15c   :  { %2363 = vst [vmem:[%s3957_s3 + $0xa8] sm:$0xff] %v2260_v49   ;;  %v1555_v35 = vsel %vm1427_vm14, %v1363_v17, %v1491_v12  ;;  %v1303_v38 = vmul.f32 %v2836_v31, %v3590_v14  ;;  %v1302_v4 = vmul.f32 %v2832_v20, %v3590_v14  ;;  %v1556_v56 = vsel %vm1428_vm15, %v1364_v23, %v1492_v58 }
 0x15d   :  { %vm1425_vm1 = vcmp.ge.f32.partialorder %v1361_v42, 0.0  ;;  %v1489_v28 = vmul.f32 0.2, %v1361_v42  ;;  %v1554_v1 = vsel %vm1426_vm0, %v1362_v24, %v1490_v29  ;;  %v2275_v34 = vpack.c.bf16 %v1556_v56, %v1555_v35  ;;  %v2860_v49 = vpop.permute.xlu1 %2859 }
 0x15e   :  { %v1367_v13 = vadd.f32 %v1303_v38, %v4034_v25  ;;  %v1368_v55 = vadd.f32 %v1304_v50, %v4035_v59  ;;  %v2831_v15 = vunpack.i.l.bf16 %v2830_v54  ;;  %v1366_v39 = vadd.f32 %v1302_v4, %v4036_v60 }
 0x15f   :  { %v1553_v9 = vsel %vm1425_vm1, %v1361_v42, %v1489_v28  ;;  %v2847_v62 = vunpack.i.h.bf16 %v2845_v2  ;;  %v2846_v22 = vunpack.i.l.bf16 %v2845_v2  ;;  %2366 = vst [vmem:[%s3957_s3 + $0xc0] sm:$0xff] %v2275_v34   ;;  %v2842_v3 = vunpack.i.h.bf16 %v2840_v63 }
 0x160   :  { %v2270_v16 = vpack.c.bf16 %v1554_v1, %v1553_v9  ;;  %vm1431_vm2 = vcmp.ge.f32.partialorder %v1367_v13, 0.0  ;;  %vm1432_vm3 = vcmp.ge.f32.partialorder %v1368_v55, 0.0  ;;  %v1495_v48 = vmul.f32 0.2, %v1367_v13  ;;  %v4041_v9 = vld [vmem:[#allocation15_spill] sm:$0xff] }
 0x161   :  { %v1496_v7 = vmul.f32 0.2, %v1368_v55  ;;  %v1301_v10 = vmul.f32 %v2831_v15, %v3590_v14  ;;  %vm1430_vm4 = vcmp.ge.f32.partialorder %v1366_v39, 0.0  ;;  %v1494_v32 = vmul.f32 0.2, %v1366_v39  ;;  %v4040_v15 = vld [vmem:[#allocation10_spill] sm:$0xff] }
 0x162   :  { %2365 = vst [vmem:[%s3957_s3 + $0xb8] sm:$0xff] %v2270_v16   ;;  %v1559_v33 = vsel %vm1431_vm2, %v1367_v13, %v1495_v48  ;;  %v1308_v41 = vmul.f32 %v2847_v62, %v3590_v14  ;;  %v1307_v26 = vmul.f32 %v2846_v22, %v3590_v14  ;;  %v2841_v44 = vunpack.i.l.bf16 %v2840_v63  ;;  %v4043_v16 = vld [vmem:[#allocation7_spill] sm:$0xff] }
 0x163   :  { %v1560_v57 = vsel %vm1432_vm3, %v1368_v55, %v1496_v7  ;;  %v1365_v47 = vadd.f32 %v1301_v10, %v4037_v53  ;;  %v1558_v37 = vsel %vm1430_vm4, %v1366_v39, %v1494_v32  ;;  %v1306_v18 = vmul.f32 %v2842_v3, %v3590_v14  ;;  %v4042_v39 = vld [vmem:[#allocation9_spill] sm:$0xff] }
 0x164   :  { %v2285_v27 = vpack.c.bf16 %v1560_v57, %v1559_v33  ;;  %v1371_v45 = vadd.f32 %v1307_v26, %v3699_v51  ;;  %v1372_v54 = vadd.f32 %v1308_v41, %v3702_v6  ;;  %v1305_v40 = vmul.f32 %v2841_v44, %v3590_v14 }
 0x165   :  { %vm1429_vm5 = vcmp.ge.f32.partialorder %v1365_v47, 0.0  ;;  %v1493_v61 = vmul.f32 0.2, %v1365_v47  ;;  %v2857_v19 = vunpack.i.h.bf16 %v2855_v8  ;;  %v1370_v6 = vadd.f32 %v1306_v18, %v4039_v21 }
 0x166   :  { %2368 = vst [vmem:[%s3957_s3 + $0xd0] sm:$0xff] %v2285_v27   ;;  %vm1435_vm6 = vcmp.ge.f32.partialorder %v1371_v45, 0.0  ;;  %vm1436_vm7 = vcmp.ge.f32.partialorder %v1372_v54, 0.0  ;;  %v1499_v17 = vmul.f32 0.2, %v1371_v45  ;;  %v1369_v51 = vadd.f32 %v1305_v40, %v4038_v30 }
 0x167   :  { %v1500_v36 = vmul.f32 0.2, %v1372_v54  ;;  %v1557_v23 = vsel %vm1429_vm5, %v1365_v47, %v1493_v61  ;;  %v1312_v24 = vmul.f32 %v2857_v19, %v3590_v14  ;;  %v2856_v20 = vunpack.i.l.bf16 %v2855_v8 }
 0x168   :  { %v2280_v5 = vpack.c.bf16 %v1558_v37, %v1557_v23  ;;  %v1563_v43 = vsel %vm1435_vm6, %v1371_v45, %v1499_v17  ;;  %vm1433_vm8 = vcmp.ge.f32.partialorder %v1369_v51, 0.0  ;;  %vm1434_vm9 = vcmp.ge.f32.partialorder %v1370_v6, 0.0 }
 0x169   :  { %v1564_v31 = vsel %vm1436_vm7, %v1372_v54, %v1500_v36  ;;  %v1497_v58 = vmul.f32 0.2, %v1369_v51  ;;  %v1498_v52 = vmul.f32 0.2, %v1370_v6  ;;  %v1311_v42 = vmul.f32 %v2856_v20, %v3590_v14 }
 0x16a   :  { %v2295_v12 = vpack.c.bf16 %v1564_v31, %v1563_v43  ;;  %2367 = vst [vmem:[%s3957_s3 + $0xc8] sm:$0xff] %v2280_v5   ;;  %v1376_v29 = vadd.f32 %v1312_v24, %v3722_v11  ;;  %v2852_v35 = vunpack.i.h.bf16 %v2850_v46  ;;  %v2851_v38 = vunpack.i.l.bf16 %v2850_v46 }
 0x16b   :  { %v1561_v50 = vsel %vm1433_vm8, %v1369_v51, %v1497_v58  ;;  %v2862_v4 = vunpack.i.h.bf16 %v2860_v49  ;;  %v2861_v2 = vunpack.i.l.bf16 %v2860_v49  ;;  %v1562_v63 = vsel %vm1434_vm9, %v1370_v6, %v1498_v52 }
 0x16c   :  { %2370 = vst [vmem:[%s3957_s3 + $0xe0] sm:$0xff] %v2295_v12   ;;  %v1375_v56 = vadd.f32 %v1311_v42, %v3719_v0  ;;  %vm1440_vm10 = vcmp.ge.f32.partialorder %v1376_v29, 0.0  ;;  %v1504_v28 = vmul.f32 0.2, %v1376_v29  ;;  %v2290_v1 = vpack.c.bf16 %v1562_v63, %v1561_v50 }
 0x16d   :  { %v1310_v34 = vmul.f32 %v2852_v35, %v3590_v14  ;;  %v1309_v25 = vmul.f32 %v2851_v38, %v3590_v14  ;;  %v1314_v11 = vmul.f32 %v2862_v4, %v3590_v14  ;;  %v1313_v55 = vmul.f32 %v2861_v2, %v3590_v14 }
 0x16e   :  { %vm1439_vm11 = vcmp.ge.f32.partialorder %v1375_v56, 0.0  ;;  %v1503_v13 = vmul.f32 0.2, %v1375_v56  ;;  %v1568_v59 = vsel %vm1440_vm10, %v1376_v29, %v1504_v28  ;;  %2369 = vst [vmem:[%s3957_s3 + $0xd8] sm:$0xff] %v2290_v1  }
 0x16f   :  { %v1373_v0 = vadd.f32 %v1309_v25, %v4040_v15  ;;  %v1374_v60 = vadd.f32 %v1310_v34, %v4041_v9  ;;  %v1378_v62 = vadd.f32 %v1314_v11, %v4042_v39  ;;  %v1377_v48 = vadd.f32 %v1313_v55, %v4043_v16 }
 0x170   :  { %v1567_v22 = vsel %vm1439_vm11, %v1375_v56, %v1503_v13 }
 0x171   :  { %v2305_v7 = vpack.c.bf16 %v1568_v59, %v1567_v22  ;;  %vm1437_vm12 = vcmp.ge.f32.partialorder %v1373_v0, 0.0  ;;  %vm1438_vm13 = vcmp.ge.f32.partialorder %v1374_v60, 0.0  ;;  %v1501_v10 = vmul.f32 0.2, %v1373_v0 }
 0x172   :  { %v1502_v32 = vmul.f32 0.2, %v1374_v60  ;;  %vm1441_vm14 = vcmp.ge.f32.partialorder %v1377_v48, 0.0  ;;  %vm1442_vm15 = vcmp.ge.f32.partialorder %v1378_v62, 0.0  ;;  %v1505_v14 = vmul.f32 0.2, %v1377_v48 }
 0x173   :  { %2372 = vst [vmem:[%s3957_s3 + $0xf0] sm:$0xff] %v2305_v7   ;;  %v1565_v33 = vsel %vm1437_vm12, %v1373_v0, %v1501_v10  ;;  %v1506_v41 = vmul.f32 0.2, %v1378_v62 }
 0x174   :  { %v1566_v26 = vsel %vm1438_vm13, %v1374_v60, %v1502_v32  ;;  %v1569_v3 = vsel %vm1441_vm14, %v1377_v48, %v1505_v14 }
 0x175   :  { %v2300_v8 = vpack.c.bf16 %v1566_v26, %v1565_v33  ;;  %v1570_v46 = vsel %vm1442_vm15, %v1378_v62, %v1506_v41 }
 0x176   :  { %v2310_v57 = vpack.c.bf16 %v1570_v46, %v1569_v3 }
 0x177   :  { %2371 = vst [vmem:[%s3957_s3 + $0xe8] sm:$0xff] %v2300_v8  }
 0x178   :  { %2373 = vst [vmem:[%s3957_s3 + $0xf8] sm:$0xff] %v2310_v57  }

// kernel: discriminator_forward.12
= control target key start
LH: loop header
LB: loop body
LE: loop exit
PB: predicated region body
PF: predicated region fallthrough
CT: control target
= control target key end

     0   :  { %s273_s6 = smov 0   ;;  %s297_s0 = inlined_call_operand.vmem [shape: bf16[2,16,128], index: 0, kind: input, shape index: {}]   ;;  %s298_s1 = inlined_call_operand.vmem [shape: bf16[2,16,128], index: 1, kind: output, shape index: {}]  }
   0x1 LB: > { %s219_s7 = sadd.s32 4294967295, %s261_s6   ;;  %p223_p0 = scmp.ge.s32.totalorder %s261_s6, 1  ;;  %s261_s6 = sphi %s273_s6, %s11_s6  }
   0x2   : > { %p87_p1 = scmp.lt.s32.totalorder %s261_s6, 3 }
   0x4   : > { %p88_p2 = pnand %p223_p0, %p87_p1 }
   0x5   : > { %p107_p3 = scmp.lt.s32.totalorder (!%p88_p2), %s219_s7, 1 }
   0x6   : > { %91 = sbr.rel (%p88_p2) target bundleno = 62 (0x3e), region = 24 }
   0xd   : > { %s300_s7 = smov (!%p107_p3, %s219_s7), 1 }
   0xe   : > { %s232_s8 = sshll.u32 %s300_s7, 3 }
   0xf   : > { %s111_s11 = scalar_lea.vmem %s297_s0, %s232_s8  ;;  %s116_s14 = scalar_lea.vmem %s298_s1, %s232_s8 }
  0x10   : > { %v237_v0 = vld [vmem:[%s111_s11] sm:$0xff]  }
  0x11   : > { %v238_v1 = vunpack.c.l.bf16 %v237_v0  ;;  %v239_v2 = vunpack.c.h.bf16 %v237_v0 }
  0x13   : > { %v121_v3 = vadd.f32 %v239_v2, %v238_v1  ;;  %v129_v4 = vmul.f32 %v238_v1, %v238_v1  ;;  %v130_v5 = vmul.f32 %v239_v2, %v239_v2 }
  0x15   : > { %v122_v6 = vrot.slane %v121_v3, 4  ;;  %v131_v7 = vadd.f32 %v130_v5, %v129_v4 }
  0x17   : > { %v123_v8 = vadd.f32 %v122_v6, %v121_v3  ;;  %v132_v9 = vrot.slane %v131_v7, 4 }
  0x19   : > { %v124_v10 = vrot.slane %v123_v8, 2  ;;  %v133_v11 = vadd.f32 %v132_v9, %v131_v7 }
  0x1b   : > { %v125_v12 = vadd.f32 %v124_v10, %v123_v8  ;;  %v134_v13 = vrot.slane %v133_v11, 2 }
  0x1d   : > { %v126_v14 = vrot.slane %v125_v12, 1  ;;  %v135_v15 = vadd.f32 %v134_v13, %v133_v11 }
  0x1f   : > { %v127_v16 = vadd.f32 %v126_v14, %v125_v12  ;;  %v136_v17 = vrot.slane %v135_v15, 1 }
  0x21   : > { %v128_v18 = vmul.f32 0.0625, %v127_v16  ;;  %v137_v19 = vadd.f32 %v136_v17, %v135_v15 }
  0x23   : > { %v138_v20 = vmul.f32 0.0625, %v137_v19  ;;  %v139_v21 = vmul.f32 %v128_v18, %v128_v18  ;;  %v142_v25 = vsub.f32 %v238_v1, %v128_v18  ;;  %v143_v26 = vsub.f32 %v239_v2, %v128_v18 }
  0x25   : > { %v140_v22 = vsub.f32 %v138_v20, %v139_v21 }
  0x27   : > { %v141_v23 = vmax.f32 %v140_v22, 0.0 }
  0x29   : > { %v144_v24 = vadd.f32 1e-05, %v141_v23 }
  0x2b   : > { %253 = vrsqrt.f32 %v144_v24 }
  0x35   : > { %v254_v27 = vpop.eup %253 }
  0x36   : > { %v146_v28 = vmul.f32 %v254_v27, %v142_v25  ;;  %v147_v29 = vmul.f32 %v254_v27, %v143_v26 }
  0x38   : > { %vm148_vm0 = vcmp.ge.f32.partialorder %v146_v28, 0.0  ;;  %vm149_vm1 = vcmp.ge.f32.partialorder %v147_v29, 0.0  ;;  %v150_v30 = vmul.f32 0.2, %v146_v28  ;;  %v151_v31 = vmul.f32 0.2, %v147_v29 }
  0x3a   : > { %v152_v32 = vsel %vm148_vm0, %v146_v28, %v150_v30  ;;  %v153_v33 = vsel %vm149_vm1, %v147_v29, %v151_v31 }
  0x3b   : > { %v243_v34 = vpack.c.bf16 %v153_v33, %v152_v32 }
  0x3d   : > { %244 = vst [vmem:[%s116_s14] sm:$0xff] %v243_v34  }
  0x3e PF: > { %s11_s6 = sadd.s32 1, %s261_s6  }
  0x3f   : > { %p8_p4 = scmp.ge.s32.totalorder %s11_s6, 4  }
  0x41   :  { %10 = sbr.rel (!%p8_p4) target bundleno = 1 (0x1), region = 54 }

// kernel: discriminator_forward.9
= control target key start
LH: loop header
LB: loop body
LE: loop exit
PB: predicated region body
PF: predicated region fallthrough
CT: control target
= control target key end

     0   :  { %s3544_s21 = smov 0   ;;  %s3546_s22 = smov 0   ;;  %s4200_s0 = inlined_call_operand.vmem [shape: bf16[2,18,9,128], index: 0, kind: input, shape index: {}, may-alias: {0,1}]   ;;  %s4201_s1 = inlined_call_operand.vmem [shape: bf16[2,18,9,128], index: 1, kind: input, shape index: {}, may-alias: {0,1}]   ;;  %s4202_s2 = inlined_call_operand.vmem [shape: bf16[2,18,9,128], index: 2, kind: input, shape index: {}, may-alias: {2,3}]   ;;  %s4203_s3 = inlined_call_operand.vmem [shape: bf16[2,18,9,128], index: 3, kind: input, shape index: {}, may-alias: {2,3}]   ;;  %s4204_s4 = inlined_call_operand.vmem [shape: bf16[4,4,128,128], index: 4, kind: input, shape index: {}]   ;;  %s4205_s5 = inlined_call_operand.vmem [shape: f32[1,128], index: 5, kind: input, shape index: {}]   ;;  %s4206_s6 = inlined_call_operand.vmem [shape: bf16[2,8,8,128], index: 6, kind: output, shape index: {}]  }
   0x1   :  { %s3548_s23 = smov 0   ;;  %s3550_s24 = smov 0  }
   0x2   :  { %s3552_s25 = smov 0  }
   0x3 LB: > { %s25_s26 = sadd.s32 1, %s3497_s23  ;;  %s28_s27 = sadd.s32 1, %s3501_s24  ;;  %s3505_s25 = sphi %s3552_s25, %s16_s25   ;;  %s3501_s24 = sphi %s3550_s24, %s4210_s24   ;;  %s3497_s23 = sphi %s3548_s23, %s4209_s23   ;;  %s3493_s22 = sphi %s3546_s22, %s4208_s22   ;;  %s3489_s21 = sphi %s3544_s21, %s4207_s21  }
   0x4   : > { %p26_p0 = scmp.ge.s32.totalorder %s25_s26, 8  ;;  %p2414_p1 = scmp.ge.s32.totalorder %s3505_s25, 1 }
   0x5   : > { %p296_p2 = scmp.lt.s32.totalorder %s3505_s25, 17 }
   0x6   : > { %s4212_s26 = smov (%p26_p0, %s25_s26), 0  ;;  %s4214_s27 = smov (!%p26_p0, %s28_s27), %s3501_s24 }
   0x7   : > { %p297_p3 = pnand %p2414_p1, %p296_p2  ;;  %p30_p4 = scmp.ge.s32.totalorder %s4214_s27, 2 }
   0x8   : > { %v3331_v0 = vld [vmem:[%s4204_s4 + $0x40] sm:$0xff] (!%p297_p3)   ;;  %v3507_v1 = vmov (!%p297_p3), 0.0   ;;  %v3333_v3 = vld [vmem:[%s4204_s4 + $0x48] sm:$0xff] (!%p297_p3)   ;;  %vm3508_vm0 = vmmov (!%p297_p3), 0   ;;  %s3599_s12 = sshll.u32 (!%p297_p3), %s3489_s21, 1  ;;  %v3335_v5 = vld [vmem:[%s4204_s4 + $0x50] sm:$0xff] (!%p297_p3)  }
   0x9   : > { %s4216_s27 = smov (%p30_p4, %s4214_s27), 0  ;;  %300 = sbr.rel (%p297_p3) target bundleno = 487 (0x1e7), region = 44 }
   0xa   : > { %2968 = vmatprep.subr.bf16.mxu0 (!%p297_p3), %v3507_v1  ;;  %2988 = vmatprep.subr.bf16.mxu1 (!%p297_p3), %v3507_v1  ;;  %v3332_v2 = vld [vmem:[%s4204_s4] sm:$0xff] (!%p297_p3)   ;;  %v3334_v4 = vld [vmem:[%s4204_s4 + $0x8] sm:$0xff] (!%p297_p3)   ;;  %v3336_v6 = vld [vmem:[%s4204_s4 + $0x10] sm:$0xff] (!%p297_p3)   ;;  %p367_p5 = scmp.lt.s32.totalorder (!%p297_p3), %s3493_s22, 1  ;;  %p369_p6 = scmp.lt.s32.totalorder (!%p297_p3), %s3599_s12, 17 }
   0xb   : > { %2969 = vmatpush3.bf16.msra.mxu0 (!%p297_p3), %v3331_v0  ;;  %2984 = vmatprep.mubr.msk.bf16.mxu0 (!%p297_p3), %vm3508_vm0, %v3507_v1  ;;  %v3337_v7 = vld [vmem:[%s4204_s4 + $0x58] sm:$0xff] (!%p297_p3)   ;;  %v3339_v9 = vld [vmem:[%s4204_s4 + $0x60] sm:$0xff] (!%p297_p3)   ;;  %v3341_v11 = vld [vmem:[%s4204_s4 + $0x68] sm:$0xff] (!%p297_p3)   ;;  %s2821_s29 = sadd.s32 (!%p297_p3), 2, %s3599_s12  ;;  %p416_p8 = scmp.lt.s32.totalorder (!%p297_p3), %s3489_s21, 7 }
   0xc   : > { %2989 = vmatpush3.bf16.msra.mxu1 (!%p297_p3), %v3332_v2  ;;  %2970 = vmatprep.subr.bf16.mxu0 (!%p297_p3), %v3507_v1  ;;  %v3338_v8 = vld [vmem:[%s4204_s4 + $0x18] sm:$0xff] (!%p297_p3)   ;;  %v3340_v10 = vld [vmem:[%s4204_s4 + $0x20] sm:$0xff] (!%p297_p3)   ;;  %v3342_v12 = vld [vmem:[%s4204_s4 + $0x28] sm:$0xff] (!%p297_p3)   ;;  %p381_p7 = scmp.lt.s32.totalorder (!%p297_p3), %s2821_s29, 17 }
   0xd   : > { %2990 = vmatprep.subr.bf16.mxu1 (!%p297_p3), %v3507_v1  ;;  %3004 = vmatprep.mubr.msk.bf16.mxu1 (!%p297_p3), %vm3508_vm0, %v3507_v1  ;;  %v3343_v13 = vld [vmem:[%s4204_s4 + $0x70] sm:$0xff] (!%p297_p3)   ;;  %v3345_v15 = vld [vmem:[%s4204_s4 + $0x78] sm:$0xff] (!%p297_p3)   ;;  %v3347_v19 = vld [vmem:[%s4204_s4 + $0x80] sm:$0xff] (!%p297_p3)  }
   0xe   : > { %v3344_v14 = vld [vmem:[%s4204_s4 + $0x30] sm:$0xff] (!%p297_p3)   ;;  %v3346_v16 = vld [vmem:[%s4204_s4 + $0x38] sm:$0xff] (!%p297_p3)   ;;  %v3348_v20 = vld [vmem:[%s4204_s4 + $0xc0] sm:$0xff] (!%p297_p3)  }
   0xf   : > { %2971 = vmatpush3.bf16.msra.mxu0 (!%p297_p3), %v3333_v3  ;;  %v3349_v21 = vld [vmem:[%s4204_s4 + $0x88] sm:$0xff] (!%p297_p3)   ;;  %v3351_v23 = vld [vmem:[%s4204_s4 + $0x90] sm:$0xff] (!%p297_p3)   ;;  %v3353_v25 = vld [vmem:[%s4204_s4 + $0x98] sm:$0xff] (!%p297_p3)  }
  0x10   : > { %2991 = vmatpush3.bf16.msra.mxu1 %v3334_v4  ;;  %2972 = vmatprep.subr.bf16.mxu0 %v3507_v1  ;;  %s4218_s22 = smov (!%p367_p5, %s3493_s22), 1  ;;  %s4220_s29 = smov (!%p381_p7, %s2821_s29), 17  ;;  %v3350_v22 = vld [vmem:[%s4204_s4 + $0xc8] sm:$0xff]   ;;  %v3352_v24 = vld [vmem:[%s4204_s4 + $0xd0] sm:$0xff]   ;;  %v3354_v26 = vld [vmem:[%s4204_s4 + $0xd8] sm:$0xff]  }
  0x11   : > { %2992 = vmatprep.subr.bf16.mxu1 %v3507_v1  ;;  %s370_s28 = scalar_select %p369_p6, %s3599_s12, 17  ;;  %v3355_v27 = vld [vmem:[%s4204_s4 + $0xa0] sm:$0xff]   ;;  %v3357_v29 = vld [vmem:[%s4204_s4 + $0xa8] sm:$0xff]   ;;  %v3359_v34 = vld [vmem:[%s4204_s4 + $0xb0] sm:$0xff]  }
  0x12   : > { %s3288_s9 = smul.u32 36, %s4218_s22  ;;  %s2419_s17 = sshll.u32 %s4220_s29, 1  ;;  %v3356_v28 = vld [vmem:[%s4204_s4 + $0xe0] sm:$0xff]   ;;  %v3358_v32 = vld [vmem:[%s4204_s4 + $0xe8] sm:$0xff]   ;;  %v3360_v36 = vld [vmem:[%s4204_s4 + $0xf0] sm:$0xff]  }
  0x13   : > { %2973 = vmatpush3.bf16.msra.mxu0 %v3335_v5  ;;  %s2416_s10 = sshll.u32 %s370_s28, 1  ;;  %v3361_v37 = vld [vmem:[%s4204_s4 + $0xb8] sm:$0xff]   ;;  %v3365_v45 = vld [vmem:[%s4204_s4 + $0x100] sm:$0xff]   ;;  %v3367_v47 = vld [vmem:[%s4204_s4 + $0x108] sm:$0xff]   ;;  %s4222_s21 = smov (!%p416_p8, %s3489_s21), 7 }
  0x14   : > { %2993 = vmatpush3.bf16.msra.mxu1 %v3336_v6  ;;  %2974 = vmatprep.subr.bf16.mxu0 %v3507_v1  ;;  %s373_s16 = sadd.s32 %s3288_s9, %s2416_s10  ;;  %v3362_v42 = vld [vmem:[%s4204_s4 + $0xf8] sm:$0xff]   ;;  %v3366_v46 = vld [vmem:[%s4204_s4 + $0x140] sm:$0xff]   ;;  %v3368_v48 = vld [vmem:[%s4204_s4 + $0x148] sm:$0xff]   ;;  %s2427_s14 = sshll.u32 %s4218_s22, 3 }
  0x15   : > { %2994 = vmatprep.subr.bf16.mxu1 %v3507_v1  ;;  %s2417_s19 = sshll.u32 %s373_s16, 2  ;;  %v3369_v49 = vld [vmem:[%s4204_s4 + $0x110] sm:$0xff]   ;;  %v3371_v51 = vld [vmem:[%s4204_s4 + $0x118] sm:$0xff]   ;;  %v3373_v53 = vld [vmem:[%s4204_s4 + $0x120] sm:$0xff]   ;;  %s419_s12 = sadd.s32 %s2427_s14, %s4222_s21 }
  0x16   : > { %s3654_s8 = scalar_lea.vmem %s4202_s2, %s2417_s19  ;;  %s3662_s15 = scalar_lea.vmem %s4200_s0, %s2417_s19  ;;  %v3370_v50 = vld [vmem:[%s4204_s4 + $0x150] sm:$0xff]   ;;  %v3372_v52 = vld [vmem:[%s4204_s4 + $0x158] sm:$0xff]   ;;  %v3374_v54 = vld [vmem:[%s4204_s4 + $0x160] sm:$0xff]  }
  0x17   : > { %2975 = vmatpush3.bf16.msra.mxu0 %v3337_v7  ;;  %v440_v17 = vld [vmem:[%s3654_s8] sm:$0xf]  ;;  %s3676_s19 = sadd.s32 %s3288_s9, %s2419_s17  ;;  %v3375_v55 = vld [vmem:[%s4204_s4 + $0x128] sm:$0xff]   ;;  %v3377_v57 = vld [vmem:[%s4204_s4 + $0x130] sm:$0xff]  }
  0x18   : > { %2995 = vmatpush3.bf16.msra.mxu1 %v3338_v8  ;;  %2976 = vmatprep.subr.bf16.mxu0 %v3507_v1  ;;  %v423_v18 = vld [vmem:[%s3662_s15] sm:$0xf]  ;;  %v3376_v56 = vld [vmem:[%s4204_s4 + $0x168] sm:$0xff]   ;;  %v3378_v58 = vld [vmem:[%s4204_s4 + $0x170] sm:$0xff]   ;;  %s2420_s18 = sshll.u32 %s3676_s19, 2 }
  0x19   : > { %2996 = vmatprep.subr.bf16.mxu1 %v3507_v1  ;;  %v3363_v30 = vld [vmem:[%s3662_s15] sm:$0x1f]   ;;  %v3379_v59 = vld [vmem:[%s4204_s4 + $0x138] sm:$0xff]   ;;  %v2511_v61 = vld [vmem:[%s3662_s15 + $0x8] sm:$0xf]  ;;  %s3839_s7 = scalar_lea.vmem %s4201_s1, %s2420_s18  ;;  %s3847_s13 = scalar_lea.vmem %s4203_s3, %s2420_s18 }
  0x1a   : > { %v3364_v31 = vld [vmem:[%s3654_s8] sm:$0x1f]   ;;  %v661_v33 = vshll.u32 %v3363_v30, 16  ;;  %v659_v38 = vshrl.u32 %v3363_v30, 16  ;;  %v3380_v60 = vld [vmem:[%s4204_s4 + $0x178] sm:$0xff]   ;;  %v3383_v2 = vld [vmem:[%s4204_s4 + $0x188] sm:$0xff]  }
  0x1b   : > { %2977 = vmatpush3.bf16.msra.mxu0 %v3339_v9  ;;  %v782_v35 = vshll.u32 %v3364_v31, 16  ;;  %v780_v40 = vshrl.u32 %v3364_v31, 16  ;;  %v2536_v62 = vld [vmem:[%s3654_s8 + $0x8] sm:$0xf]  ;;  %v3381_v63 = vld [vmem:[%s4204_s4 + $0x180] sm:$0xff]   ;;  %v3385_v4 = vld [vmem:[%s4204_s4 + $0x190] sm:$0xff]  }
  0x1c   : > { %2997 = vmatpush3.bf16.msra.mxu1 %v3340_v10  ;;  %2978 = vmatprep.subr.bf16.mxu0 %v3507_v1  ;;  %v663_v39 = vrot.slane %v661_v33, 1  ;;  %v3382_v0 = vld [vmem:[%s4204_s4 + $0x1c0] sm:$0xff]   ;;  %v3384_v3 = vld [vmem:[%s4204_s4 + $0x1c8] sm:$0xff]   ;;  %v3386_v5 = vld [vmem:[%s4204_s4 + $0x1d0] sm:$0xff]  }
  0x1d   : > { %2998 = vmatprep.subr.bf16.mxu1 %v3507_v1  ;;  %v784_v41 = vrot.slane %v782_v35, 1  ;;  %v3387_v6 = vld [vmem:[%s4204_s4 + $0x198] sm:$0xff]   ;;  %v3389_v8 = vld [vmem:[%s4204_s4 + $0x1a0] sm:$0xff]   ;;  %v3391_v10 = vld [vmem:[%s4204_s4 + $0x1a8] sm:$0xff]  }
  0x1e   : > { %v664_v43 = vor.u32 %v663_v39, %v659_v38  ;;  %v3388_v7 = vld [vmem:[%s4204_s4 + $0x1d8] sm:$0xff]   ;;  %v3390_v9 = vld [vmem:[%s4204_s4 + $0x1e0] sm:$0xff]   ;;  %v3403_v30 = vld [vmem:[%s4204_s4 + $0x210] sm:$0xff]  }
  0x1f   : > { %2979 = vmatpush3.bf16.msra.mxu0 %v3341_v11  ;;  %v785_v44 = vor.u32 %v784_v41, %v780_v40  ;;  %v3397_v11 = vld [vmem:[%s3662_s15 + $0x8] sm:$0x1f]   ;;  %v3404_v31 = vld [vmem:[%s4204_s4 + $0x250] sm:$0xff]   ;;  %v3406_v33 = vld [vmem:[%s4204_s4 + $0x258] sm:$0xff]   ;;  %s2428_s15 = sshll.u32 %s419_s12, 2 }
  0x20   : > { %2999 = vmatpush3.bf16.msra.mxu1 %v3342_v12  ;;  %2980 = vmatprep.subr.bf16.mxu0 %v3507_v1  ;;  %v3398_v12 = vld [vmem:[%s3654_s8 + $0x8] sm:$0x1f]   ;;  %v3408_v35 = vld [vmem:[%s4204_s4 + $0x260] sm:$0xff]   ;;  %v3411_v38 = vld [vmem:[%s4204_s4 + $0x230] sm:$0xff]   ;;  %s421_s22 = scalar_lea.vmem %s4206_s6, %s2428_s15 }
  0x21   : > { %3000 = vmatprep.subr.bf16.mxu1 %v3507_v1  ;;  %v3412_v39 = vld [vmem:[%s4204_s4 + $0x270] sm:$0xff]   ;;  %v3413_v40 = vld [vmem:[%s4204_s4 + $0x238] sm:$0xff]  }
  0x22   : > { %v3414_v41 = vld [vmem:[%s4204_s4 + $0x278] sm:$0xff]  }
  0x23   : > { %2981 = vmatpush3.bf16.msra.mxu0 %v3343_v13  ;;  %v3392_v13 = vld [vmem:[%s4204_s4 + $0x1e8] sm:$0xff]  }
  0x24   : > { %3001 = vmatpush3.bf16.msra.mxu1 %v3344_v14  ;;  %2982 = vmatprep.subr.bf16.mxu0 %v3507_v1  ;;  %v1119_v14 = vshll.u32 %v3397_v11, 16 }
  0x25   : > { %3002 = vmatprep.subr.bf16.mxu1 %v3507_v1 }
  0x27   : > { %2983 = vmatpush3.bf16.msra.mxu0 %v3345_v15  ;;  %v3393_v15 = vld [vmem:[%s4204_s4 + $0x1b0] sm:$0xff]  }
  0x28   : > { %3003 = vmatpush3.bf16.msra.mxu1 %v3346_v16  ;;  %3008 = vmatprep.subr.bf16.mxu0 %v3507_v1  ;;  %v1240_v16 = vshll.u32 %v3398_v12, 16 }
  0x29   : > { %3028 = vmatprep.subr.bf16.mxu1 %v3507_v1 }
  0x2a   : > { %2985 = vmatmul.mubr.bf16.vlgmr.msra.gmra.mrb[0].mxu0 %v440_v17  ;;  %v3394_v17 = vld [vmem:[%s4204_s4 + $0x1f0] sm:$0xff]  }
  0x2b   : > { %3005 = vmatmul.mubr.bf16.vlgmr.msra.gmra.mrb[0].mxu1 %v423_v18  ;;  %3009 = vmatpush3.bf16.msra.mxu0 %v3347_v19  ;;  %v3395_v18 = vld [vmem:[%s4204_s4 + $0x1b8] sm:$0xff]   ;;  %v1117_v19 = vshrl.u32 %v3397_v11, 16  ;;  %v3437_v11 = vld [vmem:[%s4204_s4 + $0x310] sm:$0xff]  }
  0x2c   : > { %3029 = vmatpush3.bf16.msra.mxu1 %v3348_v20  ;;  %3010 = vmatprep.subr.bf16.mxu0 %v3507_v1  ;;  %v1121_v20 = vrot.slane %v1119_v14, 1  ;;  %v3440_v14 = vld [vmem:[%s4204_s4 + $0x358] sm:$0xff]  }
  0x2d   : > { %3030 = vmatprep.subr.bf16.mxu1 %v3507_v1  ;;  %3024 = vmatprep.mubr.msk.bf16.mxu0 %vm3508_vm0, %v3507_v1 }
  0x2e   : > { %3044 = vmatprep.mubr.msk.bf16.mxu1 %vm3508_vm0, %v3507_v1 }
  0x2f   : > { %3011 = vmatpush3.bf16.msra.mxu0 %v3349_v21  ;;  %v1238_v21 = vshrl.u32 %v3398_v12, 16  ;;  %v3438_v12 = vld [vmem:[%s4204_s4 + $0x350] sm:$0xff]  }
  0x30   : > { %3031 = vmatpush3.bf16.msra.mxu1 %v3350_v22  ;;  %3012 = vmatprep.subr.bf16.mxu0 %v3507_v1  ;;  %v1242_v22 = vrot.slane %v1240_v16, 1  ;;  %v3442_v16 = vld [vmem:[%s4204_s4 + $0x360] sm:$0xff]  }
  0x31   : > { %3032 = vmatprep.subr.bf16.mxu1 %v3507_v1 }
  0x33   : > { %3013 = vmatpush3.bf16.msra.mxu0 %v3351_v23  ;;  %v3396_v23 = vld [vmem:[%s4204_s4 + $0x1f8] sm:$0xff]  }
  0x34   : > { %3033 = vmatpush3.bf16.msra.mxu1 %v3352_v24  ;;  %3014 = vmatprep.subr.bf16.mxu0 %v3507_v1  ;;  %v1122_v24 = vor.u32 %v1121_v20, %v1117_v19  ;;  %v3445_v19 = vld [vmem:[%s4204_s4 + $0x330] sm:$0xff]  }
  0x35   : > { %3034 = vmatprep.subr.bf16.mxu1 %v3507_v1  ;;  %v3446_v20 = vld [vmem:[%s4204_s4 + $0x370] sm:$0xff]  }
  0x37   : > { %3015 = vmatpush3.bf16.msra.mxu0 %v3353_v25  ;;  %v1243_v25 = vor.u32 %v1242_v22, %v1238_v21  ;;  %v3447_v21 = vld [vmem:[%s4204_s4 + $0x338] sm:$0xff]  }
  0x38   : > { %3035 = vmatpush3.bf16.msra.mxu1 %v3354_v26  ;;  %3016 = vmatprep.subr.bf16.mxu0 %v3507_v1  ;;  %v3399_v26 = vld [vmem:[%s4204_s4 + $0x200] sm:$0xff]   ;;  %v3448_v22 = vld [vmem:[%s4204_s4 + $0x378] sm:$0xff]  }
  0x39   : > { %3036 = vmatprep.subr.bf16.mxu1 %v3507_v1 }
  0x3b   : > { %3017 = vmatpush3.bf16.msra.mxu0 %v3355_v27  ;;  %v3400_v27 = vld [vmem:[%s4204_s4 + $0x240] sm:$0xff]  }
  0x3c   : > { %3037 = vmatpush3.bf16.msra.mxu1 %v3356_v28  ;;  %3018 = vmatprep.subr.bf16.mxu0 %v3507_v1  ;;  %v3401_v28 = vld [vmem:[%s4204_s4 + $0x208] sm:$0xff]  }
  0x3d   : > { %3038 = vmatprep.subr.bf16.mxu1 %v3507_v1 }
  0x3f   : > { %3019 = vmatpush3.bf16.msra.mxu0 %v3357_v29  ;;  %v3402_v29 = vld [vmem:[%s4204_s4 + $0x248] sm:$0xff]  }
  0x40   : > { %3039 = vmatpush3.bf16.msra.mxu1 %v3358_v32  ;;  %3020 = vmatprep.subr.bf16.mxu0 %v3507_v1  ;;  %v3405_v32 = vld [vmem:[%s4204_s4 + $0x218] sm:$0xff]  }
  0x41   : > { %3040 = vmatprep.subr.bf16.mxu1 %v3507_v1 }
  0x43   : > { %3021 = vmatpush3.bf16.msra.mxu0 %v3359_v34  ;;  %v3407_v34 = vld [vmem:[%s4204_s4 + $0x220] sm:$0xff]  }
  0x44   : > { %3041 = vmatpush3.bf16.msra.mxu1 %v3360_v36  ;;  %3022 = vmatprep.subr.bf16.mxu0 %v3507_v1  ;;  %v3409_v36 = vld [vmem:[%s4204_s4 + $0x228] sm:$0xff]  }
  0x45   : > { %3042 = vmatprep.subr.bf16.mxu1 %v3507_v1 }
  0x47   : > { %3023 = vmatpush3.bf16.msra.mxu0 %v3361_v37  ;;  %v3410_v37 = vld [vmem:[%s4204_s4 + $0x268] sm:$0xff]  }
  0x48   : > { %3043 = vmatpush3.bf16.msra.mxu1 %v3362_v42  ;;  %3048 = vmatprep.subr.bf16.mxu0 %v3507_v1  ;;  %v1334_v42 = vld [vmem:[%s3839_s7] sm:$0xf] }
  0x49   : > { %3068 = vmatprep.subr.bf16.mxu1 %v3507_v1 }
  0x4a   : > { %3025 = vmatmul.mubr.bf16.vlgmr.msra.gmra.mrb[4].mxu0 %v664_v43  ;;  %v3415_v43 = vld [vmem:[%s4204_s4 + $0x280] sm:$0xff]  }
  0x4b   : > { %3045 = vmatmul.mubr.bf16.vlgmr.msra.gmra.mrb[4].mxu1 %v785_v44  ;;  %3049 = vmatpush3.bf16.msra.mxu0 %v3365_v45  ;;  %v1441_v44 = vld [vmem:[%s3847_s13] sm:$0xf] }
  0x4c   : > { %3069 = vmatpush3.bf16.msra.mxu1 %v3366_v46  ;;  %3050 = vmatprep.subr.bf16.mxu0 %v3507_v1  ;;  %v3416_v45 = vld [vmem:[%s4204_s4 + $0x2c0] sm:$0xff]   ;;  %v3417_v46 = vld [vmem:[%s4204_s4 + $0x288] sm:$0xff]  }
  0x4d   : > { %3070 = vmatprep.subr.bf16.mxu1 %v3507_v1  ;;  %3064 = vmatprep.mubr.msk.bf16.mxu0 %vm3508_vm0, %v3507_v1 }
  0x4e   : > { %3084 = vmatprep.mubr.msk.bf16.mxu1 %vm3508_vm0, %v3507_v1 }
  0x4f   : > { %3051 = vmatpush3.bf16.msra.mxu0 %v3367_v47  ;;  %v3418_v47 = vld [vmem:[%s4204_s4 + $0x2c8] sm:$0xff]  }
  0x50   : > { %3071 = vmatpush3.bf16.msra.mxu1 %v3368_v48  ;;  %3052 = vmatprep.subr.bf16.mxu0 %v3507_v1  ;;  %v3419_v48 = vld [vmem:[%s4204_s4 + $0x290] sm:$0xff]  }
  0x51   : > { %3072 = vmatprep.subr.bf16.mxu1 %v3507_v1 }
  0x53   : > { %3053 = vmatpush3.bf16.msra.mxu0 %v3369_v49  ;;  %v3420_v49 = vld [vmem:[%s4204_s4 + $0x2d0] sm:$0xff]  }
  0x54   : > { %3073 = vmatpush3.bf16.msra.mxu1 %v3370_v50  ;;  %3054 = vmatprep.subr.bf16.mxu0 %v3507_v1  ;;  %v3421_v50 = vld [vmem:[%s4204_s4 + $0x298] sm:$0xff]  }
  0x55   : > { %3074 = vmatprep.subr.bf16.mxu1 %v3507_v1 }
  0x57   : > { %3055 = vmatpush3.bf16.msra.mxu0 %v3371_v51  ;;  %v3422_v51 = vld [vmem:[%s4204_s4 + $0x2d8] sm:$0xff]  }
  0x58   : > { %3075 = vmatpush3.bf16.msra.mxu1 %v3372_v52  ;;  %3056 = vmatprep.subr.bf16.mxu0 %v3507_v1  ;;  %v3423_v52 = vld [vmem:[%s4204_s4 + $0x2a0] sm:$0xff]  }
  0x59   : > { %3076 = vmatprep.subr.bf16.mxu1 %v3507_v1 }
  0x5b   : > { %3057 = vmatpush3.bf16.msra.mxu0 %v3373_v53  ;;  %v3424_v53 = vld [vmem:[%s4204_s4 + $0x2e0] sm:$0xff]  }
  0x5c   : > { %3077 = vmatpush3.bf16.msra.mxu1 %v3374_v54  ;;  %3058 = vmatprep.subr.bf16.mxu0 %v3507_v1  ;;  %v3431_v54 = vld [vmem:[%s3839_s7] sm:$0x1f]  }
  0x5d   : > { %3078 = vmatprep.subr.bf16.mxu1 %v3507_v1 }
  0x5f   : > { %3059 = vmatpush3.bf16.msra.mxu0 %v3375_v55  ;;  %v3425_v55 = vld [vmem:[%s4204_s4 + $0x2a8] sm:$0xff]  }
  0x60   : > { %3079 = vmatpush3.bf16.msra.mxu1 %v3376_v56  ;;  %3060 = vmatprep.subr.bf16.mxu0 %v3507_v1  ;;  %v3432_v56 = vld [vmem:[%s3847_s13] sm:$0x1f]  }
  0x61   : > { %3080 = vmatprep.subr.bf16.mxu1 %v3507_v1 }
  0x63   : > { %3061 = vmatpush3.bf16.msra.mxu0 %v3377_v57  ;;  %v3426_v57 = vld [vmem:[%s4204_s4 + $0x2e8] sm:$0xff]  }
  0x64   : > { %3081 = vmatpush3.bf16.msra.mxu1 %v3378_v58  ;;  %3062 = vmatprep.subr.bf16.mxu0 %v3507_v1  ;;  %v1575_v58 = vshll.u32 %v3431_v54, 16 }
  0x65   : > { %3082 = vmatprep.subr.bf16.mxu1 %v3507_v1 }
  0x67   : > { %3063 = vmatpush3.bf16.msra.mxu0 %v3379_v59  ;;  %v3427_v59 = vld [vmem:[%s4204_s4 + $0x2b0] sm:$0xff]  }
  0x68   : > { %3083 = vmatpush3.bf16.msra.mxu1 %v3380_v60  ;;  %3088 = vmatprep.subr.bf16.mxu0 %v3507_v1  ;;  %v1696_v60 = vshll.u32 %v3432_v56, 16 }
  0x69   : > { %3108 = vmatprep.subr.bf16.mxu1 %v3507_v1 }
  0x6a   : > { %3065 = vmatmul.mubr.bf16.vlgmr.msra.gmra.mrb[8].mxu0 %v2511_v61  ;;  %v3428_v61 = vld [vmem:[%s4204_s4 + $0x2f0] sm:$0xff]  }
  0x6b   : > { %3085 = vmatmul.mubr.bf16.vlgmr.msra.gmra.mrb[8].mxu1 %v2536_v62  ;;  %3089 = vmatpush3.bf16.msra.mxu0 %v3381_v63  ;;  %v1573_v62 = vshrl.u32 %v3431_v54, 16  ;;  %v1577_v63 = vrot.slane %v1575_v58, 1  ;;  %v3463_v54 = vld [vmem:[%s4204_s4 + $0x3b8] sm:$0xff]  }
  0x6c   : > { %3109 = vmatpush3.bf16.msra.mxu1 %v3382_v0  ;;  %3090 = vmatprep.subr.bf16.mxu0 %v3507_v1  ;;  %v3429_v0 = vld [vmem:[%s4204_s4 + $0x2b8] sm:$0xff]  }
  0x6d   : > { %3110 = vmatprep.subr.bf16.mxu1 %v3507_v1  ;;  %3104 = vmatprep.mubr.msk.bf16.mxu0 %vm3508_vm0, %v3507_v1 }
  0x6e   : > { %3124 = vmatprep.mubr.msk.bf16.mxu1 %vm3508_vm0, %v3507_v1 }
  0x6f   : > { %3091 = vmatpush3.bf16.msra.mxu0 %v3383_v2  ;;  %v1694_v2 = vshrl.u32 %v3432_v56, 16 }
  0x70   : > { %3111 = vmatpush3.bf16.msra.mxu1 %v3384_v3  ;;  %3092 = vmatprep.subr.bf16.mxu0 %v3507_v1  ;;  %v1698_v3 = vrot.slane %v1696_v60, 1 }
  0x71   : > { %3112 = vmatprep.subr.bf16.mxu1 %v3507_v1 }
  0x73   : > { %3093 = vmatpush3.bf16.msra.mxu0 %v3385_v4  ;;  %v3430_v4 = vld [vmem:[%s4204_s4 + $0x2f8] sm:$0xff]  }
  0x74   : > { %3113 = vmatpush3.bf16.msra.mxu1 %v3386_v5  ;;  %3094 = vmatprep.subr.bf16.mxu0 %v3507_v1  ;;  %v1578_v5 = vor.u32 %v1577_v63, %v1573_v62 }
  0x75   : > { %3114 = vmatprep.subr.bf16.mxu1 %v3507_v1 }
  0x77   : > { %3095 = vmatpush3.bf16.msra.mxu0 %v3387_v6  ;;  %v1699_v6 = vor.u32 %v1698_v3, %v1694_v2 }
  0x78   : > { %3115 = vmatpush3.bf16.msra.mxu1 %v3388_v7  ;;  %3096 = vmatprep.subr.bf16.mxu0 %v3507_v1  ;;  %v3433_v7 = vld [vmem:[%s4204_s4 + $0x300] sm:$0xff]  }
  0x79   : > { %3116 = vmatprep.subr.bf16.mxu1 %v3507_v1 }
  0x7b   : > { %3097 = vmatpush3.bf16.msra.mxu0 %v3389_v8  ;;  %v3434_v8 = vld [vmem:[%s4204_s4 + $0x340] sm:$0xff]  }
  0x7c   : > { %3117 = vmatpush3.bf16.msra.mxu1 %v3390_v9  ;;  %3098 = vmatprep.subr.bf16.mxu0 %v3507_v1  ;;  %v3435_v9 = vld [vmem:[%s4204_s4 + $0x308] sm:$0xff]  }
  0x7d   : > { %3118 = vmatprep.subr.bf16.mxu1 %v3507_v1 }
  0x7f   : > { %3099 = vmatpush3.bf16.msra.mxu0 %v3391_v10  ;;  %v3436_v10 = vld [vmem:[%s4204_s4 + $0x348] sm:$0xff]  }
  0x80   : > { %3119 = vmatpush3.bf16.msra.mxu1 %v3392_v13  ;;  %3100 = vmatprep.subr.bf16.mxu0 %v3507_v1  ;;  %v3439_v13 = vld [vmem:[%s4204_s4 + $0x318] sm:$0xff]  }
  0x81   : > { %3120 = vmatprep.subr.bf16.mxu1 %v3507_v1 }
  0x83   : > { %3101 = vmatpush3.bf16.msra.mxu0 %v3393_v15  ;;  %v3441_v15 = vld [vmem:[%s4204_s4 + $0x320] sm:$0xff]  }
  0x84   : > { %3121 = vmatpush3.bf16.msra.mxu1 %v3394_v17  ;;  %3102 = vmatprep.subr.bf16.mxu0 %v3507_v1  ;;  %v3443_v17 = vld [vmem:[%s4204_s4 + $0x328] sm:$0xff]  }
  0x85   : > { %3122 = vmatprep.subr.bf16.mxu1 %v3507_v1 }
  0x87   : > { %3103 = vmatpush3.bf16.msra.mxu0 %v3395_v18  ;;  %v3444_v18 = vld [vmem:[%s4204_s4 + $0x368] sm:$0xff]  }
  0x88   : > { %3123 = vmatpush3.bf16.msra.mxu1 %v3396_v23  ;;  %3128 = vmatprep.subr.bf16.mxu0 %v3507_v1  ;;  %v2713_v23 = vld [vmem:[%s3839_s7 + $0x8] sm:$0xf] }
  0x89   : > { %3148 = vmatprep.subr.bf16.mxu1 %v3507_v1 }
  0x8a   : > { %3105 = vmatmul.mubr.bf16.vlgmr.msra.gmra.mrb[12].mxu0 %v1122_v24  ;;  %v3449_v24 = vld [vmem:[%s4204_s4 + $0x380] sm:$0xff]  }
  0x8b   : > { %3125 = vmatmul.mubr.bf16.vlgmr.msra.gmra.mrb[12].mxu1 %v1243_v25  ;;  %3129 = vmatpush3.bf16.msra.mxu0 %v3399_v26  ;;  %v2738_v25 = vld [vmem:[%s3847_s13 + $0x8] sm:$0xf]  ;;  %v3450_v26 = vld [vmem:[%s4204_s4 + $0x3c0] sm:$0xff]  }
  0x8c   : > { %3149 = vmatpush3.bf16.msra.mxu1 %v3400_v27  ;;  %3130 = vmatprep.subr.bf16.mxu0 %v3507_v1  ;;  %v3451_v27 = vld [vmem:[%s4204_s4 + $0x388] sm:$0xff]  }
  0x8d   : > { %3150 = vmatprep.subr.bf16.mxu1 %v3507_v1  ;;  %3144 = vmatprep.mubr.msk.bf16.mxu0 %vm3508_vm0, %v3507_v1 }
  0x8e   : > { %3164 = vmatprep.mubr.msk.bf16.mxu1 %vm3508_vm0, %v3507_v1 }
  0x8f   : > { %3131 = vmatpush3.bf16.msra.mxu0 %v3401_v28  ;;  %v3452_v28 = vld [vmem:[%s4204_s4 + $0x3c8] sm:$0xff]  }
  0x90   : > { %3151 = vmatpush3.bf16.msra.mxu1 %v3402_v29  ;;  %3132 = vmatprep.subr.bf16.mxu0 %v3507_v1  ;;  %v3453_v29 = vld [vmem:[%s4204_s4 + $0x390] sm:$0xff]  }
  0x91   : > { %3152 = vmatprep.subr.bf16.mxu1 %v3507_v1 }
  0x93   : > { %3133 = vmatpush3.bf16.msra.mxu0 %v3403_v30  ;;  %v3454_v30 = vld [vmem:[%s4204_s4 + $0x3d0] sm:$0xff]  }
  0x94   : > { %3153 = vmatpush3.bf16.msra.mxu1 %v3404_v31  ;;  %3134 = vmatprep.subr.bf16.mxu0 %v3507_v1  ;;  %v3455_v31 = vld [vmem:[%s4204_s4 + $0x398] sm:$0xff]  }
  0x95   : > { %3154 = vmatprep.subr.bf16.mxu1 %v3507_v1 }
  0x97   : > { %3135 = vmatpush3.bf16.msra.mxu0 %v3405_v32  ;;  %v3456_v32 = vld [vmem:[%s4204_s4 + $0x3d8] sm:$0xff]  }
  0x98   : > { %3155 = vmatpush3.bf16.msra.mxu1 %v3406_v33  ;;  %3136 = vmatprep.subr.bf16.mxu0 %v3507_v1  ;;  %v3457_v33 = vld [vmem:[%s4204_s4 + $0x3a0] sm:$0xff]  }
  0x99   : > { %3156 = vmatprep.subr.bf16.mxu1 %v3507_v1 }
  0x9b   : > { %3137 = vmatpush3.bf16.msra.mxu0 %v3407_v34  ;;  %v3458_v34 = vld [vmem:[%s4204_s4 + $0x3e0] sm:$0xff]  }
  0x9c   : > { %3157 = vmatpush3.bf16.msra.mxu1 %v3408_v35  ;;  %3138 = vmatprep.subr.bf16.mxu0 %v3507_v1  ;;  %v3465_v35 = vld [vmem:[%s3839_s7 + $0x8] sm:$0x1f]  }
  0x9d   : > { %3158 = vmatprep.subr.bf16.mxu1 %v3507_v1 }
  0x9f   : > { %3139 = vmatpush3.bf16.msra.mxu0 %v3409_v36  ;;  %v3459_v36 = vld [vmem:[%s4204_s4 + $0x3a8] sm:$0xff]  }
  0xa0   : > { %3159 = vmatpush3.bf16.msra.mxu1 %v3410_v37  ;;  %3140 = vmatprep.subr.bf16.mxu0 %v3507_v1  ;;  %v3466_v37 = vld [vmem:[%s3847_s13 + $0x8] sm:$0x1f]  }
  0xa1   : > { %3160 = vmatprep.subr.bf16.mxu1 %v3507_v1 }
  0xa3   : > { %3141 = vmatpush3.bf16.msra.mxu0 %v3411_v38  ;;  %v3460_v38 = vld [vmem:[%s4204_s4 + $0x3e8] sm:$0xff]  }
  0xa4   : > { %3161 = vmatpush3.bf16.msra.mxu1 %v3412_v39  ;;  %3142 = vmatprep.subr.bf16.mxu0 %v3507_v1 }
  0xa5   : > { %3162 = vmatprep.subr.bf16.mxu1 %v3507_v1 }
  0xa7   : > { %3143 = vmatpush3.bf16.msra.mxu0 %v3413_v40 }
  0xa8   : > { %3163 = vmatpush3.bf16.msra.mxu1 %v3414_v41  ;;  %3168 = vmatprep.subr.bf16.mxu0 %v3507_v1 }
  0xa9   : > { %3188 = vmatprep.subr.bf16.mxu1 %v3507_v1 }
  0xaa   : > { %3145 = vmatmul.mubr.bf16.vlgmr.msra.gmra.mrb[16].mxu0 %v1334_v42  ;;  %v2033_v42 = vshll.u32 %v3465_v35, 16 }
  0xab   : > { %3165 = vmatmul.mubr.bf16.vlgmr.msra.gmra.mrb[16].mxu1 %v1441_v44  ;;  %3169 = vmatpush3.bf16.msra.mxu0 %v3415_v43 }
  0xac   : > { %3189 = vmatpush3.bf16.msra.mxu1 %v3416_v45  ;;  %3170 = vmatprep.subr.bf16.mxu0 %v3507_v1 }
  0xad   : > { %3190 = vmatprep.subr.bf16.mxu1 %v3507_v1  ;;  %3184 = vmatprep.mubr.msk.bf16.mxu0 %vm3508_vm0, %v3507_v1 }
  0xae   : > { %3204 = vmatprep.mubr.msk.bf16.mxu1 %vm3508_vm0, %v3507_v1 }
  0xaf   : > { %3171 = vmatpush3.bf16.msra.mxu0 %v3417_v46  ;;  %v3461_v46 = vld [vmem:[%s4204_s4 + $0x3b0] sm:$0xff]  }
  0xb0   : > { %3191 = vmatpush3.bf16.msra.mxu1 %v3418_v47  ;;  %3172 = vmatprep.subr.bf16.mxu0 %v3507_v1  ;;  %v2154_v47 = vshll.u32 %v3466_v37, 16 }
  0xb1   : > { %3192 = vmatprep.subr.bf16.mxu1 %v3507_v1 }
  0xb2   : > { %v2156_v56 = vrot.slane %v2154_v47, 1 }
  0xb3   : > { %3173 = vmatpush3.bf16.msra.mxu0 %v3419_v48 }
  0xb4   : > { %3193 = vmatpush3.bf16.msra.mxu1 %v3420_v49  ;;  %3174 = vmatprep.subr.bf16.mxu0 %v3507_v1 }
  0xb5   : > { %3194 = vmatprep.subr.bf16.mxu1 %v3507_v1 }
  0xb7   : > { %3175 = vmatpush3.bf16.msra.mxu0 %v3421_v50  ;;  %v3462_v50 = vld [vmem:[%s4204_s4 + $0x3f0] sm:$0xff]  }
  0xb8   : > { %3195 = vmatpush3.bf16.msra.mxu1 %v3422_v51  ;;  %3176 = vmatprep.subr.bf16.mxu0 %v3507_v1 }
  0xb9   : > { %3196 = vmatprep.subr.bf16.mxu1 %v3507_v1 }
  0xbb   : > { %3177 = vmatpush3.bf16.msra.mxu0 %v3423_v52  ;;  %v2031_v52 = vshrl.u32 %v3465_v35, 16 }
  0xbc   : > { %3197 = vmatpush3.bf16.msra.mxu1 %v3424_v53  ;;  %3178 = vmatprep.subr.bf16.mxu0 %v3507_v1  ;;  %v2035_v53 = vrot.slane %v2033_v42, 1 }
  0xbd   : > { %3198 = vmatprep.subr.bf16.mxu1 %v3507_v1 }
  0xbe   : > { %v2036_v58 = vor.u32 %v2035_v53, %v2031_v52 }
  0xbf   : > { %3179 = vmatpush3.bf16.msra.mxu0 %v3425_v55  ;;  %v2152_v55 = vshrl.u32 %v3466_v37, 16 }
  0xc0   : > { %3199 = vmatpush3.bf16.msra.mxu1 %v3426_v57  ;;  %3180 = vmatprep.subr.bf16.mxu0 %v3507_v1  ;;  %v3464_v57 = vld [vmem:[%s4204_s4 + $0x3f8] sm:$0xff]  }
  0xc1   : > { %3200 = vmatprep.subr.bf16.mxu1 %v3507_v1 }
  0xc3   : > { %3181 = vmatpush3.bf16.msra.mxu0 %v3427_v59  ;;  %v2157_v59 = vor.u32 %v2156_v56, %v2152_v55 }
  0xc4   : > { %3201 = vmatpush3.bf16.msra.mxu1 %v3428_v61  ;;  %3182 = vmatprep.subr.bf16.mxu0 %v3507_v1 }
  0xc5   : > { %3202 = vmatprep.subr.bf16.mxu1 %v3507_v1 }
  0xc7   : > { %3183 = vmatpush3.bf16.msra.mxu0 %v3429_v0 }
  0xc8   : > { %3203 = vmatpush3.bf16.msra.mxu1 %v3430_v4  ;;  %3208 = vmatprep.subr.bf16.mxu0 %v3507_v1 }
  0xc9   : > { %3228 = vmatprep.subr.bf16.mxu1 %v3507_v1 }
  0xca   : > { %3185 = vmatmul.mubr.bf16.vlgmr.msra.gmra.mrb[20].mxu0 %v1578_v5 }
  0xcb   : > { %3205 = vmatmul.mubr.bf16.vlgmr.msra.gmra.mrb[20].mxu1 %v1699_v6  ;;  %3209 = vmatpush3.bf16.msra.mxu0 %v3433_v7 }
  0xcc   : > { %3229 = vmatpush3.bf16.msra.mxu1 %v3434_v8  ;;  %3210 = vmatprep.subr.bf16.mxu0 %v3507_v1 }
  0xcd   : > { %3230 = vmatprep.subr.bf16.mxu1 %v3507_v1  ;;  %3224 = vmatprep.mubr.msk.bf16.mxu0 %vm3508_vm0, %v3507_v1 }
  0xce   : > { %3244 = vmatprep.mubr.msk.bf16.mxu1 %vm3508_vm0, %v3507_v1 }
  0xcf   : > { %3211 = vmatpush3.bf16.msra.mxu0 %v3435_v9 }
  0xd0   : > { %3231 = vmatpush3.bf16.msra.mxu1 %v3436_v10  ;;  %3212 = vmatprep.subr.bf16.mxu0 %v3507_v1 }
  0xd1   : > { %3232 = vmatprep.subr.bf16.mxu1 %v3507_v1 }
  0xd3   : > { %3213 = vmatpush3.bf16.msra.mxu0 %v3437_v11 }
  0xd4   : > { %3233 = vmatpush3.bf16.msra.mxu1 %v3438_v12  ;;  %3214 = vmatprep.subr.bf16.mxu0 %v3507_v1 }
  0xd5   : > { %3234 = vmatprep.subr.bf16.mxu1 %v3507_v1 }
  0xd7   : > { %3215 = vmatpush3.bf16.msra.mxu0 %v3439_v13 }
  0xd8   : > { %3235 = vmatpush3.bf16.msra.mxu1 %v3440_v14  ;;  %3216 = vmatprep.subr.bf16.mxu0 %v3507_v1 }
  0xd9   : > { %3236 = vmatprep.subr.bf16.mxu1 %v3507_v1 }
  0xdb   : > { %3217 = vmatpush3.bf16.msra.mxu0 %v3441_v15 }
  0xdc   : > { %3237 = vmatpush3.bf16.msra.mxu1 %v3442_v16  ;;  %3218 = vmatprep.subr.bf16.mxu0 %v3507_v1 }
  0xdd   : > { %3238 = vmatprep.subr.bf16.mxu1 %v3507_v1 }
  0xdf   : > { %3219 = vmatpush3.bf16.msra.mxu0 %v3443_v17 }
  0xe0   : > { %3239 = vmatpush3.bf16.msra.mxu1 %v3444_v18  ;;  %3220 = vmatprep.subr.bf16.mxu0 %v3507_v1 }
  0xe1   : > { %3240 = vmatprep.subr.bf16.mxu1 %v3507_v1 }
  0xe3   : > { %3221 = vmatpush3.bf16.msra.mxu0 %v3445_v19 }
  0xe4   : > { %3241 = vmatpush3.bf16.msra.mxu1 %v3446_v20  ;;  %3222 = vmatprep.subr.bf16.mxu0 %v3507_v1 }
  0xe5   : > { %3242 = vmatprep.subr.bf16.mxu1 %v3507_v1 }
  0xe7   : > { %3223 = vmatpush3.bf16.msra.mxu0 %v3447_v21 }
  0xe8   : > { %3243 = vmatpush3.bf16.msra.mxu1 %v3448_v22  ;;  %3248 = vmatprep.subr.bf16.mxu0 %v3507_v1 }
  0xe9   : > { %3268 = vmatprep.subr.bf16.mxu1 %v3507_v1 }
  0xea   : > { %3225 = vmatmul.mubr.bf16.vlgmr.msra.gmra.mrb[24].mxu0 %v2713_v23 }
  0xeb   : > { %3245 = vmatmul.mubr.bf16.vlgmr.msra.gmra.mrb[24].mxu1 %v2738_v25  ;;  %3249 = vmatpush3.bf16.msra.mxu0 %v3449_v24 }
  0xec   : > { %3269 = vmatpush3.bf16.msra.mxu1 %v3450_v26  ;;  %3250 = vmatprep.subr.bf16.mxu0 %v3507_v1 }
  0xed   : > { %3270 = vmatprep.subr.bf16.mxu1 %v3507_v1  ;;  %3264 = vmatprep.mubr.msk.bf16.mxu0 %vm3508_vm0, %v3507_v1 }
  0xee   : > { %3284 = vmatprep.mubr.msk.bf16.mxu1 %vm3508_vm0, %v3507_v1 }
  0xef   : > { %3251 = vmatpush3.bf16.msra.mxu0 %v3451_v27 }
  0xf0   : > { %3271 = vmatpush3.bf16.msra.mxu1 %v3452_v28  ;;  %3252 = vmatprep.subr.bf16.mxu0 %v3507_v1 }
  0xf1   : > { %3272 = vmatprep.subr.bf16.mxu1 %v3507_v1 }
  0xf3   : > { %3253 = vmatpush3.bf16.msra.mxu0 %v3453_v29 }
  0xf4   : > { %3273 = vmatpush3.bf16.msra.mxu1 %v3454_v30  ;;  %3254 = vmatprep.subr.bf16.mxu0 %v3507_v1 }
  0xf5   : > { %3274 = vmatprep.subr.bf16.mxu1 %v3507_v1 }
  0xf7   : > { %3255 = vmatpush3.bf16.msra.mxu0 %v3455_v31 }
  0xf8   : > { %3275 = vmatpush3.bf16.msra.mxu1 %v3456_v32  ;;  %3256 = vmatprep.subr.bf16.mxu0 %v3507_v1 }
  0xf9   : > { %3276 = vmatprep.subr.bf16.mxu1 %v3507_v1 }
  0xfb   : > { %3257 = vmatpush3.bf16.msra.mxu0 %v3457_v33 }
  0xfc   : > { %3277 = vmatpush3.bf16.msra.mxu1 %v3458_v34  ;;  %3258 = vmatprep.subr.bf16.mxu0 %v3507_v1 }
  0xfd   : > { %v540_v39 = vpop.f32.mrb[0].mxu0  ;;  %3278 = vmatprep.subr.bf16.mxu1 %v3507_v1 }
  0xfe   : > { %v628_v40 = vpop.f32.mrb[0].mxu1  ;;  %v2986_v41 = vpop.f32.mrb[1].mxu0 }
  0xff   : > { %v629_v43 = vadd.f32 %v628_v40, %v540_v39  ;;  %v3006_v44 = vpop.f32.mrb[1].mxu1  ;;  %v543_v45 = vpop.f32.mrb[2].mxu0  ;;  %3259 = vmatpush3.bf16.msra.mxu0 %v3459_v36 }
 0x100   : > { %v631_v48 = vpop.f32.mrb[2].mxu1  ;;  %3279 = vmatpush3.bf16.msra.mxu1 %v3460_v38  ;;  %v2987_v49 = vpop.f32.mrb[3].mxu0  ;;  %3260 = vmatprep.subr.bf16.mxu0 %v3507_v1 }
 0x101   : > { %v3007_v51 = vpop.f32.mrb[3].mxu1  ;;  %3280 = vmatprep.subr.bf16.mxu1 %v3507_v1 }
 0x103   : > { %3261 = vmatpush3.bf16.msra.mxu0 %v3461_v46 }
 0x104   : > { %3281 = vmatpush3.bf16.msra.mxu1 %v3462_v50  ;;  %3262 = vmatprep.subr.bf16.mxu0 %v3507_v1 }
 0x105   : > { %3282 = vmatprep.subr.bf16.mxu1 %v3507_v1 }
 0x107   : > { %3263 = vmatpush3.bf16.msra.mxu0 %v3463_v54 }
 0x108   : > { %3283 = vmatpush3.bf16.msra.mxu1 %v3464_v57 }
 0x10a   : > { %3265 = vmatmul.mubr.bf16.vlgmr.msra.gmra.mrb[28].mxu0 %v2036_v58 }
 0x10b   : > { %3285 = vmatmul.mubr.bf16.vlgmr.msra.gmra.mrb[28].mxu1 %v2157_v59 }
 0x11d   : > { %v748_v60 = vpop.f32.mrb[4].mxu0 }
 0x11e   : > { %v754_v61 = vadd.f32 %v748_v60, %v629_v43  ;;  %v869_v62 = vpop.f32.mrb[4].mxu1  ;;  %v3026_v63 = vpop.f32.mrb[5].mxu0  ;;  %v2817_v60 = vld [vmem:[%s4205_s5] ss:$0 sm:$0xff] }
 0x11f   : > { %v3046_v0 = vpop.f32.mrb[5].mxu1  ;;  %v751_v2 = vpop.f32.mrb[6].mxu0 }
 0x120   : > { %v875_v3 = vadd.f32 %v869_v62, %v754_v61  ;;  %v872_v4 = vpop.f32.mrb[6].mxu1  ;;  %v3027_v5 = vpop.f32.mrb[7].mxu0 }
 0x121   : > { %v3047_v6 = vpop.f32.mrb[7].mxu1 }
 0x13d   : > { %v977_v7 = vpop.f32.mrb[8].mxu0 }
 0x13e   : > { %v983_v8 = vadd.f32 %v977_v7, %v875_v3  ;;  %v1085_v9 = vpop.f32.mrb[8].mxu1  ;;  %v3066_v1 = vpop.f32.mrb[9].mxu0 }
 0x13f   : > { %v3086_v10 = vpop.f32.mrb[9].mxu1  ;;  %v980_v11 = vpop.f32.mrb[10].mxu0 }
 0x140   : > { %v1091_v12 = vadd.f32 %v1085_v9, %v983_v8  ;;  %v1088_v13 = vpop.f32.mrb[10].mxu1  ;;  %v3067_v14 = vpop.f32.mrb[11].mxu0 }
 0x141   : > { %v3087_v15 = vpop.f32.mrb[11].mxu1 }
 0x15d   : > { %v1206_v16 = vpop.f32.mrb[12].mxu0 }
 0x15e   : > { %v1212_v17 = vadd.f32 %v1206_v16, %v1091_v12  ;;  %v1327_v18 = vpop.f32.mrb[12].mxu1  ;;  %v3106_v19 = vpop.f32.mrb[13].mxu0 }
 0x15f   : > { %v3126_v20 = vpop.f32.mrb[13].mxu1  ;;  %v1209_v21 = vpop.f32.mrb[14].mxu0 }
 0x160   : > { %v1333_v22 = vadd.f32 %v1327_v18, %v1212_v17  ;;  %v1330_v23 = vpop.f32.mrb[14].mxu1  ;;  %v3107_v24 = vpop.f32.mrb[15].mxu0 }
 0x161   : > { %v3127_v25 = vpop.f32.mrb[15].mxu1 }
 0x17d   : > { %v1434_v26 = vpop.f32.mrb[16].mxu0 }
 0x17e   : > { %v1440_v27 = vadd.f32 %v1434_v26, %v1333_v22  ;;  %v1541_v28 = vpop.f32.mrb[16].mxu1  ;;  %v3146_v29 = vpop.f32.mrb[17].mxu0 }
 0x17f   : > { %v3166_v30 = vpop.f32.mrb[17].mxu1  ;;  %v1437_v31 = vpop.f32.mrb[18].mxu0 }
 0x180   : > { %v1547_v32 = vadd.f32 %v1541_v28, %v1440_v27  ;;  %v1544_v33 = vpop.f32.mrb[18].mxu1  ;;  %v3147_v34 = vpop.f32.mrb[19].mxu0 }
 0x181   : > { %v3167_v35 = vpop.f32.mrb[19].mxu1 }
 0x19d   : > { %v1662_v36 = vpop.f32.mrb[20].mxu0 }
 0x19e   : > { %v1668_v37 = vadd.f32 %v1662_v36, %v1547_v32  ;;  %v1783_v38 = vpop.f32.mrb[20].mxu1  ;;  %v3186_v39 = vpop.f32.mrb[21].mxu0 }
 0x19f   : > { %v3206_v40 = vpop.f32.mrb[21].mxu1  ;;  %v1665_v41 = vpop.f32.mrb[22].mxu0 }
 0x1a0   : > { %v1789_v42 = vadd.f32 %v1783_v38, %v1668_v37  ;;  %v1786_v43 = vpop.f32.mrb[22].mxu1  ;;  %v3187_v44 = vpop.f32.mrb[23].mxu0 }
 0x1a1   : > { %v3207_v45 = vpop.f32.mrb[23].mxu1 }
 0x1bd   : > { %v1891_v46 = vpop.f32.mrb[24].mxu0 }
 0x1be   : > { %v1897_v47 = vadd.f32 %v1891_v46, %v1789_v42  ;;  %v1999_v48 = vpop.f32.mrb[24].mxu1  ;;  %v3226_v49 = vpop.f32.mrb[25].mxu0 }
 0x1bf   : > { %v3246_v50 = vpop.f32.mrb[25].mxu1  ;;  %v1894_v51 = vpop.f32.mrb[26].mxu0 }
 0x1c0   : > { %v2005_v52 = vadd.f32 %v1999_v48, %v1897_v47  ;;  %v2002_v53 = vpop.f32.mrb[26].mxu1  ;;  %v3227_v54 = vpop.f32.mrb[27].mxu0 }
 0x1c1   : > { %v3247_v55 = vpop.f32.mrb[27].mxu1 }
 0x1dd   : > { %v2120_v56 = vpop.f32.mrb[28].mxu0 }
 0x1de   : > { %v2126_v57 = vadd.f32 %v2120_v56, %v2005_v52  ;;  %v2241_v58 = vpop.f32.mrb[28].mxu1  ;;  %v3266_v59 = vpop.f32.mrb[29].mxu0 }
 0x1df   : > { %v3286_v61 = vpop.f32.mrb[29].mxu1  ;;  %v2123_v62 = vpop.f32.mrb[30].mxu0 }
 0x1e0   : > { %v2247_v63 = vadd.f32 %v2241_v58, %v2126_v57  ;;  %v2244_v0 = vpop.f32.mrb[30].mxu1  ;;  %v3267_v2 = vpop.f32.mrb[31].mxu0 }
 0x1e1   : > { %v3287_v3 = vpop.f32.mrb[31].mxu1 }
 0x1e2   : > { %v2255_v4 = vadd.f32 %v2817_v60, %v2247_v63 }
 0x1e4   : > { %v2256_v5 = vpack.c.bf16 %v2255_v4, %v2255_v4 }
 0x1e6   : > { %2257 = vst [vmem:[%s421_s22] sm:$0xf] %v2256_v5 }
 0x1e7 PF: > { %s16_s25 = sadd.s32 1, %s3505_s25   ;;  %s4207_s21 = smov %s3497_s23 }
 0x1e8   : > { %p13_p9 = scmp.ge.s32.totalorder %s16_s25, 18   ;;  %s4208_s22 = smov %s3501_s24 }
 0x1e9   : > { %s4209_s23 = smov %s4212_s26  ;;  %s4210_s24 = smov %s4216_s27 }
 0x1ea   :  { %15 = sbr.rel (!%p13_p9) target bundleno = 3 (0x3), region = 102 }

// kernel: discriminator_forward.14
= control target key start
LH: loop header
LB: loop body
LE: loop exit
PB: predicated region body
PF: predicated region fallthrough
CT: control target
= control target key end

     0   :  { %s272_s6 = smov 0   ;;  %s299_s0 = inlined_call_operand.vmem [shape: bf16[2,9,128], index: 0, kind: input, shape index: {}]   ;;  %s300_s1 = inlined_call_operand.vmem [shape: bf16[2,9,128], index: 1, kind: output, shape index: {}]  }
   0x1 LB: > { %s227_s7 = sadd.s32 4294967295, %s260_s6   ;;  %p231_p0 = scmp.ge.s32.totalorder %s260_s6, 1  ;;  %s260_s6 = sphi %s272_s6, %s11_s6  }
   0x2   : > { %p87_p1 = scmp.lt.s32.totalorder %s260_s6, 3 }
   0x4   : > { %p88_p2 = pnand %p231_p0, %p87_p1 }
   0x5   : > { %p107_p3 = scmp.lt.s32.totalorder (!%p88_p2), %s227_s7, 1  ;;  %vm121_vm0 = vcmask (!%p88_p2), 1040384   ;;  %vm167_vm1 = vsmask.f32 (!%p88_p2), 256 }
   0x6   : > { %91 = sbr.rel (%p88_p2) target bundleno = 64 (0x40), region = 24  ;;  %vm168_vm4 = vmand (!%p88_p2), %vm121_vm0, %vm167_vm1 }
   0xd   : > { %s302_s7 = smov (!%p107_p3, %s227_s7), 1 }
   0xe   : > { %s240_s8 = sshll.u32 %s302_s7, 3 }
   0xf   : > { %s111_s11 = scalar_lea.vmem %s299_s0, %s240_s8  ;;  %s116_s14 = scalar_lea.vmem %s300_s1, %s240_s8 }
  0x10   : > { %v117_v0 = vld [vmem:[%s111_s11] sm:$0xf]  ;;  %v118_v1 = vld [vmem:[%s111_s11 + $0x4] sm:$0x1] }
  0x11   : > { %v119_v2 = vunpack.c.l.bf16 %v117_v0  ;;  %v120_v3 = vunpack.c.l.bf16 %v118_v1  ;;  %v169_v37 = vld [vmem:[%s116_s14 + $0x4] sm:$0x1] }
  0x13   : > { %v122_v4 = vsel %vm121_vm0, %v120_v3, 0.0  ;;  %v131_v5 = vmul.f32 %v119_v2, %v119_v2  ;;  %v132_v6 = vmul.f32 %v120_v3, %v120_v3 }
  0x14   : > { %v123_v7 = vadd.f32 %v122_v4, %v119_v2 }
  0x15   : > { %v133_v8 = vsel %vm121_vm0, %v132_v6, 0.0 }
  0x16   : > { %v124_v9 = vrot.slane %v123_v7, 4  ;;  %v134_v10 = vadd.f32 %v133_v8, %v131_v5 }
  0x18   : > { %v125_v11 = vadd.f32 %v124_v9, %v123_v7  ;;  %v135_v12 = vrot.slane %v134_v10, 4 }
  0x1a   : > { %v126_v13 = vrot.slane %v125_v11, 2  ;;  %v136_v14 = vadd.f32 %v135_v12, %v134_v10 }
  0x1c   : > { %v127_v15 = vadd.f32 %v126_v13, %v125_v11  ;;  %v137_v16 = vrot.slane %v136_v14, 2 }
  0x1e   : > { %v128_v17 = vrot.slane %v127_v15, 1  ;;  %v138_v18 = vadd.f32 %v137_v16, %v136_v14 }
  0x20   : > { %v129_v19 = vadd.f32 %v128_v17, %v127_v15  ;;  %v139_v20 = vrot.slane %v138_v18, 1 }
  0x22   : > { %v130_v21 = vmul.f32 0.11111111, %v129_v19  ;;  %v140_v22 = vadd.f32 %v139_v20, %v138_v18 }
  0x24   : > { %v141_v23 = vmul.f32 0.11111111, %v140_v22  ;;  %v142_v24 = vmul.f32 %v130_v21, %v130_v21  ;;  %v145_v28 = vsub.f32 %v119_v2, %v130_v21  ;;  %v146_v29 = vsub.f32 %v120_v3, %v130_v21 }
  0x26   : > { %v143_v25 = vsub.f32 %v141_v23, %v142_v24 }
  0x28   : > { %v144_v26 = vmax.f32 %v143_v25, 0.0 }
  0x2a   : > { %v147_v27 = vadd.f32 1e-05, %v144_v26 }
  0x2c   : > { %252 = vrsqrt.f32 %v147_v27 }
  0x36   : > { %v253_v30 = vpop.eup %252 }
  0x37   : > { %v149_v31 = vmul.f32 %v253_v30, %v145_v28  ;;  %v150_v32 = vmul.f32 %v253_v30, %v146_v29 }
  0x39   : > { %vm151_vm2 = vcmp.ge.f32.partialorder %v149_v31, 0.0  ;;  %v153_v33 = vmul.f32 0.2, %v149_v31  ;;  %vm152_vm3 = vcmp.ge.f32.partialorder %v150_v32, 0.0  ;;  %v154_v34 = vmul.f32 0.2, %v150_v32 }
  0x3b   : > { %v155_v35 = vsel %vm151_vm2, %v149_v31, %v153_v33  ;;  %v156_v36 = vsel %vm152_vm3, %v150_v32, %v154_v34 }
  0x3c   : > { %v242_v38 = vpack.c.bf16 %v155_v35, %v155_v35  ;;  %v243_v39 = vpack.c.bf16 %v156_v36, %v156_v36 }
  0x3e   : > { %165 = vst [vmem:[%s116_s14] sm:$0xf] %v242_v38  ;;  %v170_v40 = vsel %vm168_vm4, %v243_v39, %v169_v37 }
  0x3f   : > { %171 = vst [vmem:[%s116_s14 + $0x4] sm:$0x1] %v170_v40 }
  0x40 PF: > { %s11_s6 = sadd.s32 1, %s260_s6  }
  0x41   : > { %p8_p4 = scmp.ge.s32.totalorder %s11_s6, 4  }
  0x43   :  { %10 = sbr.rel (!%p8_p4) target bundleno = 1 (0x1), region = 54 }

// kernel: discriminator_forward.11
= control target key start
LH: loop header
LB: loop body
LE: loop exit
PB: predicated region body
PF: predicated region fallthrough
CT: control target
= control target key end

     0   :  { %s3488_s21 = smov 0   ;;  %s3490_s22 = smov 0   ;;  %s4144_s0 = inlined_call_operand.vmem [shape: bf16[2,10,5,128], index: 0, kind: input, shape index: {}, may-alias: {0,1}]   ;;  %s4145_s1 = inlined_call_operand.vmem [shape: bf16[2,10,5,128], index: 1, kind: input, shape index: {}, may-alias: {0,1}]   ;;  %s4146_s2 = inlined_call_operand.vmem [shape: bf16[2,10,5,128], index: 2, kind: input, shape index: {}, may-alias: {2,3}]   ;;  %s4147_s3 = inlined_call_operand.vmem [shape: bf16[2,10,5,128], index: 3, kind: input, shape index: {}, may-alias: {2,3}]   ;;  %s4148_s4 = inlined_call_operand.vmem [shape: bf16[4,4,128,128], index: 4, kind: input, shape index: {}]   ;;  %s4149_s5 = inlined_call_operand.vmem [shape: f32[1,128], index: 5, kind: input, shape index: {}]   ;;  %s4150_s6 = inlined_call_operand.vmem [shape: bf16[2,4,4,128], index: 6, kind: output, shape index: {}]  }
   0x1   :  { %s3492_s23 = smov 0   ;;  %s3494_s24 = smov 0  }
   0x2   :  { %s3496_s25 = smov 0  }
   0x3 LB: > { %s25_s26 = sadd.s32 1, %s3441_s23  ;;  %s28_s27 = sadd.s32 1, %s3445_s24  ;;  %s3449_s25 = sphi %s3496_s25, %s16_s25   ;;  %s3445_s24 = sphi %s3494_s24, %s4154_s24   ;;  %s3441_s23 = sphi %s3492_s23, %s4153_s23   ;;  %s3437_s22 = sphi %s3490_s22, %s4152_s22   ;;  %s3433_s21 = sphi %s3488_s21, %s4151_s21  }
   0x4   : > { %p26_p0 = scmp.ge.s32.totalorder %s25_s26, 4  ;;  %p2366_p1 = scmp.ge.s32.totalorder %s3449_s25, 1 }
   0x5   : > { %p292_p2 = scmp.lt.s32.totalorder %s3449_s25, 9 }
   0x6   : > { %s4156_s26 = smov (%p26_p0, %s25_s26), 0  ;;  %s4158_s27 = smov (!%p26_p0, %s28_s27), %s3445_s24 }
   0x7   : > { %p293_p3 = pnand %p2366_p1, %p292_p2  ;;  %p30_p4 = scmp.ge.s32.totalorder %s4158_s27, 2 }
   0x8   : > { %v3275_v0 = vld [vmem:[%s4148_s4 + $0x40] sm:$0xff] (!%p293_p3)   ;;  %v3451_v1 = vmov (!%p293_p3), 0.0   ;;  %v3277_v3 = vld [vmem:[%s4148_s4 + $0x48] sm:$0xff] (!%p293_p3)   ;;  %vm3452_vm0 = vmmov (!%p293_p3), 0   ;;  %s3536_s10 = sshll.u32 (!%p293_p3), %s3433_s21, 1  ;;  %p359_p5 = scmp.lt.s32.totalorder (!%p293_p3), %s3437_s22, 1 }
   0x9   : > { %s4160_s27 = smov (%p30_p4, %s4158_s27), 0  ;;  %296 = sbr.rel (%p293_p3) target bundleno = 487 (0x1e7), region = 44 }
   0xa   : > { %2912 = vmatprep.subr.bf16.mxu0 (!%p293_p3), %v3451_v1  ;;  %2932 = vmatprep.subr.bf16.mxu1 (!%p293_p3), %v3451_v1  ;;  %v3276_v2 = vld [vmem:[%s4148_s4] sm:$0xff] (!%p293_p3)   ;;  %v3278_v4 = vld [vmem:[%s4148_s4 + $0x8] sm:$0xff] (!%p293_p3)   ;;  %p361_p6 = scmp.lt.s32.totalorder (!%p293_p3), %s3536_s10, 9  ;;  %v3279_v5 = vld [vmem:[%s4148_s4 + $0x50] sm:$0xff] (!%p293_p3)   ;;  %s2765_s30 = sadd.s32 (!%p293_p3), 2, %s3536_s10 }
   0xb   : > { %2913 = vmatpush3.bf16.msra.mxu0 (!%p293_p3), %v3275_v0  ;;  %2928 = vmatprep.mubr.msk.bf16.mxu0 (!%p293_p3), %vm3452_vm0, %v3451_v1  ;;  %v3280_v6 = vld [vmem:[%s4148_s4 + $0x10] sm:$0xff] (!%p293_p3)   ;;  %v3281_v7 = vld [vmem:[%s4148_s4 + $0x58] sm:$0xff] (!%p293_p3)   ;;  %v3283_v9 = vld [vmem:[%s4148_s4 + $0x60] sm:$0xff] (!%p293_p3)   ;;  %p372_p7 = scmp.lt.s32.totalorder (!%p293_p3), %s2765_s30, 9  ;;  %p404_p8 = scmp.lt.s32.totalorder (!%p293_p3), %s3433_s21, 3 }
   0xc   : > { %2933 = vmatpush3.bf16.msra.mxu1 (!%p293_p3), %v3276_v2  ;;  %2914 = vmatprep.subr.bf16.mxu0 (!%p293_p3), %v3451_v1  ;;  %v3282_v8 = vld [vmem:[%s4148_s4 + $0x18] sm:$0xff] (!%p293_p3)   ;;  %v3284_v10 = vld [vmem:[%s4148_s4 + $0x20] sm:$0xff] (!%p293_p3)   ;;  %v3285_v11 = vld [vmem:[%s4148_s4 + $0x68] sm:$0xff] (!%p293_p3)  }
   0xd   : > { %2934 = vmatprep.subr.bf16.mxu1 (!%p293_p3), %v3451_v1  ;;  %2948 = vmatprep.mubr.msk.bf16.mxu1 (!%p293_p3), %vm3452_vm0, %v3451_v1  ;;  %v3286_v12 = vld [vmem:[%s4148_s4 + $0x28] sm:$0xff] (!%p293_p3)   ;;  %v3287_v13 = vld [vmem:[%s4148_s4 + $0x70] sm:$0xff] (!%p293_p3)   ;;  %v3289_v15 = vld [vmem:[%s4148_s4 + $0x78] sm:$0xff] (!%p293_p3)  }
   0xe   : > { %v3288_v14 = vld [vmem:[%s4148_s4 + $0x30] sm:$0xff] (!%p293_p3)   ;;  %v3290_v16 = vld [vmem:[%s4148_s4 + $0x38] sm:$0xff] (!%p293_p3)   ;;  %v3295_v19 = vld [vmem:[%s4148_s4 + $0x80] sm:$0xff] (!%p293_p3)  }
   0xf   : > { %2915 = vmatpush3.bf16.msra.mxu0 (!%p293_p3), %v3277_v3  ;;  %v3296_v20 = vld [vmem:[%s4148_s4 + $0xc0] sm:$0xff] (!%p293_p3)   ;;  %v3297_v21 = vld [vmem:[%s4148_s4 + $0x88] sm:$0xff] (!%p293_p3)   ;;  %v3299_v23 = vld [vmem:[%s4148_s4 + $0x90] sm:$0xff] (!%p293_p3)  }
  0x10   : > { %s4162_s22 = smov (!%p359_p5, %s3437_s22), 1  ;;  %2935 = vmatpush3.bf16.msra.mxu1 %v3278_v4  ;;  %2916 = vmatprep.subr.bf16.mxu0 %v3451_v1  ;;  %v3298_v22 = vld [vmem:[%s4148_s4 + $0xc8] sm:$0xff]   ;;  %s4164_s30 = smov (!%p372_p7, %s2765_s30), 9  ;;  %v3300_v24 = vld [vmem:[%s4148_s4 + $0xd0] sm:$0xff]   ;;  %v3301_v25 = vld [vmem:[%s4148_s4 + $0x98] sm:$0xff]  }
  0x11   : > { %s362_s15 = scalar_select %p361_p6, %s3536_s10, 9  ;;  %2936 = vmatprep.subr.bf16.mxu1 %v3451_v1  ;;  %v3302_v26 = vld [vmem:[%s4148_s4 + $0xd8] sm:$0xff]   ;;  %v3303_v27 = vld [vmem:[%s4148_s4 + $0xa0] sm:$0xff]   ;;  %v3305_v31 = vld [vmem:[%s4148_s4 + $0xa8] sm:$0xff]  }
  0x12   : > { %s3232_s18 = smul.u32 10, %s4162_s22  ;;  %v3304_v29 = vld [vmem:[%s4148_s4 + $0xe0] sm:$0xff]   ;;  %v3306_v32 = vld [vmem:[%s4148_s4 + $0xe8] sm:$0xff]   ;;  %v3307_v34 = vld [vmem:[%s4148_s4 + $0xb0] sm:$0xff]   ;;  %s4166_s21 = smov (!%p404_p8, %s3433_s21), 3 }
  0x13   : > { %2917 = vmatpush3.bf16.msra.mxu0 %v3279_v5  ;;  %v3308_v36 = vld [vmem:[%s4148_s4 + $0xf0] sm:$0xff]   ;;  %v3309_v40 = vld [vmem:[%s4148_s4 + $0xb8] sm:$0xff]   ;;  %v3311_v45 = vld [vmem:[%s4148_s4 + $0x100] sm:$0xff]  }
  0x14   : > { %s364_s19 = sadd.s32 %s3232_s18, %s362_s15  ;;  %2937 = vmatpush3.bf16.msra.mxu1 %v3280_v6  ;;  %2918 = vmatprep.subr.bf16.mxu0 %v3451_v1  ;;  %s3637_s10 = sadd.s32 %s3232_s18, %s4164_s30  ;;  %v3310_v42 = vld [vmem:[%s4148_s4 + $0xf8] sm:$0xff]   ;;  %v3312_v46 = vld [vmem:[%s4148_s4 + $0x140] sm:$0xff]   ;;  %v3313_v47 = vld [vmem:[%s4148_s4 + $0x108] sm:$0xff]  }
  0x15   : > { %2938 = vmatprep.subr.bf16.mxu1 %v3451_v1  ;;  %s2368_s7 = sshll.u32 %s364_s19, 2  ;;  %v3314_v48 = vld [vmem:[%s4148_s4 + $0x148] sm:$0xff]   ;;  %v3315_v49 = vld [vmem:[%s4148_s4 + $0x110] sm:$0xff]   ;;  %v3317_v51 = vld [vmem:[%s4148_s4 + $0x118] sm:$0xff]   ;;  %s2370_s14 = sshll.u32 %s3637_s10, 2 }
  0x16   : > { %s3580_s15 = scalar_lea.vmem %s4146_s2, %s2368_s7  ;;  %s3586_s19 = scalar_lea.vmem %s4144_s0, %s2368_s7  ;;  %v3316_v50 = vld [vmem:[%s4148_s4 + $0x150] sm:$0xff]   ;;  %v3318_v52 = vld [vmem:[%s4148_s4 + $0x158] sm:$0xff]   ;;  %v3319_v53 = vld [vmem:[%s4148_s4 + $0x120] sm:$0xff]  }
  0x17   : > { %2919 = vmatpush3.bf16.msra.mxu0 %v3281_v7  ;;  %v428_v17 = vld [vmem:[%s3580_s15] sm:$0x3]  ;;  %v3321_v55 = vld [vmem:[%s4148_s4 + $0x128] sm:$0xff]   ;;  %s3745_s10 = scalar_lea.vmem %s4145_s1, %s2370_s14  ;;  %v3323_v57 = vld [vmem:[%s4148_s4 + $0x130] sm:$0xff]   ;;  %s3753_s11 = scalar_lea.vmem %s4147_s3, %s2370_s14 }
  0x18   : > { %2939 = vmatpush3.bf16.msra.mxu1 %v3282_v8  ;;  %2920 = vmatprep.subr.bf16.mxu0 %v3451_v1  ;;  %v411_v18 = vld [vmem:[%s3586_s19] sm:$0x3]  ;;  %v3322_v56 = vld [vmem:[%s4148_s4 + $0x168] sm:$0xff]   ;;  %v3324_v58 = vld [vmem:[%s4148_s4 + $0x170] sm:$0xff]  }
  0x19   : > { %2940 = vmatprep.subr.bf16.mxu1 %v3451_v1  ;;  %v3293_v28 = vld [vmem:[%s3586_s19] ss:$0 sps:$4 sm:$0x77]   ;;  %v3325_v59 = vld [vmem:[%s4148_s4 + $0x138] sm:$0xff]   ;;  %v2459_v61 = vld [vmem:[%s3586_s19 + $0x4] sm:$0x3] }
  0x1a   : > { %v3291_v30 = vld [vmem:[%s3580_s15] ss:$0 sps:$4 sm:$0x77]   ;;  %v646_v33 = vshll.u32 %v3293_v28, 16  ;;  %v644_v38 = vshrl.u32 %v3293_v28, 16  ;;  %v3326_v60 = vld [vmem:[%s4148_s4 + $0x178] sm:$0xff]  }
  0x1b   : > { %2921 = vmatpush3.bf16.msra.mxu0 %v3283_v9  ;;  %v764_v35 = vshll.u32 %v3291_v30, 16  ;;  %v762_v37 = vshrl.u32 %v3291_v30, 16  ;;  %v3320_v54 = vld [vmem:[%s4148_s4 + $0x160] sm:$0xff]   ;;  %v3329_v2 = vld [vmem:[%s4148_s4 + $0x188] sm:$0xff]   ;;  %v3331_v4 = vld [vmem:[%s4148_s4 + $0x190] sm:$0xff]  }
  0x1c   : > { %2941 = vmatpush3.bf16.msra.mxu1 %v3284_v10  ;;  %2922 = vmatprep.subr.bf16.mxu0 %v3451_v1  ;;  %v648_v39 = vrot.slane %v646_v33, 1  ;;  %v2484_v62 = vld [vmem:[%s3580_s15 + $0x4] sm:$0x3]  ;;  %v3330_v3 = vld [vmem:[%s4148_s4 + $0x1c8] sm:$0xff]   ;;  %v3332_v5 = vld [vmem:[%s4148_s4 + $0x1d0] sm:$0xff]  }
  0x1d   : > { %2942 = vmatprep.subr.bf16.mxu1 %v3451_v1  ;;  %v766_v41 = vrot.slane %v764_v35, 1  ;;  %v3327_v63 = vld [vmem:[%s4148_s4 + $0x180] sm:$0xff]   ;;  %v3333_v6 = vld [vmem:[%s4148_s4 + $0x198] sm:$0xff]   ;;  %v3345_v28 = vld [vmem:[%s4148_s4 + $0x208] sm:$0xff]  }
  0x1e   : > { %v649_v43 = vor.u32 %v648_v39, %v644_v38  ;;  %v3328_v0 = vld [vmem:[%s4148_s4 + $0x1c0] sm:$0xff]   ;;  %v3334_v7 = vld [vmem:[%s4148_s4 + $0x1d8] sm:$0xff]   ;;  %v3347_v30 = vld [vmem:[%s4148_s4 + $0x210] sm:$0xff]  }
  0x1f   : > { %2923 = vmatpush3.bf16.msra.mxu0 %v3285_v11  ;;  %v767_v44 = vor.u32 %v766_v41, %v762_v37  ;;  %v3335_v8 = vld [vmem:[%s4148_s4 + $0x1a0] sm:$0xff]   ;;  %v3350_v33 = vld [vmem:[%s4148_s4 + $0x258] sm:$0xff]   ;;  %v3354_v37 = vld [vmem:[%s4148_s4 + $0x268] sm:$0xff]  }
  0x20   : > { %2943 = vmatpush3.bf16.msra.mxu1 %v3286_v12  ;;  %2924 = vmatprep.subr.bf16.mxu0 %v3451_v1  ;;  %v3294_v9 = vld [vmem:[%s3586_s19 + $0x4] ss:$0 sps:$4 sm:$0x77]   ;;  %v3337_v12 = vld [vmem:[%s4148_s4 + $0x1a8] sm:$0xff]   ;;  %v3355_v38 = vld [vmem:[%s4148_s4 + $0x230] sm:$0xff]   ;;  %s2375_s19 = sshll.u32 %s4162_s22, 2 }
  0x21   : > { %2944 = vmatprep.subr.bf16.mxu1 %v3451_v1  ;;  %v3336_v10 = vld [vmem:[%s4148_s4 + $0x1e0] sm:$0xff]   ;;  %v3356_v39 = vld [vmem:[%s4148_s4 + $0x270] sm:$0xff]   ;;  %v3358_v41 = vld [vmem:[%s4148_s4 + $0x278] sm:$0xff]   ;;  %s407_s17 = sadd.s32 %s2375_s19, %s4166_s21 }
  0x22   : > { %v3292_v11 = vld [vmem:[%s3580_s15 + $0x4] ss:$0 sps:$4 sm:$0x77]   ;;  %s2376_s20 = sshll.u32 %s407_s17, 1 }
  0x23   : > { %2925 = vmatpush3.bf16.msra.mxu0 %v3287_v13  ;;  %v3338_v13 = vld [vmem:[%s4148_s4 + $0x1e8] sm:$0xff]   ;;  %v3352_v35 = vld [vmem:[%s4148_s4 + $0x260] sm:$0xff]   ;;  %s409_s22 = scalar_lea.vmem %s4150_s6, %s2376_s20 }
  0x24   : > { %2945 = vmatpush3.bf16.msra.mxu1 %v3288_v14  ;;  %2926 = vmatprep.subr.bf16.mxu0 %v3451_v1  ;;  %v1098_v14 = vshll.u32 %v3294_v9, 16 }
  0x25   : > { %2946 = vmatprep.subr.bf16.mxu1 %v3451_v1 }
  0x27   : > { %2927 = vmatpush3.bf16.msra.mxu0 %v3289_v15  ;;  %v3339_v15 = vld [vmem:[%s4148_s4 + $0x1b0] sm:$0xff]  }
  0x28   : > { %2947 = vmatpush3.bf16.msra.mxu1 %v3290_v16  ;;  %2952 = vmatprep.subr.bf16.mxu0 %v3451_v1  ;;  %v1216_v16 = vshll.u32 %v3292_v11, 16 }
  0x29   : > { %2972 = vmatprep.subr.bf16.mxu1 %v3451_v1 }
  0x2a   : > { %2929 = vmatmul.mubr.bf16.vlgmr.msra.gmra.mrb[0].mxu0 %v428_v17  ;;  %v3340_v17 = vld [vmem:[%s4148_s4 + $0x1f0] sm:$0xff]  }
  0x2b   : > { %2949 = vmatmul.mubr.bf16.vlgmr.msra.gmra.mrb[0].mxu1 %v411_v18  ;;  %2953 = vmatpush3.bf16.msra.mxu0 %v3295_v19  ;;  %v1096_v18 = vshrl.u32 %v3294_v9, 16  ;;  %v1100_v19 = vrot.slane %v1098_v14, 1  ;;  %v3379_v9 = vld [vmem:[%s4148_s4 + $0x308] sm:$0xff]   ;;  %v3384_v14 = vld [vmem:[%s4148_s4 + $0x358] sm:$0xff]  }
  0x2c   : > { %2973 = vmatpush3.bf16.msra.mxu1 %v3296_v20  ;;  %2954 = vmatprep.subr.bf16.mxu0 %v3451_v1  ;;  %v1214_v20 = vshrl.u32 %v3292_v11, 16  ;;  %v3381_v11 = vld [vmem:[%s4148_s4 + $0x310] sm:$0xff]  }
  0x2d   : > { %2974 = vmatprep.subr.bf16.mxu1 %v3451_v1  ;;  %2968 = vmatprep.mubr.msk.bf16.mxu0 %vm3452_vm0, %v3451_v1 }
  0x2e   : > { %2988 = vmatprep.mubr.msk.bf16.mxu1 %vm3452_vm0, %v3451_v1 }
  0x2f   : > { %2955 = vmatpush3.bf16.msra.mxu0 %v3297_v21  ;;  %v3341_v21 = vld [vmem:[%s4148_s4 + $0x1b8] sm:$0xff]  }
  0x30   : > { %2975 = vmatpush3.bf16.msra.mxu1 %v3298_v22  ;;  %2956 = vmatprep.subr.bf16.mxu0 %v3451_v1  ;;  %v1218_v22 = vrot.slane %v1216_v16, 1  ;;  %v3386_v16 = vld [vmem:[%s4148_s4 + $0x360] sm:$0xff]  }
  0x31   : > { %2976 = vmatprep.subr.bf16.mxu1 %v3451_v1 }
  0x33   : > { %2957 = vmatpush3.bf16.msra.mxu0 %v3299_v23  ;;  %v3342_v23 = vld [vmem:[%s4148_s4 + $0x1f8] sm:$0xff]  }
  0x34   : > { %2977 = vmatpush3.bf16.msra.mxu1 %v3300_v24  ;;  %2958 = vmatprep.subr.bf16.mxu0 %v3451_v1  ;;  %v1101_v24 = vor.u32 %v1100_v19, %v1096_v18  ;;  %v3388_v18 = vld [vmem:[%s4148_s4 + $0x368] sm:$0xff]   ;;  %v3389_v19 = vld [vmem:[%s4148_s4 + $0x330] sm:$0xff]  }
  0x35   : > { %2978 = vmatprep.subr.bf16.mxu1 %v3451_v1 }
  0x37   : > { %2959 = vmatpush3.bf16.msra.mxu0 %v3301_v25  ;;  %v1219_v25 = vor.u32 %v1218_v22, %v1214_v20  ;;  %v3390_v20 = vld [vmem:[%s4148_s4 + $0x370] sm:$0xff]   ;;  %v3392_v22 = vld [vmem:[%s4148_s4 + $0x378] sm:$0xff]  }
  0x38   : > { %2979 = vmatpush3.bf16.msra.mxu1 %v3302_v26  ;;  %2960 = vmatprep.subr.bf16.mxu0 %v3451_v1  ;;  %v3343_v26 = vld [vmem:[%s4148_s4 + $0x200] sm:$0xff]  }
  0x39   : > { %2980 = vmatprep.subr.bf16.mxu1 %v3451_v1 }
  0x3b   : > { %2961 = vmatpush3.bf16.msra.mxu0 %v3303_v27  ;;  %v3344_v27 = vld [vmem:[%s4148_s4 + $0x240] sm:$0xff]  }
  0x3c   : > { %2981 = vmatpush3.bf16.msra.mxu1 %v3304_v29  ;;  %2962 = vmatprep.subr.bf16.mxu0 %v3451_v1  ;;  %v3346_v29 = vld [vmem:[%s4148_s4 + $0x248] sm:$0xff]  }
  0x3d   : > { %2982 = vmatprep.subr.bf16.mxu1 %v3451_v1 }
  0x3f   : > { %2963 = vmatpush3.bf16.msra.mxu0 %v3305_v31  ;;  %v3348_v31 = vld [vmem:[%s4148_s4 + $0x250] sm:$0xff]  }
  0x40   : > { %2983 = vmatpush3.bf16.msra.mxu1 %v3306_v32  ;;  %2964 = vmatprep.subr.bf16.mxu0 %v3451_v1  ;;  %v3349_v32 = vld [vmem:[%s4148_s4 + $0x218] sm:$0xff]  }
  0x41   : > { %2984 = vmatprep.subr.bf16.mxu1 %v3451_v1 }
  0x43   : > { %2965 = vmatpush3.bf16.msra.mxu0 %v3307_v34  ;;  %v3351_v34 = vld [vmem:[%s4148_s4 + $0x220] sm:$0xff]  }
  0x44   : > { %2985 = vmatpush3.bf16.msra.mxu1 %v3308_v36  ;;  %2966 = vmatprep.subr.bf16.mxu0 %v3451_v1  ;;  %v3353_v36 = vld [vmem:[%s4148_s4 + $0x228] sm:$0xff]  }
  0x45   : > { %2986 = vmatprep.subr.bf16.mxu1 %v3451_v1 }
  0x47   : > { %2967 = vmatpush3.bf16.msra.mxu0 %v3309_v40  ;;  %v3357_v40 = vld [vmem:[%s4148_s4 + $0x238] sm:$0xff]  }
  0x48   : > { %2987 = vmatpush3.bf16.msra.mxu1 %v3310_v42  ;;  %2992 = vmatprep.subr.bf16.mxu0 %v3451_v1  ;;  %v1310_v42 = vld [vmem:[%s3745_s10] sm:$0x3] }
  0x49   : > { %3012 = vmatprep.subr.bf16.mxu1 %v3451_v1 }
  0x4a   : > { %2969 = vmatmul.mubr.bf16.vlgmr.msra.gmra.mrb[4].mxu0 %v649_v43  ;;  %v3359_v43 = vld [vmem:[%s4148_s4 + $0x280] sm:$0xff]  }
  0x4b   : > { %2989 = vmatmul.mubr.bf16.vlgmr.msra.gmra.mrb[4].mxu1 %v767_v44  ;;  %2993 = vmatpush3.bf16.msra.mxu0 %v3311_v45  ;;  %v1417_v44 = vld [vmem:[%s3753_s11] sm:$0x3] }
  0x4c   : > { %3013 = vmatpush3.bf16.msra.mxu1 %v3312_v46  ;;  %2994 = vmatprep.subr.bf16.mxu0 %v3451_v1  ;;  %v3360_v45 = vld [vmem:[%s4148_s4 + $0x2c0] sm:$0xff]   ;;  %v3361_v46 = vld [vmem:[%s4148_s4 + $0x288] sm:$0xff]  }
  0x4d   : > { %3014 = vmatprep.subr.bf16.mxu1 %v3451_v1  ;;  %3008 = vmatprep.mubr.msk.bf16.mxu0 %vm3452_vm0, %v3451_v1 }
  0x4e   : > { %3028 = vmatprep.mubr.msk.bf16.mxu1 %vm3452_vm0, %v3451_v1 }
  0x4f   : > { %2995 = vmatpush3.bf16.msra.mxu0 %v3313_v47  ;;  %v3362_v47 = vld [vmem:[%s4148_s4 + $0x2c8] sm:$0xff]  }
  0x50   : > { %3015 = vmatpush3.bf16.msra.mxu1 %v3314_v48  ;;  %2996 = vmatprep.subr.bf16.mxu0 %v3451_v1  ;;  %v3363_v48 = vld [vmem:[%s4148_s4 + $0x290] sm:$0xff]  }
  0x51   : > { %3016 = vmatprep.subr.bf16.mxu1 %v3451_v1 }
  0x53   : > { %2997 = vmatpush3.bf16.msra.mxu0 %v3315_v49  ;;  %v3364_v49 = vld [vmem:[%s4148_s4 + $0x2d0] sm:$0xff]  }
  0x54   : > { %3017 = vmatpush3.bf16.msra.mxu1 %v3316_v50  ;;  %2998 = vmatprep.subr.bf16.mxu0 %v3451_v1  ;;  %v3365_v50 = vld [vmem:[%s4148_s4 + $0x298] sm:$0xff]  }
  0x55   : > { %3018 = vmatprep.subr.bf16.mxu1 %v3451_v1 }
  0x57   : > { %2999 = vmatpush3.bf16.msra.mxu0 %v3317_v51  ;;  %v3366_v51 = vld [vmem:[%s4148_s4 + $0x2d8] sm:$0xff]  }
  0x58   : > { %3019 = vmatpush3.bf16.msra.mxu1 %v3318_v52  ;;  %3000 = vmatprep.subr.bf16.mxu0 %v3451_v1  ;;  %v3367_v52 = vld [vmem:[%s4148_s4 + $0x2a0] sm:$0xff]  }
  0x59   : > { %3020 = vmatprep.subr.bf16.mxu1 %v3451_v1 }
  0x5b   : > { %3001 = vmatpush3.bf16.msra.mxu0 %v3319_v53  ;;  %v3368_v53 = vld [vmem:[%s4148_s4 + $0x2e0] sm:$0xff]  }
  0x5c   : > { %3021 = vmatpush3.bf16.msra.mxu1 %v3320_v54  ;;  %3002 = vmatprep.subr.bf16.mxu0 %v3451_v1  ;;  %v3375_v54 = vld [vmem:[%s3745_s10] ss:$0 sps:$4 sm:$0x77]  }
  0x5d   : > { %3022 = vmatprep.subr.bf16.mxu1 %v3451_v1 }
  0x5f   : > { %3003 = vmatpush3.bf16.msra.mxu0 %v3321_v55  ;;  %v3369_v55 = vld [vmem:[%s4148_s4 + $0x2a8] sm:$0xff]  }
  0x60   : > { %3023 = vmatpush3.bf16.msra.mxu1 %v3322_v56  ;;  %3004 = vmatprep.subr.bf16.mxu0 %v3451_v1  ;;  %v3376_v56 = vld [vmem:[%s3753_s11] ss:$0 sps:$4 sm:$0x77]  }
  0x61   : > { %3024 = vmatprep.subr.bf16.mxu1 %v3451_v1 }
  0x63   : > { %3005 = vmatpush3.bf16.msra.mxu0 %v3323_v57  ;;  %v3370_v57 = vld [vmem:[%s4148_s4 + $0x2e8] sm:$0xff]  }
  0x64   : > { %3025 = vmatpush3.bf16.msra.mxu1 %v3324_v58  ;;  %3006 = vmatprep.subr.bf16.mxu0 %v3451_v1  ;;  %v1548_v58 = vshll.u32 %v3375_v54, 16 }
  0x65   : > { %3026 = vmatprep.subr.bf16.mxu1 %v3451_v1 }
  0x67   : > { %3007 = vmatpush3.bf16.msra.mxu0 %v3325_v59  ;;  %v3371_v59 = vld [vmem:[%s4148_s4 + $0x2b0] sm:$0xff]  }
  0x68   : > { %3027 = vmatpush3.bf16.msra.mxu1 %v3326_v60  ;;  %3032 = vmatprep.subr.bf16.mxu0 %v3451_v1  ;;  %v1666_v60 = vshll.u32 %v3376_v56, 16 }
  0x69   : > { %3052 = vmatprep.subr.bf16.mxu1 %v3451_v1 }
  0x6a   : > { %3009 = vmatmul.mubr.bf16.vlgmr.msra.gmra.mrb[8].mxu0 %v2459_v61  ;;  %v3372_v61 = vld [vmem:[%s4148_s4 + $0x2f0] sm:$0xff]  }
  0x6b   : > { %3029 = vmatmul.mubr.bf16.vlgmr.msra.gmra.mrb[8].mxu1 %v2484_v62  ;;  %3033 = vmatpush3.bf16.msra.mxu0 %v3327_v63  ;;  %v1546_v62 = vshrl.u32 %v3375_v54, 16  ;;  %v1550_v63 = vrot.slane %v1548_v58, 1  ;;  %v3407_v54 = vld [vmem:[%s4148_s4 + $0x3b8] sm:$0xff]  }
  0x6c   : > { %3053 = vmatpush3.bf16.msra.mxu1 %v3328_v0  ;;  %3034 = vmatprep.subr.bf16.mxu0 %v3451_v1  ;;  %v3373_v0 = vld [vmem:[%s4148_s4 + $0x2b8] sm:$0xff]  }
  0x6d   : > { %3054 = vmatprep.subr.bf16.mxu1 %v3451_v1  ;;  %3048 = vmatprep.mubr.msk.bf16.mxu0 %vm3452_vm0, %v3451_v1 }
  0x6e   : > { %3068 = vmatprep.mubr.msk.bf16.mxu1 %vm3452_vm0, %v3451_v1 }
  0x6f   : > { %3035 = vmatpush3.bf16.msra.mxu0 %v3329_v2  ;;  %v1664_v2 = vshrl.u32 %v3376_v56, 16 }
  0x70   : > { %3055 = vmatpush3.bf16.msra.mxu1 %v3330_v3  ;;  %3036 = vmatprep.subr.bf16.mxu0 %v3451_v1  ;;  %v1668_v3 = vrot.slane %v1666_v60, 1 }
  0x71   : > { %3056 = vmatprep.subr.bf16.mxu1 %v3451_v1 }
  0x73   : > { %3037 = vmatpush3.bf16.msra.mxu0 %v3331_v4  ;;  %v3374_v4 = vld [vmem:[%s4148_s4 + $0x2f8] sm:$0xff]  }
  0x74   : > { %3057 = vmatpush3.bf16.msra.mxu1 %v3332_v5  ;;  %3038 = vmatprep.subr.bf16.mxu0 %v3451_v1  ;;  %v1551_v5 = vor.u32 %v1550_v63, %v1546_v62 }
  0x75   : > { %3058 = vmatprep.subr.bf16.mxu1 %v3451_v1 }
  0x77   : > { %3039 = vmatpush3.bf16.msra.mxu0 %v3333_v6  ;;  %v1669_v6 = vor.u32 %v1668_v3, %v1664_v2 }
  0x78   : > { %3059 = vmatpush3.bf16.msra.mxu1 %v3334_v7  ;;  %3040 = vmatprep.subr.bf16.mxu0 %v3451_v1  ;;  %v3377_v7 = vld [vmem:[%s4148_s4 + $0x300] sm:$0xff]  }
  0x79   : > { %3060 = vmatprep.subr.bf16.mxu1 %v3451_v1 }
  0x7b   : > { %3041 = vmatpush3.bf16.msra.mxu0 %v3335_v8  ;;  %v3378_v8 = vld [vmem:[%s4148_s4 + $0x340] sm:$0xff]  }
  0x7c   : > { %3061 = vmatpush3.bf16.msra.mxu1 %v3336_v10  ;;  %3042 = vmatprep.subr.bf16.mxu0 %v3451_v1  ;;  %v3380_v10 = vld [vmem:[%s4148_s4 + $0x348] sm:$0xff]  }
  0x7d   : > { %3062 = vmatprep.subr.bf16.mxu1 %v3451_v1 }
  0x7f   : > { %3043 = vmatpush3.bf16.msra.mxu0 %v3337_v12  ;;  %v3382_v12 = vld [vmem:[%s4148_s4 + $0x350] sm:$0xff]  }
  0x80   : > { %3063 = vmatpush3.bf16.msra.mxu1 %v3338_v13  ;;  %3044 = vmatprep.subr.bf16.mxu0 %v3451_v1  ;;  %v3383_v13 = vld [vmem:[%s4148_s4 + $0x318] sm:$0xff]  }
  0x81   : > { %3064 = vmatprep.subr.bf16.mxu1 %v3451_v1 }
  0x83   : > { %3045 = vmatpush3.bf16.msra.mxu0 %v3339_v15  ;;  %v3385_v15 = vld [vmem:[%s4148_s4 + $0x320] sm:$0xff]  }
  0x84   : > { %3065 = vmatpush3.bf16.msra.mxu1 %v3340_v17  ;;  %3046 = vmatprep.subr.bf16.mxu0 %v3451_v1  ;;  %v3387_v17 = vld [vmem:[%s4148_s4 + $0x328] sm:$0xff]  }
  0x85   : > { %3066 = vmatprep.subr.bf16.mxu1 %v3451_v1 }
  0x87   : > { %3047 = vmatpush3.bf16.msra.mxu0 %v3341_v21  ;;  %v3391_v21 = vld [vmem:[%s4148_s4 + $0x338] sm:$0xff]  }
  0x88   : > { %3067 = vmatpush3.bf16.msra.mxu1 %v3342_v23  ;;  %3072 = vmatprep.subr.bf16.mxu0 %v3451_v1  ;;  %v2659_v23 = vld [vmem:[%s3745_s10 + $0x4] sm:$0x3] }
  0x89   : > { %3092 = vmatprep.subr.bf16.mxu1 %v3451_v1 }
  0x8a   : > { %3049 = vmatmul.mubr.bf16.vlgmr.msra.gmra.mrb[12].mxu0 %v1101_v24  ;;  %v3393_v24 = vld [vmem:[%s4148_s4 + $0x380] sm:$0xff]  }
  0x8b   : > { %3069 = vmatmul.mubr.bf16.vlgmr.msra.gmra.mrb[12].mxu1 %v1219_v25  ;;  %3073 = vmatpush3.bf16.msra.mxu0 %v3343_v26  ;;  %v2684_v25 = vld [vmem:[%s3753_s11 + $0x4] sm:$0x3] }
  0x8c   : > { %3093 = vmatpush3.bf16.msra.mxu1 %v3344_v27  ;;  %3074 = vmatprep.subr.bf16.mxu0 %v3451_v1  ;;  %v3394_v26 = vld [vmem:[%s4148_s4 + $0x3c0] sm:$0xff]   ;;  %v3395_v27 = vld [vmem:[%s4148_s4 + $0x388] sm:$0xff]  }
  0x8d   : > { %3094 = vmatprep.subr.bf16.mxu1 %v3451_v1  ;;  %3088 = vmatprep.mubr.msk.bf16.mxu0 %vm3452_vm0, %v3451_v1 }
  0x8e   : > { %3108 = vmatprep.mubr.msk.bf16.mxu1 %vm3452_vm0, %v3451_v1 }
  0x8f   : > { %3075 = vmatpush3.bf16.msra.mxu0 %v3345_v28  ;;  %v3396_v28 = vld [vmem:[%s4148_s4 + $0x3c8] sm:$0xff]  }
  0x90   : > { %3095 = vmatpush3.bf16.msra.mxu1 %v3346_v29  ;;  %3076 = vmatprep.subr.bf16.mxu0 %v3451_v1  ;;  %v3397_v29 = vld [vmem:[%s4148_s4 + $0x390] sm:$0xff]  }
  0x91   : > { %3096 = vmatprep.subr.bf16.mxu1 %v3451_v1 }
  0x93   : > { %3077 = vmatpush3.bf16.msra.mxu0 %v3347_v30  ;;  %v3398_v30 = vld [vmem:[%s4148_s4 + $0x3d0] sm:$0xff]  }
  0x94   : > { %3097 = vmatpush3.bf16.msra.mxu1 %v3348_v31  ;;  %3078 = vmatprep.subr.bf16.mxu0 %v3451_v1  ;;  %v3399_v31 = vld [vmem:[%s4148_s4 + $0x398] sm:$0xff]  }
  0x95   : > { %3098 = vmatprep.subr.bf16.mxu1 %v3451_v1 }
  0x97   : > { %3079 = vmatpush3.bf16.msra.mxu0 %v3349_v32  ;;  %v3400_v32 = vld [vmem:[%s4148_s4 + $0x3d8] sm:$0xff]  }
  0x98   : > { %3099 = vmatpush3.bf16.msra.mxu1 %v3350_v33  ;;  %3080 = vmatprep.subr.bf16.mxu0 %v3451_v1  ;;  %v3401_v33 = vld [vmem:[%s4148_s4 + $0x3a0] sm:$0xff]  }
  0x99   : > { %3100 = vmatprep.subr.bf16.mxu1 %v3451_v1 }
  0x9b   : > { %3081 = vmatpush3.bf16.msra.mxu0 %v3351_v34  ;;  %v3402_v34 = vld [vmem:[%s4148_s4 + $0x3e0] sm:$0xff]  }
  0x9c   : > { %3101 = vmatpush3.bf16.msra.mxu1 %v3352_v35  ;;  %3082 = vmatprep.subr.bf16.mxu0 %v3451_v1  ;;  %v3409_v35 = vld [vmem:[%s3745_s10 + $0x4] ss:$0 sps:$4 sm:$0x77]  }
  0x9d   : > { %3102 = vmatprep.subr.bf16.mxu1 %v3451_v1 }
  0x9f   : > { %3083 = vmatpush3.bf16.msra.mxu0 %v3353_v36  ;;  %v3403_v36 = vld [vmem:[%s4148_s4 + $0x3a8] sm:$0xff]  }
  0xa0   : > { %3103 = vmatpush3.bf16.msra.mxu1 %v3354_v37  ;;  %3084 = vmatprep.subr.bf16.mxu0 %v3451_v1  ;;  %v3410_v37 = vld [vmem:[%s3753_s11 + $0x4] ss:$0 sps:$4 sm:$0x77]  }
  0xa1   : > { %3104 = vmatprep.subr.bf16.mxu1 %v3451_v1 }
  0xa3   : > { %3085 = vmatpush3.bf16.msra.mxu0 %v3355_v38  ;;  %v3404_v38 = vld [vmem:[%s4148_s4 + $0x3e8] sm:$0xff]  }
  0xa4   : > { %3105 = vmatpush3.bf16.msra.mxu1 %v3356_v39  ;;  %3086 = vmatprep.subr.bf16.mxu0 %v3451_v1 }
  0xa5   : > { %3106 = vmatprep.subr.bf16.mxu1 %v3451_v1 }
  0xa7   : > { %3087 = vmatpush3.bf16.msra.mxu0 %v3357_v40 }
  0xa8   : > { %3107 = vmatpush3.bf16.msra.mxu1 %v3358_v41  ;;  %3112 = vmatprep.subr.bf16.mxu0 %v3451_v1 }
  0xa9   : > { %3132 = vmatprep.subr.bf16.mxu1 %v3451_v1 }
  0xaa   : > { %3089 = vmatmul.mubr.bf16.vlgmr.msra.gmra.mrb[16].mxu0 %v1310_v42  ;;  %v2000_v42 = vshll.u32 %v3409_v35, 16 }
  0xab   : > { %3109 = vmatmul.mubr.bf16.vlgmr.msra.gmra.mrb[16].mxu1 %v1417_v44  ;;  %3113 = vmatpush3.bf16.msra.mxu0 %v3359_v43 }
  0xac   : > { %3133 = vmatpush3.bf16.msra.mxu1 %v3360_v45  ;;  %3114 = vmatprep.subr.bf16.mxu0 %v3451_v1 }
  0xad   : > { %3134 = vmatprep.subr.bf16.mxu1 %v3451_v1  ;;  %3128 = vmatprep.mubr.msk.bf16.mxu0 %vm3452_vm0, %v3451_v1 }
  0xae   : > { %3148 = vmatprep.mubr.msk.bf16.mxu1 %vm3452_vm0, %v3451_v1 }
  0xaf   : > { %3115 = vmatpush3.bf16.msra.mxu0 %v3361_v46  ;;  %v3405_v46 = vld [vmem:[%s4148_s4 + $0x3b0] sm:$0xff]  }
  0xb0   : > { %3135 = vmatpush3.bf16.msra.mxu1 %v3362_v47  ;;  %3116 = vmatprep.subr.bf16.mxu0 %v3451_v1  ;;  %v2118_v47 = vshll.u32 %v3410_v37, 16 }
  0xb1   : > { %3136 = vmatprep.subr.bf16.mxu1 %v3451_v1 }
  0xb2   : > { %v2120_v56 = vrot.slane %v2118_v47, 1 }
  0xb3   : > { %3117 = vmatpush3.bf16.msra.mxu0 %v3363_v48 }
  0xb4   : > { %3137 = vmatpush3.bf16.msra.mxu1 %v3364_v49  ;;  %3118 = vmatprep.subr.bf16.mxu0 %v3451_v1 }
  0xb5   : > { %3138 = vmatprep.subr.bf16.mxu1 %v3451_v1 }
  0xb7   : > { %3119 = vmatpush3.bf16.msra.mxu0 %v3365_v50  ;;  %v3406_v50 = vld [vmem:[%s4148_s4 + $0x3f0] sm:$0xff]  }
  0xb8   : > { %3139 = vmatpush3.bf16.msra.mxu1 %v3366_v51  ;;  %3120 = vmatprep.subr.bf16.mxu0 %v3451_v1 }
  0xb9   : > { %3140 = vmatprep.subr.bf16.mxu1 %v3451_v1 }
  0xbb   : > { %3121 = vmatpush3.bf16.msra.mxu0 %v3367_v52  ;;  %v1998_v52 = vshrl.u32 %v3409_v35, 16 }
  0xbc   : > { %3141 = vmatpush3.bf16.msra.mxu1 %v3368_v53  ;;  %3122 = vmatprep.subr.bf16.mxu0 %v3451_v1  ;;  %v2002_v53 = vrot.slane %v2000_v42, 1 }
  0xbd   : > { %3142 = vmatprep.subr.bf16.mxu1 %v3451_v1 }
  0xbe   : > { %v2003_v58 = vor.u32 %v2002_v53, %v1998_v52 }
  0xbf   : > { %3123 = vmatpush3.bf16.msra.mxu0 %v3369_v55  ;;  %v2116_v55 = vshrl.u32 %v3410_v37, 16 }
  0xc0   : > { %3143 = vmatpush3.bf16.msra.mxu1 %v3370_v57  ;;  %3124 = vmatprep.subr.bf16.mxu0 %v3451_v1  ;;  %v3408_v57 = vld [vmem:[%s4148_s4 + $0x3f8] sm:$0xff]  }
  0xc1   : > { %3144 = vmatprep.subr.bf16.mxu1 %v3451_v1 }
  0xc3   : > { %3125 = vmatpush3.bf16.msra.mxu0 %v3371_v59  ;;  %v2121_v59 = vor.u32 %v2120_v56, %v2116_v55 }
  0xc4   : > { %3145 = vmatpush3.bf16.msra.mxu1 %v3372_v61  ;;  %3126 = vmatprep.subr.bf16.mxu0 %v3451_v1 }
  0xc5   : > { %3146 = vmatprep.subr.bf16.mxu1 %v3451_v1 }
  0xc7   : > { %3127 = vmatpush3.bf16.msra.mxu0 %v3373_v0 }
  0xc8   : > { %3147 = vmatpush3.bf16.msra.mxu1 %v3374_v4  ;;  %3152 = vmatprep.subr.bf16.mxu0 %v3451_v1 }
  0xc9   : > { %3172 = vmatprep.subr.bf16.mxu1 %v3451_v1 }
  0xca   : > { %3129 = vmatmul.mubr.bf16.vlgmr.msra.gmra.mrb[20].mxu0 %v1551_v5 }
  0xcb   : > { %3149 = vmatmul.mubr.bf16.vlgmr.msra.gmra.mrb[20].mxu1 %v1669_v6  ;;  %3153 = vmatpush3.bf16.msra.mxu0 %v3377_v7 }
  0xcc   : > { %3173 = vmatpush3.bf16.msra.mxu1 %v3378_v8  ;;  %3154 = vmatprep.subr.bf16.mxu0 %v3451_v1 }
  0xcd   : > { %3174 = vmatprep.subr.bf16.mxu1 %v3451_v1  ;;  %3168 = vmatprep.mubr.msk.bf16.mxu0 %vm3452_vm0, %v3451_v1 }
  0xce   : > { %3188 = vmatprep.mubr.msk.bf16.mxu1 %vm3452_vm0, %v3451_v1 }
  0xcf   : > { %3155 = vmatpush3.bf16.msra.mxu0 %v3379_v9 }
  0xd0   : > { %3175 = vmatpush3.bf16.msra.mxu1 %v3380_v10  ;;  %3156 = vmatprep.subr.bf16.mxu0 %v3451_v1 }
  0xd1   : > { %3176 = vmatprep.subr.bf16.mxu1 %v3451_v1 }
  0xd3   : > { %3157 = vmatpush3.bf16.msra.mxu0 %v3381_v11 }
  0xd4   : > { %3177 = vmatpush3.bf16.msra.mxu1 %v3382_v12  ;;  %3158 = vmatprep.subr.bf16.mxu0 %v3451_v1 }
  0xd5   : > { %3178 = vmatprep.subr.bf16.mxu1 %v3451_v1 }
  0xd7   : > { %3159 = vmatpush3.bf16.msra.mxu0 %v3383_v13 }
  0xd8   : > { %3179 = vmatpush3.bf16.msra.mxu1 %v3384_v14  ;;  %3160 = vmatprep.subr.bf16.mxu0 %v3451_v1 }
  0xd9   : > { %3180 = vmatprep.subr.bf16.mxu1 %v3451_v1 }
  0xdb   : > { %3161 = vmatpush3.bf16.msra.mxu0 %v3385_v15 }
  0xdc   : > { %3181 = vmatpush3.bf16.msra.mxu1 %v3386_v16  ;;  %3162 = vmatprep.subr.bf16.mxu0 %v3451_v1 }
  0xdd   : > { %3182 = vmatprep.subr.bf16.mxu1 %v3451_v1 }
  0xdf   : > { %3163 = vmatpush3.bf16.msra.mxu0 %v3387_v17 }
  0xe0   : > { %3183 = vmatpush3.bf16.msra.mxu1 %v3388_v18  ;;  %3164 = vmatprep.subr.bf16.mxu0 %v3451_v1 }
  0xe1   : > { %3184 = vmatprep.subr.bf16.mxu1 %v3451_v1 }
  0xe3   : > { %3165 = vmatpush3.bf16.msra.mxu0 %v3389_v19 }
  0xe4   : > { %3185 = vmatpush3.bf16.msra.mxu1 %v3390_v20  ;;  %3166 = vmatprep.subr.bf16.mxu0 %v3451_v1 }
  0xe5   : > { %3186 = vmatprep.subr.bf16.mxu1 %v3451_v1 }
  0xe7   : > { %3167 = vmatpush3.bf16.msra.mxu0 %v3391_v21 }
  0xe8   : > { %3187 = vmatpush3.bf16.msra.mxu1 %v3392_v22  ;;  %3192 = vmatprep.subr.bf16.mxu0 %v3451_v1 }
  0xe9   : > { %3212 = vmatprep.subr.bf16.mxu1 %v3451_v1 }
  0xea   : > { %3169 = vmatmul.mubr.bf16.vlgmr.msra.gmra.mrb[24].mxu0 %v2659_v23 }
  0xeb   : > { %3189 = vmatmul.mubr.bf16.vlgmr.msra.gmra.mrb[24].mxu1 %v2684_v25  ;;  %3193 = vmatpush3.bf16.msra.mxu0 %v3393_v24 }
  0xec   : > { %3213 = vmatpush3.bf16.msra.mxu1 %v3394_v26  ;;  %3194 = vmatprep.subr.bf16.mxu0 %v3451_v1 }
  0xed   : > { %3214 = vmatprep.subr.bf16.mxu1 %v3451_v1  ;;  %3208 = vmatprep.mubr.msk.bf16.mxu0 %vm3452_vm0, %v3451_v1 }
  0xee   : > { %3228 = vmatprep.mubr.msk.bf16.mxu1 %vm3452_vm0, %v3451_v1 }
  0xef   : > { %3195 = vmatpush3.bf16.msra.mxu0 %v3395_v27 }
  0xf0   : > { %3215 = vmatpush3.bf16.msra.mxu1 %v3396_v28  ;;  %3196 = vmatprep.subr.bf16.mxu0 %v3451_v1 }
  0xf1   : > { %3216 = vmatprep.subr.bf16.mxu1 %v3451_v1 }
  0xf3   : > { %3197 = vmatpush3.bf16.msra.mxu0 %v3397_v29 }
  0xf4   : > { %3217 = vmatpush3.bf16.msra.mxu1 %v3398_v30  ;;  %3198 = vmatprep.subr.bf16.mxu0 %v3451_v1 }
  0xf5   : > { %3218 = vmatprep.subr.bf16.mxu1 %v3451_v1 }
  0xf7   : > { %3199 = vmatpush3.bf16.msra.mxu0 %v3399_v31 }
  0xf8   : > { %3219 = vmatpush3.bf16.msra.mxu1 %v3400_v32  ;;  %3200 = vmatprep.subr.bf16.mxu0 %v3451_v1 }
  0xf9   : > { %3220 = vmatprep.subr.bf16.mxu1 %v3451_v1 }
  0xfb   : > { %3201 = vmatpush3.bf16.msra.mxu0 %v3401_v33 }
  0xfc   : > { %3221 = vmatpush3.bf16.msra.mxu1 %v3402_v34  ;;  %3202 = vmatprep.subr.bf16.mxu0 %v3451_v1 }
  0xfd   : > { %v528_v39 = vpop.f32.mrb[0].mxu0  ;;  %3222 = vmatprep.subr.bf16.mxu1 %v3451_v1 }
  0xfe   : > { %v616_v40 = vpop.f32.mrb[0].mxu1  ;;  %v2930_v41 = vpop.f32.mrb[1].mxu0 }
  0xff   : > { %v617_v43 = vadd.f32 %v616_v40, %v528_v39  ;;  %v2950_v44 = vpop.f32.mrb[1].mxu1  ;;  %v531_v45 = vpop.f32.mrb[2].mxu0  ;;  %3203 = vmatpush3.bf16.msra.mxu0 %v3403_v36 }
 0x100   : > { %v619_v48 = vpop.f32.mrb[2].mxu1  ;;  %3223 = vmatpush3.bf16.msra.mxu1 %v3404_v38  ;;  %v2931_v49 = vpop.f32.mrb[3].mxu0  ;;  %3204 = vmatprep.subr.bf16.mxu0 %v3451_v1 }
 0x101   : > { %v2951_v51 = vpop.f32.mrb[3].mxu1  ;;  %3224 = vmatprep.subr.bf16.mxu1 %v3451_v1 }
 0x103   : > { %3205 = vmatpush3.bf16.msra.mxu0 %v3405_v46 }
 0x104   : > { %3225 = vmatpush3.bf16.msra.mxu1 %v3406_v50  ;;  %3206 = vmatprep.subr.bf16.mxu0 %v3451_v1 }
 0x105   : > { %3226 = vmatprep.subr.bf16.mxu1 %v3451_v1 }
 0x107   : > { %3207 = vmatpush3.bf16.msra.mxu0 %v3407_v54 }
 0x108   : > { %3227 = vmatpush3.bf16.msra.mxu1 %v3408_v57 }
 0x10a   : > { %3209 = vmatmul.mubr.bf16.vlgmr.msra.gmra.mrb[28].mxu0 %v2003_v58 }
 0x10b   : > { %3229 = vmatmul.mubr.bf16.vlgmr.msra.gmra.mrb[28].mxu1 %v2121_v59 }
 0x11d   : > { %v733_v60 = vpop.f32.mrb[4].mxu0 }
 0x11e   : > { %v739_v61 = vadd.f32 %v733_v60, %v617_v43  ;;  %v851_v62 = vpop.f32.mrb[4].mxu1  ;;  %v2970_v63 = vpop.f32.mrb[5].mxu0  ;;  %v2761_v60 = vld [vmem:[%s4149_s5] ss:$0 sm:$0xff] }
 0x11f   : > { %v2990_v0 = vpop.f32.mrb[5].mxu1  ;;  %v736_v2 = vpop.f32.mrb[6].mxu0 }
 0x120   : > { %v857_v3 = vadd.f32 %v851_v62, %v739_v61  ;;  %v854_v4 = vpop.f32.mrb[6].mxu1  ;;  %v2971_v5 = vpop.f32.mrb[7].mxu0 }
 0x121   : > { %v2991_v6 = vpop.f32.mrb[7].mxu1 }
 0x13d   : > { %v959_v7 = vpop.f32.mrb[8].mxu0 }
 0x13e   : > { %v965_v8 = vadd.f32 %v959_v7, %v857_v3  ;;  %v1067_v9 = vpop.f32.mrb[8].mxu1  ;;  %v3010_v1 = vpop.f32.mrb[9].mxu0 }
 0x13f   : > { %v3030_v10 = vpop.f32.mrb[9].mxu1  ;;  %v962_v11 = vpop.f32.mrb[10].mxu0 }
 0x140   : > { %v1073_v12 = vadd.f32 %v1067_v9, %v965_v8  ;;  %v1070_v13 = vpop.f32.mrb[10].mxu1  ;;  %v3011_v14 = vpop.f32.mrb[11].mxu0 }
 0x141   : > { %v3031_v15 = vpop.f32.mrb[11].mxu1 }
 0x15d   : > { %v1185_v16 = vpop.f32.mrb[12].mxu0 }
 0x15e   : > { %v1191_v17 = vadd.f32 %v1185_v16, %v1073_v12  ;;  %v1303_v18 = vpop.f32.mrb[12].mxu1  ;;  %v3050_v19 = vpop.f32.mrb[13].mxu0 }
 0x15f   : > { %v3070_v20 = vpop.f32.mrb[13].mxu1  ;;  %v1188_v21 = vpop.f32.mrb[14].mxu0 }
 0x160   : > { %v1309_v22 = vadd.f32 %v1303_v18, %v1191_v17  ;;  %v1306_v23 = vpop.f32.mrb[14].mxu1  ;;  %v3051_v24 = vpop.f32.mrb[15].mxu0 }
 0x161   : > { %v3071_v25 = vpop.f32.mrb[15].mxu1 }
 0x17d   : > { %v1410_v26 = vpop.f32.mrb[16].mxu0 }
 0x17e   : > { %v1416_v27 = vadd.f32 %v1410_v26, %v1309_v22  ;;  %v1517_v28 = vpop.f32.mrb[16].mxu1  ;;  %v3090_v29 = vpop.f32.mrb[17].mxu0 }
 0x17f   : > { %v3110_v30 = vpop.f32.mrb[17].mxu1  ;;  %v1413_v31 = vpop.f32.mrb[18].mxu0 }
 0x180   : > { %v1523_v32 = vadd.f32 %v1517_v28, %v1416_v27  ;;  %v1520_v33 = vpop.f32.mrb[18].mxu1  ;;  %v3091_v34 = vpop.f32.mrb[19].mxu0 }
 0x181   : > { %v3111_v35 = vpop.f32.mrb[19].mxu1 }
 0x19d   : > { %v1635_v36 = vpop.f32.mrb[20].mxu0 }
 0x19e   : > { %v1641_v37 = vadd.f32 %v1635_v36, %v1523_v32  ;;  %v1753_v38 = vpop.f32.mrb[20].mxu1  ;;  %v3130_v39 = vpop.f32.mrb[21].mxu0 }
 0x19f   : > { %v3150_v40 = vpop.f32.mrb[21].mxu1  ;;  %v1638_v41 = vpop.f32.mrb[22].mxu0 }
 0x1a0   : > { %v1759_v42 = vadd.f32 %v1753_v38, %v1641_v37  ;;  %v1756_v43 = vpop.f32.mrb[22].mxu1  ;;  %v3131_v44 = vpop.f32.mrb[23].mxu0 }
 0x1a1   : > { %v3151_v45 = vpop.f32.mrb[23].mxu1 }
 0x1bd   : > { %v1861_v46 = vpop.f32.mrb[24].mxu0 }
 0x1be   : > { %v1867_v47 = vadd.f32 %v1861_v46, %v1759_v42  ;;  %v1969_v48 = vpop.f32.mrb[24].mxu1  ;;  %v3170_v49 = vpop.f32.mrb[25].mxu0 }
 0x1bf   : > { %v3190_v50 = vpop.f32.mrb[25].mxu1  ;;  %v1864_v51 = vpop.f32.mrb[26].mxu0 }
 0x1c0   : > { %v1975_v52 = vadd.f32 %v1969_v48, %v1867_v47  ;;  %v1972_v53 = vpop.f32.mrb[26].mxu1  ;;  %v3171_v54 = vpop.f32.mrb[27].mxu0 }
 0x1c1   : > { %v3191_v55 = vpop.f32.mrb[27].mxu1 }
 0x1dd   : > { %v2087_v56 = vpop.f32.mrb[28].mxu0 }
 0x1de   : > { %v2093_v57 = vadd.f32 %v2087_v56, %v1975_v52  ;;  %v2205_v58 = vpop.f32.mrb[28].mxu1  ;;  %v3210_v59 = vpop.f32.mrb[29].mxu0 }
 0x1df   : > { %v3230_v61 = vpop.f32.mrb[29].mxu1  ;;  %v2090_v62 = vpop.f32.mrb[30].mxu0 }
 0x1e0   : > { %v2211_v63 = vadd.f32 %v2205_v58, %v2093_v57  ;;  %v2208_v0 = vpop.f32.mrb[30].mxu1  ;;  %v3211_v2 = vpop.f32.mrb[31].mxu0 }
 0x1e1   : > { %v3231_v3 = vpop.f32.mrb[31].mxu1 }
 0x1e2   : > { %v2219_v4 = vadd.f32 %v2761_v60, %v2211_v63 }
 0x1e4   : > { %v2220_v5 = vpack.c.bf16 %v2219_v4, %v2219_v4 }
 0x1e6   : > { %2221 = vst [vmem:[%s409_s22] sm:$0x3] %v2220_v5 }
 0x1e7 PF: > { %s16_s25 = sadd.s32 1, %s3449_s25   ;;  %s4151_s21 = smov %s3441_s23 }
 0x1e8   : > { %p13_p9 = scmp.ge.s32.totalorder %s16_s25, 10   ;;  %s4152_s22 = smov %s3445_s24 }
 0x1e9   : > { %s4153_s23 = smov %s4156_s26  ;;  %s4154_s24 = smov %s4160_s27 }
 0x1ea   :  { %15 = sbr.rel (!%p13_p9) target bundleno = 3 (0x3), region = 102 }

// kernel: discriminator_forward.13
= control target key start
LH: loop header
LB: loop body
LE: loop exit
PB: predicated region body
PF: predicated region fallthrough
CT: control target
= control target key end

     0   :  { %s3464_s21 = smov 0   ;;  %s3466_s22 = smov 0   ;;  %s4110_s0 = inlined_call_operand.vmem [shape: bf16[2,6,6,128], index: 0, kind: input, shape index: {}, may-alias: {0,1,2,3}]   ;;  %s4111_s1 = inlined_call_operand.vmem [shape: bf16[2,6,6,128], index: 1, kind: input, shape index: {}, may-alias: {0,1,2,3}]   ;;  %s4112_s2 = inlined_call_operand.vmem [shape: bf16[2,6,6,128], index: 2, kind: input, shape index: {}, may-alias: {0,1,2,3}]   ;;  %s4113_s3 = inlined_call_operand.vmem [shape: bf16[2,6,6,128], index: 3, kind: input, shape index: {}, may-alias: {0,1,2,3}]   ;;  %s4114_s4 = inlined_call_operand.vmem [shape: bf16[4,4,128,128], index: 4, kind: input, shape index: {}]   ;;  %s4115_s5 = inlined_call_operand.vmem [shape: f32[1,128], index: 5, kind: input, shape index: {}]   ;;  %s4116_s6 = inlined_call_operand.vmem [shape: bf16[2,3,3,128], index: 6, kind: output, shape index: {}]  }
   0x1   :  { %s3468_s23 = smov 0   ;;  %s3470_s24 = smov 0  }
   0x2   :  { %s3472_s25 = smov 0  }
   0x3 LB: > { %s25_s26 = sadd.s32 1, %s3417_s23  ;;  %s28_s27 = sadd.s32 1, %s3421_s24  ;;  %s3425_s25 = sphi %s3472_s25, %s16_s25   ;;  %s3421_s24 = sphi %s3470_s24, %s4120_s24   ;;  %s3417_s23 = sphi %s3468_s23, %s4119_s23   ;;  %s3413_s22 = sphi %s3466_s22, %s4118_s22   ;;  %s3409_s21 = sphi %s3464_s21, %s4117_s21  }
   0x4   : > { %p26_p0 = scmp.ge.s32.totalorder %s25_s26, 3  ;;  %p2358_p1 = scmp.ge.s32.totalorder %s3425_s25, 1 }
   0x5   : > { %p288_p2 = scmp.lt.s32.totalorder %s3425_s25, 7 }
   0x6   : > { %s4122_s26 = smov (%p26_p0, %s25_s26), 0  ;;  %s4124_s27 = smov (!%p26_p0, %s28_s27), %s3421_s24 }
   0x7   : > { %p289_p3 = pnand %p2358_p1, %p288_p2  ;;  %p30_p4 = scmp.ge.s32.totalorder %s4124_s27, 2 }
   0x8   : > { %v3251_v0 = vld [vmem:[%s4114_s4 + $0x40] sm:$0xff] (!%p289_p3)   ;;  %v3427_v1 = vmov (!%p289_p3), 0.0   ;;  %v3253_v3 = vld [vmem:[%s4114_s4 + $0x48] sm:$0xff] (!%p289_p3)   ;;  %vm3428_vm0 = vmmov (!%p289_p3), 0   ;;  %p351_p5 = scmp.lt.s32.totalorder (!%p289_p3), %s3413_s22, 1  ;;  %p353_p6 = scmp.lt.s32.totalorder (!%p289_p3), %s3409_s21, 5 }
   0x9   : > { %s4126_s27 = smov (%p30_p4, %s4124_s27), 0  ;;  %292 = sbr.rel (%p289_p3) target bundleno = 488 (0x1e8), region = 44 }
   0xa   : > { %2887 = vmatprep.subr.bf16.mxu0 (!%p289_p3), %v3427_v1  ;;  %2907 = vmatprep.subr.bf16.mxu1 (!%p289_p3), %v3427_v1  ;;  %v3252_v2 = vld [vmem:[%s4114_s4] sm:$0xff] (!%p289_p3)   ;;  %v3254_v4 = vld [vmem:[%s4114_s4 + $0x8] sm:$0xff] (!%p289_p3)   ;;  %v3255_v5 = vld [vmem:[%s4114_s4 + $0x50] sm:$0xff] (!%p289_p3)   ;;  %s359_s16 = sadd.s32 (!%p289_p3), 1, %s3409_s21  ;;  %s369_s30 = sadd.s32 (!%p289_p3), 2, %s3409_s21  ;;  %vm2208_vm1 = vcmask (!%p289_p3), 1041408  }
   0xb   : > { %2888 = vmatpush3.bf16.msra.mxu0 (!%p289_p3), %v3251_v0  ;;  %2903 = vmatprep.mubr.msk.bf16.mxu0 (!%p289_p3), %vm3428_vm0, %v3427_v1  ;;  %v3256_v6 = vld [vmem:[%s4114_s4 + $0x10] sm:$0xff] (!%p289_p3)   ;;  %v3257_v7 = vld [vmem:[%s4114_s4 + $0x58] sm:$0xff] (!%p289_p3)   ;;  %v3259_v9 = vld [vmem:[%s4114_s4 + $0x60] sm:$0xff] (!%p289_p3)   ;;  %p362_p7 = scmp.lt.s32.totalorder (!%p289_p3), %s359_s16, 5  ;;  %p372_p8 = scmp.lt.s32.totalorder (!%p289_p3), %s369_s30, 5 }
   0xc   : > { %2908 = vmatpush3.bf16.msra.mxu1 (!%p289_p3), %v3252_v2  ;;  %2889 = vmatprep.subr.bf16.mxu0 (!%p289_p3), %v3427_v1  ;;  %v3258_v8 = vld [vmem:[%s4114_s4 + $0x18] sm:$0xff] (!%p289_p3)   ;;  %v3260_v10 = vld [vmem:[%s4114_s4 + $0x20] sm:$0xff] (!%p289_p3)   ;;  %v3261_v13 = vld [vmem:[%s4114_s4 + $0x68] sm:$0xff] (!%p289_p3)   ;;  %p391_p10 = scmp.lt.s32.totalorder (!%p289_p3), %s3409_s21, 2  ;;  %vm2209_vm2 = vsmask.f32 (!%p289_p3), 1280 }
   0xd   : > { %2909 = vmatprep.subr.bf16.mxu1 (!%p289_p3), %v3427_v1  ;;  %2923 = vmatprep.mubr.msk.bf16.mxu1 (!%p289_p3), %vm3428_vm0, %v3427_v1  ;;  %v3262_v14 = vld [vmem:[%s4114_s4 + $0x28] sm:$0xff] (!%p289_p3)   ;;  %v3263_v16 = vld [vmem:[%s4114_s4 + $0x70] sm:$0xff] (!%p289_p3)   ;;  %v3265_v20 = vld [vmem:[%s4114_s4 + $0x78] sm:$0xff] (!%p289_p3)  }
   0xe   : > { %v3264_v17 = vld [vmem:[%s4114_s4 + $0x30] sm:$0xff] (!%p289_p3)   ;;  %v3266_v21 = vld [vmem:[%s4114_s4 + $0x38] sm:$0xff] (!%p289_p3)   ;;  %v3269_v23 = vld [vmem:[%s4114_s4 + $0x80] sm:$0xff] (!%p289_p3)  }
   0xf   : > { %2890 = vmatpush3.bf16.msra.mxu0 (!%p289_p3), %v3253_v3  ;;  %v3270_v24 = vld [vmem:[%s4114_s4 + $0xc0] sm:$0xff] (!%p289_p3)   ;;  %v3271_v25 = vld [vmem:[%s4114_s4 + $0x88] sm:$0xff] (!%p289_p3)   ;;  %v3273_v27 = vld [vmem:[%s4114_s4 + $0x90] sm:$0xff] (!%p289_p3)  }
  0x10   : > { %s4128_s22 = smov (!%p351_p5, %s3413_s22), 1  ;;  %2910 = vmatpush3.bf16.msra.mxu1 %v3254_v4  ;;  %2891 = vmatprep.subr.bf16.mxu0 %v3427_v1  ;;  %v3272_v26 = vld [vmem:[%s4114_s4 + $0xc8] sm:$0xff]   ;;  %s4130_s16 = smov (!%p362_p7, %s359_s16), 5  ;;  %v3274_v28 = vld [vmem:[%s4114_s4 + $0xd0] sm:$0xff]   ;;  %v3275_v29 = vld [vmem:[%s4114_s4 + $0x98] sm:$0xff]  }
  0x11   : > { %s354_s12 = scalar_select %p353_p6, %s3409_s21, 5  ;;  %2911 = vmatprep.subr.bf16.mxu1 %v3427_v1  ;;  %v3276_v30 = vld [vmem:[%s4114_s4 + $0xd8] sm:$0xff]   ;;  %v3277_v32 = vld [vmem:[%s4114_s4 + $0xa0] sm:$0xff]   ;;  %v3279_v34 = vld [vmem:[%s4114_s4 + $0xa8] sm:$0xff]  }
  0x12   : > { %s3528_s15 = smul.u32 6, %s4128_s22  ;;  %v3278_v33 = vld [vmem:[%s4114_s4 + $0xe0] sm:$0xff]   ;;  %v3280_v35 = vld [vmem:[%s4114_s4 + $0xe8] sm:$0xff]   ;;  %v3281_v37 = vld [vmem:[%s4114_s4 + $0xb0] sm:$0xff]   ;;  %s4132_s30 = smov (!%p372_p8, %s369_s30), 5 }
  0x13   : > { %2892 = vmatpush3.bf16.msra.mxu0 %v3255_v5  ;;  %v3282_v39 = vld [vmem:[%s4114_s4 + $0xf0] sm:$0xff]   ;;  %v3283_v41 = vld [vmem:[%s4114_s4 + $0xb8] sm:$0xff]   ;;  %v3285_v46 = vld [vmem:[%s4114_s4 + $0x100] sm:$0xff]  }
  0x14   : > { %s356_s18 = sadd.s32 %s3528_s15, %s354_s12  ;;  %2912 = vmatpush3.bf16.msra.mxu1 %v3256_v6  ;;  %2893 = vmatprep.subr.bf16.mxu0 %v3427_v1  ;;  %s365_s11 = sadd.s32 %s3528_s15, %s4130_s16  ;;  %v3284_v43 = vld [vmem:[%s4114_s4 + $0xf8] sm:$0xff]   ;;  %v3286_v47 = vld [vmem:[%s4114_s4 + $0x140] sm:$0xff]   ;;  %v3287_v48 = vld [vmem:[%s4114_s4 + $0x108] sm:$0xff]  }
  0x15   : > { %s2359_s28 = sshll.u32 %s356_s18, 2  ;;  %2913 = vmatprep.subr.bf16.mxu1 %v3427_v1  ;;  %s2360_s14 = sshll.u32 %s365_s11, 2  ;;  %v3288_v49 = vld [vmem:[%s4114_s4 + $0x148] sm:$0xff]   ;;  %v3289_v50 = vld [vmem:[%s4114_s4 + $0x110] sm:$0xff]   ;;  %v3291_v52 = vld [vmem:[%s4114_s4 + $0x118] sm:$0xff]  }
  0x16   : > { %s3547_s9 = scalar_lea.vmem %s4110_s0, %s2359_s28  ;;  %s3632_s29 = scalar_lea.vmem %s4111_s1, %s2360_s14  ;;  %v3290_v51 = vld [vmem:[%s4114_s4 + $0x150] sm:$0xff]   ;;  %v3292_v53 = vld [vmem:[%s4114_s4 + $0x158] sm:$0xff]   ;;  %v3293_v54 = vld [vmem:[%s4114_s4 + $0x120] sm:$0xff]  }
  0x17   : > { %2894 = vmatpush3.bf16.msra.mxu0 %v3257_v7  ;;  %v398_v11 = vld [vmem:[%s3547_s9] sm:$0x3]  ;;  %s375_s19 = sadd.s32 %s3528_s15, %s4132_s30  ;;  %v3295_v58 = vld [vmem:[%s4114_s4 + $0x128] sm:$0xff]   ;;  %v3297_v60 = vld [vmem:[%s4114_s4 + $0x130] sm:$0xff]   ;;  %s379_s18 = sadd.s32 3, %s3409_s21 }
  0x18   : > { %2914 = vmatpush3.bf16.msra.mxu1 %v3258_v8  ;;  %2895 = vmatprep.subr.bf16.mxu0 %v3427_v1  ;;  %v2380_v12 = vcombine.low %v398_v11, %v398_v11  ;;  %v3268_v31 = vld [vmem:[%s3547_s9] ss:$0 sps:$4 sm:$0x66]   ;;  %s2361_s8 = sshll.u32 %s375_s19, 2  ;;  %v3296_v59 = vld [vmem:[%s4114_s4 + $0x168] sm:$0xff]   ;;  %v3298_v62 = vld [vmem:[%s4114_s4 + $0x170] sm:$0xff]  }
  0x19   : > { %2915 = vmatprep.subr.bf16.mxu1 %v3427_v1  ;;  %v749_v36 = vshrl.u32 %v3268_v31, 16  ;;  %v752_v38 = vshll.u32 %v3268_v31, 16  ;;  %v640_v44 = vrot.slane %v3268_v31, 1  ;;  %v846_v55 = vld [vmem:[%s3632_s29] sm:$0x3]  ;;  %s3708_s13 = scalar_lea.vmem %s4112_s2, %s2361_s8  ;;  %v3299_v63 = vld [vmem:[%s4114_s4 + $0x138] sm:$0xff]   ;;  %vm2210_vm3 = vmand %vm2208_vm1, %vm2209_vm2 }
  0x1a   : > { %v438_v15 = vshll.u32 %v2380_v12, 16  ;;  %v436_v18 = vshrl.u32 %v2380_v12, 16  ;;  %v3294_v56 = vld [vmem:[%s4114_s4 + $0x160] sm:$0xff]   ;;  %v2486_v57 = vcombine.low %v846_v55, %v846_v55  ;;  %v3300_v3 = vld [vmem:[%s4114_s4 + $0x178] sm:$0xff]   ;;  %v3305_v7 = vld [vmem:[%s4114_s4 + $0x188] sm:$0xff]   ;;  %p382_p9 = scmp.lt.s32.totalorder %s379_s18, 5 }
  0x1b   : > { %2896 = vmatpush3.bf16.msra.mxu0 %v3259_v9  ;;  %v751_v40 = vrot.slane %v749_v36, 1  ;;  %v754_v42 = vrot.slane %v752_v38, 2  ;;  %v3303_v5 = vld [vmem:[%s4114_s4 + $0x180] sm:$0xff]   ;;  %v3306_v8 = vld [vmem:[%s4114_s4 + $0x1c8] sm:$0xff]   ;;  %v3307_v9 = vld [vmem:[%s4114_s4 + $0x190] sm:$0xff]   ;;  %s3208_s8 = smul.u32 3, %s4128_s22 }
  0x1c   : > { %2916 = vmatpush3.bf16.msra.mxu1 %v3260_v10  ;;  %2897 = vmatprep.subr.bf16.mxu0 %v3427_v1  ;;  %v440_v19 = vrot.slane %v438_v15, 1  ;;  %v976_v61 = vshll.u32 %v2486_v57, 16  ;;  %v974_v0 = vshrl.u32 %v2486_v57, 16  ;;  %v3304_v6 = vld [vmem:[%s4114_s4 + $0x1c0] sm:$0xff]   ;;  %v3308_v10 = vld [vmem:[%s4114_s4 + $0x1d0] sm:$0xff]   ;;  %s4134_s18 = smov (!%p382_p9, %s379_s18), 5 }
  0x1d   : > { %2917 = vmatprep.subr.bf16.mxu1 %v3427_v1  ;;  %v755_v45 = vor.u32 %v754_v42, %v751_v40  ;;  %v3310_v12 = vld [vmem:[%s4114_s4 + $0x1d8] sm:$0xff]   ;;  %s385_s17 = sadd.s32 %s3528_s15, %s4134_s18  ;;  %v3312_v15 = vld [vmem:[%s4114_s4 + $0x1e0] sm:$0xff]   ;;  %v3322_v31 = vld [vmem:[%s4114_s4 + $0x248] sm:$0xff]   ;;  %s4136_s21 = smov (!%p391_p10, %s3409_s21), 2 }
  0x1e   : > { %v441_v22 = vor.u32 %v440_v19, %v436_v18  ;;  %v978_v2 = vrot.slane %v976_v61, 1  ;;  %s2362_s9 = sshll.u32 %s385_s17, 2  ;;  %v3315_v19 = vld [vmem:[%s4114_s4 + $0x1b0] sm:$0xff]   ;;  %v3327_v36 = vld [vmem:[%s4114_s4 + $0x220] sm:$0xff]   ;;  %v3344_v57 = vld [vmem:[%s4114_s4 + $0x2d8] sm:$0xff]   ;;  %s394_s15 = sadd.s32 %s3208_s8, %s4136_s21 }
  0x1f   : > { %2898 = vmatpush3.bf16.msra.mxu0 %v3261_v13  ;;  %v3302_v13 = vld [vmem:[%s3632_s29] ss:$0 sps:$4 sm:$0x66]   ;;  %s3787_s18 = scalar_lea.vmem %s4113_s3, %s2362_s9  ;;  %v3331_v42 = vld [vmem:[%s4114_s4 + $0x230] sm:$0xff]   ;;  %v3347_v61 = vld [vmem:[%s4114_s4 + $0x2a8] sm:$0xff]   ;;  %s2363_s29 = sshll.u32 %s394_s15, 1 }
  0x20   : > { %2918 = vmatpush3.bf16.msra.mxu1 %v3262_v14  ;;  %2899 = vmatprep.subr.bf16.mxu0 %v3427_v1  ;;  %v979_v4 = vor.u32 %v978_v2, %v974_v0  ;;  %v3311_v14 = vld [vmem:[%s4114_s4 + $0x1a0] sm:$0xff]   ;;  %v1200_v18 = vshrl.u32 %v3302_v13, 16  ;;  %s396_s14 = scalar_lea.vmem %s4116_s6, %s2363_s29 }
  0x21   : > { %2919 = vmatprep.subr.bf16.mxu1 %v3427_v1  ;;  %v1297_v38 = vld [vmem:[%s3708_s13] sm:$0x3] }
  0x22   : > { %v2584_v40 = vcombine.low %v1297_v38, %v1297_v38 }
  0x23   : > { %2900 = vmatpush3.bf16.msra.mxu0 %v3263_v16  ;;  %v3313_v16 = vld [vmem:[%s4114_s4 + $0x1a8] sm:$0xff]  }
  0x24   : > { %2920 = vmatpush3.bf16.msra.mxu1 %v3264_v17  ;;  %2901 = vmatprep.subr.bf16.mxu0 %v3427_v1  ;;  %v3314_v17 = vld [vmem:[%s4114_s4 + $0x1e8] sm:$0xff]  }
  0x25   : > { %2921 = vmatprep.subr.bf16.mxu1 %v3427_v1 }
  0x27   : > { %2902 = vmatpush3.bf16.msra.mxu0 %v3265_v20  ;;  %v3316_v20 = vld [vmem:[%s4114_s4 + $0x1f0] sm:$0xff]  }
  0x28   : > { %2922 = vmatpush3.bf16.msra.mxu1 %v3266_v21  ;;  %2927 = vmatprep.subr.bf16.mxu0 %v3427_v1  ;;  %v1203_v21 = vshll.u32 %v3302_v13, 16 }
  0x29   : > { %2947 = vmatprep.subr.bf16.mxu1 %v3427_v1 }
  0x2a   : > { %2904 = vmatmul.mubr.bf16.vlgmr.msra.gmra.mrb[0].mxu0 %v441_v22  ;;  %v1202_v22 = vrot.slane %v1200_v18, 1  ;;  %v3361_v18 = vld [vmem:[%s4114_s4 + $0x320] sm:$0xff]  }
  0x2b   : > { %2924 = vmatmul.mubr.bf16.vlgmr.msra.gmra.mrb[0].mxu1 %v398_v11  ;;  %2928 = vmatpush3.bf16.msra.mxu0 %v3269_v23  ;;  %v3309_v11 = vld [vmem:[%s4114_s4 + $0x198] sm:$0xff]  }
  0x2c   : > { %2948 = vmatpush3.bf16.msra.mxu1 %v3270_v24  ;;  %2929 = vmatprep.subr.bf16.mxu0 %v3427_v1  ;;  %v3317_v23 = vld [vmem:[%s4114_s4 + $0x1b8] sm:$0xff]   ;;  %v1205_v24 = vrot.slane %v1203_v21, 2  ;;  %v3363_v21 = vld [vmem:[%s4114_s4 + $0x328] sm:$0xff]  }
  0x2d   : > { %2949 = vmatprep.subr.bf16.mxu1 %v3427_v1  ;;  %2943 = vmatprep.mubr.msk.bf16.mxu0 %vm3428_vm0, %v3427_v1 }
  0x2e   : > { %2963 = vmatprep.mubr.msk.bf16.mxu1 %vm3428_vm0, %v3427_v1 }
  0x2f   : > { %2930 = vmatpush3.bf16.msra.mxu0 %v3271_v25  ;;  %v3318_v25 = vld [vmem:[%s4114_s4 + $0x1f8] sm:$0xff]  }
  0x30   : > { %2950 = vmatpush3.bf16.msra.mxu1 %v3272_v26  ;;  %2931 = vmatprep.subr.bf16.mxu0 %v3427_v1  ;;  %v1091_v26 = vrot.slane %v3302_v13, 1  ;;  %v3356_v13 = vld [vmem:[%s4114_s4 + $0x348] sm:$0xff]  }
  0x31   : > { %2951 = vmatprep.subr.bf16.mxu1 %v3427_v1 }
  0x33   : > { %2932 = vmatpush3.bf16.msra.mxu0 %v3273_v27  ;;  %v1206_v27 = vor.u32 %v1205_v24, %v1202_v22  ;;  %v3365_v24 = vld [vmem:[%s4114_s4 + $0x330] sm:$0xff]  }
  0x34   : > { %2952 = vmatpush3.bf16.msra.mxu1 %v3274_v28  ;;  %2933 = vmatprep.subr.bf16.mxu0 %v3427_v1  ;;  %v3319_v28 = vld [vmem:[%s4114_s4 + $0x200] sm:$0xff]  }
  0x35   : > { %2953 = vmatprep.subr.bf16.mxu1 %v3427_v1 }
  0x37   : > { %2934 = vmatpush3.bf16.msra.mxu0 %v3275_v29  ;;  %v3320_v29 = vld [vmem:[%s4114_s4 + $0x240] sm:$0xff]  }
  0x38   : > { %2954 = vmatpush3.bf16.msra.mxu1 %v3276_v30  ;;  %2935 = vmatprep.subr.bf16.mxu0 %v3427_v1  ;;  %v3321_v30 = vld [vmem:[%s4114_s4 + $0x208] sm:$0xff]  }
  0x39   : > { %2955 = vmatprep.subr.bf16.mxu1 %v3427_v1 }
  0x3b   : > { %2936 = vmatpush3.bf16.msra.mxu0 %v3277_v32  ;;  %v3323_v32 = vld [vmem:[%s4114_s4 + $0x210] sm:$0xff]  }
  0x3c   : > { %2956 = vmatpush3.bf16.msra.mxu1 %v3278_v33  ;;  %2937 = vmatprep.subr.bf16.mxu0 %v3427_v1  ;;  %v3324_v33 = vld [vmem:[%s4114_s4 + $0x250] sm:$0xff]  }
  0x3d   : > { %2957 = vmatprep.subr.bf16.mxu1 %v3427_v1 }
  0x3f   : > { %2938 = vmatpush3.bf16.msra.mxu0 %v3279_v34  ;;  %v3325_v34 = vld [vmem:[%s4114_s4 + $0x218] sm:$0xff]  }
  0x40   : > { %2958 = vmatpush3.bf16.msra.mxu1 %v3280_v35  ;;  %2939 = vmatprep.subr.bf16.mxu0 %v3427_v1  ;;  %v3326_v35 = vld [vmem:[%s4114_s4 + $0x258] sm:$0xff]  }
  0x41   : > { %2959 = vmatprep.subr.bf16.mxu1 %v3427_v1 }
  0x43   : > { %2940 = vmatpush3.bf16.msra.mxu0 %v3281_v37  ;;  %v3328_v37 = vld [vmem:[%s4114_s4 + $0x260] sm:$0xff]  }
  0x44   : > { %2960 = vmatpush3.bf16.msra.mxu1 %v3282_v39  ;;  %2941 = vmatprep.subr.bf16.mxu0 %v3427_v1  ;;  %v3329_v39 = vld [vmem:[%s4114_s4 + $0x228] sm:$0xff]  }
  0x45   : > { %2961 = vmatprep.subr.bf16.mxu1 %v3427_v1 }
  0x47   : > { %2942 = vmatpush3.bf16.msra.mxu0 %v3283_v41  ;;  %v3330_v41 = vld [vmem:[%s4114_s4 + $0x268] sm:$0xff]  }
  0x48   : > { %2962 = vmatpush3.bf16.msra.mxu1 %v3284_v43  ;;  %2967 = vmatprep.subr.bf16.mxu0 %v3427_v1  ;;  %v1427_v43 = vshll.u32 %v2584_v40, 16 }
  0x49   : > { %2987 = vmatprep.subr.bf16.mxu1 %v3427_v1 }
  0x4a   : > { %2944 = vmatmul.mubr.bf16.vlgmr.msra.gmra.mrb[4].mxu0 %v640_v44  ;;  %v3332_v44 = vld [vmem:[%s4114_s4 + $0x270] sm:$0xff]  }
  0x4b   : > { %2964 = vmatmul.mubr.bf16.vlgmr.msra.gmra.mrb[4].mxu1 %v755_v45  ;;  %2968 = vmatpush3.bf16.msra.mxu0 %v3285_v46  ;;  %v3333_v45 = vld [vmem:[%s4114_s4 + $0x238] sm:$0xff]   ;;  %v1425_v46 = vshrl.u32 %v2584_v40, 16  ;;  %v3379_v40 = vld [vmem:[%s4114_s4 + $0x3a0] sm:$0xff]  }
  0x4c   : > { %2988 = vmatpush3.bf16.msra.mxu1 %v3286_v47  ;;  %2969 = vmatprep.subr.bf16.mxu0 %v3427_v1  ;;  %v1429_v47 = vrot.slane %v1427_v43, 1  ;;  %v3381_v43 = vld [vmem:[%s4114_s4 + $0x3a8] sm:$0xff]  }
  0x4d   : > { %2989 = vmatprep.subr.bf16.mxu1 %v3427_v1  ;;  %2983 = vmatprep.mubr.msk.bf16.mxu0 %vm3428_vm0, %v3427_v1 }
  0x4e   : > { %3003 = vmatprep.mubr.msk.bf16.mxu1 %vm3428_vm0, %v3427_v1 }
  0x4f   : > { %2970 = vmatpush3.bf16.msra.mxu0 %v3287_v48  ;;  %v3334_v48 = vld [vmem:[%s4114_s4 + $0x278] sm:$0xff]  }
  0x50   : > { %2990 = vmatpush3.bf16.msra.mxu1 %v3288_v49  ;;  %2971 = vmatprep.subr.bf16.mxu0 %v3427_v1  ;;  %v1430_v49 = vor.u32 %v1429_v47, %v1425_v46 }
  0x51   : > { %2991 = vmatprep.subr.bf16.mxu1 %v3427_v1 }
  0x53   : > { %2972 = vmatpush3.bf16.msra.mxu0 %v3289_v50  ;;  %v3337_v50 = vld [vmem:[%s4114_s4 + $0x280] sm:$0xff]  }
  0x54   : > { %2992 = vmatpush3.bf16.msra.mxu1 %v3290_v51  ;;  %2973 = vmatprep.subr.bf16.mxu0 %v3427_v1  ;;  %v3338_v51 = vld [vmem:[%s4114_s4 + $0x2c0] sm:$0xff]  }
  0x55   : > { %2993 = vmatprep.subr.bf16.mxu1 %v3427_v1 }
  0x57   : > { %2974 = vmatpush3.bf16.msra.mxu0 %v3291_v52  ;;  %v3339_v52 = vld [vmem:[%s4114_s4 + $0x288] sm:$0xff]  }
  0x58   : > { %2994 = vmatpush3.bf16.msra.mxu1 %v3292_v53  ;;  %2975 = vmatprep.subr.bf16.mxu0 %v3427_v1  ;;  %v3340_v53 = vld [vmem:[%s4114_s4 + $0x2c8] sm:$0xff]  }
  0x59   : > { %2995 = vmatprep.subr.bf16.mxu1 %v3427_v1 }
  0x5b   : > { %2976 = vmatpush3.bf16.msra.mxu0 %v3293_v54  ;;  %v3341_v54 = vld [vmem:[%s4114_s4 + $0x290] sm:$0xff]  }
  0x5c   : > { %2996 = vmatpush3.bf16.msra.mxu1 %v3294_v56  ;;  %2977 = vmatprep.subr.bf16.mxu0 %v3427_v1  ;;  %v3343_v56 = vld [vmem:[%s4114_s4 + $0x298] sm:$0xff]  }
  0x5d   : > { %2997 = vmatprep.subr.bf16.mxu1 %v3427_v1 }
  0x5f   : > { %2978 = vmatpush3.bf16.msra.mxu0 %v3295_v58  ;;  %v3345_v58 = vld [vmem:[%s4114_s4 + $0x2a0] sm:$0xff]  }
  0x60   : > { %2998 = vmatpush3.bf16.msra.mxu1 %v3296_v59  ;;  %2979 = vmatprep.subr.bf16.mxu0 %v3427_v1  ;;  %v3346_v59 = vld [vmem:[%s4114_s4 + $0x2e0] sm:$0xff]  }
  0x61   : > { %2999 = vmatprep.subr.bf16.mxu1 %v3427_v1 }
  0x63   : > { %2980 = vmatpush3.bf16.msra.mxu0 %v3297_v60  ;;  %v3336_v60 = vld [vmem:[%s3708_s13] ss:$0 sps:$4 sm:$0x66]  }
  0x64   : > { %3000 = vmatpush3.bf16.msra.mxu1 %v3298_v62  ;;  %2981 = vmatprep.subr.bf16.mxu0 %v3427_v1  ;;  %v3348_v62 = vld [vmem:[%s4114_s4 + $0x2e8] sm:$0xff]   ;;  %v1651_v0 = vshrl.u32 %v3336_v60, 16  ;;  %v1654_v2 = vshll.u32 %v3336_v60, 16 }
  0x65   : > { %3001 = vmatprep.subr.bf16.mxu1 %v3427_v1 }
  0x67   : > { %2982 = vmatpush3.bf16.msra.mxu0 %v3299_v63  ;;  %v3349_v63 = vld [vmem:[%s4114_s4 + $0x2b0] sm:$0xff]  }
  0x68   : > { %3002 = vmatpush3.bf16.msra.mxu1 %v3300_v3  ;;  %3007 = vmatprep.subr.bf16.mxu0 %v3427_v1  ;;  %v3350_v3 = vld [vmem:[%s4114_s4 + $0x2f0] sm:$0xff]  }
  0x69   : > { %3027 = vmatprep.subr.bf16.mxu1 %v3427_v1 }
  0x6a   : > { %2984 = vmatmul.mubr.bf16.vlgmr.msra.gmra.mrb[8].mxu0 %v846_v55  ;;  %v3342_v55 = vld [vmem:[%s4114_s4 + $0x2d0] sm:$0xff]  }
  0x6b   : > { %3004 = vmatmul.mubr.bf16.vlgmr.msra.gmra.mrb[8].mxu1 %v979_v4  ;;  %3008 = vmatpush3.bf16.msra.mxu0 %v3303_v5  ;;  %v3351_v4 = vld [vmem:[%s4114_s4 + $0x2b8] sm:$0xff]   ;;  %v1653_v5 = vrot.slane %v1651_v0, 1 }
  0x6c   : > { %3028 = vmatpush3.bf16.msra.mxu1 %v3304_v6  ;;  %3009 = vmatprep.subr.bf16.mxu0 %v3427_v1  ;;  %v1656_v6 = vrot.slane %v1654_v2, 2 }
  0x6d   : > { %3029 = vmatprep.subr.bf16.mxu1 %v3427_v1  ;;  %3023 = vmatprep.mubr.msk.bf16.mxu0 %vm3428_vm0, %v3427_v1 }
  0x6e   : > { %3043 = vmatprep.mubr.msk.bf16.mxu1 %vm3428_vm0, %v3427_v1 }
  0x6f   : > { %3010 = vmatpush3.bf16.msra.mxu0 %v3305_v7  ;;  %v3352_v7 = vld [vmem:[%s4114_s4 + $0x2f8] sm:$0xff]  }
  0x70   : > { %3030 = vmatpush3.bf16.msra.mxu1 %v3306_v8  ;;  %3011 = vmatprep.subr.bf16.mxu0 %v3427_v1  ;;  %v1542_v8 = vrot.slane %v3336_v60, 1 }
  0x71   : > { %3031 = vmatprep.subr.bf16.mxu1 %v3427_v1 }
  0x73   : > { %3012 = vmatpush3.bf16.msra.mxu0 %v3307_v9  ;;  %v1657_v9 = vor.u32 %v1656_v6, %v1653_v5 }
  0x74   : > { %3032 = vmatpush3.bf16.msra.mxu1 %v3308_v10  ;;  %3013 = vmatprep.subr.bf16.mxu0 %v3427_v1  ;;  %v3353_v10 = vld [vmem:[%s4114_s4 + $0x300] sm:$0xff]  }
  0x75   : > { %3033 = vmatprep.subr.bf16.mxu1 %v3427_v1 }
  0x77   : > { %3014 = vmatpush3.bf16.msra.mxu0 %v3309_v11  ;;  %v3354_v11 = vld [vmem:[%s4114_s4 + $0x340] sm:$0xff]  }
  0x78   : > { %3034 = vmatpush3.bf16.msra.mxu1 %v3310_v12  ;;  %3015 = vmatprep.subr.bf16.mxu0 %v3427_v1  ;;  %v3355_v12 = vld [vmem:[%s4114_s4 + $0x308] sm:$0xff]  }
  0x79   : > { %3035 = vmatprep.subr.bf16.mxu1 %v3427_v1 }
  0x7b   : > { %3016 = vmatpush3.bf16.msra.mxu0 %v3311_v14  ;;  %v3357_v14 = vld [vmem:[%s4114_s4 + $0x310] sm:$0xff]  }
  0x7c   : > { %3036 = vmatpush3.bf16.msra.mxu1 %v3312_v15  ;;  %3017 = vmatprep.subr.bf16.mxu0 %v3427_v1  ;;  %v3358_v15 = vld [vmem:[%s4114_s4 + $0x350] sm:$0xff]  }
  0x7d   : > { %3037 = vmatprep.subr.bf16.mxu1 %v3427_v1 }
  0x7f   : > { %3018 = vmatpush3.bf16.msra.mxu0 %v3313_v16  ;;  %v3359_v16 = vld [vmem:[%s4114_s4 + $0x318] sm:$0xff]  }
  0x80   : > { %3038 = vmatpush3.bf16.msra.mxu1 %v3314_v17  ;;  %3019 = vmatprep.subr.bf16.mxu0 %v3427_v1  ;;  %v3360_v17 = vld [vmem:[%s4114_s4 + $0x358] sm:$0xff]  }
  0x81   : > { %3039 = vmatprep.subr.bf16.mxu1 %v3427_v1 }
  0x83   : > { %3020 = vmatpush3.bf16.msra.mxu0 %v3315_v19  ;;  %v3362_v19 = vld [vmem:[%s4114_s4 + $0x360] sm:$0xff]  }
  0x84   : > { %3040 = vmatpush3.bf16.msra.mxu1 %v3316_v20  ;;  %3021 = vmatprep.subr.bf16.mxu0 %v3427_v1  ;;  %v1748_v20 = vld [vmem:[%s3787_s18] sm:$0x3] }
  0x85   : > { %3041 = vmatprep.subr.bf16.mxu1 %v3427_v1  ;;  %v2682_v22 = vcombine.low %v1748_v20, %v1748_v20 }
  0x87   : > { %3022 = vmatpush3.bf16.msra.mxu0 %v3317_v23  ;;  %v3364_v23 = vld [vmem:[%s4114_s4 + $0x368] sm:$0xff]  }
  0x88   : > { %3042 = vmatpush3.bf16.msra.mxu1 %v3318_v25  ;;  %3047 = vmatprep.subr.bf16.mxu0 %v3427_v1  ;;  %v1878_v25 = vshll.u32 %v2682_v22, 16 }
  0x89   : > { %3067 = vmatprep.subr.bf16.mxu1 %v3427_v1 }
  0x8a   : > { %3024 = vmatmul.mubr.bf16.vlgmr.msra.gmra.mrb[12].mxu0 %v1091_v26  ;;  %v3366_v26 = vld [vmem:[%s4114_s4 + $0x370] sm:$0xff]  }
  0x8b   : > { %3044 = vmatmul.mubr.bf16.vlgmr.msra.gmra.mrb[12].mxu1 %v1206_v27  ;;  %3048 = vmatpush3.bf16.msra.mxu0 %v3319_v28  ;;  %v3367_v27 = vld [vmem:[%s4114_s4 + $0x338] sm:$0xff]   ;;  %v1876_v28 = vshrl.u32 %v2682_v22, 16 }
  0x8c   : > { %3068 = vmatpush3.bf16.msra.mxu1 %v3320_v29  ;;  %3049 = vmatprep.subr.bf16.mxu0 %v3427_v1  ;;  %v1880_v29 = vrot.slane %v1878_v25, 1 }
  0x8d   : > { %3069 = vmatprep.subr.bf16.mxu1 %v3427_v1  ;;  %3063 = vmatprep.mubr.msk.bf16.mxu0 %vm3428_vm0, %v3427_v1 }
  0x8e   : > { %3083 = vmatprep.mubr.msk.bf16.mxu1 %vm3428_vm0, %v3427_v1 }
  0x8f   : > { %3050 = vmatpush3.bf16.msra.mxu0 %v3321_v30  ;;  %v3368_v30 = vld [vmem:[%s4114_s4 + $0x378] sm:$0xff]  }
  0x90   : > { %3070 = vmatpush3.bf16.msra.mxu1 %v3322_v31  ;;  %3051 = vmatprep.subr.bf16.mxu0 %v3427_v1  ;;  %v1881_v31 = vor.u32 %v1880_v29, %v1876_v28 }
  0x91   : > { %3071 = vmatprep.subr.bf16.mxu1 %v3427_v1 }
  0x93   : > { %3052 = vmatpush3.bf16.msra.mxu0 %v3323_v32  ;;  %v3371_v32 = vld [vmem:[%s4114_s4 + $0x380] sm:$0xff]  }
  0x94   : > { %3072 = vmatpush3.bf16.msra.mxu1 %v3324_v33  ;;  %3053 = vmatprep.subr.bf16.mxu0 %v3427_v1  ;;  %v3372_v33 = vld [vmem:[%s4114_s4 + $0x3c0] sm:$0xff]  }
  0x95   : > { %3073 = vmatprep.subr.bf16.mxu1 %v3427_v1 }
  0x97   : > { %3054 = vmatpush3.bf16.msra.mxu0 %v3325_v34  ;;  %v3373_v34 = vld [vmem:[%s4114_s4 + $0x388] sm:$0xff]  }
  0x98   : > { %3074 = vmatpush3.bf16.msra.mxu1 %v3326_v35  ;;  %3055 = vmatprep.subr.bf16.mxu0 %v3427_v1  ;;  %v3374_v35 = vld [vmem:[%s4114_s4 + $0x3c8] sm:$0xff]  }
  0x99   : > { %3075 = vmatprep.subr.bf16.mxu1 %v3427_v1 }
  0x9b   : > { %3056 = vmatpush3.bf16.msra.mxu0 %v3327_v36  ;;  %v3375_v36 = vld [vmem:[%s4114_s4 + $0x390] sm:$0xff]  }
  0x9c   : > { %3076 = vmatpush3.bf16.msra.mxu1 %v3328_v37  ;;  %3057 = vmatprep.subr.bf16.mxu0 %v3427_v1  ;;  %v3376_v37 = vld [vmem:[%s4114_s4 + $0x3d0] sm:$0xff]  }
  0x9d   : > { %3077 = vmatprep.subr.bf16.mxu1 %v3427_v1 }
  0x9f   : > { %3058 = vmatpush3.bf16.msra.mxu0 %v3329_v39  ;;  %v3378_v39 = vld [vmem:[%s4114_s4 + $0x3d8] sm:$0xff]  }
  0xa0   : > { %3078 = vmatpush3.bf16.msra.mxu1 %v3330_v41  ;;  %3059 = vmatprep.subr.bf16.mxu0 %v3427_v1  ;;  %v3380_v41 = vld [vmem:[%s4114_s4 + $0x3e0] sm:$0xff]  }
  0xa1   : > { %3079 = vmatprep.subr.bf16.mxu1 %v3427_v1 }
  0xa3   : > { %3060 = vmatpush3.bf16.msra.mxu0 %v3331_v42  ;;  %v3370_v42 = vld [vmem:[%s3787_s18] ss:$0 sps:$4 sm:$0x66]  }
  0xa4   : > { %3080 = vmatpush3.bf16.msra.mxu1 %v3332_v44  ;;  %3061 = vmatprep.subr.bf16.mxu0 %v3427_v1  ;;  %v3382_v44 = vld [vmem:[%s4114_s4 + $0x3e8] sm:$0xff]  }
  0xa5   : > { %3081 = vmatprep.subr.bf16.mxu1 %v3427_v1 }
  0xa7   : > { %3062 = vmatpush3.bf16.msra.mxu0 %v3333_v45 }
  0xa8   : > { %3082 = vmatpush3.bf16.msra.mxu1 %v3334_v48  ;;  %3087 = vmatprep.subr.bf16.mxu0 %v3427_v1 }
  0xa9   : > { %3107 = vmatprep.subr.bf16.mxu1 %v3427_v1 }
  0xaa   : > { %3064 = vmatmul.mubr.bf16.vlgmr.msra.gmra.mrb[16].mxu0 %v1297_v38  ;;  %v3377_v38 = vld [vmem:[%s4114_s4 + $0x398] sm:$0xff]  }
  0xab   : > { %3084 = vmatmul.mubr.bf16.vlgmr.msra.gmra.mrb[16].mxu1 %v1430_v49  ;;  %3088 = vmatpush3.bf16.msra.mxu0 %v3337_v50 }
  0xac   : > { %3108 = vmatpush3.bf16.msra.mxu1 %v3338_v51  ;;  %3089 = vmatprep.subr.bf16.mxu0 %v3427_v1  ;;  %v3383_v51 = vld [vmem:[%s4114_s4 + $0x3b0] sm:$0xff]  }
  0xad   : > { %3109 = vmatprep.subr.bf16.mxu1 %v3427_v1  ;;  %3103 = vmatprep.mubr.msk.bf16.mxu0 %vm3428_vm0, %v3427_v1 }
  0xae   : > { %3123 = vmatprep.mubr.msk.bf16.mxu1 %vm3428_vm0, %v3427_v1 }
  0xaf   : > { %3090 = vmatpush3.bf16.msra.mxu0 %v3339_v52  ;;  %v2102_v52 = vshrl.u32 %v3370_v42, 16 }
  0xb0   : > { %3110 = vmatpush3.bf16.msra.mxu1 %v3340_v53  ;;  %3091 = vmatprep.subr.bf16.mxu0 %v3427_v1  ;;  %v2105_v53 = vshll.u32 %v3370_v42, 16 }
  0xb1   : > { %3111 = vmatprep.subr.bf16.mxu1 %v3427_v1 }
  0xb2   : > { %v2107_v60 = vrot.slane %v2105_v53, 2 }
  0xb3   : > { %3092 = vmatpush3.bf16.msra.mxu0 %v3341_v54 }
  0xb4   : > { %3112 = vmatpush3.bf16.msra.mxu1 %v3342_v55  ;;  %3093 = vmatprep.subr.bf16.mxu0 %v3427_v1 }
  0xb5   : > { %3113 = vmatprep.subr.bf16.mxu1 %v3427_v1 }
  0xb7   : > { %3094 = vmatpush3.bf16.msra.mxu0 %v3343_v56  ;;  %v3384_v56 = vld [vmem:[%s4114_s4 + $0x3f0] sm:$0xff]  }
  0xb8   : > { %3114 = vmatpush3.bf16.msra.mxu1 %v3344_v57  ;;  %3095 = vmatprep.subr.bf16.mxu0 %v3427_v1 }
  0xb9   : > { %3115 = vmatprep.subr.bf16.mxu1 %v3427_v1 }
  0xbb   : > { %3096 = vmatpush3.bf16.msra.mxu0 %v3345_v58  ;;  %v3385_v58 = vld [vmem:[%s4114_s4 + $0x3b8] sm:$0xff]  }
  0xbc   : > { %3116 = vmatpush3.bf16.msra.mxu1 %v3346_v59  ;;  %3097 = vmatprep.subr.bf16.mxu0 %v3427_v1  ;;  %v2104_v59 = vrot.slane %v2102_v52, 1 }
  0xbd   : > { %3117 = vmatprep.subr.bf16.mxu1 %v3427_v1 }
  0xbf   : > { %3098 = vmatpush3.bf16.msra.mxu0 %v3347_v61  ;;  %v3386_v61 = vld [vmem:[%s4114_s4 + $0x3f8] sm:$0xff]  }
  0xc0   : > { %3118 = vmatpush3.bf16.msra.mxu1 %v3348_v62  ;;  %3099 = vmatprep.subr.bf16.mxu0 %v3427_v1  ;;  %v1993_v62 = vrot.slane %v3370_v42, 1 }
  0xc1   : > { %3119 = vmatprep.subr.bf16.mxu1 %v3427_v1 }
  0xc3   : > { %3100 = vmatpush3.bf16.msra.mxu0 %v3349_v63  ;;  %v2108_v63 = vor.u32 %v2107_v60, %v2104_v59 }
  0xc4   : > { %3120 = vmatpush3.bf16.msra.mxu1 %v3350_v3  ;;  %3101 = vmatprep.subr.bf16.mxu0 %v3427_v1 }
  0xc5   : > { %3121 = vmatprep.subr.bf16.mxu1 %v3427_v1 }
  0xc7   : > { %3102 = vmatpush3.bf16.msra.mxu0 %v3351_v4 }
  0xc8   : > { %3122 = vmatpush3.bf16.msra.mxu1 %v3352_v7  ;;  %3127 = vmatprep.subr.bf16.mxu0 %v3427_v1 }
  0xc9   : > { %3147 = vmatprep.subr.bf16.mxu1 %v3427_v1 }
  0xca   : > { %3104 = vmatmul.mubr.bf16.vlgmr.msra.gmra.mrb[20].mxu0 %v1542_v8 }
  0xcb   : > { %3124 = vmatmul.mubr.bf16.vlgmr.msra.gmra.mrb[20].mxu1 %v1657_v9  ;;  %3128 = vmatpush3.bf16.msra.mxu0 %v3353_v10 }
  0xcc   : > { %3148 = vmatpush3.bf16.msra.mxu1 %v3354_v11  ;;  %3129 = vmatprep.subr.bf16.mxu0 %v3427_v1 }
  0xcd   : > { %3149 = vmatprep.subr.bf16.mxu1 %v3427_v1  ;;  %3143 = vmatprep.mubr.msk.bf16.mxu0 %vm3428_vm0, %v3427_v1 }
  0xce   : > { %3163 = vmatprep.mubr.msk.bf16.mxu1 %vm3428_vm0, %v3427_v1 }
  0xcf   : > { %3130 = vmatpush3.bf16.msra.mxu0 %v3355_v12 }
  0xd0   : > { %3150 = vmatpush3.bf16.msra.mxu1 %v3356_v13  ;;  %3131 = vmatprep.subr.bf16.mxu0 %v3427_v1 }
  0xd1   : > { %3151 = vmatprep.subr.bf16.mxu1 %v3427_v1 }
  0xd3   : > { %3132 = vmatpush3.bf16.msra.mxu0 %v3357_v14 }
  0xd4   : > { %3152 = vmatpush3.bf16.msra.mxu1 %v3358_v15  ;;  %3133 = vmatprep.subr.bf16.mxu0 %v3427_v1 }
  0xd5   : > { %3153 = vmatprep.subr.bf16.mxu1 %v3427_v1 }
  0xd7   : > { %3134 = vmatpush3.bf16.msra.mxu0 %v3359_v16 }
  0xd8   : > { %3154 = vmatpush3.bf16.msra.mxu1 %v3360_v17  ;;  %3135 = vmatprep.subr.bf16.mxu0 %v3427_v1 }
  0xd9   : > { %3155 = vmatprep.subr.bf16.mxu1 %v3427_v1 }
  0xdb   : > { %3136 = vmatpush3.bf16.msra.mxu0 %v3361_v18 }
  0xdc   : > { %3156 = vmatpush3.bf16.msra.mxu1 %v3362_v19  ;;  %3137 = vmatprep.subr.bf16.mxu0 %v3427_v1 }
  0xdd   : > { %3157 = vmatprep.subr.bf16.mxu1 %v3427_v1 }
  0xdf   : > { %3138 = vmatpush3.bf16.msra.mxu0 %v3363_v21 }
  0xe0   : > { %3158 = vmatpush3.bf16.msra.mxu1 %v3364_v23  ;;  %3139 = vmatprep.subr.bf16.mxu0 %v3427_v1 }
  0xe1   : > { %3159 = vmatprep.subr.bf16.mxu1 %v3427_v1 }
  0xe3   : > { %3140 = vmatpush3.bf16.msra.mxu0 %v3365_v24 }
  0xe4   : > { %3160 = vmatpush3.bf16.msra.mxu1 %v3366_v26  ;;  %3141 = vmatprep.subr.bf16.mxu0 %v3427_v1 }
  0xe5   : > { %3161 = vmatprep.subr.bf16.mxu1 %v3427_v1 }
  0xe7   : > { %3142 = vmatpush3.bf16.msra.mxu0 %v3367_v27 }
  0xe8   : > { %3162 = vmatpush3.bf16.msra.mxu1 %v3368_v30  ;;  %3167 = vmatprep.subr.bf16.mxu0 %v3427_v1 }
  0xe9   : > { %3187 = vmatprep.subr.bf16.mxu1 %v3427_v1 }
  0xea   : > { %3144 = vmatmul.mubr.bf16.vlgmr.msra.gmra.mrb[24].mxu0 %v1748_v20 }
  0xeb   : > { %3164 = vmatmul.mubr.bf16.vlgmr.msra.gmra.mrb[24].mxu1 %v1881_v31  ;;  %3168 = vmatpush3.bf16.msra.mxu0 %v3371_v32 }
  0xec   : > { %3188 = vmatpush3.bf16.msra.mxu1 %v3372_v33  ;;  %3169 = vmatprep.subr.bf16.mxu0 %v3427_v1 }
  0xed   : > { %3189 = vmatprep.subr.bf16.mxu1 %v3427_v1  ;;  %3183 = vmatprep.mubr.msk.bf16.mxu0 %vm3428_vm0, %v3427_v1 }
  0xee   : > { %3203 = vmatprep.mubr.msk.bf16.mxu1 %vm3428_vm0, %v3427_v1 }
  0xef   : > { %3170 = vmatpush3.bf16.msra.mxu0 %v3373_v34 }
  0xf0   : > { %3190 = vmatpush3.bf16.msra.mxu1 %v3374_v35  ;;  %3171 = vmatprep.subr.bf16.mxu0 %v3427_v1 }
  0xf1   : > { %3191 = vmatprep.subr.bf16.mxu1 %v3427_v1 }
  0xf3   : > { %3172 = vmatpush3.bf16.msra.mxu0 %v3375_v36 }
  0xf4   : > { %3192 = vmatpush3.bf16.msra.mxu1 %v3376_v37  ;;  %3173 = vmatprep.subr.bf16.mxu0 %v3427_v1 }
  0xf5   : > { %3193 = vmatprep.subr.bf16.mxu1 %v3427_v1 }
  0xf7   : > { %3174 = vmatpush3.bf16.msra.mxu0 %v3377_v38 }
  0xf8   : > { %3194 = vmatpush3.bf16.msra.mxu1 %v3378_v39  ;;  %3175 = vmatprep.subr.bf16.mxu0 %v3427_v1 }
  0xf9   : > { %3195 = vmatprep.subr.bf16.mxu1 %v3427_v1 }
  0xfb   : > { %3176 = vmatpush3.bf16.msra.mxu0 %v3379_v40 }
  0xfc   : > { %3196 = vmatpush3.bf16.msra.mxu1 %v3380_v41  ;;  %3177 = vmatprep.subr.bf16.mxu0 %v3427_v1 }
  0xfd   : > { %v525_v45 = vpop.f32.mrb[0].mxu0  ;;  %3197 = vmatprep.subr.bf16.mxu1 %v3427_v1 }
  0xfe   : > { %v613_v46 = vpop.f32.mrb[0].mxu1  ;;  %v2905_v47 = vpop.f32.mrb[1].mxu0 }
  0xff   : > { %v614_v48 = vadd.f32 %v613_v46, %v525_v45  ;;  %v2925_v49 = vpop.f32.mrb[1].mxu1  ;;  %v528_v50 = vpop.f32.mrb[2].mxu0  ;;  %3178 = vmatpush3.bf16.msra.mxu0 %v3381_v43 }
 0x100   : > { %v616_v54 = vpop.f32.mrb[2].mxu1  ;;  %3198 = vmatpush3.bf16.msra.mxu1 %v3382_v44  ;;  %v2906_v55 = vpop.f32.mrb[3].mxu0  ;;  %3179 = vmatprep.subr.bf16.mxu0 %v3427_v1 }
 0x101   : > { %v2926_v57 = vpop.f32.mrb[3].mxu1  ;;  %3199 = vmatprep.subr.bf16.mxu1 %v3427_v1 }
 0x103   : > { %3180 = vmatpush3.bf16.msra.mxu0 %v3383_v51 }
 0x104   : > { %3200 = vmatpush3.bf16.msra.mxu1 %v3384_v56  ;;  %3181 = vmatprep.subr.bf16.mxu0 %v3427_v1 }
 0x105   : > { %3201 = vmatprep.subr.bf16.mxu1 %v3427_v1 }
 0x107   : > { %3182 = vmatpush3.bf16.msra.mxu0 %v3385_v58 }
 0x108   : > { %3202 = vmatpush3.bf16.msra.mxu1 %v3386_v61 }
 0x10a   : > { %3184 = vmatmul.mubr.bf16.vlgmr.msra.gmra.mrb[28].mxu0 %v1993_v62 }
 0x10b   : > { %3204 = vmatmul.mubr.bf16.vlgmr.msra.gmra.mrb[28].mxu1 %v2108_v63 }
 0x11d   : > { %v724_v0 = vpop.f32.mrb[4].mxu0 }
 0x11e   : > { %v730_v2 = vadd.f32 %v724_v0, %v614_v48  ;;  %v839_v3 = vpop.f32.mrb[4].mxu1  ;;  %v2945_v4 = vpop.f32.mrb[5].mxu0  ;;  %v2740_v0 = vld [vmem:[%s4115_s5] ss:$0 sm:$0xff] }
 0x11f   : > { %v2965_v5 = vpop.f32.mrb[5].mxu1  ;;  %v727_v6 = vpop.f32.mrb[6].mxu0 }
 0x120   : > { %v845_v7 = vadd.f32 %v839_v3, %v730_v2  ;;  %v842_v8 = vpop.f32.mrb[6].mxu1  ;;  %v2946_v9 = vpop.f32.mrb[7].mxu0 }
 0x121   : > { %v2966_v10 = vpop.f32.mrb[7].mxu1  ;;  %v2211_v9 = vld [vmem:[%s396_s14] sm:$0x3] }
 0x13d   : > { %v946_v11 = vpop.f32.mrb[8].mxu0 }
 0x13e   : > { %v952_v12 = vadd.f32 %v946_v11, %v845_v7  ;;  %v1063_v13 = vpop.f32.mrb[8].mxu1  ;;  %v2985_v1 = vpop.f32.mrb[9].mxu0 }
 0x13f   : > { %v3005_v14 = vpop.f32.mrb[9].mxu1  ;;  %v949_v15 = vpop.f32.mrb[10].mxu0 }
 0x140   : > { %v1069_v16 = vadd.f32 %v1063_v13, %v952_v12  ;;  %v1066_v17 = vpop.f32.mrb[10].mxu1  ;;  %v2986_v18 = vpop.f32.mrb[11].mxu0 }
 0x141   : > { %v3006_v19 = vpop.f32.mrb[11].mxu1 }
 0x15d   : > { %v1175_v20 = vpop.f32.mrb[12].mxu0 }
 0x15e   : > { %v1181_v21 = vadd.f32 %v1175_v20, %v1069_v16  ;;  %v1290_v22 = vpop.f32.mrb[12].mxu1  ;;  %v3025_v23 = vpop.f32.mrb[13].mxu0 }
 0x15f   : > { %v3045_v24 = vpop.f32.mrb[13].mxu1  ;;  %v1178_v25 = vpop.f32.mrb[14].mxu0 }
 0x160   : > { %v1296_v26 = vadd.f32 %v1290_v22, %v1181_v21  ;;  %v1293_v27 = vpop.f32.mrb[14].mxu1  ;;  %v3026_v28 = vpop.f32.mrb[15].mxu0 }
 0x161   : > { %v3046_v29 = vpop.f32.mrb[15].mxu1 }
 0x17d   : > { %v1397_v30 = vpop.f32.mrb[16].mxu0 }
 0x17e   : > { %v1403_v31 = vadd.f32 %v1397_v30, %v1296_v26  ;;  %v1514_v32 = vpop.f32.mrb[16].mxu1  ;;  %v3065_v33 = vpop.f32.mrb[17].mxu0 }
 0x17f   : > { %v3085_v34 = vpop.f32.mrb[17].mxu1  ;;  %v1400_v35 = vpop.f32.mrb[18].mxu0 }
 0x180   : > { %v1520_v36 = vadd.f32 %v1514_v32, %v1403_v31  ;;  %v1517_v37 = vpop.f32.mrb[18].mxu1  ;;  %v3066_v38 = vpop.f32.mrb[19].mxu0 }
 0x181   : > { %v3086_v39 = vpop.f32.mrb[19].mxu1 }
 0x19d   : > { %v1626_v40 = vpop.f32.mrb[20].mxu0 }
 0x19e   : > { %v1632_v41 = vadd.f32 %v1626_v40, %v1520_v36  ;;  %v1741_v42 = vpop.f32.mrb[20].mxu1  ;;  %v3105_v43 = vpop.f32.mrb[21].mxu0 }
 0x19f   : > { %v3125_v44 = vpop.f32.mrb[21].mxu1  ;;  %v1629_v45 = vpop.f32.mrb[22].mxu0 }
 0x1a0   : > { %v1747_v46 = vadd.f32 %v1741_v42, %v1632_v41  ;;  %v1744_v47 = vpop.f32.mrb[22].mxu1  ;;  %v3106_v48 = vpop.f32.mrb[23].mxu0 }
 0x1a1   : > { %v3126_v49 = vpop.f32.mrb[23].mxu1 }
 0x1bd   : > { %v1848_v50 = vpop.f32.mrb[24].mxu0 }
 0x1be   : > { %v1854_v51 = vadd.f32 %v1848_v50, %v1747_v46  ;;  %v1965_v52 = vpop.f32.mrb[24].mxu1  ;;  %v3145_v53 = vpop.f32.mrb[25].mxu0 }
 0x1bf   : > { %v3165_v54 = vpop.f32.mrb[25].mxu1  ;;  %v1851_v55 = vpop.f32.mrb[26].mxu0 }
 0x1c0   : > { %v1971_v56 = vadd.f32 %v1965_v52, %v1854_v51  ;;  %v1968_v57 = vpop.f32.mrb[26].mxu1  ;;  %v3146_v58 = vpop.f32.mrb[27].mxu0 }
 0x1c1   : > { %v3166_v59 = vpop.f32.mrb[27].mxu1 }
 0x1dd   : > { %v2077_v60 = vpop.f32.mrb[28].mxu0 }
 0x1de   : > { %v2083_v61 = vadd.f32 %v2077_v60, %v1971_v56  ;;  %v2192_v62 = vpop.f32.mrb[28].mxu1  ;;  %v3185_v63 = vpop.f32.mrb[29].mxu0 }
 0x1df   : > { %v3205_v2 = vpop.f32.mrb[29].mxu1  ;;  %v2080_v3 = vpop.f32.mrb[30].mxu0 }
 0x1e0   : > { %v2198_v4 = vadd.f32 %v2192_v62, %v2083_v61  ;;  %v2195_v5 = vpop.f32.mrb[30].mxu1  ;;  %v3186_v6 = vpop.f32.mrb[31].mxu0 }
 0x1e1   : > { %v3206_v7 = vpop.f32.mrb[31].mxu1 }
 0x1e2   : > { %v2206_v8 = vadd.f32 %v2740_v0, %v2198_v4 }
 0x1e4   : > { %v2207_v10 = vpack.c.bf16 %v2206_v8, %v2206_v8 }
 0x1e6   : > { %v2212_v11 = vsel %vm2210_vm3, %v2207_v10, %v2211_v9 }
 0x1e7   : > { %2213 = vst [vmem:[%s396_s14] sm:$0x3] %v2212_v11 }
 0x1e8 PF: > { %s16_s25 = sadd.s32 1, %s3425_s25   ;;  %s4117_s21 = smov %s3417_s23 }
 0x1e9   : > { %p13_p11 = scmp.ge.s32.totalorder %s16_s25, 8   ;;  %s4118_s22 = smov %s3421_s24 }
 0x1ea   : > { %s4119_s23 = smov %s4122_s26  ;;  %s4120_s24 = smov %s4126_s27 }
 0x1eb   :  { %15 = sbr.rel (!%p13_p11) target bundleno = 3 (0x3), region = 98 }

// kernel: discriminator_forward.15
= control target key start
LH: loop header
LB: loop body
LE: loop exit
PB: predicated region body
PF: predicated region fallthrough
CT: control target
= control target key end

     0   :  { %s3486_s21 = smov 0   ;;  %s3488_s22 = smov 0   ;;  %s4140_s0 = inlined_call_operand.vmem [shape: bf16[2,5,5,128], index: 0, kind: input, shape index: {}, may-alias: {0,1,2,3}]   ;;  %s4141_s1 = inlined_call_operand.vmem [shape: bf16[2,5,5,128], index: 1, kind: input, shape index: {}, may-alias: {0,1,2,3}]   ;;  %s4142_s2 = inlined_call_operand.vmem [shape: bf16[2,5,5,128], index: 2, kind: input, shape index: {}, may-alias: {0,1,2,3}]   ;;  %s4143_s3 = inlined_call_operand.vmem [shape: bf16[2,5,5,128], index: 3, kind: input, shape index: {}, may-alias: {0,1,2,3}]   ;;  %s4144_s4 = inlined_call_operand.vmem [shape: bf16[4,4,128,128], index: 4, kind: input, shape index: {}]   ;;  %s4145_s5 = inlined_call_operand.vmem [shape: f32[1,128], index: 5, kind: input, shape index: {}]   ;;  %s4146_s6 = inlined_call_operand.vmem [shape: f32[2,2,2,128], index: 6, kind: output, shape index: {}]  }
   0x1   :  { %s3490_s23 = smov 0   ;;  %s3492_s24 = smov 0  }
   0x2   :  { %s3494_s25 = smov 0  }
   0x3 LB: > { %s25_s26 = sadd.s32 1, %s3439_s23  ;;  %s28_s27 = sadd.s32 1, %s3443_s24  ;;  %s3447_s25 = sphi %s3494_s25, %s16_s25   ;;  %s3443_s24 = sphi %s3492_s24, %s4150_s24   ;;  %s3439_s23 = sphi %s3490_s23, %s4149_s23   ;;  %s3435_s22 = sphi %s3488_s22, %s4148_s22   ;;  %s3431_s21 = sphi %s3486_s21, %s4147_s21  }
   0x4   : > { %p26_p0 = scmp.ge.s32.totalorder %s25_s26, 2  ;;  %p2372_p1 = scmp.ge.s32.totalorder %s3447_s25, 1 }
   0x5   : > { %p288_p2 = scmp.lt.s32.totalorder %s3447_s25, 5 }
   0x6   : > { %s4152_s26 = smov (%p26_p0, %s25_s26), 0  ;;  %s4154_s27 = smov (!%p26_p0, %s28_s27), %s3443_s24 }
   0x7   : > { %p289_p3 = pnand %p2372_p1, %p288_p2  ;;  %p30_p4 = scmp.ge.s32.totalorder %s4154_s27, 2 }
   0x8   : > { %v3269_v0 = vld [vmem:[%s4144_s4 + $0x40] sm:$0xff] (!%p289_p3)   ;;  %v3449_v1 = vmov (!%p289_p3), 0.0   ;;  %v3271_v3 = vld [vmem:[%s4144_s4 + $0x48] sm:$0xff] (!%p289_p3)   ;;  %vm3450_vm0 = vmmov (!%p289_p3), 0   ;;  %p351_p5 = scmp.lt.s32.totalorder (!%p289_p3), %s3435_s22, 1  ;;  %p353_p6 = scmp.lt.s32.totalorder (!%p289_p3), %s3431_s21, 4 }
   0x9   : > { %s4156_s27 = smov (%p30_p4, %s4154_s27), 0  ;;  %292 = sbr.rel (%p289_p3) target bundleno = 485 (0x1e5), region = 44 }
   0xa   : > { %2906 = vmatprep.subr.bf16.mxu0 (!%p289_p3), %v3449_v1  ;;  %2926 = vmatprep.subr.bf16.mxu1 (!%p289_p3), %v3449_v1  ;;  %v3270_v2 = vld [vmem:[%s4144_s4] sm:$0xff] (!%p289_p3)   ;;  %v3272_v4 = vld [vmem:[%s4144_s4 + $0x8] sm:$0xff] (!%p289_p3)   ;;  %v3273_v5 = vld [vmem:[%s4144_s4 + $0x50] sm:$0xff] (!%p289_p3)   ;;  %s359_s16 = sadd.s32 (!%p289_p3), 1, %s3431_s21  ;;  %p391_p10 = scmp.lt.s32.totalorder (!%p289_p3), %s3431_s21, 1 }
   0xb   : > { %2907 = vmatpush3.bf16.msra.mxu0 (!%p289_p3), %v3269_v0  ;;  %2922 = vmatprep.mubr.msk.bf16.mxu0 (!%p289_p3), %vm3450_vm0, %v3449_v1  ;;  %v3274_v6 = vld [vmem:[%s4144_s4 + $0x10] sm:$0xff] (!%p289_p3)   ;;  %v3275_v7 = vld [vmem:[%s4144_s4 + $0x58] sm:$0xff] (!%p289_p3)   ;;  %v3277_v9 = vld [vmem:[%s4144_s4 + $0x60] sm:$0xff] (!%p289_p3)   ;;  %p362_p7 = scmp.lt.s32.totalorder (!%p289_p3), %s359_s16, 4 }
   0xc   : > { %2927 = vmatpush3.bf16.msra.mxu1 (!%p289_p3), %v3270_v2  ;;  %2908 = vmatprep.subr.bf16.mxu0 (!%p289_p3), %v3449_v1  ;;  %v3276_v8 = vld [vmem:[%s4144_s4 + $0x18] sm:$0xff] (!%p289_p3)   ;;  %v3278_v10 = vld [vmem:[%s4144_s4 + $0x20] sm:$0xff] (!%p289_p3)   ;;  %v3279_v12 = vld [vmem:[%s4144_s4 + $0x68] sm:$0xff] (!%p289_p3)  }
   0xd   : > { %2928 = vmatprep.subr.bf16.mxu1 (!%p289_p3), %v3449_v1  ;;  %2942 = vmatprep.mubr.msk.bf16.mxu1 (!%p289_p3), %vm3450_vm0, %v3449_v1  ;;  %v3280_v13 = vld [vmem:[%s4144_s4 + $0x28] sm:$0xff] (!%p289_p3)   ;;  %v3281_v15 = vld [vmem:[%s4144_s4 + $0x70] sm:$0xff] (!%p289_p3)   ;;  %v3283_v19 = vld [vmem:[%s4144_s4 + $0x78] sm:$0xff] (!%p289_p3)  }
   0xe   : > { %v3282_v16 = vld [vmem:[%s4144_s4 + $0x30] sm:$0xff] (!%p289_p3)   ;;  %v3284_v20 = vld [vmem:[%s4144_s4 + $0x38] sm:$0xff] (!%p289_p3)   ;;  %v3286_v22 = vld [vmem:[%s4144_s4 + $0x80] sm:$0xff] (!%p289_p3)  }
   0xf   : > { %2909 = vmatpush3.bf16.msra.mxu0 (!%p289_p3), %v3271_v3  ;;  %v3287_v24 = vld [vmem:[%s4144_s4 + $0xc0] sm:$0xff] (!%p289_p3)   ;;  %v3288_v25 = vld [vmem:[%s4144_s4 + $0x88] sm:$0xff] (!%p289_p3)   ;;  %v3290_v27 = vld [vmem:[%s4144_s4 + $0x90] sm:$0xff] (!%p289_p3)  }
  0x10   : > { %s4158_s22 = smov (!%p351_p5, %s3435_s22), 1  ;;  %2929 = vmatpush3.bf16.msra.mxu1 %v3272_v4  ;;  %2910 = vmatprep.subr.bf16.mxu0 %v3449_v1  ;;  %v3289_v26 = vld [vmem:[%s4144_s4 + $0xc8] sm:$0xff]   ;;  %v3291_v28 = vld [vmem:[%s4144_s4 + $0xd0] sm:$0xff]   ;;  %s4160_s16 = smov (!%p362_p7, %s359_s16), 4  ;;  %v3292_v29 = vld [vmem:[%s4144_s4 + $0x98] sm:$0xff]  }
  0x11   : > { %s354_s12 = scalar_select %p353_p6, %s3431_s21, 4  ;;  %2930 = vmatprep.subr.bf16.mxu1 %v3449_v1  ;;  %v3293_v30 = vld [vmem:[%s4144_s4 + $0xd8] sm:$0xff]   ;;  %v3294_v31 = vld [vmem:[%s4144_s4 + $0xa0] sm:$0xff]   ;;  %v3296_v34 = vld [vmem:[%s4144_s4 + $0xa8] sm:$0xff]  }
  0x12   : > { %s3550_s15 = smul.u32 5, %s4158_s22  ;;  %v3295_v32 = vld [vmem:[%s4144_s4 + $0xe0] sm:$0xff]   ;;  %v3297_v35 = vld [vmem:[%s4144_s4 + $0xe8] sm:$0xff]   ;;  %v3298_v36 = vld [vmem:[%s4144_s4 + $0xb0] sm:$0xff]  }
  0x13   : > { %2911 = vmatpush3.bf16.msra.mxu0 %v3273_v5  ;;  %v3299_v39 = vld [vmem:[%s4144_s4 + $0xf0] sm:$0xff]   ;;  %v3300_v41 = vld [vmem:[%s4144_s4 + $0xb8] sm:$0xff]   ;;  %v3304_v47 = vld [vmem:[%s4144_s4 + $0x100] sm:$0xff]  }
  0x14   : > { %s356_s18 = sadd.s32 %s3550_s15, %s354_s12  ;;  %2931 = vmatpush3.bf16.msra.mxu1 %v3274_v6  ;;  %2912 = vmatprep.subr.bf16.mxu0 %v3449_v1  ;;  %s365_s13 = sadd.s32 %s3550_s15, %s4160_s16  ;;  %v3301_v44 = vld [vmem:[%s4144_s4 + $0xf8] sm:$0xff]   ;;  %v3305_v48 = vld [vmem:[%s4144_s4 + $0x140] sm:$0xff]   ;;  %v3306_v49 = vld [vmem:[%s4144_s4 + $0x108] sm:$0xff]  }
  0x15   : > { %s2373_s28 = sshll.u32 %s356_s18, 2  ;;  %2932 = vmatprep.subr.bf16.mxu1 %v3449_v1  ;;  %s2374_s20 = sshll.u32 %s365_s13, 2  ;;  %v3307_v50 = vld [vmem:[%s4144_s4 + $0x148] sm:$0xff]   ;;  %v3308_v51 = vld [vmem:[%s4144_s4 + $0x110] sm:$0xff]   ;;  %v3310_v53 = vld [vmem:[%s4144_s4 + $0x118] sm:$0xff]  }
  0x16   : > { %s3569_s9 = scalar_lea.vmem %s4140_s0, %s2373_s28  ;;  %s3658_s7 = scalar_lea.vmem %s4141_s1, %s2374_s20  ;;  %v3309_v52 = vld [vmem:[%s4144_s4 + $0x150] sm:$0xff]   ;;  %v3311_v54 = vld [vmem:[%s4144_s4 + $0x158] sm:$0xff]   ;;  %v3312_v55 = vld [vmem:[%s4144_s4 + $0x120] sm:$0xff]  }
  0x17   : > { %2913 = vmatpush3.bf16.msra.mxu0 %v3275_v7  ;;  %v3285_v11 = vld [vmem:[%s3569_s9] ss:$0 sps:$4 sm:$0x33]   ;;  %s369_s12 = sadd.s32 2, %s3431_s21  ;;  %v3314_v58 = vld [vmem:[%s4144_s4 + $0x128] sm:$0xff]   ;;  %v3316_v60 = vld [vmem:[%s4144_s4 + $0x130] sm:$0xff]  }
  0x18   : > { %2933 = vmatpush3.bf16.msra.mxu1 %v3276_v8  ;;  %2914 = vmatprep.subr.bf16.mxu0 %v3449_v1  ;;  %v439_v14 = vshll.u32 %v3285_v11, 16  ;;  %v437_v17 = vshrl.u32 %v3285_v11, 16  ;;  %v398_v23 = vld [vmem:[%s3569_s9] sm:$0x1]  ;;  %p372_p8 = scmp.lt.s32.totalorder %s369_s12, 4  ;;  %v3315_v59 = vld [vmem:[%s4144_s4 + $0x168] sm:$0xff]  }
  0x19   : > { %2934 = vmatprep.subr.bf16.mxu1 %v3449_v1  ;;  %v3303_v33 = vld [vmem:[%s3569_s9] ss:$0 sps:$4 sm:$0x66]   ;;  %v3317_v62 = vld [vmem:[%s4144_s4 + $0x170] sm:$0xff]   ;;  %v3318_v63 = vld [vmem:[%s4144_s4 + $0x138] sm:$0xff]  }
  0x1a   : > { %v441_v18 = vrot.slane %v439_v14, 1  ;;  %v754_v37 = vshrl.u32 %v3303_v33, 16  ;;  %v757_v38 = vshll.u32 %v3303_v33, 16  ;;  %v3302_v40 = vld [vmem:[%s3569_s9] ss:$0 sps:$4 sm:$0x22]  }
  0x1b   : > { %2915 = vmatpush3.bf16.msra.mxu0 %v3277_v9  ;;  %v641_v45 = vrot.slane %v3302_v40, 1  ;;  %s4162_s12 = smov (!%p372_p8, %s369_s12), 4  ;;  %v3313_v56 = vld [vmem:[%s4144_s4 + $0x160] sm:$0xff]   ;;  %v3319_v3 = vld [vmem:[%s4144_s4 + $0x178] sm:$0xff]   ;;  %v3324_v8 = vld [vmem:[%s4144_s4 + $0x188] sm:$0xff]  }
  0x1c   : > { %2935 = vmatpush3.bf16.msra.mxu1 %v3278_v10  ;;  %2916 = vmatprep.subr.bf16.mxu0 %v3449_v1  ;;  %v442_v21 = vor.u32 %v441_v18, %v437_v17  ;;  %v756_v42 = vrot.slane %v754_v37, 1  ;;  %v759_v43 = vrot.slane %v757_v38, 2  ;;  %s375_s10 = sadd.s32 %s3550_s15, %s4162_s12  ;;  %v3321_v57 = vld [vmem:[%s3658_s7] ss:$0 sps:$4 sm:$0x33]   ;;  %v3325_v9 = vld [vmem:[%s4144_s4 + $0x1c8] sm:$0xff]  }
  0x1d   : > { %2936 = vmatprep.subr.bf16.mxu1 %v3449_v1  ;;  %s2375_s14 = sshll.u32 %s375_s10, 2  ;;  %v982_v61 = vshll.u32 %v3321_v57, 16  ;;  %v980_v0 = vshrl.u32 %v3321_v57, 16  ;;  %v851_v4 = vld [vmem:[%s3658_s7] sm:$0x1]  ;;  %v3326_v10 = vld [vmem:[%s4144_s4 + $0x190] sm:$0xff]  }
  0x1e   : > { %v760_v46 = vor.u32 %v759_v43, %v756_v42  ;;  %s3740_s20 = scalar_lea.vmem %s4142_s2, %s2375_s14  ;;  %v3322_v6 = vld [vmem:[%s4144_s4 + $0x180] sm:$0xff]   ;;  %v3327_v11 = vld [vmem:[%s4144_s4 + $0x1d0] sm:$0xff]   ;;  %s379_s10 = sadd.s32 3, %s3431_s21  ;;  %v3332_v17 = vld [vmem:[%s4144_s4 + $0x1a8] sm:$0xff]  }
  0x1f   : > { %2917 = vmatpush3.bf16.msra.mxu0 %v3279_v12  ;;  %v984_v2 = vrot.slane %v982_v61, 1  ;;  %v3323_v7 = vld [vmem:[%s4144_s4 + $0x1c0] sm:$0xff]   ;;  %v3328_v12 = vld [vmem:[%s4144_s4 + $0x198] sm:$0xff]   ;;  %p382_p9 = scmp.lt.s32.totalorder %s379_s10, 4  ;;  %v3333_v18 = vld [vmem:[%s4144_s4 + $0x1e8] sm:$0xff]   ;;  %s4166_s21 = smov (!%p391_p10, %s3431_s21), 1 }
  0x20   : > { %2937 = vmatpush3.bf16.msra.mxu1 %v3280_v13  ;;  %2918 = vmatprep.subr.bf16.mxu0 %v3449_v1  ;;  %v3329_v13 = vld [vmem:[%s4144_s4 + $0x1d8] sm:$0xff]   ;;  %v3330_v14 = vld [vmem:[%s4144_s4 + $0x1a0] sm:$0xff]   ;;  %v3342_v33 = vld [vmem:[%s4144_s4 + $0x248] sm:$0xff]  }
  0x21   : > { %2938 = vmatprep.subr.bf16.mxu1 %v3449_v1  ;;  %v985_v5 = vor.u32 %v984_v2, %v980_v0  ;;  %s4164_s10 = smov (!%p382_p9, %s379_s10), 4  ;;  %v3346_v37 = vld [vmem:[%s4144_s4 + $0x258] sm:$0xff]   ;;  %v3347_v38 = vld [vmem:[%s4144_s4 + $0x220] sm:$0xff]   ;;  %v3349_v40 = vld [vmem:[%s4144_s4 + $0x228] sm:$0xff]  }
  0x22   : > { %s385_s29 = sadd.s32 %s3550_s15, %s4164_s10  ;;  %v3350_v42 = vld [vmem:[%s4144_s4 + $0x268] sm:$0xff]   ;;  %v3351_v43 = vld [vmem:[%s4144_s4 + $0x230] sm:$0xff]   ;;  %v3366_v61 = vld [vmem:[%s4144_s4 + $0x2e0] sm:$0xff]  }
  0x23   : > { %2919 = vmatpush3.bf16.msra.mxu0 %v3281_v15  ;;  %v3320_v15 = vld [vmem:[%s3658_s7] ss:$0 sps:$4 sm:$0x66]   ;;  %s2376_s11 = sshll.u32 %s385_s29, 2  ;;  %v3362_v57 = vld [vmem:[%s4144_s4 + $0x2d0] sm:$0xff]   ;;  %v3368_v0 = vld [vmem:[%s4144_s4 + $0x2e8] sm:$0xff]  }
  0x24   : > { %2939 = vmatpush3.bf16.msra.mxu1 %v3282_v16  ;;  %2920 = vmatprep.subr.bf16.mxu0 %v3449_v1  ;;  %v3331_v16 = vld [vmem:[%s4144_s4 + $0x1e0] sm:$0xff]   ;;  %s3826_s19 = scalar_lea.vmem %s4143_s3, %s2376_s11  ;;  %v3369_v2 = vld [vmem:[%s4144_s4 + $0x2b0] sm:$0xff]  }
  0x25   : > { %2940 = vmatprep.subr.bf16.mxu1 %v3449_v1 }
  0x27   : > { %2921 = vmatpush3.bf16.msra.mxu0 %v3283_v19  ;;  %v1210_v19 = vshrl.u32 %v3320_v15, 16 }
  0x28   : > { %2941 = vmatpush3.bf16.msra.mxu1 %v3284_v20  ;;  %2946 = vmatprep.subr.bf16.mxu0 %v3449_v1  ;;  %v3334_v20 = vld [vmem:[%s4144_s4 + $0x1b0] sm:$0xff]  }
  0x29   : > { %2966 = vmatprep.subr.bf16.mxu1 %v3449_v1 }
  0x2a   : > { %2923 = vmatmul.mubr.bf16.vlgmr.msra.gmra.mrb[0].mxu0 %v442_v21  ;;  %v1213_v21 = vshll.u32 %v3320_v15, 16  ;;  %v3376_v15 = vld [vmem:[%s4144_s4 + $0x308] sm:$0xff]  }
  0x2b   : > { %2943 = vmatmul.mubr.bf16.vlgmr.msra.gmra.mrb[0].mxu1 %v398_v23  ;;  %2947 = vmatpush3.bf16.msra.mxu0 %v3286_v22  ;;  %v3335_v22 = vld [vmem:[%s4144_s4 + $0x1f0] sm:$0xff]   ;;  %v3338_v23 = vld [vmem:[%s3658_s7] ss:$0 sps:$4 sm:$0x22]  }
  0x2c   : > { %2967 = vmatpush3.bf16.msra.mxu1 %v3287_v24  ;;  %2948 = vmatprep.subr.bf16.mxu0 %v3449_v1  ;;  %v3336_v24 = vld [vmem:[%s4144_s4 + $0x1b8] sm:$0xff]  }
  0x2d   : > { %2968 = vmatprep.subr.bf16.mxu1 %v3449_v1  ;;  %2962 = vmatprep.mubr.msk.bf16.mxu0 %vm3450_vm0, %v3449_v1 }
  0x2e   : > { %2982 = vmatprep.mubr.msk.bf16.mxu1 %vm3450_vm0, %v3449_v1 }
  0x2f   : > { %2949 = vmatpush3.bf16.msra.mxu0 %v3288_v25  ;;  %v1212_v25 = vrot.slane %v1210_v19, 1  ;;  %v3380_v19 = vld [vmem:[%s4144_s4 + $0x318] sm:$0xff]  }
  0x30   : > { %2969 = vmatpush3.bf16.msra.mxu1 %v3289_v26  ;;  %2950 = vmatprep.subr.bf16.mxu0 %v3449_v1  ;;  %v1215_v26 = vrot.slane %v1213_v21, 2  ;;  %v3382_v21 = vld [vmem:[%s4144_s4 + $0x320] sm:$0xff]  }
  0x31   : > { %2970 = vmatprep.subr.bf16.mxu1 %v3449_v1 }
  0x33   : > { %2951 = vmatpush3.bf16.msra.mxu0 %v3290_v27  ;;  %v3337_v27 = vld [vmem:[%s4144_s4 + $0x1f8] sm:$0xff]  }
  0x34   : > { %2971 = vmatpush3.bf16.msra.mxu1 %v3291_v28  ;;  %2952 = vmatprep.subr.bf16.mxu0 %v3449_v1  ;;  %v1097_v28 = vrot.slane %v3338_v23, 1  ;;  %v3384_v23 = vld [vmem:[%s4144_s4 + $0x328] sm:$0xff]  }
  0x35   : > { %2972 = vmatprep.subr.bf16.mxu1 %v3449_v1 }
  0x37   : > { %2953 = vmatpush3.bf16.msra.mxu0 %v3292_v29  ;;  %v1216_v29 = vor.u32 %v1215_v26, %v1212_v25  ;;  %v3385_v25 = vld [vmem:[%s4144_s4 + $0x368] sm:$0xff]   ;;  %v3386_v26 = vld [vmem:[%s4144_s4 + $0x330] sm:$0xff]  }
  0x38   : > { %2973 = vmatpush3.bf16.msra.mxu1 %v3293_v30  ;;  %2954 = vmatprep.subr.bf16.mxu0 %v3449_v1  ;;  %v3339_v30 = vld [vmem:[%s4144_s4 + $0x200] sm:$0xff]  }
  0x39   : > { %2974 = vmatprep.subr.bf16.mxu1 %v3449_v1 }
  0x3b   : > { %2955 = vmatpush3.bf16.msra.mxu0 %v3294_v31  ;;  %v3340_v31 = vld [vmem:[%s4144_s4 + $0x240] sm:$0xff]  }
  0x3c   : > { %2975 = vmatpush3.bf16.msra.mxu1 %v3295_v32  ;;  %2956 = vmatprep.subr.bf16.mxu0 %v3449_v1  ;;  %v3341_v32 = vld [vmem:[%s4144_s4 + $0x208] sm:$0xff]  }
  0x3d   : > { %2976 = vmatprep.subr.bf16.mxu1 %v3449_v1 }
  0x3f   : > { %2957 = vmatpush3.bf16.msra.mxu0 %v3296_v34  ;;  %v3343_v34 = vld [vmem:[%s4144_s4 + $0x210] sm:$0xff]  }
  0x40   : > { %2977 = vmatpush3.bf16.msra.mxu1 %v3297_v35  ;;  %2958 = vmatprep.subr.bf16.mxu0 %v3449_v1  ;;  %v3344_v35 = vld [vmem:[%s4144_s4 + $0x250] sm:$0xff]  }
  0x41   : > { %2978 = vmatprep.subr.bf16.mxu1 %v3449_v1 }
  0x43   : > { %2959 = vmatpush3.bf16.msra.mxu0 %v3298_v36  ;;  %v3345_v36 = vld [vmem:[%s4144_s4 + $0x218] sm:$0xff]  }
  0x44   : > { %2979 = vmatpush3.bf16.msra.mxu1 %v3299_v39  ;;  %2960 = vmatprep.subr.bf16.mxu0 %v3449_v1  ;;  %v3348_v39 = vld [vmem:[%s4144_s4 + $0x260] sm:$0xff]  }
  0x45   : > { %2980 = vmatprep.subr.bf16.mxu1 %v3449_v1 }
  0x47   : > { %2961 = vmatpush3.bf16.msra.mxu0 %v3300_v41  ;;  %v3356_v41 = vld [vmem:[%s3740_s20] ss:$0 sps:$4 sm:$0x33]  }
  0x48   : > { %2981 = vmatpush3.bf16.msra.mxu1 %v3301_v44  ;;  %2986 = vmatprep.subr.bf16.mxu0 %v3449_v1  ;;  %v1438_v44 = vshll.u32 %v3356_v41, 16 }
  0x49   : > { %3006 = vmatprep.subr.bf16.mxu1 %v3449_v1 }
  0x4a   : > { %2963 = vmatmul.mubr.bf16.vlgmr.msra.gmra.mrb[4].mxu0 %v641_v45  ;;  %v3352_v45 = vld [vmem:[%s4144_s4 + $0x270] sm:$0xff]  }
  0x4b   : > { %2983 = vmatmul.mubr.bf16.vlgmr.msra.gmra.mrb[4].mxu1 %v760_v46  ;;  %2987 = vmatpush3.bf16.msra.mxu0 %v3304_v47  ;;  %v3353_v46 = vld [vmem:[%s4144_s4 + $0x238] sm:$0xff]   ;;  %v1436_v47 = vshrl.u32 %v3356_v41, 16 }
  0x4c   : > { %3007 = vmatpush3.bf16.msra.mxu1 %v3305_v48  ;;  %2988 = vmatprep.subr.bf16.mxu0 %v3449_v1  ;;  %v1440_v48 = vrot.slane %v1438_v44, 1  ;;  %v3398_v41 = vld [vmem:[%s4144_s4 + $0x398] sm:$0xff]   ;;  %v3401_v44 = vld [vmem:[%s4144_s4 + $0x3e0] sm:$0xff]  }
  0x4d   : > { %3008 = vmatprep.subr.bf16.mxu1 %v3449_v1  ;;  %3002 = vmatprep.mubr.msk.bf16.mxu0 %vm3450_vm0, %v3449_v1 }
  0x4e   : > { %3022 = vmatprep.mubr.msk.bf16.mxu1 %vm3450_vm0, %v3449_v1 }
  0x4f   : > { %2989 = vmatpush3.bf16.msra.mxu0 %v3306_v49  ;;  %v3354_v49 = vld [vmem:[%s4144_s4 + $0x278] sm:$0xff]  }
  0x50   : > { %3009 = vmatpush3.bf16.msra.mxu1 %v3307_v50  ;;  %2990 = vmatprep.subr.bf16.mxu0 %v3449_v1  ;;  %v1307_v50 = vld [vmem:[%s3740_s20] sm:$0x1] }
  0x51   : > { %3010 = vmatprep.subr.bf16.mxu1 %v3449_v1 }
  0x53   : > { %2991 = vmatpush3.bf16.msra.mxu0 %v3308_v51  ;;  %v1441_v51 = vor.u32 %v1440_v48, %v1436_v47  ;;  %v3403_v47 = vld [vmem:[%s4144_s4 + $0x3e8] sm:$0xff]  }
  0x54   : > { %3011 = vmatpush3.bf16.msra.mxu1 %v3309_v52  ;;  %2992 = vmatprep.subr.bf16.mxu0 %v3449_v1  ;;  %v3357_v52 = vld [vmem:[%s4144_s4 + $0x280] sm:$0xff]  }
  0x55   : > { %3012 = vmatprep.subr.bf16.mxu1 %v3449_v1 }
  0x57   : > { %2993 = vmatpush3.bf16.msra.mxu0 %v3310_v53  ;;  %v3358_v53 = vld [vmem:[%s4144_s4 + $0x2c0] sm:$0xff]  }
  0x58   : > { %3013 = vmatpush3.bf16.msra.mxu1 %v3311_v54  ;;  %2994 = vmatprep.subr.bf16.mxu0 %v3449_v1  ;;  %v3359_v54 = vld [vmem:[%s4144_s4 + $0x288] sm:$0xff]  }
  0x59   : > { %3014 = vmatprep.subr.bf16.mxu1 %v3449_v1 }
  0x5b   : > { %2995 = vmatpush3.bf16.msra.mxu0 %v3312_v55  ;;  %v3360_v55 = vld [vmem:[%s4144_s4 + $0x2c8] sm:$0xff]  }
  0x5c   : > { %3015 = vmatpush3.bf16.msra.mxu1 %v3313_v56  ;;  %2996 = vmatprep.subr.bf16.mxu0 %v3449_v1  ;;  %v3361_v56 = vld [vmem:[%s4144_s4 + $0x290] sm:$0xff]  }
  0x5d   : > { %3016 = vmatprep.subr.bf16.mxu1 %v3449_v1 }
  0x5f   : > { %2997 = vmatpush3.bf16.msra.mxu0 %v3314_v58  ;;  %v3363_v58 = vld [vmem:[%s4144_s4 + $0x298] sm:$0xff]  }
  0x60   : > { %3017 = vmatpush3.bf16.msra.mxu1 %v3315_v59  ;;  %2998 = vmatprep.subr.bf16.mxu0 %v3449_v1  ;;  %v3364_v59 = vld [vmem:[%s4144_s4 + $0x2d8] sm:$0xff]  }
  0x61   : > { %3018 = vmatprep.subr.bf16.mxu1 %v3449_v1 }
  0x63   : > { %2999 = vmatpush3.bf16.msra.mxu0 %v3316_v60  ;;  %v3365_v60 = vld [vmem:[%s4144_s4 + $0x2a0] sm:$0xff]  }
  0x64   : > { %3019 = vmatpush3.bf16.msra.mxu1 %v3317_v62  ;;  %3000 = vmatprep.subr.bf16.mxu0 %v3449_v1  ;;  %v3355_v62 = vld [vmem:[%s3740_s20] ss:$0 sps:$4 sm:$0x66]  }
  0x65   : > { %3020 = vmatprep.subr.bf16.mxu1 %v3449_v1 }
  0x67   : > { %3001 = vmatpush3.bf16.msra.mxu0 %v3318_v63  ;;  %v3367_v63 = vld [vmem:[%s4144_s4 + $0x2a8] sm:$0xff]  }
  0x68   : > { %3021 = vmatpush3.bf16.msra.mxu1 %v3319_v3  ;;  %3026 = vmatprep.subr.bf16.mxu0 %v3449_v1  ;;  %v1666_v3 = vshrl.u32 %v3355_v62, 16 }
  0x69   : > { %3046 = vmatprep.subr.bf16.mxu1 %v3449_v1 }
  0x6a   : > { %3003 = vmatmul.mubr.bf16.vlgmr.msra.gmra.mrb[8].mxu0 %v851_v4  ;;  %v1669_v4 = vshll.u32 %v3355_v62, 16  ;;  %v3406_v62 = vld [vmem:[%s4144_s4 + $0x3b8] sm:$0xff]  }
  0x6b   : > { %3023 = vmatmul.mubr.bf16.vlgmr.msra.gmra.mrb[8].mxu1 %v985_v5  ;;  %3027 = vmatpush3.bf16.msra.mxu0 %v3322_v6  ;;  %v3370_v5 = vld [vmem:[%s4144_s4 + $0x2f0] sm:$0xff]   ;;  %v3373_v6 = vld [vmem:[%s3740_s20] ss:$0 sps:$4 sm:$0x22]  }
  0x6c   : > { %3047 = vmatpush3.bf16.msra.mxu1 %v3323_v7  ;;  %3028 = vmatprep.subr.bf16.mxu0 %v3449_v1  ;;  %v3371_v7 = vld [vmem:[%s4144_s4 + $0x2b8] sm:$0xff]  }
  0x6d   : > { %3048 = vmatprep.subr.bf16.mxu1 %v3449_v1  ;;  %3042 = vmatprep.mubr.msk.bf16.mxu0 %vm3450_vm0, %v3449_v1 }
  0x6e   : > { %3062 = vmatprep.mubr.msk.bf16.mxu1 %vm3450_vm0, %v3449_v1 }
  0x6f   : > { %3029 = vmatpush3.bf16.msra.mxu0 %v3324_v8  ;;  %v1668_v8 = vrot.slane %v1666_v3, 1 }
  0x70   : > { %3049 = vmatpush3.bf16.msra.mxu1 %v3325_v9  ;;  %3030 = vmatprep.subr.bf16.mxu0 %v3449_v1  ;;  %v1671_v9 = vrot.slane %v1669_v4, 2 }
  0x71   : > { %3050 = vmatprep.subr.bf16.mxu1 %v3449_v1 }
  0x73   : > { %3031 = vmatpush3.bf16.msra.mxu0 %v3326_v10  ;;  %v3372_v10 = vld [vmem:[%s4144_s4 + $0x2f8] sm:$0xff]  }
  0x74   : > { %3051 = vmatpush3.bf16.msra.mxu1 %v3327_v11  ;;  %3032 = vmatprep.subr.bf16.mxu0 %v3449_v1  ;;  %v1553_v11 = vrot.slane %v3373_v6, 1 }
  0x75   : > { %3052 = vmatprep.subr.bf16.mxu1 %v3449_v1 }
  0x77   : > { %3033 = vmatpush3.bf16.msra.mxu0 %v3328_v12  ;;  %v1672_v12 = vor.u32 %v1671_v9, %v1668_v8 }
  0x78   : > { %3053 = vmatpush3.bf16.msra.mxu1 %v3329_v13  ;;  %3034 = vmatprep.subr.bf16.mxu0 %v3449_v1  ;;  %v3374_v13 = vld [vmem:[%s4144_s4 + $0x300] sm:$0xff]  }
  0x79   : > { %3054 = vmatprep.subr.bf16.mxu1 %v3449_v1 }
  0x7b   : > { %3035 = vmatpush3.bf16.msra.mxu0 %v3330_v14  ;;  %v3375_v14 = vld [vmem:[%s4144_s4 + $0x340] sm:$0xff]  }
  0x7c   : > { %3055 = vmatpush3.bf16.msra.mxu1 %v3331_v16  ;;  %3036 = vmatprep.subr.bf16.mxu0 %v3449_v1  ;;  %v3377_v16 = vld [vmem:[%s4144_s4 + $0x348] sm:$0xff]  }
  0x7d   : > { %3056 = vmatprep.subr.bf16.mxu1 %v3449_v1 }
  0x7f   : > { %3037 = vmatpush3.bf16.msra.mxu0 %v3332_v17  ;;  %v3378_v17 = vld [vmem:[%s4144_s4 + $0x310] sm:$0xff]  }
  0x80   : > { %3057 = vmatpush3.bf16.msra.mxu1 %v3333_v18  ;;  %3038 = vmatprep.subr.bf16.mxu0 %v3449_v1  ;;  %v3379_v18 = vld [vmem:[%s4144_s4 + $0x350] sm:$0xff]  }
  0x81   : > { %3058 = vmatprep.subr.bf16.mxu1 %v3449_v1 }
  0x83   : > { %3039 = vmatpush3.bf16.msra.mxu0 %v3334_v20  ;;  %v3381_v20 = vld [vmem:[%s4144_s4 + $0x358] sm:$0xff]  }
  0x84   : > { %3059 = vmatpush3.bf16.msra.mxu1 %v3335_v22  ;;  %3040 = vmatprep.subr.bf16.mxu0 %v3449_v1  ;;  %v3383_v22 = vld [vmem:[%s4144_s4 + $0x360] sm:$0xff]  }
  0x85   : > { %3060 = vmatprep.subr.bf16.mxu1 %v3449_v1 }
  0x87   : > { %3041 = vmatpush3.bf16.msra.mxu0 %v3336_v24  ;;  %v3391_v24 = vld [vmem:[%s3826_s19] ss:$0 sps:$4 sm:$0x33]  }
  0x88   : > { %3061 = vmatpush3.bf16.msra.mxu1 %v3337_v27  ;;  %3066 = vmatprep.subr.bf16.mxu0 %v3449_v1  ;;  %v1894_v27 = vshll.u32 %v3391_v24, 16 }
  0x89   : > { %3086 = vmatprep.subr.bf16.mxu1 %v3449_v1 }
  0x8a   : > { %3043 = vmatmul.mubr.bf16.vlgmr.msra.gmra.mrb[12].mxu0 %v1097_v28  ;;  %v3387_v28 = vld [vmem:[%s4144_s4 + $0x370] sm:$0xff]  }
  0x8b   : > { %3063 = vmatmul.mubr.bf16.vlgmr.msra.gmra.mrb[12].mxu1 %v1216_v29  ;;  %3067 = vmatpush3.bf16.msra.mxu0 %v3339_v30  ;;  %v3388_v29 = vld [vmem:[%s4144_s4 + $0x338] sm:$0xff]   ;;  %v1892_v30 = vshrl.u32 %v3391_v24, 16 }
  0x8c   : > { %3087 = vmatpush3.bf16.msra.mxu1 %v3340_v31  ;;  %3068 = vmatprep.subr.bf16.mxu0 %v3449_v1  ;;  %v1896_v31 = vrot.slane %v1894_v27, 1 }
  0x8d   : > { %3088 = vmatprep.subr.bf16.mxu1 %v3449_v1  ;;  %3082 = vmatprep.mubr.msk.bf16.mxu0 %vm3450_vm0, %v3449_v1 }
  0x8e   : > { %3102 = vmatprep.mubr.msk.bf16.mxu1 %vm3450_vm0, %v3449_v1 }
  0x8f   : > { %3069 = vmatpush3.bf16.msra.mxu0 %v3341_v32  ;;  %v3389_v32 = vld [vmem:[%s4144_s4 + $0x378] sm:$0xff]  }
  0x90   : > { %3089 = vmatpush3.bf16.msra.mxu1 %v3342_v33  ;;  %3070 = vmatprep.subr.bf16.mxu0 %v3449_v1  ;;  %v1763_v33 = vld [vmem:[%s3826_s19] sm:$0x1] }
  0x91   : > { %3090 = vmatprep.subr.bf16.mxu1 %v3449_v1 }
  0x93   : > { %3071 = vmatpush3.bf16.msra.mxu0 %v3343_v34  ;;  %v1897_v34 = vor.u32 %v1896_v31, %v1892_v30 }
  0x94   : > { %3091 = vmatpush3.bf16.msra.mxu1 %v3344_v35  ;;  %3072 = vmatprep.subr.bf16.mxu0 %v3449_v1  ;;  %v3392_v35 = vld [vmem:[%s4144_s4 + $0x380] sm:$0xff]  }
  0x95   : > { %3092 = vmatprep.subr.bf16.mxu1 %v3449_v1 }
  0x97   : > { %3073 = vmatpush3.bf16.msra.mxu0 %v3345_v36  ;;  %v3393_v36 = vld [vmem:[%s4144_s4 + $0x3c0] sm:$0xff]  }
  0x98   : > { %3093 = vmatpush3.bf16.msra.mxu1 %v3346_v37  ;;  %3074 = vmatprep.subr.bf16.mxu0 %v3449_v1  ;;  %v3394_v37 = vld [vmem:[%s4144_s4 + $0x388] sm:$0xff]  }
  0x99   : > { %3094 = vmatprep.subr.bf16.mxu1 %v3449_v1 }
  0x9b   : > { %3075 = vmatpush3.bf16.msra.mxu0 %v3347_v38  ;;  %v3395_v38 = vld [vmem:[%s4144_s4 + $0x3c8] sm:$0xff]  }
  0x9c   : > { %3095 = vmatpush3.bf16.msra.mxu1 %v3348_v39  ;;  %3076 = vmatprep.subr.bf16.mxu0 %v3449_v1  ;;  %v3396_v39 = vld [vmem:[%s4144_s4 + $0x390] sm:$0xff]  }
  0x9d   : > { %3096 = vmatprep.subr.bf16.mxu1 %v3449_v1 }
  0x9f   : > { %3077 = vmatpush3.bf16.msra.mxu0 %v3349_v40  ;;  %v3397_v40 = vld [vmem:[%s4144_s4 + $0x3d0] sm:$0xff]  }
  0xa0   : > { %3097 = vmatpush3.bf16.msra.mxu1 %v3350_v42  ;;  %3078 = vmatprep.subr.bf16.mxu0 %v3449_v1  ;;  %v3399_v42 = vld [vmem:[%s4144_s4 + $0x3d8] sm:$0xff]  }
  0xa1   : > { %3098 = vmatprep.subr.bf16.mxu1 %v3449_v1 }
  0xa3   : > { %3079 = vmatpush3.bf16.msra.mxu0 %v3351_v43  ;;  %v3400_v43 = vld [vmem:[%s4144_s4 + $0x3a0] sm:$0xff]  }
  0xa4   : > { %3099 = vmatpush3.bf16.msra.mxu1 %v3352_v45  ;;  %3080 = vmatprep.subr.bf16.mxu0 %v3449_v1  ;;  %v3390_v45 = vld [vmem:[%s3826_s19] ss:$0 sps:$4 sm:$0x66]  }
  0xa5   : > { %3100 = vmatprep.subr.bf16.mxu1 %v3449_v1 }
  0xa7   : > { %3081 = vmatpush3.bf16.msra.mxu0 %v3353_v46  ;;  %v3402_v46 = vld [vmem:[%s4144_s4 + $0x3a8] sm:$0xff]  }
  0xa8   : > { %3101 = vmatpush3.bf16.msra.mxu1 %v3354_v49  ;;  %3106 = vmatprep.subr.bf16.mxu0 %v3449_v1 }
  0xa9   : > { %3126 = vmatprep.subr.bf16.mxu1 %v3449_v1 }
  0xaa   : > { %3083 = vmatmul.mubr.bf16.vlgmr.msra.gmra.mrb[16].mxu0 %v1307_v50 }
  0xab   : > { %3103 = vmatmul.mubr.bf16.vlgmr.msra.gmra.mrb[16].mxu1 %v1441_v51  ;;  %3107 = vmatpush3.bf16.msra.mxu0 %v3357_v52 }
  0xac   : > { %3127 = vmatpush3.bf16.msra.mxu1 %v3358_v53  ;;  %3108 = vmatprep.subr.bf16.mxu0 %v3449_v1 }
  0xad   : > { %3128 = vmatprep.subr.bf16.mxu1 %v3449_v1  ;;  %3122 = vmatprep.mubr.msk.bf16.mxu0 %vm3450_vm0, %v3449_v1 }
  0xae   : > { %3142 = vmatprep.mubr.msk.bf16.mxu1 %vm3450_vm0, %v3449_v1 }
  0xaf   : > { %3109 = vmatpush3.bf16.msra.mxu0 %v3359_v54  ;;  %v3404_v54 = vld [vmem:[%s4144_s4 + $0x3b0] sm:$0xff]  }
  0xb0   : > { %3129 = vmatpush3.bf16.msra.mxu1 %v3360_v55  ;;  %3110 = vmatprep.subr.bf16.mxu0 %v3449_v1  ;;  %v2122_v55 = vshrl.u32 %v3390_v45, 16 }
  0xb1   : > { %3130 = vmatprep.subr.bf16.mxu1 %v3449_v1 }
  0xb3   : > { %3111 = vmatpush3.bf16.msra.mxu0 %v3361_v56  ;;  %v2125_v56 = vshll.u32 %v3390_v45, 16 }
  0xb4   : > { %3131 = vmatpush3.bf16.msra.mxu1 %v3362_v57  ;;  %3112 = vmatprep.subr.bf16.mxu0 %v3449_v1 }
  0xb5   : > { %3132 = vmatprep.subr.bf16.mxu1 %v3449_v1 }
  0xb7   : > { %3113 = vmatpush3.bf16.msra.mxu0 %v3363_v58 }
  0xb8   : > { %3133 = vmatpush3.bf16.msra.mxu1 %v3364_v59  ;;  %3114 = vmatprep.subr.bf16.mxu0 %v3449_v1  ;;  %v3405_v59 = vld [vmem:[%s4144_s4 + $0x3f0] sm:$0xff]  }
  0xb9   : > { %3134 = vmatprep.subr.bf16.mxu1 %v3449_v1 }
  0xbb   : > { %3115 = vmatpush3.bf16.msra.mxu0 %v3365_v60 }
  0xbc   : > { %3135 = vmatpush3.bf16.msra.mxu1 %v3366_v61  ;;  %3116 = vmatprep.subr.bf16.mxu0 %v3449_v1  ;;  %v3408_v61 = vld [vmem:[%s3826_s19] ss:$0 sps:$4 sm:$0x22]   ;;  %s2377_s19 = sshll.u32 %s4158_s22, 1 }
  0xbd   : > { %3136 = vmatprep.subr.bf16.mxu1 %v3449_v1  ;;  %v2009_v3 = vrot.slane %v3408_v61, 1  ;;  %s394_s20 = sadd.s32 %s2377_s19, %s4166_s21 }
  0xbe   : > { %s2378_s11 = sshll.u32 %s394_s20, 1 }
  0xbf   : > { %3117 = vmatpush3.bf16.msra.mxu0 %v3367_v63  ;;  %v2124_v63 = vrot.slane %v2122_v55, 1  ;;  %s396_s17 = scalar_lea.vmem %s4146_s6, %s2378_s11 }
  0xc0   : > { %3137 = vmatpush3.bf16.msra.mxu1 %v3368_v0  ;;  %3118 = vmatprep.subr.bf16.mxu0 %v3449_v1  ;;  %v2127_v0 = vrot.slane %v2125_v56, 2 }
  0xc1   : > { %3138 = vmatprep.subr.bf16.mxu1 %v3449_v1 }
  0xc2   : > { %v2128_v4 = vor.u32 %v2127_v0, %v2124_v63 }
  0xc3   : > { %3119 = vmatpush3.bf16.msra.mxu0 %v3369_v2  ;;  %v3407_v2 = vld [vmem:[%s4144_s4 + $0x3f8] sm:$0xff]  }
  0xc4   : > { %3139 = vmatpush3.bf16.msra.mxu1 %v3370_v5  ;;  %3120 = vmatprep.subr.bf16.mxu0 %v3449_v1 }
  0xc5   : > { %3140 = vmatprep.subr.bf16.mxu1 %v3449_v1 }
  0xc7   : > { %3121 = vmatpush3.bf16.msra.mxu0 %v3371_v7 }
  0xc8   : > { %3141 = vmatpush3.bf16.msra.mxu1 %v3372_v10  ;;  %3146 = vmatprep.subr.bf16.mxu0 %v3449_v1 }
  0xc9   : > { %3166 = vmatprep.subr.bf16.mxu1 %v3449_v1 }
  0xca   : > { %3123 = vmatmul.mubr.bf16.vlgmr.msra.gmra.mrb[20].mxu0 %v1553_v11 }
  0xcb   : > { %3143 = vmatmul.mubr.bf16.vlgmr.msra.gmra.mrb[20].mxu1 %v1672_v12  ;;  %3147 = vmatpush3.bf16.msra.mxu0 %v3374_v13 }
  0xcc   : > { %3167 = vmatpush3.bf16.msra.mxu1 %v3375_v14  ;;  %3148 = vmatprep.subr.bf16.mxu0 %v3449_v1 }
  0xcd   : > { %3168 = vmatprep.subr.bf16.mxu1 %v3449_v1  ;;  %3162 = vmatprep.mubr.msk.bf16.mxu0 %vm3450_vm0, %v3449_v1 }
  0xce   : > { %3182 = vmatprep.mubr.msk.bf16.mxu1 %vm3450_vm0, %v3449_v1 }
  0xcf   : > { %3149 = vmatpush3.bf16.msra.mxu0 %v3376_v15 }
  0xd0   : > { %3169 = vmatpush3.bf16.msra.mxu1 %v3377_v16  ;;  %3150 = vmatprep.subr.bf16.mxu0 %v3449_v1 }
  0xd1   : > { %3170 = vmatprep.subr.bf16.mxu1 %v3449_v1 }
  0xd3   : > { %3151 = vmatpush3.bf16.msra.mxu0 %v3378_v17 }
  0xd4   : > { %3171 = vmatpush3.bf16.msra.mxu1 %v3379_v18  ;;  %3152 = vmatprep.subr.bf16.mxu0 %v3449_v1 }
  0xd5   : > { %3172 = vmatprep.subr.bf16.mxu1 %v3449_v1 }
  0xd7   : > { %3153 = vmatpush3.bf16.msra.mxu0 %v3380_v19 }
  0xd8   : > { %3173 = vmatpush3.bf16.msra.mxu1 %v3381_v20  ;;  %3154 = vmatprep.subr.bf16.mxu0 %v3449_v1 }
  0xd9   : > { %3174 = vmatprep.subr.bf16.mxu1 %v3449_v1 }
  0xdb   : > { %3155 = vmatpush3.bf16.msra.mxu0 %v3382_v21 }
  0xdc   : > { %3175 = vmatpush3.bf16.msra.mxu1 %v3383_v22  ;;  %3156 = vmatprep.subr.bf16.mxu0 %v3449_v1 }
  0xdd   : > { %3176 = vmatprep.subr.bf16.mxu1 %v3449_v1 }
  0xdf   : > { %3157 = vmatpush3.bf16.msra.mxu0 %v3384_v23 }
  0xe0   : > { %3177 = vmatpush3.bf16.msra.mxu1 %v3385_v25  ;;  %3158 = vmatprep.subr.bf16.mxu0 %v3449_v1 }
  0xe1   : > { %3178 = vmatprep.subr.bf16.mxu1 %v3449_v1 }
  0xe3   : > { %3159 = vmatpush3.bf16.msra.mxu0 %v3386_v26 }
  0xe4   : > { %3179 = vmatpush3.bf16.msra.mxu1 %v3387_v28  ;;  %3160 = vmatprep.subr.bf16.mxu0 %v3449_v1 }
  0xe5   : > { %3180 = vmatprep.subr.bf16.mxu1 %v3449_v1 }
  0xe7   : > { %3161 = vmatpush3.bf16.msra.mxu0 %v3388_v29 }
  0xe8   : > { %3181 = vmatpush3.bf16.msra.mxu1 %v3389_v32  ;;  %3186 = vmatprep.subr.bf16.mxu0 %v3449_v1 }
  0xe9   : > { %3206 = vmatprep.subr.bf16.mxu1 %v3449_v1 }
  0xea   : > { %3163 = vmatmul.mubr.bf16.vlgmr.msra.gmra.mrb[24].mxu0 %v1763_v33 }
  0xeb   : > { %3183 = vmatmul.mubr.bf16.vlgmr.msra.gmra.mrb[24].mxu1 %v1897_v34  ;;  %3187 = vmatpush3.bf16.msra.mxu0 %v3392_v35 }
  0xec   : > { %3207 = vmatpush3.bf16.msra.mxu1 %v3393_v36  ;;  %3188 = vmatprep.subr.bf16.mxu0 %v3449_v1 }
  0xed   : > { %3208 = vmatprep.subr.bf16.mxu1 %v3449_v1  ;;  %3202 = vmatprep.mubr.msk.bf16.mxu0 %vm3450_vm0, %v3449_v1 }
  0xee   : > { %3222 = vmatprep.mubr.msk.bf16.mxu1 %vm3450_vm0, %v3449_v1 }
  0xef   : > { %3189 = vmatpush3.bf16.msra.mxu0 %v3394_v37 }
  0xf0   : > { %3209 = vmatpush3.bf16.msra.mxu1 %v3395_v38  ;;  %3190 = vmatprep.subr.bf16.mxu0 %v3449_v1 }
  0xf1   : > { %3210 = vmatprep.subr.bf16.mxu1 %v3449_v1 }
  0xf3   : > { %3191 = vmatpush3.bf16.msra.mxu0 %v3396_v39 }
  0xf4   : > { %3211 = vmatpush3.bf16.msra.mxu1 %v3397_v40  ;;  %3192 = vmatprep.subr.bf16.mxu0 %v3449_v1 }
  0xf5   : > { %3212 = vmatprep.subr.bf16.mxu1 %v3449_v1 }
  0xf7   : > { %3193 = vmatpush3.bf16.msra.mxu0 %v3398_v41 }
  0xf8   : > { %3213 = vmatpush3.bf16.msra.mxu1 %v3399_v42  ;;  %3194 = vmatprep.subr.bf16.mxu0 %v3449_v1 }
  0xf9   : > { %3214 = vmatprep.subr.bf16.mxu1 %v3449_v1 }
  0xfb   : > { %3195 = vmatpush3.bf16.msra.mxu0 %v3400_v43 }
  0xfc   : > { %3215 = vmatpush3.bf16.msra.mxu1 %v3401_v44  ;;  %3196 = vmatprep.subr.bf16.mxu0 %v3449_v1 }
  0xfd   : > { %v526_v48 = vpop.f32.mrb[0].mxu0  ;;  %3216 = vmatprep.subr.bf16.mxu1 %v3449_v1 }
  0xfe   : > { %v614_v49 = vpop.f32.mrb[0].mxu1  ;;  %v2924_v50 = vpop.f32.mrb[1].mxu0 }
  0xff   : > { %v615_v51 = vadd.f32 %v614_v49, %v526_v48  ;;  %v2944_v52 = vpop.f32.mrb[1].mxu1  ;;  %v529_v53 = vpop.f32.mrb[2].mxu0  ;;  %3197 = vmatpush3.bf16.msra.mxu0 %v3402_v46 }
 0x100   : > { %v617_v57 = vpop.f32.mrb[2].mxu1  ;;  %3217 = vmatpush3.bf16.msra.mxu1 %v3403_v47  ;;  %v2925_v58 = vpop.f32.mrb[3].mxu0  ;;  %3198 = vmatprep.subr.bf16.mxu0 %v3449_v1 }
 0x101   : > { %v2945_v60 = vpop.f32.mrb[3].mxu1  ;;  %3218 = vmatprep.subr.bf16.mxu1 %v3449_v1 }
 0x103   : > { %3199 = vmatpush3.bf16.msra.mxu0 %v3404_v54 }
 0x104   : > { %3219 = vmatpush3.bf16.msra.mxu1 %v3405_v59  ;;  %3200 = vmatprep.subr.bf16.mxu0 %v3449_v1 }
 0x105   : > { %3220 = vmatprep.subr.bf16.mxu1 %v3449_v1 }
 0x107   : > { %3201 = vmatpush3.bf16.msra.mxu0 %v3406_v62 }
 0x108   : > { %3221 = vmatpush3.bf16.msra.mxu1 %v3407_v2 }
 0x10a   : > { %3203 = vmatmul.mubr.bf16.vlgmr.msra.gmra.mrb[28].mxu0 %v2009_v3 }
 0x10b   : > { %3223 = vmatmul.mubr.bf16.vlgmr.msra.gmra.mrb[28].mxu1 %v2128_v4 }
 0x11d   : > { %v725_v5 = vpop.f32.mrb[4].mxu0 }
 0x11e   : > { %v731_v6 = vadd.f32 %v725_v5, %v615_v51  ;;  %v844_v7 = vpop.f32.mrb[4].mxu1  ;;  %v2964_v8 = vpop.f32.mrb[5].mxu0  ;;  %v2759_v5 = vld [vmem:[%s4145_s5] ss:$0 sm:$0xff] }
 0x11f   : > { %v2984_v9 = vpop.f32.mrb[5].mxu1  ;;  %v728_v10 = vpop.f32.mrb[6].mxu0 }
 0x120   : > { %v850_v11 = vadd.f32 %v844_v7, %v731_v6  ;;  %v847_v12 = vpop.f32.mrb[6].mxu1  ;;  %v2965_v13 = vpop.f32.mrb[7].mxu0 }
 0x121   : > { %v2985_v14 = vpop.f32.mrb[7].mxu1 }
 0x13d   : > { %v951_v15 = vpop.f32.mrb[8].mxu0 }
 0x13e   : > { %v957_v16 = vadd.f32 %v951_v15, %v850_v11  ;;  %v1069_v17 = vpop.f32.mrb[8].mxu1  ;;  %v3004_v1 = vpop.f32.mrb[9].mxu0 }
 0x13f   : > { %v3024_v18 = vpop.f32.mrb[9].mxu1  ;;  %v954_v19 = vpop.f32.mrb[10].mxu0 }
 0x140   : > { %v1075_v20 = vadd.f32 %v1069_v17, %v957_v16  ;;  %v1072_v21 = vpop.f32.mrb[10].mxu1  ;;  %v3005_v22 = vpop.f32.mrb[11].mxu0 }
 0x141   : > { %v3025_v23 = vpop.f32.mrb[11].mxu1 }
 0x15d   : > { %v1181_v24 = vpop.f32.mrb[12].mxu0 }
 0x15e   : > { %v1187_v25 = vadd.f32 %v1181_v24, %v1075_v20  ;;  %v1300_v26 = vpop.f32.mrb[12].mxu1  ;;  %v3044_v27 = vpop.f32.mrb[13].mxu0 }
 0x15f   : > { %v3064_v28 = vpop.f32.mrb[13].mxu1  ;;  %v1184_v29 = vpop.f32.mrb[14].mxu0 }
 0x160   : > { %v1306_v30 = vadd.f32 %v1300_v26, %v1187_v25  ;;  %v1303_v31 = vpop.f32.mrb[14].mxu1  ;;  %v3045_v32 = vpop.f32.mrb[15].mxu0 }
 0x161   : > { %v3065_v33 = vpop.f32.mrb[15].mxu1 }
 0x17d   : > { %v1407_v34 = vpop.f32.mrb[16].mxu0 }
 0x17e   : > { %v1413_v35 = vadd.f32 %v1407_v34, %v1306_v30  ;;  %v1525_v36 = vpop.f32.mrb[16].mxu1  ;;  %v3084_v37 = vpop.f32.mrb[17].mxu0 }
 0x17f   : > { %v3104_v38 = vpop.f32.mrb[17].mxu1  ;;  %v1410_v39 = vpop.f32.mrb[18].mxu0 }
 0x180   : > { %v1531_v40 = vadd.f32 %v1525_v36, %v1413_v35  ;;  %v1528_v41 = vpop.f32.mrb[18].mxu1  ;;  %v3085_v42 = vpop.f32.mrb[19].mxu0 }
 0x181   : > { %v3105_v43 = vpop.f32.mrb[19].mxu1 }
 0x19d   : > { %v1637_v44 = vpop.f32.mrb[20].mxu0 }
 0x19e   : > { %v1643_v45 = vadd.f32 %v1637_v44, %v1531_v40  ;;  %v1756_v46 = vpop.f32.mrb[20].mxu1  ;;  %v3124_v47 = vpop.f32.mrb[21].mxu0 }
 0x19f   : > { %v3144_v48 = vpop.f32.mrb[21].mxu1  ;;  %v1640_v49 = vpop.f32.mrb[22].mxu0 }
 0x1a0   : > { %v1762_v50 = vadd.f32 %v1756_v46, %v1643_v45  ;;  %v1759_v51 = vpop.f32.mrb[22].mxu1  ;;  %v3125_v52 = vpop.f32.mrb[23].mxu0 }
 0x1a1   : > { %v3145_v53 = vpop.f32.mrb[23].mxu1 }
 0x1bd   : > { %v1863_v54 = vpop.f32.mrb[24].mxu0 }
 0x1be   : > { %v1869_v55 = vadd.f32 %v1863_v54, %v1762_v50  ;;  %v1981_v56 = vpop.f32.mrb[24].mxu1  ;;  %v3164_v57 = vpop.f32.mrb[25].mxu0 }
 0x1bf   : > { %v3184_v58 = vpop.f32.mrb[25].mxu1  ;;  %v1866_v59 = vpop.f32.mrb[26].mxu0 }
 0x1c0   : > { %v1987_v60 = vadd.f32 %v1981_v56, %v1869_v55  ;;  %v1984_v61 = vpop.f32.mrb[26].mxu1  ;;  %v3165_v62 = vpop.f32.mrb[27].mxu0 }
 0x1c1   : > { %v3185_v63 = vpop.f32.mrb[27].mxu1 }
 0x1dd   : > { %v2093_v0 = vpop.f32.mrb[28].mxu0 }
 0x1de   : > { %v2099_v2 = vadd.f32 %v2093_v0, %v1987_v60  ;;  %v2212_v3 = vpop.f32.mrb[28].mxu1  ;;  %v3204_v4 = vpop.f32.mrb[29].mxu0 }
 0x1df   : > { %v3224_v6 = vpop.f32.mrb[29].mxu1  ;;  %v2096_v7 = vpop.f32.mrb[30].mxu0 }
 0x1e0   : > { %v2218_v8 = vadd.f32 %v2212_v3, %v2099_v2  ;;  %v2215_v9 = vpop.f32.mrb[30].mxu1  ;;  %v3205_v10 = vpop.f32.mrb[31].mxu0 }
 0x1e1   : > { %v3225_v11 = vpop.f32.mrb[31].mxu1 }
 0x1e2   : > { %v2226_v12 = vadd.f32 %v2759_v5, %v2218_v8 }
 0x1e4   : > { %2227 = vst [vmem:[%s396_s17] sm:$0x3] %v2226_v12 }
 0x1e5 PF: > { %s16_s25 = sadd.s32 1, %s3447_s25   ;;  %s4147_s21 = smov %s3439_s23 }
 0x1e6   : > { %p13_p11 = scmp.ge.s32.totalorder %s16_s25, 6   ;;  %s4148_s22 = smov %s3443_s24 }
 0x1e7   : > { %s4149_s23 = smov %s4152_s26  ;;  %s4150_s24 = smov %s4156_s27 }
 0x1e8   :  { %15 = sbr.rel (!%p13_p11) target bundleno = 3 (0x3), region = 98 }

</bundles_post_ra>
